<compile_context>
chip_gen: v7x
topology: tpu7x:2x2x1
jax: 0.10.0
libtpu: 0.0.40
codegen_flags: <defaults>
</compile_context>

<pallas_src>
import functools
import numpy as np
import jax
import jax.numpy as jnp
from jax.experimental import pallas as pl
from jax.experimental.pallas import tpu as pltpu

# ----- stubbed pysc2 action ids ------------------------------------------------
_NO_OP = 0
_SELECT_ARMY = 7
_MOVE_SCREEN = 12            # actions.FUNCTIONS.Attack_screen.id
ACTION_DICT = {0: _NO_OP, 1: _SELECT_ARMY, 2: _MOVE_SCREEN}

# ----- OheNet hyper-parameters (repo defaults) ----------------------------------
K_OUT = 24                   # conv output channels
N_FEATURES = 32              # OheNet.n_features
PIX_HIDDEN = 128             # pixel residual hidden dim
PIX_NRES = 4
FEAT_HIDDEN = 64             # feature residual hidden dim
FEAT_NRES = 4
ACTION_SPACE = 3
EPS = 1e-5                   # LayerNorm eps (PyTorch default)


def _layernorm(x, w, b):
    mu = jnp.mean(x, axis=-1, keepdims=True)
    var = jnp.mean((x - mu) ** 2, axis=-1, keepdims=True)
    return (x - mu) * jax.lax.rsqrt(var + EPS) * w + b


# ================================ Pallas kernel ================================
def ohe_actor_kernel(patches_ref, convw_ref, convb_ref, projw_ref, posproj_ref,
                     pw1_ref, pb1_ref, pw2_ref, pb2_ref,
                     fw1_ref, fb1_ref, fw2_ref, fb2_ref,
                     linw_ref, linb_ref, mask_ref,
                     out_ref, xscr_ref, vscr_ref,
                     *, b_blk, n_pix, row_stride, n_actions):
    bf16, f32 = jnp.bfloat16, jnp.float32
    F = N_FEATURES
    P = n_pix

    # --- conv3x3 (im2col) + ReLU + projection: shared weights, batch on sublanes ---
    pT = patches_ref[0]                                                     # (b*Pr, C9) bf16
    h = jnp.dot(pT, convw_ref[...], preferred_element_type=f32)
    h = jnp.maximum(h + convb_ref[...], 0.0)                                # (b*Pr, K)
    x_all = jnp.dot(h.astype(bf16), projw_ref[...], preferred_element_type=f32)  # (b*Pr, F)

    # relayout (b, P, F) -> (P, b*F) through a VMEM scratch; add positional encoding
    pos = posproj_ref[...]                                                  # (P, F) f32
    for b in range(b_blk):
        xscr_ref[:, b * F:(b + 1) * F] = (
            x_all[b * row_stride:b * row_stride + P, :] + pos)
    x = xscr_ref[...]                                                       # (P, b*F) f32

    # --- pixel residual block: LN over pixels (sublanes), Linear(P->H->P), shared weights ---
    # LayerNorm affine is pre-folded into pw1/pb1; variance is one-pass (E[x^2]-mu^2).
    inv_p = 1.0 / P
    for l in range(PIX_NRES):
        mu = jnp.sum(x, axis=0, keepdims=True) * inv_p                      # (1, b*F)
        var = jnp.sum(x * x, axis=0, keepdims=True) * inv_p - mu * mu
        z = ((x - mu) * jax.lax.rsqrt(var + EPS)).astype(bf16)              # (P, b*F)
        h1 = jnp.dot(pw1_ref[l], z, preferred_element_type=f32) + pb1_ref[l]
        h1 = jnp.maximum(h1, 0.0).astype(bf16)                              # (H, b*F)
        x = x + jnp.dot(pw2_ref[l], h1, preferred_element_type=f32) + pb2_ref[l]

    # --- featurewise max-pool over pixels; relayout (1, b*F) -> (b_blk, F) ---
    vmax = jnp.max(x, axis=0, keepdims=True)                                # (1, b*F)
    for b in range(b_blk):
        vscr_ref[b:b + 1, :] = vmax[:, b * F:(b + 1) * F]
    v = vscr_ref[...]                                                       # (b_blk, F) f32

    # --- feature residual block: shared weights, LN affine folded into fw1/fb1 ---
    inv_f = 1.0 / F
    for l in range(FEAT_NRES):
        mu = jnp.sum(v, axis=-1, keepdims=True) * inv_f                     # (b_blk, 1)
        var = jnp.sum(v * v, axis=-1, keepdims=True) * inv_f - mu * mu
        z = ((v - mu) * jax.lax.rsqrt(var + EPS)).astype(bf16)
        h1 = jnp.maximum(
            jnp.dot(z, fw1_ref[l], preferred_element_type=f32) + fb1_ref[l], 0.0)
        v = v + jnp.dot(h1.astype(bf16), fw2_ref[l], preferred_element_type=f32) + fb2_ref[l]

    # --- actor head: linear -> mask unavailable -> log_softmax (vectorized, one store) ---
    logits = jnp.dot(v.astype(bf16), linw_ref[...], preferred_element_type=f32) + linb_ref[...]
    logits = jnp.where(mask_ref[...] > 0.5, -jnp.inf, logits)               # (b_blk, A)
    m = jnp.max(logits, axis=-1, keepdims=True)
    zl = logits - m
    lp = zl - jnp.log(jnp.sum(jnp.exp(zl), axis=-1, keepdims=True))
    out_ref[...] = lp[None]                                                 # (1, b_blk, A)


# ================================ glue (plain JAX) ==============================
def im2col_3x3_valid(x_nchw):
    """(B, C, H, W) -> (B, C*9, (H-2)*(W-2)); column order = c*9 + dy*3 + dx."""
    B, C, H, W = x_nchw.shape
    Ho, Wo = H - 2, W - 2
    cols = []
    for c in range(C):
        for dy in range(3):
            for dx in range(3):
                cols.append(x_nchw[:, c, dy:dy + Ho, dx:dx + Wo].reshape(B, Ho * Wo))
    return jnp.stack(cols, axis=1)


def get_action_mask(available_actions):
    """Mirrors OheActor.get_action_mask: True = unavailable (masked to -inf)."""
    return ~np.array([ACTION_DICT[i] in available_actions for i in ACTION_DICT.keys()])


def init_params(key, c_in, map_size):
    P = map_size * map_size
    ks = jax.random.split(key, 18)

    def nrm(k, shape, fan_in):
        return (jax.random.normal(k, shape, jnp.float32) / np.sqrt(fan_in)).astype(jnp.float32)

    conv_w = nrm(ks[0], (K_OUT, c_in * 9), c_in * 9)
    conv_b = nrm(ks[1], (K_OUT,), c_in * 9)

    proj_full = nrm(ks[2], (N_FEATURES, K_OUT + 2), K_OUT + 2)
    proj_b = nrm(ks[3], (N_FEATURES, 1), K_OUT + 2)
    proj_w = proj_full[:, :K_OUT]
    proj_w_pos = proj_full[:, K_OUT:]

    lin = jnp.linspace(-1.0, 1.0, map_size)
    xx = jnp.repeat(lin[:, None], map_size, axis=1)
    yy = jnp.repeat(lin[None, :], map_size, axis=0)
    pos = jnp.stack([xx.reshape(-1), yy.reshape(-1)], axis=0)            # (2, P)
    pos_proj = (proj_w_pos @ pos + proj_b).astype(jnp.float32)           # (F, P)

    pix_ln_w = (1.0 + 0.01 * jax.random.normal(ks[4], (PIX_NRES, 1, P))).astype(jnp.float32)
    pix_ln_b = (0.01 * jax.random.normal(ks[5], (PIX_NRES, 1, P))).astype(jnp.float32)
    pix_w1 = nrm(ks[6], (PIX_NRES, P, PIX_HIDDEN), P)
    pix_b1 = nrm(ks[7], (PIX_NRES, 1, PIX_HIDDEN), P)
    pix_w2 = nrm(ks[8], (PIX_NRES, PIX_HIDDEN, P), PIX_HIDDEN)
    pix_b2 = nrm(ks[9], (PIX_NRES, 1, P), PIX_HIDDEN)

    feat_ln_w = (1.0 + 0.01 * jax.random.normal(ks[10], (FEAT_NRES, 1, N_FEATURES))).astype(jnp.float32)
    feat_ln_b = (0.01 * jax.random.normal(ks[11], (FEAT_NRES, 1, N_FEATURES))).astype(jnp.float32)
    feat_w1 = nrm(ks[12], (FEAT_NRES, N_FEATURES, FEAT_HIDDEN), N_FEATURES)
    feat_b1 = nrm(ks[13], (FEAT_NRES, 1, FEAT_HIDDEN), N_FEATURES)
    feat_w2 = nrm(ks[14], (FEAT_NRES, FEAT_HIDDEN, N_FEATURES), FEAT_HIDDEN)
    feat_b2 = nrm(ks[15], (FEAT_NRES, 1, N_FEATURES), FEAT_HIDDEN)

    lin_w = nrm(ks[16], (N_FEATURES, ACTION_SPACE), N_FEATURES)
    lin_b = nrm(ks[17], (1, ACTION_SPACE), N_FEATURES)

    return dict(conv_w=conv_w, conv_b=conv_b, proj_w=proj_w, pos_proj=pos_proj,
                pix_ln_w=pix_ln_w, pix_ln_b=pix_ln_b, pix_w1=pix_w1, pix_b1=pix_b1,
                pix_w2=pix_w2, pix_b2=pix_b2,
                feat_ln_w=feat_ln_w, feat_ln_b=feat_ln_b, feat_w1=feat_w1, feat_b1=feat_b1,
                feat_w2=feat_w2, feat_b2=feat_b2,
                lin_w=lin_w, lin_b=lin_b)


def pack_kernel_params(p):
    """One-time repack: transpose to kernel layout, fold LayerNorm affine into the following
    linear (col/row scale + bias fold), cast matmul weights to bf16.  Batch-size independent
    (no block-diagonal / tiled weights)."""
    f32, bf16 = jnp.float32, jnp.bfloat16

    # fold pixel-LN affine into pix_w1 / pix_b1
    pix_w1f = p['pix_w1'] * jnp.transpose(p['pix_ln_w'], (0, 2, 1))         # (L,P,H)
    pix_b1f = p['pix_b1'] + jnp.einsum('lqp,lph->lqh', p['pix_ln_b'], p['pix_w1'])  # (L,1,H)
    # fold feature-LN affine into feat_w1 / feat_b1
    feat_w1f = p['feat_w1'] * jnp.transpose(p['feat_ln_w'], (0, 2, 1))      # (L,F,FH)
    feat_b1f = p['feat_b1'] + jnp.einsum('lqf,lfh->lqh', p['feat_ln_b'], p['feat_w1'])

    return dict(
        conv_w=p['conv_w'].T.astype(bf16),                                  # (C9, K)
        conv_b=p['conv_b'][None, :].astype(f32),                            # (1, K)
        proj_w=p['proj_w'].T.astype(bf16),                                  # (K, F)
        pos_proj=p['pos_proj'].T.astype(f32),                               # (P, F)
        pix_w1=jnp.transpose(pix_w1f, (0, 2, 1)).astype(bf16),              # (L, H, P)
        pix_b1=jnp.transpose(pix_b1f, (0, 2, 1)).astype(f32),               # (L, H, 1)
        pix_w2=jnp.transpose(p['pix_w2'], (0, 2, 1)).astype(bf16),          # (L, P, H)
        pix_b2=jnp.transpose(p['pix_b2'], (0, 2, 1)).astype(f32),           # (L, P, 1)
        feat_w1=feat_w1f.astype(bf16),                                      # (L, F, FH)
        feat_b1=feat_b1f.astype(f32),                                       # (L, 1, FH)
        feat_w2=p['feat_w2'].astype(bf16),                                  # (L, FH, F)
        feat_b2=p['feat_b2'].astype(f32),                                   # (L, 1, F)
        lin_w=p['lin_w'].astype(bf16),                                      # (F, A)
        lin_b=p['lin_b'].astype(f32),                                       # (1, A)
    )


def ohe_actor_forward(state_nchw, mask_bool, kparams, b_blk=8):
    B, C, H, W = state_nchw.shape
    map_size = H - 2
    P = map_size * map_size
    Pr = ((P + 7) // 8) * 8            # per-element row stride, sublane aligned
    C9 = C * 9
    A = ACTION_SPACE
    F = N_FEATURES

    # keep at least 2 grid steps when the batch allows (v7x dual TensorCore)
    if B > 1:
        b_blk = max(1, min(b_blk, (B + 1) // 2))
    else:
        b_blk = 1
    nblk = pl.cdiv(B, b_blk)
    B_pad = nblk * b_blk

    patches = im2col_3x3_valid(state_nchw.astype(jnp.float32))              # (B, C9, P)
    pt = jnp.transpose(patches, (0, 2, 1))                                  # (B, P, C9)
    pt = jnp.pad(pt, ((0, B_pad - B), (0, Pr - P), (0, 0)))                 # (B_pad, Pr, C9)
    patches_t = pt.reshape(nblk, b_blk * Pr, C9).astype(jnp.bfloat16)

    mask_f = jnp.asarray(np.asarray(mask_bool), jnp.float32).reshape(1, A)

    kp = kparams
    args = (patches_t, kp['conv_w'], kp['conv_b'], kp['proj_w'], kp['pos_proj'],
            kp['pix_w1'], kp['pix_b1'], kp['pix_w2'], kp['pix_b2'],
            kp['feat_w1'], kp['feat_b1'], kp['feat_w2'], kp['feat_b2'],
            kp['lin_w'], kp['lin_b'], mask_f)

    def full_spec(x):
        nd = x.ndim
        shp = x.shape
        return pl.BlockSpec(shp, lambda g: (0,) * nd)

    in_specs = [pl.BlockSpec((1, b_blk * Pr, C9), lambda g: (g, 0, 0))]
    in_specs += [full_spec(a) for a in args[1:]]

    flops = nblk * (2 * b_blk * Pr * C9 * K_OUT
                    + 2 * b_blk * Pr * K_OUT * F
                    + PIX_NRES * 4 * P * PIX_HIDDEN * (b_blk * F)
                    + FEAT_NRES * 4 * b_blk * F * FEAT_HIDDEN
                    + 2 * b_blk * F * A)
    bytes_accessed = sum(int(np.prod(a.shape)) * a.dtype.itemsize for a in args) + B_pad * A * 4
    cost = pl.CostEstimate(
        flops=int(flops),
        transcendentals=int(B_pad * (A + 2 * (PIX_NRES * F + FEAT_NRES))),
        bytes_accessed=int(bytes_accessed))

    out = pl.pallas_call(
        functools.partial(ohe_actor_kernel, b_blk=b_blk, n_pix=P, row_stride=Pr, n_actions=A),
        out_shape=jax.ShapeDtypeStruct((nblk, b_blk, A), jnp.float32),
        grid=(nblk,),
        in_specs=in_specs,
        out_specs=pl.BlockSpec((1, b_blk, A), lambda g: (g, 0, 0)),
        scratch_shapes=[pltpu.VMEM((P, b_blk * F), jnp.float32),
                        pltpu.VMEM((b_blk, F), jnp.float32)],
        compiler_params=pltpu.CompilerParams(dimension_semantics=("parallel",)),
        cost_estimate=cost,
    )(*args)
    return out.reshape(B_pad, A)[:B]


# ----- pure-JAX reference (mirrors the module's math with bf16 matmuls / f32 accumulate) ----
def _bf16(x):
    return x.astype(jnp.bfloat16)


def reference_forward(state_nchw, mask_bool, p):
    patches = im2col_3x3_valid(state_nchw.astype(jnp.float32))              # (B, C9, P)
    h = jnp.einsum('kc,bcp->bkp', _bf16(p['conv_w']), _bf16(patches),
                   preferred_element_type=jnp.float32)
    h = jnp.maximum(h + p['conv_b'][None, :, None], 0.0)
    x = jnp.einsum('fk,bkp->bfp', _bf16(p['proj_w']), _bf16(h),
                   preferred_element_type=jnp.float32) + p['pos_proj'][None]
    for l in range(PIX_NRES):
        y = _layernorm(x, p['pix_ln_w'][l], p['pix_ln_b'][l])
        h1 = jnp.maximum(jnp.einsum('bfp,ph->bfh', _bf16(y), _bf16(p['pix_w1'][l]),
                                    preferred_element_type=jnp.float32) + p['pix_b1'][l], 0.0)
        x = x + jnp.einsum('bfh,hp->bfp', _bf16(h1), _bf16(p['pix_w2'][l]),
                           preferred_element_type=jnp.float32) + p['pix_b2'][l]
    v = jnp.max(x, axis=-1)                                                 # (B, F)
    for l in range(FEAT_NRES):
        y = _layernorm(v, p['feat_ln_w'][l], p['feat_ln_b'][l])
        h1 = jnp.maximum(jnp.dot(_bf16(y), _bf16(p['feat_w1'][l]),
                                 preferred_element_type=jnp.float32) + p['feat_b1'][l], 0.0)
        v = v + jnp.dot(_bf16(h1), _bf16(p['feat_w2'][l]),
                        preferred_element_type=jnp.float32) + p['feat_b2'][l]
    logits = jnp.dot(_bf16(v), _bf16(p['lin_w']), preferred_element_type=jnp.float32) + p['lin_b']
    logits = jnp.where(jnp.asarray(np.asarray(mask_bool))[None, :], -jnp.inf, logits)
    return jax.nn.log_softmax(logits, axis=-1)


if __name__ == "__main__":
    key = jax.random.PRNGKey(0)
    k_state, k_params = jax.random.split(key)

    B, C, H, W = 6, 4, 16, 16                 # map_size = 14, P = 196
    state = jax.random.normal(k_state, (B, C, H, W), jnp.float32)
    params = init_params(k_params, C, H - 2)
    kparams = pack_kernel_params(params)

    available_actions = [_NO_OP, _SELECT_ARMY]   # Attack_screen unavailable -> masked
    mask = get_action_mask(available_actions)

    log_probs = ohe_actor_forward(state, mask, kparams, b_blk=4)
    jax.block_until_ready(log_probs)

    ref = reference_forward(state, mask, params)
    assert log_probs.shape == (B, ACTION_SPACE)
    np.testing.assert_allclose(np.asarray(log_probs), np.asarray(ref), rtol=3e-2, atol=3e-2)
    print("KERNEL_OK")
</pallas_src>

<mosaic_0001>
module attributes {stable_mosaic.version = 11 : i64} {
  func.func @ohe_actor_kernel(%arg0: i32, %arg1: memref<1x600x36xbf16, #tpu.memory_space<vmem>>, %arg2: memref<36x24xbf16, #tpu.memory_space<vmem>>, %arg3: memref<1x24xf32, #tpu.memory_space<vmem>>, %arg4: memref<24x32xbf16, #tpu.memory_space<vmem>>, %arg5: memref<196x32xf32, #tpu.memory_space<vmem>>, %arg6: memref<4x128x196xbf16, #tpu.memory_space<vmem>>, %arg7: memref<4x128x1xf32, #tpu.memory_space<vmem>>, %arg8: memref<4x196x128xbf16, #tpu.memory_space<vmem>>, %arg9: memref<4x196x1xf32, #tpu.memory_space<vmem>>, %arg10: memref<4x32x64xbf16, #tpu.memory_space<vmem>>, %arg11: memref<4x1x64xf32, #tpu.memory_space<vmem>>, %arg12: memref<4x64x32xbf16, #tpu.memory_space<vmem>>, %arg13: memref<4x1x32xf32, #tpu.memory_space<vmem>>, %arg14: memref<32x3xbf16, #tpu.memory_space<vmem>>, %arg15: memref<1x3xf32, #tpu.memory_space<vmem>>, %arg16: memref<1x3xf32, #tpu.memory_space<vmem>>, %arg17: memref<1x3x3xf32, #tpu.memory_space<vmem>>, %arg18: memref<196x96xf32, #tpu.memory_space<vmem>>, %arg19: memref<3x32xf32, #tpu.memory_space<vmem>>) attributes {dimension_semantics = [#tpu.dimension_semantics<parallel>], iteration_bounds = array<i64: 2>, scalar_prefetch = 0 : i64, scratch_operands = 2 : i64, tpu.core_type = #tpu.core_type<tc>, window_params = [{transform_indices = @transform_0, window_bounds = array<i64: 1, 600, 36>}, {pipeline_mode = #tpu.pipeline_mode<synchronous>, transform_indices = @transform_1, window_bounds = array<i64: 36, 24>}, {pipeline_mode = #tpu.pipeline_mode<synchronous>, transform_indices = @transform_2, window_bounds = array<i64: 1, 24>}, {pipeline_mode = #tpu.pipeline_mode<synchronous>, transform_indices = @transform_3, window_bounds = array<i64: 24, 32>}, {pipeline_mode = #tpu.pipeline_mode<synchronous>, transform_indices = @transform_4, window_bounds = array<i64: 196, 32>}, {pipeline_mode = #tpu.pipeline_mode<synchronous>, transform_indices = @transform_5, window_bounds = array<i64: 4, 128, 196>}, {pipeline_mode = #tpu.pipeline_mode<synchronous>, transform_indices = @transform_6, window_bounds = array<i64: 4, 128, 1>}, {pipeline_mode = #tpu.pipeline_mode<synchronous>, transform_indices = @transform_7, window_bounds = array<i64: 4, 196, 128>}, {pipeline_mode = #tpu.pipeline_mode<synchronous>, transform_indices = @transform_8, window_bounds = array<i64: 4, 196, 1>}, {pipeline_mode = #tpu.pipeline_mode<synchronous>, transform_indices = @transform_9, window_bounds = array<i64: 4, 32, 64>}, {pipeline_mode = #tpu.pipeline_mode<synchronous>, transform_indices = @transform_10, window_bounds = array<i64: 4, 1, 64>}, {pipeline_mode = #tpu.pipeline_mode<synchronous>, transform_indices = @transform_11, window_bounds = array<i64: 4, 64, 32>}, {pipeline_mode = #tpu.pipeline_mode<synchronous>, transform_indices = @transform_12, window_bounds = array<i64: 4, 1, 32>}, {pipeline_mode = #tpu.pipeline_mode<synchronous>, transform_indices = @transform_13, window_bounds = array<i64: 32, 3>}, {pipeline_mode = #tpu.pipeline_mode<synchronous>, transform_indices = @transform_14, window_bounds = array<i64: 1, 3>}, {pipeline_mode = #tpu.pipeline_mode<synchronous>, transform_indices = @transform_15, window_bounds = array<i64: 1, 3>}, {transform_indices = @transform_16, window_bounds = array<i64: 1, 3, 3>}]} {
    %c0 = arith.constant 0 : index
    %c0_0 = arith.constant 0 : index
    %c0_1 = arith.constant 0 : index
    %0 = vector.load %arg1[%c0, %c0_0, %c0_1] : memref<1x600x36xbf16, #tpu.memory_space<vmem>>, vector<1x600x36xbf16>
    %1 = vector.shape_cast %0 : vector<1x600x36xbf16> to vector<600x36xbf16>
    %c0_2 = arith.constant 0 : index
    %c0_3 = arith.constant 0 : index
    %2 = vector.load %arg2[%c0_2, %c0_3] : memref<36x24xbf16, #tpu.memory_space<vmem>>, vector<36x24xbf16>
    %cst = arith.constant dense<0.000000e+00> : vector<600x24xf32>
    %3 = tpu.matmul %1, %2, %cst {dimension_numbers = #tpu.dot_dimension_numbers<[1], [0], [0], [1], [0, 0, 1, 1], [], []>} : vector<600x36xbf16>, vector<36x24xbf16>, vector<600x24xf32> -> vector<600x24xf32>
    %c0_4 = arith.constant 0 : index
    %c0_5 = arith.constant 0 : index
    %4 = vector.load %arg3[%c0_4, %c0_5] : memref<1x24xf32, #tpu.memory_space<vmem>>, vector<1x24xf32>
    %5 = vector.broadcast %4 : vector<1x24xf32> to vector<600x24xf32>
    %6 = arith.addf %3, %5 : vector<600x24xf32>
    %cst_6 = arith.constant 0.000000e+00 : f32
    %7 = vector.broadcast %cst_6 : f32 to vector<600x24xf32>
    %8 = arith.maximumf %6, %7 : vector<600x24xf32>
    %9 = arith.truncf %8 : vector<600x24xf32> to vector<600x24xbf16>
    %c0_7 = arith.constant 0 : index
    %c0_8 = arith.constant 0 : index
    %10 = vector.load %arg4[%c0_7, %c0_8] : memref<24x32xbf16, #tpu.memory_space<vmem>>, vector<24x32xbf16>
    %cst_9 = arith.constant dense<0.000000e+00> : vector<600x32xf32>
    %11 = tpu.matmul %9, %10, %cst_9 {dimension_numbers = #tpu.dot_dimension_numbers<[1], [0], [0], [1], [0, 0, 1, 1], [], []>} : vector<600x24xbf16>, vector<24x32xbf16>, vector<600x32xf32> -> vector<600x32xf32>
    %c0_10 = arith.constant 0 : index
    %c0_11 = arith.constant 0 : index
    %12 = vector.load %arg5[%c0_10, %c0_11] : memref<196x32xf32, #tpu.memory_space<vmem>>, vector<196x32xf32>
    %13 = vector.extract_strided_slice %11 {offsets = [0, 0], sizes = [196, 32], strides = [1, 1]} : vector<600x32xf32> to vector<196x32xf32>
    %14 = arith.addf %13, %12 : vector<196x32xf32>
    %c0_12 = arith.constant 0 : index
    %c0_13 = arith.constant 0 : index
    %15 = vector.load %arg18[%c0_12, %c0_13] : memref<196x96xf32, #tpu.memory_space<vmem>>, vector<196x32xf32>
    tpu.vector_store %arg18[%c0_12, %c0_13], %14 {strides = array<i32>} : memref<196x96xf32, #tpu.memory_space<vmem>>, vector<196x32xf32>,
    %16 = vector.extract_strided_slice %11 {offsets = [200, 0], sizes = [196, 32], strides = [1, 1]} : vector<600x32xf32> to vector<196x32xf32>
    %17 = arith.addf %16, %12 : vector<196x32xf32>
    %c0_14 = arith.constant 0 : index
    %c32 = arith.constant 32 : index
    %18 = vector.load %arg18[%c0_14, %c32] : memref<196x96xf32, #tpu.memory_space<vmem>>, vector<196x32xf32>
    tpu.vector_store %arg18[%c0_14, %c32], %17 {strides = array<i32>} : memref<196x96xf32, #tpu.memory_space<vmem>>, vector<196x32xf32>,
    %19 = vector.extract_strided_slice %11 {offsets = [400, 0], sizes = [196, 32], strides = [1, 1]} : vector<600x32xf32> to vector<196x32xf32>
    %20 = arith.addf %19, %12 : vector<196x32xf32>
    %c0_15 = arith.constant 0 : index
    %c64 = arith.constant 64 : index
    %21 = vector.load %arg18[%c0_15, %c64] : memref<196x96xf32, #tpu.memory_space<vmem>>, vector<196x32xf32>
    tpu.vector_store %arg18[%c0_15, %c64], %20 {strides = array<i32>} : memref<196x96xf32, #tpu.memory_space<vmem>>, vector<196x32xf32>,
    %c0_16 = arith.constant 0 : index
    %c0_17 = arith.constant 0 : index
    %22 = vector.load %arg18[%c0_16, %c0_17] : memref<196x96xf32, #tpu.memory_space<vmem>>, vector<196x96xf32>
    %cst_18 = arith.constant dense<0.000000e+00> : vector<96xf32>
    %23 = vector.multi_reduction <add>, %22, %cst_18 [0] : vector<196x96xf32> to vector<96xf32>
    %24 = vector.shape_cast %23 : vector<96xf32> to vector<1x96xf32>
    %cst_19 = arith.constant 0.00510204071 : f32
    %25 = vector.broadcast %cst_19 : f32 to vector<1x96xf32>
    %26 = arith.mulf %24, %25 : vector<1x96xf32>
    %27 = arith.mulf %22, %22 : vector<196x96xf32>
    %cst_20 = arith.constant dense<0.000000e+00> : vector<96xf32>
    %28 = vector.multi_reduction <add>, %27, %cst_20 [0] : vector<196x96xf32> to vector<96xf32>
    %29 = vector.shape_cast %28 : vector<96xf32> to vector<1x96xf32>
    %cst_21 = arith.constant 0.00510204071 : f32
    %30 = vector.broadcast %cst_21 : f32 to vector<1x96xf32>
    %31 = arith.mulf %29, %30 : vector<1x96xf32>
    %32 = arith.mulf %26, %26 : vector<1x96xf32>
    %33 = arith.subf %31, %32 : vector<1x96xf32>
    %34 = vector.broadcast %26 : vector<1x96xf32> to vector<196x96xf32>
    %35 = arith.subf %22, %34 : vector<196x96xf32>
    %cst_22 = arith.constant 9.99999974E-6 : f32
    %36 = vector.broadcast %cst_22 : f32 to vector<1x96xf32>
    %37 = arith.addf %33, %36 : vector<1x96xf32>
    %38 = math.rsqrt %37 : vector<1x96xf32>
    %39 = vector.broadcast %38 : vector<1x96xf32> to vector<196x96xf32>
    %40 = arith.mulf %35, %39 : vector<196x96xf32>
    %41 = arith.truncf %40 : vector<196x96xf32> to vector<196x96xbf16>
    %c0_23 = arith.constant 0 : index
    %c0_24 = arith.constant 0 : index
    %c0_25 = arith.constant 0 : index
    %42 = vector.load %arg6[%c0_23, %c0_24, %c0_25] : memref<4x128x196xbf16, #tpu.memory_space<vmem>>, vector<1x128x196xbf16>
    %43 = vector.shape_cast %42 : vector<1x128x196xbf16> to vector<128x196xbf16>
    %cst_26 = arith.constant dense<0.000000e+00> : vector<128x96xf32>
    %44 = tpu.matmul %43, %41, %cst_26 {dimension_numbers = #tpu.dot_dimension_numbers<[1], [0], [0], [1], [0, 0, 1, 1], [], []>} : vector<128x196xbf16>, vector<196x96xbf16>, vector<128x96xf32> -> vector<128x96xf32>
    %c0_27 = arith.constant 0 : index
    %c0_28 = arith.constant 0 : index
    %c0_29 = arith.constant 0 : index
    %45 = vector.load %arg7[%c0_27, %c0_28, %c0_29] : memref<4x128x1xf32, #tpu.memory_space<vmem>>, vector<1x128x1xf32>
    %46 = vector.shape_cast %45 : vector<1x128x1xf32> to vector<128x1xf32>
    %47 = vector.broadcast %46 : vector<128x1xf32> to vector<128x96xf32>
    %48 = arith.addf %44, %47 : vector<128x96xf32>
    %cst_30 = arith.constant 0.000000e+00 : f32
    %49 = vector.broadcast %cst_30 : f32 to vector<128x96xf32>
    %50 = arith.maximumf %48, %49 : vector<128x96xf32>
    %51 = arith.truncf %50 : vector<128x96xf32> to vector<128x96xbf16>
    %c0_31 = arith.constant 0 : index
    %c0_32 = arith.constant 0 : index
    %c0_33 = arith.constant 0 : index
    %52 = vector.load %arg8[%c0_31, %c0_32, %c0_33] : memref<4x196x128xbf16, #tpu.memory_space<vmem>>, vector<1x196x128xbf16>
    %53 = vector.shape_cast %52 : vector<1x196x128xbf16> to vector<196x128xbf16>
    %cst_34 = arith.constant dense<0.000000e+00> : vector<196x96xf32>
    %54 = tpu.matmul %53, %51, %cst_34 {dimension_numbers = #tpu.dot_dimension_numbers<[1], [0], [0], [1], [0, 0, 1, 1], [], []>} : vector<196x128xbf16>, vector<128x96xbf16>, vector<196x96xf32> -> vector<196x96xf32>
    %55 = arith.addf %22, %54 : vector<196x96xf32>
    %c0_35 = arith.constant 0 : index
    %c0_36 = arith.constant 0 : index
    %c0_37 = arith.constant 0 : index
    %56 = vector.load %arg9[%c0_35, %c0_36, %c0_37] : memref<4x196x1xf32, #tpu.memory_space<vmem>>, vector<1x196x1xf32>
    %57 = vector.shape_cast %56 : vector<1x196x1xf32> to vector<196x1xf32>
    %58 = vector.broadcast %57 : vector<196x1xf32> to vector<196x96xf32>
    %59 = arith.addf %55, %58 : vector<196x96xf32>
    %cst_38 = arith.constant dense<0.000000e+00> : vector<96xf32>
    %60 = vector.multi_reduction <add>, %59, %cst_38 [0] : vector<196x96xf32> to vector<96xf32>
    %61 = vector.shape_cast %60 : vector<96xf32> to vector<1x96xf32>
    %cst_39 = arith.constant 0.00510204071 : f32
    %62 = vector.broadcast %cst_39 : f32 to vector<1x96xf32>
    %63 = arith.mulf %61, %62 : vector<1x96xf32>
    %64 = arith.mulf %59, %59 : vector<196x96xf32>
    %cst_40 = arith.constant dense<0.000000e+00> : vector<96xf32>
    %65 = vector.multi_reduction <add>, %64, %cst_40 [0] : vector<196x96xf32> to vector<96xf32>
    %66 = vector.shape_cast %65 : vector<96xf32> to vector<1x96xf32>
    %cst_41 = arith.constant 0.00510204071 : f32
    %67 = vector.broadcast %cst_41 : f32 to vector<1x96xf32>
    %68 = arith.mulf %66, %67 : vector<1x96xf32>
    %69 = arith.mulf %63, %63 : vector<1x96xf32>
    %70 = arith.subf %68, %69 : vector<1x96xf32>
    %71 = vector.broadcast %63 : vector<1x96xf32> to vector<196x96xf32>
    %72 = arith.subf %59, %71 : vector<196x96xf32>
    %cst_42 = arith.constant 9.99999974E-6 : f32
    %73 = vector.broadcast %cst_42 : f32 to vector<1x96xf32>
    %74 = arith.addf %70, %73 : vector<1x96xf32>
    %75 = math.rsqrt %74 : vector<1x96xf32>
    %76 = vector.broadcast %75 : vector<1x96xf32> to vector<196x96xf32>
    %77 = arith.mulf %72, %76 : vector<196x96xf32>
    %78 = arith.truncf %77 : vector<196x96xf32> to vector<196x96xbf16>
    %c1 = arith.constant 1 : index
    %c0_43 = arith.constant 0 : index
    %c0_44 = arith.constant 0 : index
    %79 = vector.load %arg6[%c1, %c0_43, %c0_44] : memref<4x128x196xbf16, #tpu.memory_space<vmem>>, vector<1x128x196xbf16>
    %80 = vector.shape_cast %79 : vector<1x128x196xbf16> to vector<128x196xbf16>
    %cst_45 = arith.constant dense<0.000000e+00> : vector<128x96xf32>
    %81 = tpu.matmul %80, %78, %cst_45 {dimension_numbers = #tpu.dot_dimension_numbers<[1], [0], [0], [1], [0, 0, 1, 1], [], []>} : vector<128x196xbf16>, vector<196x96xbf16>, vector<128x96xf32> -> vector<128x96xf32>
    %c1_46 = arith.constant 1 : index
    %c0_47 = arith.constant 0 : index
    %c0_48 = arith.constant 0 : index
    %82 = vector.load %arg7[%c1_46, %c0_47, %c0_48] : memref<4x128x1xf32, #tpu.memory_space<vmem>>, vector<1x128x1xf32>
    %83 = vector.shape_cast %82 : vector<1x128x1xf32> to vector<128x1xf32>
    %84 = vector.broadcast %83 : vector<128x1xf32> to vector<128x96xf32>
    %85 = arith.addf %81, %84 : vector<128x96xf32>
    %cst_49 = arith.constant 0.000000e+00 : f32
    %86 = vector.broadcast %cst_49 : f32 to vector<128x96xf32>
    %87 = arith.maximumf %85, %86 : vector<128x96xf32>
    %88 = arith.truncf %87 : vector<128x96xf32> to vector<128x96xbf16>
    %c1_50 = arith.constant 1 : index
    %c0_51 = arith.constant 0 : index
    %c0_52 = arith.constant 0 : index
    %89 = vector.load %arg8[%c1_50, %c0_51, %c0_52] : memref<4x196x128xbf16, #tpu.memory_space<vmem>>, vector<1x196x128xbf16>
    %90 = vector.shape_cast %89 : vector<1x196x128xbf16> to vector<196x128xbf16>
    %cst_53 = arith.constant dense<0.000000e+00> : vector<196x96xf32>
    %91 = tpu.matmul %90, %88, %cst_53 {dimension_numbers = #tpu.dot_dimension_numbers<[1], [0], [0], [1], [0, 0, 1, 1], [], []>} : vector<196x128xbf16>, vector<128x96xbf16>, vector<196x96xf32> -> vector<196x96xf32>
    %92 = arith.addf %59, %91 : vector<196x96xf32>
    %c1_54 = arith.constant 1 : index
    %c0_55 = arith.constant 0 : index
    %c0_56 = arith.constant 0 : index
    %93 = vector.load %arg9[%c1_54, %c0_55, %c0_56] : memref<4x196x1xf32, #tpu.memory_space<vmem>>, vector<1x196x1xf32>
    %94 = vector.shape_cast %93 : vector<1x196x1xf32> to vector<196x1xf32>
    %95 = vector.broadcast %94 : vector<196x1xf32> to vector<196x96xf32>
    %96 = arith.addf %92, %95 : vector<196x96xf32>
    %cst_57 = arith.constant dense<0.000000e+00> : vector<96xf32>
    %97 = vector.multi_reduction <add>, %96, %cst_57 [0] : vector<196x96xf32> to vector<96xf32>
    %98 = vector.shape_cast %97 : vector<96xf32> to vector<1x96xf32>
    %cst_58 = arith.constant 0.00510204071 : f32
    %99 = vector.broadcast %cst_58 : f32 to vector<1x96xf32>
    %100 = arith.mulf %98, %99 : vector<1x96xf32>
    %101 = arith.mulf %96, %96 : vector<196x96xf32>
    %cst_59 = arith.constant dense<0.000000e+00> : vector<96xf32>
    %102 = vector.multi_reduction <add>, %101, %cst_59 [0] : vector<196x96xf32> to vector<96xf32>
    %103 = vector.shape_cast %102 : vector<96xf32> to vector<1x96xf32>
    %cst_60 = arith.constant 0.00510204071 : f32
    %104 = vector.broadcast %cst_60 : f32 to vector<1x96xf32>
    %105 = arith.mulf %103, %104 : vector<1x96xf32>
    %106 = arith.mulf %100, %100 : vector<1x96xf32>
    %107 = arith.subf %105, %106 : vector<1x96xf32>
    %108 = vector.broadcast %100 : vector<1x96xf32> to vector<196x96xf32>
    %109 = arith.subf %96, %108 : vector<196x96xf32>
    %cst_61 = arith.constant 9.99999974E-6 : f32
    %110 = vector.broadcast %cst_61 : f32 to vector<1x96xf32>
    %111 = arith.addf %107, %110 : vector<1x96xf32>
    %112 = math.rsqrt %111 : vector<1x96xf32>
    %113 = vector.broadcast %112 : vector<1x96xf32> to vector<196x96xf32>
    %114 = arith.mulf %109, %113 : vector<196x96xf32>
    %115 = arith.truncf %114 : vector<196x96xf32> to vector<196x96xbf16>
    %c2 = arith.constant 2 : index
    %c0_62 = arith.constant 0 : index
    %c0_63 = arith.constant 0 : index
    %116 = vector.load %arg6[%c2, %c0_62, %c0_63] : memref<4x128x196xbf16, #tpu.memory_space<vmem>>, vector<1x128x196xbf16>
    %117 = vector.shape_cast %116 : vector<1x128x196xbf16> to vector<128x196xbf16>
    %cst_64 = arith.constant dense<0.000000e+00> : vector<128x96xf32>
    %118 = tpu.matmul %117, %115, %cst_64 {dimension_numbers = #tpu.dot_dimension_numbers<[1], [0], [0], [1], [0, 0, 1, 1], [], []>} : vector<128x196xbf16>, vector<196x96xbf16>, vector<128x96xf32> -> vector<128x96xf32>
    %c2_65 = arith.constant 2 : index
    %c0_66 = arith.constant 0 : index
    %c0_67 = arith.constant 0 : index
    %119 = vector.load %arg7[%c2_65, %c0_66, %c0_67] : memref<4x128x1xf32, #tpu.memory_space<vmem>>, vector<1x128x1xf32>
    %120 = vector.shape_cast %119 : vector<1x128x1xf32> to vector<128x1xf32>
    %121 = vector.broadcast %120 : vector<128x1xf32> to vector<128x96xf32>
    %122 = arith.addf %118, %121 : vector<128x96xf32>
    %cst_68 = arith.constant 0.000000e+00 : f32
    %123 = vector.broadcast %cst_68 : f32 to vector<128x96xf32>
    %124 = arith.maximumf %122, %123 : vector<128x96xf32>
    %125 = arith.truncf %124 : vector<128x96xf32> to vector<128x96xbf16>
    %c2_69 = arith.constant 2 : index
    %c0_70 = arith.constant 0 : index
    %c0_71 = arith.constant 0 : index
    %126 = vector.load %arg8[%c2_69, %c0_70, %c0_71] : memref<4x196x128xbf16, #tpu.memory_space<vmem>>, vector<1x196x128xbf16>
    %127 = vector.shape_cast %126 : vector<1x196x128xbf16> to vector<196x128xbf16>
    %cst_72 = arith.constant dense<0.000000e+00> : vector<196x96xf32>
    %128 = tpu.matmul %127, %125, %cst_72 {dimension_numbers = #tpu.dot_dimension_numbers<[1], [0], [0], [1], [0, 0, 1, 1], [], []>} : vector<196x128xbf16>, vector<128x96xbf16>, vector<196x96xf32> -> vector<196x96xf32>
    %129 = arith.addf %96, %128 : vector<196x96xf32>
    %c2_73 = arith.constant 2 : index
    %c0_74 = arith.constant 0 : index
    %c0_75 = arith.constant 0 : index
    %130 = vector.load %arg9[%c2_73, %c0_74, %c0_75] : memref<4x196x1xf32, #tpu.memory_space<vmem>>, vector<1x196x1xf32>
    %131 = vector.shape_cast %130 : vector<1x196x1xf32> to vector<196x1xf32>
    %132 = vector.broadcast %131 : vector<196x1xf32> to vector<196x96xf32>
    %133 = arith.addf %129, %132 : vector<196x96xf32>
    %cst_76 = arith.constant dense<0.000000e+00> : vector<96xf32>
    %134 = vector.multi_reduction <add>, %133, %cst_76 [0] : vector<196x96xf32> to vector<96xf32>
    %135 = vector.shape_cast %134 : vector<96xf32> to vector<1x96xf32>
    %cst_77 = arith.constant 0.00510204071 : f32
    %136 = vector.broadcast %cst_77 : f32 to vector<1x96xf32>
    %137 = arith.mulf %135, %136 : vector<1x96xf32>
    %138 = arith.mulf %133, %133 : vector<196x96xf32>
    %cst_78 = arith.constant dense<0.000000e+00> : vector<96xf32>
    %139 = vector.multi_reduction <add>, %138, %cst_78 [0] : vector<196x96xf32> to vector<96xf32>
    %140 = vector.shape_cast %139 : vector<96xf32> to vector<1x96xf32>
    %cst_79 = arith.constant 0.00510204071 : f32
    %141 = vector.broadcast %cst_79 : f32 to vector<1x96xf32>
    %142 = arith.mulf %140, %141 : vector<1x96xf32>
    %143 = arith.mulf %137, %137 : vector<1x96xf32>
    %144 = arith.subf %142, %143 : vector<1x96xf32>
    %145 = vector.broadcast %137 : vector<1x96xf32> to vector<196x96xf32>
    %146 = arith.subf %133, %145 : vector<196x96xf32>
    %cst_80 = arith.constant 9.99999974E-6 : f32
    %147 = vector.broadcast %cst_80 : f32 to vector<1x96xf32>
    %148 = arith.addf %144, %147 : vector<1x96xf32>
    %149 = math.rsqrt %148 : vector<1x96xf32>
    %150 = vector.broadcast %149 : vector<1x96xf32> to vector<196x96xf32>
    %151 = arith.mulf %146, %150 : vector<196x96xf32>
    %152 = arith.truncf %151 : vector<196x96xf32> to vector<196x96xbf16>
    %c3 = arith.constant 3 : index
    %c0_81 = arith.constant 0 : index
    %c0_82 = arith.constant 0 : index
    %153 = vector.load %arg6[%c3, %c0_81, %c0_82] : memref<4x128x196xbf16, #tpu.memory_space<vmem>>, vector<1x128x196xbf16>
    %154 = vector.shape_cast %153 : vector<1x128x196xbf16> to vector<128x196xbf16>
    %cst_83 = arith.constant dense<0.000000e+00> : vector<128x96xf32>
    %155 = tpu.matmul %154, %152, %cst_83 {dimension_numbers = #tpu.dot_dimension_numbers<[1], [0], [0], [1], [0, 0, 1, 1], [], []>} : vector<128x196xbf16>, vector<196x96xbf16>, vector<128x96xf32> -> vector<128x96xf32>
    %c3_84 = arith.constant 3 : index
    %c0_85 = arith.constant 0 : index
    %c0_86 = arith.constant 0 : index
    %156 = vector.load %arg7[%c3_84, %c0_85, %c0_86] : memref<4x128x1xf32, #tpu.memory_space<vmem>>, vector<1x128x1xf32>
    %157 = vector.shape_cast %156 : vector<1x128x1xf32> to vector<128x1xf32>
    %158 = vector.broadcast %157 : vector<128x1xf32> to vector<128x96xf32>
    %159 = arith.addf %155, %158 : vector<128x96xf32>
    %cst_87 = arith.constant 0.000000e+00 : f32
    %160 = vector.broadcast %cst_87 : f32 to vector<128x96xf32>
    %161 = arith.maximumf %159, %160 : vector<128x96xf32>
    %162 = arith.truncf %161 : vector<128x96xf32> to vector<128x96xbf16>
    %c3_88 = arith.constant 3 : index
    %c0_89 = arith.constant 0 : index
    %c0_90 = arith.constant 0 : index
    %163 = vector.load %arg8[%c3_88, %c0_89, %c0_90] : memref<4x196x128xbf16, #tpu.memory_space<vmem>>, vector<1x196x128xbf16>
    %164 = vector.shape_cast %163 : vector<1x196x128xbf16> to vector<196x128xbf16>
    %cst_91 = arith.constant dense<0.000000e+00> : vector<196x96xf32>
    %165 = tpu.matmul %164, %162, %cst_91 {dimension_numbers = #tpu.dot_dimension_numbers<[1], [0], [0], [1], [0, 0, 1, 1], [], []>} : vector<196x128xbf16>, vector<128x96xbf16>, vector<196x96xf32> -> vector<196x96xf32>
    %166 = arith.addf %133, %165 : vector<196x96xf32>
    %c3_92 = arith.constant 3 : index
    %c0_93 = arith.constant 0 : index
    %c0_94 = arith.constant 0 : index
    %167 = vector.load %arg9[%c3_92, %c0_93, %c0_94] : memref<4x196x1xf32, #tpu.memory_space<vmem>>, vector<1x196x1xf32>
    %168 = vector.shape_cast %167 : vector<1x196x1xf32> to vector<196x1xf32>
    %169 = vector.broadcast %168 : vector<196x1xf32> to vector<196x96xf32>
    %170 = arith.addf %166, %169 : vector<196x96xf32>
    %cst_95 = arith.constant dense<0xFF800000> : vector<96xf32>
    %171 = vector.multi_reduction <maximumf>, %170, %cst_95 [0] : vector<196x96xf32> to vector<96xf32>
    %172 = vector.shape_cast %171 : vector<96xf32> to vector<1x96xf32>
    %173 = vector.extract_strided_slice %172 {offsets = [0, 0], sizes = [1, 32], strides = [1, 1]} : vector<1x96xf32> to vector<1x32xf32>
    %c0_96 = arith.constant 0 : index
    %c0_97 = arith.constant 0 : index
    %174 = vector.load %arg19[%c0_96, %c0_97] : memref<3x32xf32, #tpu.memory_space<vmem>>, vector<1x32xf32>
    tpu.vector_store %arg19[%c0_96, %c0_97], %173 {strides = array<i32>} : memref<3x32xf32, #tpu.memory_space<vmem>>, vector<1x32xf32>,
    %175 = vector.extract_strided_slice %172 {offsets = [0, 32], sizes = [1, 32], strides = [1, 1]} : vector<1x96xf32> to vector<1x32xf32>
    %c1_98 = arith.constant 1 : index
    %c0_99 = arith.constant 0 : index
    %176 = vector.load %arg19[%c1_98, %c0_99] : memref<3x32xf32, #tpu.memory_space<vmem>>, vector<1x32xf32>
    tpu.vector_store %arg19[%c1_98, %c0_99], %175 {strides = array<i32>} : memref<3x32xf32, #tpu.memory_space<vmem>>, vector<1x32xf32>,
    %177 = vector.extract_strided_slice %172 {offsets = [0, 64], sizes = [1, 32], strides = [1, 1]} : vector<1x96xf32> to vector<1x32xf32>
    %c2_100 = arith.constant 2 : index
    %c0_101 = arith.constant 0 : index
    %178 = vector.load %arg19[%c2_100, %c0_101] : memref<3x32xf32, #tpu.memory_space<vmem>>, vector<1x32xf32>
    tpu.vector_store %arg19[%c2_100, %c0_101], %177 {strides = array<i32>} : memref<3x32xf32, #tpu.memory_space<vmem>>, vector<1x32xf32>,
    %c0_102 = arith.constant 0 : index
    %c0_103 = arith.constant 0 : index
    %179 = vector.load %arg19[%c0_102, %c0_103] : memref<3x32xf32, #tpu.memory_space<vmem>>, vector<3x32xf32>
    %cst_104 = arith.constant dense<0.000000e+00> : vector<3xf32>
    %180 = vector.multi_reduction <add>, %179, %cst_104 [1] : vector<3x32xf32> to vector<3xf32>
    %181 = vector.shape_cast %180 : vector<3xf32> to vector<3x1xf32>
    %cst_105 = arith.constant 3.125000e-02 : f32
    %182 = vector.broadcast %cst_105 : f32 to vector<3x1xf32>
    %183 = arith.mulf %181, %182 : vector<3x1xf32>
    %184 = arith.mulf %179, %179 : vector<3x32xf32>
    %cst_106 = arith.constant dense<0.000000e+00> : vector<3xf32>
    %185 = vector.multi_reduction <add>, %184, %cst_106 [1] : vector<3x32xf32> to vector<3xf32>
    %186 = vector.shape_cast %185 : vector<3xf32> to vector<3x1xf32>
    %cst_107 = arith.constant 3.125000e-02 : f32
    %187 = vector.broadcast %cst_107 : f32 to vector<3x1xf32>
    %188 = arith.mulf %186, %187 : vector<3x1xf32>
    %189 = arith.mulf %183, %183 : vector<3x1xf32>
    %190 = arith.subf %188, %189 : vector<3x1xf32>
    %191 = vector.broadcast %183 : vector<3x1xf32> to vector<3x32xf32>
    %192 = arith.subf %179, %191 : vector<3x32xf32>
    %cst_108 = arith.constant 9.99999974E-6 : f32
    %193 = vector.broadcast %cst_108 : f32 to vector<3x1xf32>
    %194 = arith.addf %190, %193 : vector<3x1xf32>
    %195 = math.rsqrt %194 : vector<3x1xf32>
    %196 = vector.broadcast %195 : vector<3x1xf32> to vector<3x32xf32>
    %197 = arith.mulf %192, %196 : vector<3x32xf32>
    %198 = arith.truncf %197 : vector<3x32xf32> to vector<3x32xbf16>
    %c0_109 = arith.constant 0 : index
    %c0_110 = arith.constant 0 : index
    %c0_111 = arith.constant 0 : index
    %199 = vector.load %arg10[%c0_109, %c0_110, %c0_111] : memref<4x32x64xbf16, #tpu.memory_space<vmem>>, vector<1x32x64xbf16>
    %200 = vector.shape_cast %199 : vector<1x32x64xbf16> to vector<32x64xbf16>
    %cst_112 = arith.constant dense<0.000000e+00> : vector<3x64xf32>
    %201 = tpu.matmul %198, %200, %cst_112 {dimension_numbers = #tpu.dot_dimension_numbers<[1], [0], [0], [1], [0, 0, 1, 1], [], []>} : vector<3x32xbf16>, vector<32x64xbf16>, vector<3x64xf32> -> vector<3x64xf32>
    %c0_113 = arith.constant 0 : index
    %c0_114 = arith.constant 0 : index
    %c0_115 = arith.constant 0 : index
    %202 = vector.load %arg11[%c0_113, %c0_114, %c0_115] : memref<4x1x64xf32, #tpu.memory_space<vmem>>, vector<1x1x64xf32>
    %203 = vector.shape_cast %202 : vector<1x1x64xf32> to vector<1x64xf32>
    %204 = vector.broadcast %203 : vector<1x64xf32> to vector<3x64xf32>
    %205 = arith.addf %201, %204 : vector<3x64xf32>
    %cst_116 = arith.constant 0.000000e+00 : f32
    %206 = vector.broadcast %cst_116 : f32 to vector<3x64xf32>
    %207 = arith.maximumf %205, %206 : vector<3x64xf32>
    %208 = arith.truncf %207 : vector<3x64xf32> to vector<3x64xbf16>
    %c0_117 = arith.constant 0 : index
    %c0_118 = arith.constant 0 : index
    %c0_119 = arith.constant 0 : index
    %209 = vector.load %arg12[%c0_117, %c0_118, %c0_119] : memref<4x64x32xbf16, #tpu.memory_space<vmem>>, vector<1x64x32xbf16>
    %210 = vector.shape_cast %209 : vector<1x64x32xbf16> to vector<64x32xbf16>
    %cst_120 = arith.constant dense<0.000000e+00> : vector<3x32xf32>
    %211 = tpu.matmul %208, %210, %cst_120 {dimension_numbers = #tpu.dot_dimension_numbers<[1], [0], [0], [1], [0, 0, 1, 1], [], []>} : vector<3x64xbf16>, vector<64x32xbf16>, vector<3x32xf32> -> vector<3x32xf32>
    %212 = arith.addf %179, %211 : vector<3x32xf32>
    %c0_121 = arith.constant 0 : index
    %c0_122 = arith.constant 0 : index
    %c0_123 = arith.constant 0 : index
    %213 = vector.load %arg13[%c0_121, %c0_122, %c0_123] : memref<4x1x32xf32, #tpu.memory_space<vmem>>, vector<1x1x32xf32>
    %214 = vector.shape_cast %213 : vector<1x1x32xf32> to vector<1x32xf32>
    %215 = vector.broadcast %214 : vector<1x32xf32> to vector<3x32xf32>
    %216 = arith.addf %212, %215 : vector<3x32xf32>
    %cst_124 = arith.constant dense<0.000000e+00> : vector<3xf32>
    %217 = vector.multi_reduction <add>, %216, %cst_124 [1] : vector<3x32xf32> to vector<3xf32>
    %218 = vector.shape_cast %217 : vector<3xf32> to vector<3x1xf32>
    %cst_125 = arith.constant 3.125000e-02 : f32
    %219 = vector.broadcast %cst_125 : f32 to vector<3x1xf32>
    %220 = arith.mulf %218, %219 : vector<3x1xf32>
    %221 = arith.mulf %216, %216 : vector<3x32xf32>
    %cst_126 = arith.constant dense<0.000000e+00> : vector<3xf32>
    %222 = vector.multi_reduction <add>, %221, %cst_126 [1] : vector<3x32xf32> to vector<3xf32>
    %223 = vector.shape_cast %222 : vector<3xf32> to vector<3x1xf32>
    %cst_127 = arith.constant 3.125000e-02 : f32
    %224 = vector.broadcast %cst_127 : f32 to vector<3x1xf32>
    %225 = arith.mulf %223, %224 : vector<3x1xf32>
    %226 = arith.mulf %220, %220 : vector<3x1xf32>
    %227 = arith.subf %225, %226 : vector<3x1xf32>
    %228 = vector.broadcast %220 : vector<3x1xf32> to vector<3x32xf32>
    %229 = arith.subf %216, %228 : vector<3x32xf32>
    %cst_128 = arith.constant 9.99999974E-6 : f32
    %230 = vector.broadcast %cst_128 : f32 to vector<3x1xf32>
    %231 = arith.addf %227, %230 : vector<3x1xf32>
    %232 = math.rsqrt %231 : vector<3x1xf32>
    %233 = vector.broadcast %232 : vector<3x1xf32> to vector<3x32xf32>
    %234 = arith.mulf %229, %233 : vector<3x32xf32>
    %235 = arith.truncf %234 : vector<3x32xf32> to vector<3x32xbf16>
    %c1_129 = arith.constant 1 : index
    %c0_130 = arith.constant 0 : index
    %c0_131 = arith.constant 0 : index
    %236 = vector.load %arg10[%c1_129, %c0_130, %c0_131] : memref<4x32x64xbf16, #tpu.memory_space<vmem>>, vector<1x32x64xbf16>
    %237 = vector.shape_cast %236 : vector<1x32x64xbf16> to vector<32x64xbf16>
    %cst_132 = arith.constant dense<0.000000e+00> : vector<3x64xf32>
    %238 = tpu.matmul %235, %237, %cst_132 {dimension_numbers = #tpu.dot_dimension_numbers<[1], [0], [0], [1], [0, 0, 1, 1], [], []>} : vector<3x32xbf16>, vector<32x64xbf16>, vector<3x64xf32> -> vector<3x64xf32>
    %c1_133 = arith.constant 1 : index
    %c0_134 = arith.constant 0 : index
    %c0_135 = arith.constant 0 : index
    %239 = vector.load %arg11[%c1_133, %c0_134, %c0_135] : memref<4x1x64xf32, #tpu.memory_space<vmem>>, vector<1x1x64xf32>
    %240 = vector.shape_cast %239 : vector<1x1x64xf32> to vector<1x64xf32>
    %241 = vector.broadcast %240 : vector<1x64xf32> to vector<3x64xf32>
    %242 = arith.addf %238, %241 : vector<3x64xf32>
    %cst_136 = arith.constant 0.000000e+00 : f32
    %243 = vector.broadcast %cst_136 : f32 to vector<3x64xf32>
    %244 = arith.maximumf %242, %243 : vector<3x64xf32>
    %245 = arith.truncf %244 : vector<3x64xf32> to vector<3x64xbf16>
    %c1_137 = arith.constant 1 : index
    %c0_138 = arith.constant 0 : index
    %c0_139 = arith.constant 0 : index
    %246 = vector.load %arg12[%c1_137, %c0_138, %c0_139] : memref<4x64x32xbf16, #tpu.memory_space<vmem>>, vector<1x64x32xbf16>
    %247 = vector.shape_cast %246 : vector<1x64x32xbf16> to vector<64x32xbf16>
    %cst_140 = arith.constant dense<0.000000e+00> : vector<3x32xf32>
    %248 = tpu.matmul %245, %247, %cst_140 {dimension_numbers = #tpu.dot_dimension_numbers<[1], [0], [0], [1], [0, 0, 1, 1], [], []>} : vector<3x64xbf16>, vector<64x32xbf16>, vector<3x32xf32> -> vector<3x32xf32>
    %249 = arith.addf %216, %248 : vector<3x32xf32>
    %c1_141 = arith.constant 1 : index
    %c0_142 = arith.constant 0 : index
    %c0_143 = arith.constant 0 : index
    %250 = vector.load %arg13[%c1_141, %c0_142, %c0_143] : memref<4x1x32xf32, #tpu.memory_space<vmem>>, vector<1x1x32xf32>
    %251 = vector.shape_cast %250 : vector<1x1x32xf32> to vector<1x32xf32>
    %252 = vector.broadcast %251 : vector<1x32xf32> to vector<3x32xf32>
    %253 = arith.addf %249, %252 : vector<3x32xf32>
    %cst_144 = arith.constant dense<0.000000e+00> : vector<3xf32>
    %254 = vector.multi_reduction <add>, %253, %cst_144 [1] : vector<3x32xf32> to vector<3xf32>
    %255 = vector.shape_cast %254 : vector<3xf32> to vector<3x1xf32>
    %cst_145 = arith.constant 3.125000e-02 : f32
    %256 = vector.broadcast %cst_145 : f32 to vector<3x1xf32>
    %257 = arith.mulf %255, %256 : vector<3x1xf32>
    %258 = arith.mulf %253, %253 : vector<3x32xf32>
    %cst_146 = arith.constant dense<0.000000e+00> : vector<3xf32>
    %259 = vector.multi_reduction <add>, %258, %cst_146 [1] : vector<3x32xf32> to vector<3xf32>
    %260 = vector.shape_cast %259 : vector<3xf32> to vector<3x1xf32>
    %cst_147 = arith.constant 3.125000e-02 : f32
    %261 = vector.broadcast %cst_147 : f32 to vector<3x1xf32>
    %262 = arith.mulf %260, %261 : vector<3x1xf32>
    %263 = arith.mulf %257, %257 : vector<3x1xf32>
    %264 = arith.subf %262, %263 : vector<3x1xf32>
    %265 = vector.broadcast %257 : vector<3x1xf32> to vector<3x32xf32>
    %266 = arith.subf %253, %265 : vector<3x32xf32>
    %cst_148 = arith.constant 9.99999974E-6 : f32
    %267 = vector.broadcast %cst_148 : f32 to vector<3x1xf32>
    %268 = arith.addf %264, %267 : vector<3x1xf32>
    %269 = math.rsqrt %268 : vector<3x1xf32>
    %270 = vector.broadcast %269 : vector<3x1xf32> to vector<3x32xf32>
    %271 = arith.mulf %266, %270 : vector<3x32xf32>
    %272 = arith.truncf %271 : vector<3x32xf32> to vector<3x32xbf16>
    %c2_149 = arith.constant 2 : index
    %c0_150 = arith.constant 0 : index
    %c0_151 = arith.constant 0 : index
    %273 = vector.load %arg10[%c2_149, %c0_150, %c0_151] : memref<4x32x64xbf16, #tpu.memory_space<vmem>>, vector<1x32x64xbf16>
    %274 = vector.shape_cast %273 : vector<1x32x64xbf16> to vector<32x64xbf16>
    %cst_152 = arith.constant dense<0.000000e+00> : vector<3x64xf32>
    %275 = tpu.matmul %272, %274, %cst_152 {dimension_numbers = #tpu.dot_dimension_numbers<[1], [0], [0], [1], [0, 0, 1, 1], [], []>} : vector<3x32xbf16>, vector<32x64xbf16>, vector<3x64xf32> -> vector<3x64xf32>
    %c2_153 = arith.constant 2 : index
    %c0_154 = arith.constant 0 : index
    %c0_155 = arith.constant 0 : index
    %276 = vector.load %arg11[%c2_153, %c0_154, %c0_155] : memref<4x1x64xf32, #tpu.memory_space<vmem>>, vector<1x1x64xf32>
    %277 = vector.shape_cast %276 : vector<1x1x64xf32> to vector<1x64xf32>
    %278 = vector.broadcast %277 : vector<1x64xf32> to vector<3x64xf32>
    %279 = arith.addf %275, %278 : vector<3x64xf32>
    %cst_156 = arith.constant 0.000000e+00 : f32
    %280 = vector.broadcast %cst_156 : f32 to vector<3x64xf32>
    %281 = arith.maximumf %279, %280 : vector<3x64xf32>
    %282 = arith.truncf %281 : vector<3x64xf32> to vector<3x64xbf16>
    %c2_157 = arith.constant 2 : index
    %c0_158 = arith.constant 0 : index
    %c0_159 = arith.constant 0 : index
    %283 = vector.load %arg12[%c2_157, %c0_158, %c0_159] : memref<4x64x32xbf16, #tpu.memory_space<vmem>>, vector<1x64x32xbf16>
    %284 = vector.shape_cast %283 : vector<1x64x32xbf16> to vector<64x32xbf16>
    %cst_160 = arith.constant dense<0.000000e+00> : vector<3x32xf32>
    %285 = tpu.matmul %282, %284, %cst_160 {dimension_numbers = #tpu.dot_dimension_numbers<[1], [0], [0], [1], [0, 0, 1, 1], [], []>} : vector<3x64xbf16>, vector<64x32xbf16>, vector<3x32xf32> -> vector<3x32xf32>
    %286 = arith.addf %253, %285 : vector<3x32xf32>
    %c2_161 = arith.constant 2 : index
    %c0_162 = arith.constant 0 : index
    %c0_163 = arith.constant 0 : index
    %287 = vector.load %arg13[%c2_161, %c0_162, %c0_163] : memref<4x1x32xf32, #tpu.memory_space<vmem>>, vector<1x1x32xf32>
    %288 = vector.shape_cast %287 : vector<1x1x32xf32> to vector<1x32xf32>
    %289 = vector.broadcast %288 : vector<1x32xf32> to vector<3x32xf32>
    %290 = arith.addf %286, %289 : vector<3x32xf32>
    %cst_164 = arith.constant dense<0.000000e+00> : vector<3xf32>
    %291 = vector.multi_reduction <add>, %290, %cst_164 [1] : vector<3x32xf32> to vector<3xf32>
    %292 = vector.shape_cast %291 : vector<3xf32> to vector<3x1xf32>
    %cst_165 = arith.constant 3.125000e-02 : f32
    %293 = vector.broadcast %cst_165 : f32 to vector<3x1xf32>
    %294 = arith.mulf %292, %293 : vector<3x1xf32>
    %295 = arith.mulf %290, %290 : vector<3x32xf32>
    %cst_166 = arith.constant dense<0.000000e+00> : vector<3xf32>
    %296 = vector.multi_reduction <add>, %295, %cst_166 [1] : vector<3x32xf32> to vector<3xf32>
    %297 = vector.shape_cast %296 : vector<3xf32> to vector<3x1xf32>
    %cst_167 = arith.constant 3.125000e-02 : f32
    %298 = vector.broadcast %cst_167 : f32 to vector<3x1xf32>
    %299 = arith.mulf %297, %298 : vector<3x1xf32>
    %300 = arith.mulf %294, %294 : vector<3x1xf32>
    %301 = arith.subf %299, %300 : vector<3x1xf32>
    %302 = vector.broadcast %294 : vector<3x1xf32> to vector<3x32xf32>
    %303 = arith.subf %290, %302 : vector<3x32xf32>
    %cst_168 = arith.constant 9.99999974E-6 : f32
    %304 = vector.broadcast %cst_168 : f32 to vector<3x1xf32>
    %305 = arith.addf %301, %304 : vector<3x1xf32>
    %306 = math.rsqrt %305 : vector<3x1xf32>
    %307 = vector.broadcast %306 : vector<3x1xf32> to vector<3x32xf32>
    %308 = arith.mulf %303, %307 : vector<3x32xf32>
    %309 = arith.truncf %308 : vector<3x32xf32> to vector<3x32xbf16>
    %c3_169 = arith.constant 3 : index
    %c0_170 = arith.constant 0 : index
    %c0_171 = arith.constant 0 : index
    %310 = vector.load %arg10[%c3_169, %c0_170, %c0_171] : memref<4x32x64xbf16, #tpu.memory_space<vmem>>, vector<1x32x64xbf16>
    %311 = vector.shape_cast %310 : vector<1x32x64xbf16> to vector<32x64xbf16>
    %cst_172 = arith.constant dense<0.000000e+00> : vector<3x64xf32>
    %312 = tpu.matmul %309, %311, %cst_172 {dimension_numbers = #tpu.dot_dimension_numbers<[1], [0], [0], [1], [0, 0, 1, 1], [], []>} : vector<3x32xbf16>, vector<32x64xbf16>, vector<3x64xf32> -> vector<3x64xf32>
    %c3_173 = arith.constant 3 : index
    %c0_174 = arith.constant 0 : index
    %c0_175 = arith.constant 0 : index
    %313 = vector.load %arg11[%c3_173, %c0_174, %c0_175] : memref<4x1x64xf32, #tpu.memory_space<vmem>>, vector<1x1x64xf32>
    %314 = vector.shape_cast %313 : vector<1x1x64xf32> to vector<1x64xf32>
    %315 = vector.broadcast %314 : vector<1x64xf32> to vector<3x64xf32>
    %316 = arith.addf %312, %315 : vector<3x64xf32>
    %cst_176 = arith.constant 0.000000e+00 : f32
    %317 = vector.broadcast %cst_176 : f32 to vector<3x64xf32>
    %318 = arith.maximumf %316, %317 : vector<3x64xf32>
    %319 = arith.truncf %318 : vector<3x64xf32> to vector<3x64xbf16>
    %c3_177 = arith.constant 3 : index
    %c0_178 = arith.constant 0 : index
    %c0_179 = arith.constant 0 : index
    %320 = vector.load %arg12[%c3_177, %c0_178, %c0_179] : memref<4x64x32xbf16, #tpu.memory_space<vmem>>, vector<1x64x32xbf16>
    %321 = vector.shape_cast %320 : vector<1x64x32xbf16> to vector<64x32xbf16>
    %cst_180 = arith.constant dense<0.000000e+00> : vector<3x32xf32>
    %322 = tpu.matmul %319, %321, %cst_180 {dimension_numbers = #tpu.dot_dimension_numbers<[1], [0], [0], [1], [0, 0, 1, 1], [], []>} : vector<3x64xbf16>, vector<64x32xbf16>, vector<3x32xf32> -> vector<3x32xf32>
    %323 = arith.addf %290, %322 : vector<3x32xf32>
    %c3_181 = arith.constant 3 : index
    %c0_182 = arith.constant 0 : index
    %c0_183 = arith.constant 0 : index
    %324 = vector.load %arg13[%c3_181, %c0_182, %c0_183] : memref<4x1x32xf32, #tpu.memory_space<vmem>>, vector<1x1x32xf32>
    %325 = vector.shape_cast %324 : vector<1x1x32xf32> to vector<1x32xf32>
    %326 = vector.broadcast %325 : vector<1x32xf32> to vector<3x32xf32>
    %327 = arith.addf %323, %326 : vector<3x32xf32>
    %328 = arith.truncf %327 : vector<3x32xf32> to vector<3x32xbf16>
    %c0_184 = arith.constant 0 : index
    %c0_185 = arith.constant 0 : index
    %329 = vector.load %arg14[%c0_184, %c0_185] : memref<32x3xbf16, #tpu.memory_space<vmem>>, vector<32x3xbf16>
    %cst_186 = arith.constant dense<0.000000e+00> : vector<3x3xf32>
    %330 = tpu.matmul %328, %329, %cst_186 {dimension_numbers = #tpu.dot_dimension_numbers<[1], [0], [0], [1], [0, 0, 1, 1], [], []>} : vector<3x32xbf16>, vector<32x3xbf16>, vector<3x3xf32> -> vector<3x3xf32>
    %c0_187 = arith.constant 0 : index
    %c0_188 = arith.constant 0 : index
    %331 = vector.load %arg15[%c0_187, %c0_188] : memref<1x3xf32, #tpu.memory_space<vmem>>, vector<1x3xf32>
    %332 = vector.broadcast %331 : vector<1x3xf32> to vector<3x3xf32>
    %333 = arith.addf %330, %332 : vector<3x3xf32>
    %c0_189 = arith.constant 0 : index
    %c0_190 = arith.constant 0 : index
    %334 = vector.load %arg16[%c0_189, %c0_190] : memref<1x3xf32, #tpu.memory_space<vmem>>, vector<1x3xf32>
    %cst_191 = arith.constant 5.000000e-01 : f32
    %335 = vector.broadcast %cst_191 : f32 to vector<1x3xf32>
    %336 = arith.cmpf ogt, %334, %335 : vector<1x3xf32>
    %cst_192 = arith.constant 0xFF800000 : f32
    %337 = vector.shape_cast %336 : vector<1x3xi1> to vector<1x3xi1>
    %338 = vector.broadcast %337 : vector<1x3xi1> to vector<3x3xi1>
    %339 = vector.broadcast %cst_192 : f32 to vector<3x3xf32>
    %340 = arith.select %338, %339, %333 : vector<3x3xi1>, vector<3x3xf32>
    %cst_193 = arith.constant dense<0xFF800000> : vector<3xf32>
    %341 = vector.multi_reduction <maximumf>, %340, %cst_193 [1] : vector<3x3xf32> to vector<3xf32>
    %342 = vector.shape_cast %341 : vector<3xf32> to vector<3x1xf32>
    %343 = vector.broadcast %342 : vector<3x1xf32> to vector<3x3xf32>
    %344 = arith.subf %340, %343 : vector<3x3xf32>
    %345 = math.exp %344 : vector<3x3xf32>
    %cst_194 = arith.constant dense<0.000000e+00> : vector<3xf32>
    %346 = vector.multi_reduction <add>, %345, %cst_194 [1] : vector<3x3xf32> to vector<3xf32>
    %347 = vector.shape_cast %346 : vector<3xf32> to vector<3x1xf32>
    %348 = math.log %347 : vector<3x1xf32>
    %349 = vector.broadcast %348 : vector<3x1xf32> to vector<3x3xf32>
    %350 = arith.subf %344, %349 : vector<3x3xf32>
    %351 = vector.shape_cast %350 : vector<3x3xf32> to vector<1x3x3xf32>
    %c0_195 = arith.constant 0 : index
    %c0_196 = arith.constant 0 : index
    %c0_197 = arith.constant 0 : index
    %352 = vector.load %arg17[%c0_195, %c0_196, %c0_197] : memref<1x3x3xf32, #tpu.memory_space<vmem>>, vector<1x3x3xf32>
    tpu.vector_store %arg17[%c0_195, %c0_196, %c0_197], %351 {strides = array<i32>} : memref<1x3x3xf32, #tpu.memory_space<vmem>>, vector<1x3x3xf32>,
    return
  }
  func.func @transform_0(%arg0: i32) -> (i32, i32, i32) {
    %c0_i32 = arith.constant 0 : i32
    %c0_i32_0 = arith.constant 0 : i32
    %c0_i32_1 = arith.constant 0 : i32
    return %arg0, %c0_i32, %c0_i32_0 : i32, i32, i32
  }
  func.func @transform_1(%arg0: i32) -> (i32, i32) {
    %c0_i32 = arith.constant 0 : i32
    %c0_i32_0 = arith.constant 0 : i32
    %c0_i32_1 = arith.constant 0 : i32
    return %c0_i32, %c0_i32_0 : i32, i32
  }
  func.func @transform_2(%arg0: i32) -> (i32, i32) {
    %c0_i32 = arith.constant 0 : i32
    %c0_i32_0 = arith.constant 0 : i32
    %c0_i32_1 = arith.constant 0 : i32
    return %c0_i32, %c0_i32_0 : i32, i32
  }
  func.func @transform_3(%arg0: i32) -> (i32, i32) {
    %c0_i32 = arith.constant 0 : i32
    %c0_i32_0 = arith.constant 0 : i32
    %c0_i32_1 = arith.constant 0 : i32
    return %c0_i32, %c0_i32_0 : i32, i32
  }
  func.func @transform_4(%arg0: i32) -> (i32, i32) {
    %c0_i32 = arith.constant 0 : i32
    %c0_i32_0 = arith.constant 0 : i32
    %c0_i32_1 = arith.constant 0 : i32
    return %c0_i32, %c0_i32_0 : i32, i32
  }
  func.func @transform_5(%arg0: i32) -> (i32, i32, i32) {
    %c0_i32 = arith.constant 0 : i32
    %c0_i32_0 = arith.constant 0 : i32
    %c0_i32_1 = arith.constant 0 : i32
    %c0_i32_2 = arith.constant 0 : i32
    return %c0_i32, %c0_i32_0, %c0_i32_1 : i32, i32, i32
  }
  func.func @transform_6(%arg0: i32) -> (i32, i32, i32) {
    %c0_i32 = arith.constant 0 : i32
    %c0_i32_0 = arith.constant 0 : i32
    %c0_i32_1 = arith.constant 0 : i32
    %c0_i32_2 = arith.constant 0 : i32
    return %c0_i32, %c0_i32_0, %c0_i32_1 : i32, i32, i32
  }
  func.func @transform_7(%arg0: i32) -> (i32, i32, i32) {
    %c0_i32 = arith.constant 0 : i32
    %c0_i32_0 = arith.constant 0 : i32
    %c0_i32_1 = arith.constant 0 : i32
    %c0_i32_2 = arith.constant 0 : i32
    return %c0_i32, %c0_i32_0, %c0_i32_1 : i32, i32, i32
  }
  func.func @transform_8(%arg0: i32) -> (i32, i32, i32) {
    %c0_i32 = arith.constant 0 : i32
    %c0_i32_0 = arith.constant 0 : i32
    %c0_i32_1 = arith.constant 0 : i32
    %c0_i32_2 = arith.constant 0 : i32
    return %c0_i32, %c0_i32_0, %c0_i32_1 : i32, i32, i32
  }
  func.func @transform_9(%arg0: i32) -> (i32, i32, i32) {
    %c0_i32 = arith.constant 0 : i32
    %c0_i32_0 = arith.constant 0 : i32
    %c0_i32_1 = arith.constant 0 : i32
    %c0_i32_2 = arith.constant 0 : i32
    return %c0_i32, %c0_i32_0, %c0_i32_1 : i32, i32, i32
  }
  func.func @transform_10(%arg0: i32) -> (i32, i32, i32) {
    %c0_i32 = arith.constant 0 : i32
    %c0_i32_0 = arith.constant 0 : i32
    %c0_i32_1 = arith.constant 0 : i32
    %c0_i32_2 = arith.constant 0 : i32
    return %c0_i32, %c0_i32_0, %c0_i32_1 : i32, i32, i32
  }
  func.func @transform_11(%arg0: i32) -> (i32, i32, i32) {
    %c0_i32 = arith.constant 0 : i32
    %c0_i32_0 = arith.constant 0 : i32
    %c0_i32_1 = arith.constant 0 : i32
    %c0_i32_2 = arith.constant 0 : i32
    return %c0_i32, %c0_i32_0, %c0_i32_1 : i32, i32, i32
  }
  func.func @transform_12(%arg0: i32) -> (i32, i32, i32) {
    %c0_i32 = arith.constant 0 : i32
    %c0_i32_0 = arith.constant 0 : i32
    %c0_i32_1 = arith.constant 0 : i32
    %c0_i32_2 = arith.constant 0 : i32
    return %c0_i32, %c0_i32_0, %c0_i32_1 : i32, i32, i32
  }
  func.func @transform_13(%arg0: i32) -> (i32, i32) {
    %c0_i32 = arith.constant 0 : i32
    %c0_i32_0 = arith.constant 0 : i32
    %c0_i32_1 = arith.constant 0 : i32
    return %c0_i32, %c0_i32_0 : i32, i32
  }
  func.func @transform_14(%arg0: i32) -> (i32, i32) {
    %c0_i32 = arith.constant 0 : i32
    %c0_i32_0 = arith.constant 0 : i32
    %c0_i32_1 = arith.constant 0 : i32
    return %c0_i32, %c0_i32_0 : i32, i32
  }
  func.func @transform_15(%arg0: i32) -> (i32, i32) {
    %c0_i32 = arith.constant 0 : i32
    %c0_i32_0 = arith.constant 0 : i32
    %c0_i32_1 = arith.constant 0 : i32
    return %c0_i32, %c0_i32_0 : i32, i32
  }
  func.func @transform_16(%arg0: i32) -> (i32, i32, i32) {
    %c0_i32 = arith.constant 0 : i32
    %c0_i32_0 = arith.constant 0 : i32
    %c0_i32_1 = arith.constant 0 : i32
    return %arg0, %c0_i32, %c0_i32_0 : i32, i32, i32
  }
}

</mosaic_0001>

<bundles_post_ra>
// kernel: tpu_custom_call.1
= control target key start
LH: loop header
LB: loop body
LE: loop exit
PB: predicated region body
PF: predicated region fallthrough
CT: control target
= control target key end

     0   :  { %s8766_s21 = smov 0   ;;  %s11897_s0 = inlined_call_operand.vmem [shape: bf16[2,600,36], index: 0, kind: input, shape index: {}]   ;;  %s11898_s1 = inlined_call_operand.vmem [shape: bf16[36,24], index: 1, kind: input, shape index: {}]   ;;  %s11899_s2 = inlined_call_operand.vmem [shape: f32[1,24], index: 2, kind: input, shape index: {}]   ;;  %s11900_s3 = inlined_call_operand.vmem [shape: bf16[24,32], index: 3, kind: input, shape index: {}]   ;;  %s11901_s4 = inlined_call_operand.vmem [shape: f32[196,32], index: 4, kind: input, shape index: {}]   ;;  %s11902_s5 = inlined_call_operand.vmem [shape: bf16[4,128,196], index: 5, kind: input, shape index: {}]   ;;  %s11903_s6 = inlined_call_operand.vmem [shape: f32[4,128,1], index: 6, kind: input, shape index: {}]   ;;  %s11904_s7 = inlined_call_operand.vmem [shape: bf16[4,196,128], index: 7, kind: input, shape index: {}]   ;;  %s11905_s8 = inlined_call_operand.vmem [shape: f32[4,196,1], index: 8, kind: input, shape index: {}]   ;;  %s11906_s9 = inlined_call_operand.vmem [shape: bf16[4,32,64], index: 9, kind: input, shape index: {}]   ;;  %s11907_s10 = inlined_call_operand.vmem [shape: f32[4,1,64], index: 10, kind: input, shape index: {}]   ;;  %s11908_s11 = inlined_call_operand.vmem [shape: bf16[4,64,32], index: 11, kind: input, shape index: {}]   ;;  %s11909_s12 = inlined_call_operand.vmem [shape: f32[4,1,32], index: 12, kind: input, shape index: {}]   ;;  %s11910_s13 = inlined_call_operand.vmem [shape: bf16[32,3], index: 13, kind: input, shape index: {}]   ;;  %s11911_s14 = inlined_call_operand.vmem [shape: f32[1,3], index: 14, kind: input, shape index: {}]   ;;  %s11912_s15 = inlined_call_operand.vmem [shape: f32[1,3], index: 15, kind: input, shape index: {}]   ;;  %s11913_s16 = inlined_call_operand.vmem [shape: f32[2,3,3], index: 16, kind: output, shape index: {}]  }
   0x1   :  { %11918 = sst [smem:[#allocation23_spill]] %s11897_s0 }
   0x2 LB: > { %s7055_s22 = sadd.s32 4294967295, %s8673_s21   ;;  %p7059_p0 = scmp.ge.s32.totalorder %s8673_s21, 1  ;;  %s8673_s21 = sphi %s8766_s21, %s26_s21  }
   0x3   : > { %p462_p1 = scmp.lt.s32.totalorder %s8673_s21, 3 }
   0x5   : > { %p463_p2 = pnand %p7059_p0, %p462_p1 }
   0x7   : > { %466 = sbr.rel (%p463_p2) target bundleno = 6574 (0x19ae), region = 84 }
   0xe   : > { %v8405_v0 = vld [vmem:[%s11898_s1] sm:$0xff]   ;;  %v8406_v1 = vld [vmem:[%s11898_s1 + $0x8] sm:$0xff]   ;;  %p511_p3 = scmp.lt.s32.totalorder %s7055_s22, 1  ;;  %v8407_v2 = vld [vmem:[%s11898_s1 + $0x10] ss:$0 sps:$4 sm:$0x33]  }
   0xf   : > { %7864 = vmatprep.subr.bf16.mxu0 %v8405_v0  ;;  %vm926_vm0 = vcmask 1041408   ;;  %s11919_s17 = sld [smem:[#allocation23_spill]]  ;;  %vm811_vm1 = vcmask 293888   ;;  %v8446_v29 = vld [vmem:[%s11900_s3] sm:$0xff]   ;;  %v8447_v30 = vld [vmem:[%s11900_s3 + $0x8] ss:$0 sps:$4 sm:$0xff]  }
  0x10   : > { %7865 = vmatpush3.bf16.msra.mxu0 %v8405_v0  ;;  %s11961_s22 = smov (!%p511_p3, %s7055_s22), 1  ;;  %v928_v3 = vsel %vm926_vm0, %v8407_v2, 0  ;;  %7946 = vmatprep.subr.bf16.mxu1 %v8446_v29  ;;  %vm1506_vm2 = vcmask 1043456   ;;  %v8878_v45 = vld [vmem:[%s11899_s2] ss:$0 sm:$0xff]  ;;  %vm1391_vm3 = vcmask 195584  }
  0x11   : > { %7866 = vmatprep.subr.bf16.mxu0 %v8406_v1  ;;  %s8388_s29 = smul.u32 300, %s11961_s22  ;;  %7947 = vmatpush3.bf16.msra.mxu1 %v8446_v29  ;;  %v1508_v32 = vsel %vm1506_vm2, %v8447_v30, 0  ;;  %vm1896_vm4 = vcmask 261120   ;;  %vm1921_vm5 = vcmask 257024   ;;  %s8676_s25 = smov 32   ;;  %vm2048_vm6 = vcmask 523520  }
  0x12   : > { %8387 = vmatprep.subr.msk.bf16.mxu1 %vm1506_vm2, %v8447_v30  ;;  %s8677_s26 = smov 64   ;;  %vm2200_vm7 = vcmask 785920   ;;  %vm2252_vm8 = vcmask 785408   ;;  %vm2073_vm9 = vcmask 519424   ;;  %vm2642_vm10 = vcmask 556032   ;;  %s8680_s20 = smov 96  }
  0x13   : > { %vm2225_vm11 = vcmask 781824   ;;  %vm2300_vm12 = vcmask 781312   ;;  %vm8679_vm13 = vmmov 0   ;;  %vm6214_vm14 = vcmask 253952   ;;  %s7061_s30 = sshll.u32 %s11961_s22, 2 }
  0x14   : > { %7867 = vmatpush3.bf16.msra.mxu0 %v8406_v1  ;;  %vm6226_vm15 = vcmask 256000  }
  0x15   : > { %s8789_s18 = scalar_lea.vmem %s11919_s17, %s8388_s29  ;;  %8386 = vmatprep.subr.msk.bf16.mxu0 %vm926_vm0, %v8407_v2  ;;  %7949 = vmatpush3.bf16.msra.mxu1 %v1508_v32 }
  0x16   : > { %v8408_v4 = vld [vmem:[%s8789_s18] sm:$0xff]   ;;  %v8409_v5 = vld [vmem:[%s8789_s18 + $0x8] sm:$0xff]   ;;  %v8410_v6 = vld [vmem:[%s8789_s18 + $0x10] sm:$0xff]  }
  0x17   : > { %7870 = vmatprep.mubr.msk.bf16.mxu0 %vm811_vm1, %v8408_v4  ;;  %v8411_v7 = vld [vmem:[%s8789_s18 + $0x18] sm:$0xff]   ;;  %v8412_v8 = vld [vmem:[%s8789_s18 + $0x20] sm:$0xff]   ;;  %v8413_v9 = vld [vmem:[%s8789_s18 + $0x28] sm:$0xff]  }
  0x18   : > { %7869 = vmatpush3.bf16.msra.mxu0 %v928_v3  ;;  %v8414_v10 = vld [vmem:[%s8789_s18 + $0x30] sm:$0xff]   ;;  %v8415_v11 = vld [vmem:[%s8789_s18 + $0x38] sm:$0xff]   ;;  %v8416_v12 = vld [vmem:[%s8789_s18 + $0x40] sm:$0xff]  }
  0x19   : > { %v8417_v13 = vld [vmem:[%s8789_s18 + $0x48] sm:$0xff]   ;;  %v8418_v14 = vld [vmem:[%s8789_s18 + $0x50] sm:$0xff]   ;;  %v8419_v15 = vld [vmem:[%s8789_s18 + $0x58] sm:$0xff]  }
  0x1a   : > { %v8420_v16 = vld [vmem:[%s8789_s18 + $0x60] sm:$0xff]   ;;  %v8421_v17 = vld [vmem:[%s8789_s18 + $0x68] sm:$0xff]   ;;  %v8422_v18 = vld [vmem:[%s8789_s18 + $0x70] sm:$0xff]  }
  0x1b   : > { %7871 = vmatmul.mubr.msk.bf16.vlgmr.msra.gmra.mrb[0].mxu0 %vm811_vm1, %v8409_v5  ;;  %v8423_v19 = vld [vmem:[%s8789_s18 + $0x78] sm:$0xff]   ;;  %v8424_v20 = vld [vmem:[%s8789_s18 + $0x80] sm:$0xff]   ;;  %v8425_v21 = vld [vmem:[%s8789_s18 + $0x88] sm:$0xff]  }
  0x1c   : > { %7874 = vmatprep.mubr.msk.bf16.mxu0 %vm811_vm1, %v8410_v6  ;;  %v8426_v22 = vld [vmem:[%s8789_s18 + $0x90] sm:$0xff]   ;;  %v8427_v23 = vld [vmem:[%s8789_s18 + $0x98] sm:$0xff]   ;;  %v8428_v24 = vld [vmem:[%s8789_s18 + $0xa0] sm:$0xff]  }
  0x1d   : > { %v8429_v25 = vld [vmem:[%s8789_s18 + $0xa8] sm:$0xff]   ;;  %v8430_v26 = vld [vmem:[%s8789_s18 + $0xb0] sm:$0xff]   ;;  %v8431_v27 = vld [vmem:[%s8789_s18 + $0xb8] sm:$0xff]  }
  0x1e   : > { %v8432_v28 = vld [vmem:[%s8789_s18 + $0xc0] sm:$0xff]   ;;  %v8433_v31 = vld [vmem:[%s8789_s18 + $0xc8] sm:$0xff]   ;;  %v8434_v33 = vld [vmem:[%s8789_s18 + $0xd0] sm:$0xff]  }
  0x1f   : > { %v8435_v34 = vld [vmem:[%s8789_s18 + $0xd8] sm:$0xff]   ;;  %v8436_v35 = vld [vmem:[%s8789_s18 + $0xe0] sm:$0xff]   ;;  %v8437_v36 = vld [vmem:[%s8789_s18 + $0xe8] sm:$0xff]  }
  0x20   : > { %v8438_v37 = vld [vmem:[%s8789_s18 + $0xf0] sm:$0xff]   ;;  %v8439_v38 = vld [vmem:[%s8789_s18 + $0xf8] sm:$0xff]   ;;  %v8440_v39 = vld [vmem:[%s8789_s18 + $0x100] sm:$0xff]  }
  0x21   : > { %v8441_v40 = vld [vmem:[%s8789_s18 + $0x108] sm:$0xff]   ;;  %v8442_v41 = vld [vmem:[%s8789_s18 + $0x110] sm:$0xff]   ;;  %v8443_v42 = vld [vmem:[%s8789_s18 + $0x118] sm:$0xff]  }
  0x22   : > { %v8444_v43 = vld [vmem:[%s8789_s18 + $0x120] sm:$0xff]   ;;  %v8445_v44 = vld [vmem:[%s8789_s18 + $0x128] ss:$0 sps:$4 sm:$0xff]   ;;  %s519_s18 = scalar_lea.vmem %s11913_s16, %s7061_s30 }
  0x23   : > { %7875 = vmatmul.mubr.msk.bf16.gmra.mrb[4].mxu0 %vm811_vm1, %v8411_v7 }
  0x24   : > { %7878 = vmatprep.mubr.msk.bf16.mxu0 %vm811_vm1, %v8412_v8 }
  0x2b   : > { %7879 = vmatmul.mubr.msk.bf16.gmra.mrb[8].mxu0 %vm811_vm1, %v8413_v9 }
  0x2c   : > { %7882 = vmatprep.mubr.msk.bf16.mxu0 %vm811_vm1, %v8414_v10 }
  0x33   : > { %7883 = vmatmul.mubr.msk.bf16.gmra.mrb[12].mxu0 %vm811_vm1, %v8415_v11 }
  0x34   : > { %7886 = vmatprep.mubr.msk.bf16.mxu0 %vm811_vm1, %v8416_v12 }
  0x3b   : > { %7887 = vmatmul.mubr.msk.bf16.gmra.mrb[16].mxu0 %vm811_vm1, %v8417_v13 }
  0x3c   : > { %7890 = vmatprep.mubr.msk.bf16.mxu0 %vm811_vm1, %v8418_v14 }
  0x43   : > { %7891 = vmatmul.mubr.msk.bf16.gmra.mrb[20].mxu0 %vm811_vm1, %v8419_v15 }
  0x44   : > { %7894 = vmatprep.mubr.msk.bf16.mxu0 %vm811_vm1, %v8420_v16 }
  0x4b   : > { %7895 = vmatmul.mubr.msk.bf16.gmra.mrb[24].mxu0 %vm811_vm1, %v8421_v17 }
  0x4c   : > { %7898 = vmatprep.mubr.msk.bf16.mxu0 %vm811_vm1, %v8422_v18 }
  0x53   : > { %7899 = vmatmul.mubr.msk.bf16.gmra.mrb[28].mxu0 %vm811_vm1, %v8423_v19 }
  0x54   : > { %7902 = vmatprep.mubr.msk.bf16.mxu0 %vm811_vm1, %v8424_v20 }
  0x5b   : > { %7903 = vmatmul.mubr.msk.bf16.gmra.mrb[32].mxu0 %vm811_vm1, %v8425_v21 }
  0x5c   : > { %7906 = vmatprep.mubr.msk.bf16.mxu0 %vm811_vm1, %v8426_v22 }
  0x63   : > { %7907 = vmatmul.mubr.msk.bf16.gmra.mrb[36].mxu0 %vm811_vm1, %v8427_v23 }
  0x64   : > { %7910 = vmatprep.mubr.msk.bf16.mxu0 %vm811_vm1, %v8428_v24 }
  0x6b   : > { %7911 = vmatmul.mubr.msk.bf16.gmra.mrb[40].mxu0 %vm811_vm1, %v8429_v25 }
  0x6c   : > { %7914 = vmatprep.mubr.msk.bf16.mxu0 %vm811_vm1, %v8430_v26 }
  0x73   : > { %7915 = vmatmul.mubr.msk.bf16.gmra.mrb[44].mxu0 %vm811_vm1, %v8431_v27 }
  0x74   : > { %7918 = vmatprep.mubr.msk.bf16.mxu0 %vm811_vm1, %v8432_v28 }
  0x7b   : > { %7919 = vmatmul.mubr.msk.bf16.gmra.mrb[48].mxu0 %vm811_vm1, %v8433_v31 }
  0x7c   : > { %7922 = vmatprep.mubr.msk.bf16.mxu0 %vm811_vm1, %v8434_v33 }
  0x83   : > { %7923 = vmatmul.mubr.msk.bf16.gmra.mrb[52].mxu0 %vm811_vm1, %v8435_v34 }
  0x84   : > { %7926 = vmatprep.mubr.msk.bf16.mxu0 %vm811_vm1, %v8436_v35 }
  0x8b   : > { %7927 = vmatmul.mubr.msk.bf16.gmra.mrb[56].mxu0 %vm811_vm1, %v8437_v36 }
  0x8c   : > { %7930 = vmatprep.mubr.msk.bf16.mxu0 %vm811_vm1, %v8438_v37 }
  0x93   : > { %7931 = vmatmul.mubr.msk.bf16.gmra.mrb[60].mxu0 %vm811_vm1, %v8439_v38 }
  0x94   : > { %7934 = vmatprep.mubr.msk.bf16.mxu0 %vm811_vm1, %v8440_v39 }
  0x9b   : > { %7935 = vmatmul.mubr.msk.bf16.gmra.mrb[64].mxu0 %vm811_vm1, %v8441_v40 }
  0x9c   : > { %7938 = vmatprep.mubr.msk.bf16.mxu0 %vm811_vm1, %v8442_v41 }
  0xa3   : > { %7939 = vmatmul.mubr.msk.bf16.gmra.mrb[68].mxu0 %vm811_vm1, %v8443_v42 }
  0xa4   : > { %7942 = vmatprep.mubr.msk.bf16.mxu0 %vm811_vm1, %v8444_v43 }
  0xab   : > { %7943 = vmatmul.mubr.msk.bf16.gmra.mrb[72].mxu0 %vm811_vm1, %v8445_v44 }
  0xee   : > { %v7872_v46 = vpop.f32.mrb[0].mxu0 }
  0xef   : > { %v973_v47 = vadd.f32 %v7872_v46, %v8878_v45  ;;  %v964_v48 = vpop.f32.mrb[1].mxu0 }
  0xf0   : > { %v965_v49 = vadd.f32 %v8878_v45, %v964_v48  ;;  %v7873_v50 = vpop.f32.mrb[2].mxu0 }
  0xf1   : > { %v976_v51 = vadd.f32 %v7873_v50, %v8878_v45  ;;  %v967_v52 = vpop.f32.mrb[3].mxu0  ;;  %v1268_v54 = vmax.f32 %v973_v47, 0.0 }
  0xf2   : > { %v968_v53 = vadd.f32 %v8878_v45, %v967_v52  ;;  %v1266_v56 = vmax.f32 %v965_v49, 0.0 }
  0xf3   : > { %v1269_v55 = vmax.f32 %v976_v51, 0.0 }
  0xf4   : > { %v1267_v57 = vmax.f32 %v968_v53, 0.0 }
  0xf5   : > { %v1342_v58 = vpack.c.bf16 %v1269_v55, %v1268_v54 }
  0xf6   : > { %v7876_v59 = vpop.f32.mrb[4].mxu0  ;;  %v1341_v60 = vpack.c.bf16 %v1267_v57, %v1266_v56 }
  0xf7   : > { %v989_v61 = vadd.f32 %v7876_v59, %v8878_v45  ;;  %v980_v62 = vpop.f32.mrb[5].mxu0 }
  0xf8   : > { %v981_v63 = vadd.f32 %v8878_v45, %v980_v62  ;;  %v7877_v0 = vpop.f32.mrb[6].mxu0  ;;  %7950 = vmatprep.mubr.msk.bf16.mxu1 %vm1391_vm3, %v1341_v60 }
  0xf9   : > { %v992_v1 = vadd.f32 %v7877_v0, %v8878_v45  ;;  %v983_v2 = vpop.f32.mrb[7].mxu0  ;;  %7951 = vmatmul.mubr.msk.bf16.vlgmr.msra.gmra.mrb[0].mxu1 %vm1391_vm3, %v1342_v58  ;;  %v1272_v4 = vmax.f32 %v989_v61, 0.0 }
  0xfa   : > { %v984_v3 = vadd.f32 %v8878_v45, %v983_v2  ;;  %v1270_v6 = vmax.f32 %v981_v63, 0.0 }
  0xfb   : > { %v1273_v5 = vmax.f32 %v992_v1, 0.0 }
  0xfc   : > { %v1271_v7 = vmax.f32 %v984_v3, 0.0 }
  0xfd   : > { %v1344_v8 = vpack.c.bf16 %v1273_v5, %v1272_v4 }
  0xfe   : > { %v1343_v9 = vpack.c.bf16 %v1271_v7, %v1270_v6  ;;  %v7880_v10 = vpop.f32.mrb[8].mxu0 }
  0xff   : > { %v1005_v11 = vadd.f32 %v7880_v10, %v8878_v45  ;;  %v996_v12 = vpop.f32.mrb[9].mxu0 }
 0x100   : > { %v997_v13 = vadd.f32 %v8878_v45, %v996_v12  ;;  %v7881_v14 = vpop.f32.mrb[10].mxu0  ;;  %7954 = vmatprep.mubr.msk.bf16.mxu1 %vm1391_vm3, %v1343_v9 }
 0x101   : > { %v1008_v15 = vadd.f32 %v7881_v14, %v8878_v45  ;;  %v999_v16 = vpop.f32.mrb[11].mxu0  ;;  %7955 = vmatmul.mubr.msk.bf16.gmra.mrb[4].mxu1 %vm1391_vm3, %v1344_v8  ;;  %v1276_v18 = vmax.f32 %v1005_v11, 0.0 }
 0x102   : > { %v1000_v17 = vadd.f32 %v8878_v45, %v999_v16  ;;  %v1274_v20 = vmax.f32 %v997_v13, 0.0 }
 0x103   : > { %v1277_v19 = vmax.f32 %v1008_v15, 0.0 }
 0x104   : > { %v1275_v21 = vmax.f32 %v1000_v17, 0.0 }
 0x105   : > { %v1346_v22 = vpack.c.bf16 %v1277_v19, %v1276_v18 }
 0x106   : > { %v1345_v23 = vpack.c.bf16 %v1275_v21, %v1274_v20  ;;  %v7884_v24 = vpop.f32.mrb[12].mxu0 }
 0x107   : > { %v1021_v25 = vadd.f32 %v7884_v24, %v8878_v45  ;;  %v1012_v26 = vpop.f32.mrb[13].mxu0 }
 0x108   : > { %v1013_v27 = vadd.f32 %v8878_v45, %v1012_v26  ;;  %v7885_v28 = vpop.f32.mrb[14].mxu0  ;;  %7958 = vmatprep.mubr.msk.bf16.mxu1 %vm1391_vm3, %v1345_v23 }
 0x109   : > { %v1024_v29 = vadd.f32 %v7885_v28, %v8878_v45  ;;  %v1015_v30 = vpop.f32.mrb[15].mxu0  ;;  %7959 = vmatmul.mubr.msk.bf16.gmra.mrb[8].mxu1 %vm1391_vm3, %v1346_v22  ;;  %v1280_v32 = vmax.f32 %v1021_v25, 0.0 }
 0x10a   : > { %v1016_v31 = vadd.f32 %v8878_v45, %v1015_v30  ;;  %v1278_v34 = vmax.f32 %v1013_v27, 0.0 }
 0x10b   : > { %v1281_v33 = vmax.f32 %v1024_v29, 0.0 }
 0x10c   : > { %v1279_v35 = vmax.f32 %v1016_v31, 0.0 }
 0x10d   : > { %v1348_v36 = vpack.c.bf16 %v1281_v33, %v1280_v32 }
 0x10e   : > { %v1347_v37 = vpack.c.bf16 %v1279_v35, %v1278_v34  ;;  %v7888_v38 = vpop.f32.mrb[16].mxu0 }
 0x10f   : > { %v1037_v39 = vadd.f32 %v7888_v38, %v8878_v45  ;;  %v1028_v40 = vpop.f32.mrb[17].mxu0 }
 0x110   : > { %v1029_v41 = vadd.f32 %v8878_v45, %v1028_v40  ;;  %v7889_v42 = vpop.f32.mrb[18].mxu0  ;;  %7962 = vmatprep.mubr.msk.bf16.mxu1 %vm1391_vm3, %v1347_v37 }
 0x111   : > { %v1040_v43 = vadd.f32 %v7889_v42, %v8878_v45  ;;  %v1031_v44 = vpop.f32.mrb[19].mxu0  ;;  %7963 = vmatmul.mubr.msk.bf16.gmra.mrb[12].mxu1 %vm1391_vm3, %v1348_v36  ;;  %v1284_v47 = vmax.f32 %v1037_v39, 0.0 }
 0x112   : > { %v1032_v46 = vadd.f32 %v8878_v45, %v1031_v44  ;;  %v1282_v49 = vmax.f32 %v1029_v41, 0.0 }
 0x113   : > { %v1285_v48 = vmax.f32 %v1040_v43, 0.0 }
 0x114   : > { %v1283_v50 = vmax.f32 %v1032_v46, 0.0 }
 0x115   : > { %v1350_v51 = vpack.c.bf16 %v1285_v48, %v1284_v47 }
 0x116   : > { %v1349_v52 = vpack.c.bf16 %v1283_v50, %v1282_v49  ;;  %v7892_v53 = vpop.f32.mrb[20].mxu0 }
 0x117   : > { %v1053_v54 = vadd.f32 %v7892_v53, %v8878_v45  ;;  %v1044_v55 = vpop.f32.mrb[21].mxu0 }
 0x118   : > { %v1045_v56 = vadd.f32 %v8878_v45, %v1044_v55  ;;  %v7893_v57 = vpop.f32.mrb[22].mxu0  ;;  %7966 = vmatprep.mubr.msk.bf16.mxu1 %vm1391_vm3, %v1349_v52 }
 0x119   : > { %v1056_v58 = vadd.f32 %v7893_v57, %v8878_v45  ;;  %v1047_v59 = vpop.f32.mrb[23].mxu0  ;;  %7967 = vmatmul.mubr.msk.bf16.gmra.mrb[16].mxu1 %vm1391_vm3, %v1350_v51  ;;  %v1288_v61 = vmax.f32 %v1053_v54, 0.0 }
 0x11a   : > { %v1048_v60 = vadd.f32 %v8878_v45, %v1047_v59  ;;  %v1286_v63 = vmax.f32 %v1045_v56, 0.0 }
 0x11b   : > { %v1289_v62 = vmax.f32 %v1056_v58, 0.0 }
 0x11c   : > { %v1287_v0 = vmax.f32 %v1048_v60, 0.0 }
 0x11d   : > { %v1352_v1 = vpack.c.bf16 %v1289_v62, %v1288_v61 }
 0x11e   : > { %v1351_v2 = vpack.c.bf16 %v1287_v0, %v1286_v63  ;;  %v7896_v3 = vpop.f32.mrb[24].mxu0 }
 0x11f   : > { %v1069_v4 = vadd.f32 %v7896_v3, %v8878_v45  ;;  %v1060_v5 = vpop.f32.mrb[25].mxu0 }
 0x120   : > { %v1061_v6 = vadd.f32 %v8878_v45, %v1060_v5  ;;  %v7897_v7 = vpop.f32.mrb[26].mxu0  ;;  %7970 = vmatprep.mubr.msk.bf16.mxu1 %vm1391_vm3, %v1351_v2 }
 0x121   : > { %v1072_v8 = vadd.f32 %v7897_v7, %v8878_v45  ;;  %v1063_v9 = vpop.f32.mrb[27].mxu0  ;;  %7971 = vmatmul.mubr.msk.bf16.gmra.mrb[20].mxu1 %vm1391_vm3, %v1352_v1  ;;  %v1292_v11 = vmax.f32 %v1069_v4, 0.0 }
 0x122   : > { %v1064_v10 = vadd.f32 %v8878_v45, %v1063_v9  ;;  %v1290_v13 = vmax.f32 %v1061_v6, 0.0 }
 0x123   : > { %v1293_v12 = vmax.f32 %v1072_v8, 0.0 }
 0x124   : > { %v1291_v14 = vmax.f32 %v1064_v10, 0.0 }
 0x125   : > { %v1354_v15 = vpack.c.bf16 %v1293_v12, %v1292_v11 }
 0x126   : > { %v1353_v16 = vpack.c.bf16 %v1291_v14, %v1290_v13  ;;  %v7900_v17 = vpop.f32.mrb[28].mxu0 }
 0x127   : > { %v1085_v18 = vadd.f32 %v7900_v17, %v8878_v45  ;;  %v1076_v19 = vpop.f32.mrb[29].mxu0 }
 0x128   : > { %v1077_v20 = vadd.f32 %v8878_v45, %v1076_v19  ;;  %v7901_v21 = vpop.f32.mrb[30].mxu0  ;;  %7974 = vmatprep.mubr.msk.bf16.mxu1 %vm1391_vm3, %v1353_v16 }
 0x129   : > { %v1088_v22 = vadd.f32 %v7901_v21, %v8878_v45  ;;  %v1079_v23 = vpop.f32.mrb[31].mxu0  ;;  %7975 = vmatmul.mubr.msk.bf16.gmra.mrb[24].mxu1 %vm1391_vm3, %v1354_v15  ;;  %v1296_v25 = vmax.f32 %v1085_v18, 0.0 }
 0x12a   : > { %v1080_v24 = vadd.f32 %v8878_v45, %v1079_v23  ;;  %v1294_v27 = vmax.f32 %v1077_v20, 0.0 }
 0x12b   : > { %v1297_v26 = vmax.f32 %v1088_v22, 0.0 }
 0x12c   : > { %v1295_v28 = vmax.f32 %v1080_v24, 0.0 }
 0x12d   : > { %v1356_v29 = vpack.c.bf16 %v1297_v26, %v1296_v25 }
 0x12e   : > { %v1355_v30 = vpack.c.bf16 %v1295_v28, %v1294_v27  ;;  %v7904_v31 = vpop.f32.mrb[32].mxu0 }
 0x12f   : > { %v1101_v32 = vadd.f32 %v7904_v31, %v8878_v45  ;;  %v1092_v33 = vpop.f32.mrb[33].mxu0 }
 0x130   : > { %v1093_v34 = vadd.f32 %v8878_v45, %v1092_v33  ;;  %v7905_v35 = vpop.f32.mrb[34].mxu0  ;;  %7978 = vmatprep.mubr.msk.bf16.mxu1 %vm1391_vm3, %v1355_v30 }
 0x131   : > { %v1104_v36 = vadd.f32 %v7905_v35, %v8878_v45  ;;  %v1095_v37 = vpop.f32.mrb[35].mxu0  ;;  %7979 = vmatmul.mubr.msk.bf16.gmra.mrb[28].mxu1 %vm1391_vm3, %v1356_v29  ;;  %v1300_v39 = vmax.f32 %v1101_v32, 0.0 }
 0x132   : > { %v1096_v38 = vadd.f32 %v8878_v45, %v1095_v37  ;;  %v1298_v41 = vmax.f32 %v1093_v34, 0.0 }
 0x133   : > { %v1301_v40 = vmax.f32 %v1104_v36, 0.0 }
 0x134   : > { %v1299_v42 = vmax.f32 %v1096_v38, 0.0 }
 0x135   : > { %v1358_v43 = vpack.c.bf16 %v1301_v40, %v1300_v39 }
 0x136   : > { %v1357_v44 = vpack.c.bf16 %v1299_v42, %v1298_v41  ;;  %v7908_v46 = vpop.f32.mrb[36].mxu0 }
 0x137   : > { %v1117_v47 = vadd.f32 %v7908_v46, %v8878_v45  ;;  %v1108_v48 = vpop.f32.mrb[37].mxu0 }
 0x138   : > { %v1109_v49 = vadd.f32 %v8878_v45, %v1108_v48  ;;  %v7909_v50 = vpop.f32.mrb[38].mxu0  ;;  %7982 = vmatprep.mubr.msk.bf16.mxu1 %vm1391_vm3, %v1357_v44 }
 0x139   : > { %v1120_v51 = vadd.f32 %v7909_v50, %v8878_v45  ;;  %v1111_v52 = vpop.f32.mrb[39].mxu0  ;;  %7983 = vmatmul.mubr.msk.bf16.gmra.mrb[32].mxu1 %vm1391_vm3, %v1358_v43  ;;  %v1304_v54 = vmax.f32 %v1117_v47, 0.0 }
 0x13a   : > { %v1112_v53 = vadd.f32 %v8878_v45, %v1111_v52  ;;  %v1302_v56 = vmax.f32 %v1109_v49, 0.0 }
 0x13b   : > { %v1305_v55 = vmax.f32 %v1120_v51, 0.0 }
 0x13c   : > { %v1303_v57 = vmax.f32 %v1112_v53, 0.0 }
 0x13d   : > { %v1360_v58 = vpack.c.bf16 %v1305_v55, %v1304_v54 }
 0x13e   : > { %v1359_v59 = vpack.c.bf16 %v1303_v57, %v1302_v56  ;;  %v7912_v60 = vpop.f32.mrb[40].mxu0 }
 0x13f   : > { %v1133_v61 = vadd.f32 %v7912_v60, %v8878_v45  ;;  %v1124_v62 = vpop.f32.mrb[41].mxu0 }
 0x140   : > { %v1125_v63 = vadd.f32 %v8878_v45, %v1124_v62  ;;  %v7913_v0 = vpop.f32.mrb[42].mxu0  ;;  %7986 = vmatprep.mubr.msk.bf16.mxu1 %vm1391_vm3, %v1359_v59 }
 0x141   : > { %v1136_v1 = vadd.f32 %v7913_v0, %v8878_v45  ;;  %v1127_v2 = vpop.f32.mrb[43].mxu0  ;;  %7987 = vmatmul.mubr.msk.bf16.gmra.mrb[36].mxu1 %vm1391_vm3, %v1360_v58  ;;  %v1308_v4 = vmax.f32 %v1133_v61, 0.0 }
 0x142   : > { %v1128_v3 = vadd.f32 %v8878_v45, %v1127_v2  ;;  %v1306_v6 = vmax.f32 %v1125_v63, 0.0 }
 0x143   : > { %v1309_v5 = vmax.f32 %v1136_v1, 0.0 }
 0x144   : > { %v1307_v7 = vmax.f32 %v1128_v3, 0.0 }
 0x145   : > { %v1362_v8 = vpack.c.bf16 %v1309_v5, %v1308_v4 }
 0x146   : > { %v1361_v9 = vpack.c.bf16 %v1307_v7, %v1306_v6  ;;  %v7916_v10 = vpop.f32.mrb[44].mxu0 }
 0x147   : > { %v1149_v11 = vadd.f32 %v7916_v10, %v8878_v45  ;;  %v1140_v12 = vpop.f32.mrb[45].mxu0 }
 0x148   : > { %v1141_v13 = vadd.f32 %v8878_v45, %v1140_v12  ;;  %v7917_v14 = vpop.f32.mrb[46].mxu0  ;;  %7990 = vmatprep.mubr.msk.bf16.mxu1 %vm1391_vm3, %v1361_v9 }
 0x149   : > { %v1152_v15 = vadd.f32 %v7917_v14, %v8878_v45  ;;  %v1143_v16 = vpop.f32.mrb[47].mxu0  ;;  %7991 = vmatmul.mubr.msk.bf16.gmra.mrb[40].mxu1 %vm1391_vm3, %v1362_v8  ;;  %v1312_v18 = vmax.f32 %v1149_v11, 0.0 }
 0x14a   : > { %v1144_v17 = vadd.f32 %v8878_v45, %v1143_v16  ;;  %v1310_v20 = vmax.f32 %v1141_v13, 0.0 }
 0x14b   : > { %v1313_v19 = vmax.f32 %v1152_v15, 0.0 }
 0x14c   : > { %v1311_v21 = vmax.f32 %v1144_v17, 0.0 }
 0x14d   : > { %v1364_v22 = vpack.c.bf16 %v1313_v19, %v1312_v18 }
 0x14e   : > { %v1363_v23 = vpack.c.bf16 %v1311_v21, %v1310_v20  ;;  %v7920_v24 = vpop.f32.mrb[48].mxu0 }
 0x14f   : > { %v1165_v25 = vadd.f32 %v7920_v24, %v8878_v45  ;;  %v1156_v26 = vpop.f32.mrb[49].mxu0 }
 0x150   : > { %v1157_v27 = vadd.f32 %v8878_v45, %v1156_v26  ;;  %v7921_v28 = vpop.f32.mrb[50].mxu0  ;;  %7994 = vmatprep.mubr.msk.bf16.mxu1 %vm1391_vm3, %v1363_v23 }
 0x151   : > { %v1168_v29 = vadd.f32 %v7921_v28, %v8878_v45  ;;  %v1159_v30 = vpop.f32.mrb[51].mxu0  ;;  %7995 = vmatmul.mubr.msk.bf16.gmra.mrb[44].mxu1 %vm1391_vm3, %v1364_v22  ;;  %v1316_v32 = vmax.f32 %v1165_v25, 0.0 }
 0x152   : > { %v1160_v31 = vadd.f32 %v8878_v45, %v1159_v30  ;;  %v1314_v34 = vmax.f32 %v1157_v27, 0.0 }
 0x153   : > { %v1317_v33 = vmax.f32 %v1168_v29, 0.0 }
 0x154   : > { %v1315_v35 = vmax.f32 %v1160_v31, 0.0 }
 0x155   : > { %v1366_v36 = vpack.c.bf16 %v1317_v33, %v1316_v32 }
 0x156   : > { %v1365_v37 = vpack.c.bf16 %v1315_v35, %v1314_v34  ;;  %v7924_v38 = vpop.f32.mrb[52].mxu0 }
 0x157   : > { %v1181_v39 = vadd.f32 %v7924_v38, %v8878_v45  ;;  %v1172_v40 = vpop.f32.mrb[53].mxu0 }
 0x158   : > { %v1173_v41 = vadd.f32 %v8878_v45, %v1172_v40  ;;  %v7925_v42 = vpop.f32.mrb[54].mxu0  ;;  %7998 = vmatprep.mubr.msk.bf16.mxu1 %vm1391_vm3, %v1365_v37 }
 0x159   : > { %v1184_v43 = vadd.f32 %v7925_v42, %v8878_v45  ;;  %v1175_v44 = vpop.f32.mrb[55].mxu0  ;;  %7999 = vmatmul.mubr.msk.bf16.gmra.mrb[48].mxu1 %vm1391_vm3, %v1366_v36  ;;  %v1320_v47 = vmax.f32 %v1181_v39, 0.0 }
 0x15a   : > { %v1176_v46 = vadd.f32 %v8878_v45, %v1175_v44  ;;  %v1318_v49 = vmax.f32 %v1173_v41, 0.0 }
 0x15b   : > { %v1321_v48 = vmax.f32 %v1184_v43, 0.0 }
 0x15c   : > { %v1319_v50 = vmax.f32 %v1176_v46, 0.0 }
 0x15d   : > { %v1368_v51 = vpack.c.bf16 %v1321_v48, %v1320_v47 }
 0x15e   : > { %v1367_v52 = vpack.c.bf16 %v1319_v50, %v1318_v49  ;;  %v7928_v53 = vpop.f32.mrb[56].mxu0 }
 0x15f   : > { %v1197_v54 = vadd.f32 %v7928_v53, %v8878_v45  ;;  %v1188_v55 = vpop.f32.mrb[57].mxu0 }
 0x160   : > { %v1189_v56 = vadd.f32 %v8878_v45, %v1188_v55  ;;  %8002 = vmatprep.mubr.msk.bf16.mxu1 %vm1391_vm3, %v1367_v52  ;;  %v7929_v57 = vpop.f32.mrb[58].mxu0 }
 0x161   : > { %v1324_v58 = vmax.f32 %v1197_v54, 0.0  ;;  %v1200_v59 = vadd.f32 %v7929_v57, %v8878_v45  ;;  %8003 = vmatmul.mubr.msk.bf16.gmra.mrb[52].mxu1 %vm1391_vm3, %v1368_v51  ;;  %v1191_v60 = vpop.f32.mrb[59].mxu0 }
 0x162   : > { %v1322_v61 = vmax.f32 %v1189_v56, 0.0  ;;  %v1192_v62 = vadd.f32 %v8878_v45, %v1191_v60 }
 0x163   : > { %v1325_v63 = vmax.f32 %v1200_v59, 0.0  ;;  %v9001_v59 = vld [vmem:[%s11901_s4] sm:$0xff] }
 0x164   : > { %v1323_v0 = vmax.f32 %v1192_v62, 0.0 }
 0x165   : > { %v1370_v1 = vpack.c.bf16 %v1325_v63, %v1324_v58  ;;  %v8996_v58 = vld [vmem:[%s11901_s4 + $0x10] sm:$0xff]  ;;  %v9012_v63 = vld [vmem:[%s11901_s4 + $0x8] sm:$0xff] }
 0x166   : > { %v1369_v2 = vpack.c.bf16 %v1323_v0, %v1322_v61  ;;  %v7932_v3 = vpop.f32.mrb[60].mxu0 }
 0x167   : > { %v1213_v4 = vadd.f32 %v7932_v3, %v8878_v45  ;;  %v1204_v5 = vpop.f32.mrb[61].mxu0 }
 0x168   : > { %8006 = vmatprep.mubr.msk.bf16.mxu1 %vm1391_vm3, %v1369_v2  ;;  %v1205_v6 = vadd.f32 %v8878_v45, %v1204_v5  ;;  %v7933_v7 = vpop.f32.mrb[62].mxu0  ;;  %v9024_v5 = vld [vmem:[%s11901_s4 + $0x30] sm:$0xff] }
 0x169   : > { %8007 = vmatmul.mubr.msk.bf16.gmra.mrb[56].mxu1 %vm1391_vm3, %v1370_v1  ;;  %v1328_v8 = vmax.f32 %v1213_v4, 0.0  ;;  %v1216_v9 = vadd.f32 %v7933_v7, %v8878_v45  ;;  %v1207_v10 = vpop.f32.mrb[63].mxu0 }
 0x16a   : > { %v1326_v11 = vmax.f32 %v1205_v6, 0.0  ;;  %v1208_v12 = vadd.f32 %v8878_v45, %v1207_v10  ;;  %v9029_v6 = vld [vmem:[%s11901_s4 + $0x20] sm:$0xff] }
 0x16b   : > { %v1329_v13 = vmax.f32 %v1216_v9, 0.0 }
 0x16c   : > { %v1327_v14 = vmax.f32 %v1208_v12, 0.0 }
 0x16d   : > { %v1372_v15 = vpack.c.bf16 %v1329_v13, %v1328_v8  ;;  %v9034_v8 = vld [vmem:[%s11901_s4 + $0x38] sm:$0xff] }
 0x16e   : > { %v1371_v16 = vpack.c.bf16 %v1327_v14, %v1326_v11  ;;  %v7936_v17 = vpop.f32.mrb[64].mxu0  ;;  %v9040_v11 = vld [vmem:[%s11901_s4 + $0x28] sm:$0xff] }
 0x16f   : > { %v1229_v18 = vadd.f32 %v7936_v17, %v8878_v45  ;;  %v1220_v19 = vpop.f32.mrb[65].mxu0  ;;  %v9052_v17 = vld [vmem:[%s11901_s4 + $0x50] sm:$0xff] }
 0x170   : > { %8010 = vmatprep.mubr.msk.bf16.mxu1 %vm1391_vm3, %v1371_v16  ;;  %v1221_v20 = vadd.f32 %v8878_v45, %v1220_v19  ;;  %v7937_v21 = vpop.f32.mrb[66].mxu0 }
 0x171   : > { %8011 = vmatmul.mubr.msk.bf16.gmra.mrb[60].mxu1 %vm1391_vm3, %v1372_v15  ;;  %v1332_v22 = vmax.f32 %v1229_v18, 0.0  ;;  %v1232_v23 = vadd.f32 %v7937_v21, %v8878_v45  ;;  %v1223_v24 = vpop.f32.mrb[67].mxu0  ;;  %v9057_v18 = vld [vmem:[%s11901_s4 + $0x40] sm:$0xff] }
 0x172   : > { %v1330_v25 = vmax.f32 %v1221_v20, 0.0  ;;  %v1224_v26 = vadd.f32 %v8878_v45, %v1223_v24  ;;  %v9062_v20 = vld [vmem:[%s11901_s4 + $0x58] sm:$0xff] }
 0x173   : > { %v1333_v27 = vmax.f32 %v1232_v23, 0.0  ;;  %v9068_v23 = vld [vmem:[%s11901_s4 + $0x48] sm:$0xff] }
 0x174   : > { %v1331_v28 = vmax.f32 %v1224_v26, 0.0 }
 0x175   : > { %v1374_v29 = vpack.c.bf16 %v1333_v27, %v1332_v22 }
 0x176   : > { %v1373_v30 = vpack.c.bf16 %v1331_v28, %v1330_v25  ;;  %v7940_v31 = vpop.f32.mrb[68].mxu0 }
 0x177   : > { %v1245_v32 = vadd.f32 %v7940_v31, %v8878_v45  ;;  %v1236_v33 = vpop.f32.mrb[69].mxu0 }
 0x178   : > { %8014 = vmatprep.mubr.msk.bf16.mxu1 %vm1391_vm3, %v1373_v30  ;;  %v1237_v34 = vadd.f32 %v8878_v45, %v1236_v33  ;;  %v7941_v35 = vpop.f32.mrb[70].mxu0  ;;  %v9085_v30 = vld [vmem:[%s11901_s4 + $0x60] sm:$0xff] }
 0x179   : > { %8015 = vmatmul.mubr.msk.bf16.gmra.mrb[64].mxu1 %vm1391_vm3, %v1374_v29  ;;  %v1336_v36 = vmax.f32 %v1245_v32, 0.0  ;;  %v1248_v37 = vadd.f32 %v7941_v35, %v8878_v45  ;;  %v1239_v38 = vpop.f32.mrb[71].mxu0  ;;  %v9080_v29 = vld [vmem:[%s11901_s4 + $0x70] sm:$0xff]  ;;  %v9090_v32 = vld [vmem:[%s11901_s4 + $0x78] sm:$0xff]  ;;  %v9096_v35 = vld [vmem:[%s11901_s4 + $0x68] sm:$0xff] }
 0x17a   : > { %v1334_v39 = vmax.f32 %v1237_v34, 0.0  ;;  %v1240_v40 = vadd.f32 %v8878_v45, %v1239_v38 }
 0x17b   : > { %v1337_v41 = vmax.f32 %v1248_v37, 0.0 }
 0x17c   : > { %v1335_v42 = vmax.f32 %v1240_v40, 0.0 }
 0x17d   : > { %v1376_v43 = vpack.c.bf16 %v1337_v41, %v1336_v36  ;;  %v9108_v41 = vld [vmem:[%s11901_s4 + $0x90] sm:$0xff] }
 0x17e   : > { %v1375_v44 = vpack.c.bf16 %v1335_v42, %v1334_v39  ;;  %v7944_v46 = vpop.f32.mrb[72].mxu0  ;;  %v9113_v42 = vld [vmem:[%s11901_s4 + $0x80] sm:$0xff] }
 0x17f   : > { %v1261_v47 = vadd.f32 %v7944_v46, %v8878_v45  ;;  %v1252_v48 = vpop.f32.mrb[73].mxu0 }
 0x180   : > { %8018 = vmatprep.mubr.msk.bf16.mxu1 %vm1391_vm3, %v1375_v44  ;;  %v1253_v49 = vadd.f32 %v8878_v45, %v1252_v48  ;;  %v7945_v50 = vpop.f32.mrb[74].mxu0  ;;  %v9118_v44 = vld [vmem:[%s11901_s4 + $0x98] sm:$0xff]  ;;  %v9124_v48 = vld [vmem:[%s11901_s4 + $0x88] sm:$0xff] }
 0x181   : > { %8019 = vmatmul.mubr.msk.bf16.gmra.mrb[68].mxu1 %vm1391_vm3, %v1376_v43  ;;  %v1340_v51 = vmax.f32 %v1261_v47, 0.0  ;;  %v1255_v52 = vpop.f32.mrb[75].mxu0 }
 0x182   : > { %v1338_v53 = vmax.f32 %v1253_v49, 0.0  ;;  %v1256_v54 = vadd.f32 %v8878_v45, %v1255_v52  ;;  %v9006_v45 = vld [vmem:[%s11901_s4 + $0x18] sm:$0xff] }
 0x183   : > { %v1378_v56 = vpack.c.bf16 %v1340_v51, %v1340_v51 }
 0x184   : > { %v1339_v55 = vmax.f32 %v1256_v54, 0.0  ;;  %v9136_v54 = vld [vmem:[%s11901_s4 + $0xb0] sm:$0xff] }
 0x186   : > { %v1377_v57 = vpack.c.bf16 %v1339_v55, %v1338_v53  ;;  %v9141_v55 = vld [vmem:[%s11901_s4 + $0xa0] sm:$0xff] }
 0x188   : > { %8022 = vmatprep.mubr.msk.bf16.mxu1 %vm1391_vm3, %v1377_v57  ;;  %v9146_v57 = vld [vmem:[%s11901_s4 + $0xb8] sm:$0xff] }
 0x189   : > { %8023 = vmatmul.mubr.msk.bf16.gmra.mrb[72].mxu1 %vm1391_vm3, %v1378_v56  ;;  %vm6988_vm3 = vcmask 18432  }
 0x1cc   : > { %v7952_v60 = vpop.f32.mrb[0].mxu1 }
 0x1cd   : > { %v1873_v61 = vadd.f32 %v7952_v60, %v8996_v58  ;;  %v1544_v62 = vpop.f32.mrb[1].mxu1 }
 0x1ce   : > { %v1871_v0 = vadd.f32 %v9001_v59, %v1544_v62  ;;  %v7953_v1 = vpop.f32.mrb[2].mxu1  ;;  %v9152_v62 = vld [vmem:[%s11901_s4 + $0xa8] sm:$0xff] }
 0x1cf   : > { %1899 = vst.msk [vmem:[#allocation2 + $0x10] sm:$0xff] %vm1896_vm4, %v1873_v61  ;;  %v1874_v2 = vadd.f32 %v7953_v1, %v9006_v45  ;;  %v1547_v3 = vpop.f32.mrb[3].mxu1 }
 0x1d0   : > { %1897 = vst.msk [vmem:[#allocation2] sm:$0xff] %vm1896_vm4, %v1871_v0  ;;  %v1872_v4 = vadd.f32 %v9012_v63, %v1547_v3 }
 0x1d1   : > { %1900 = vst.msk [vmem:[#allocation2 + $0x18] sm:$0xff] %vm1896_vm4, %v1874_v2 }
 0x1d2   : > { %1898 = vst.msk [vmem:[#allocation2 + $0x8] sm:$0xff] %vm1896_vm4, %v1872_v4 }
 0x1d4   : > { %v7956_v7 = vpop.f32.mrb[4].mxu1 }
 0x1d5   : > { %v1877_v9 = vadd.f32 %v7956_v7, %v9024_v5  ;;  %v1560_v10 = vpop.f32.mrb[5].mxu1  ;;  %v9164_v7 = vld [vmem:[%s11901_s4 + $0xc0] sm:$0xf] }
 0x1d6   : > { %v1875_v12 = vadd.f32 %v9029_v6, %v1560_v10  ;;  %v7957_v13 = vpop.f32.mrb[6].mxu1  ;;  %v11914_v10 = vmov 0  }
 0x1d7   : > { %1903 = vst.msk [vmem:[#allocation2 + $0x30] sm:$0xff] %vm1896_vm4, %v1877_v9  ;;  %v1878_v14 = vadd.f32 %v7957_v13, %v9034_v8  ;;  %v1563_v15 = vpop.f32.mrb[7].mxu1  ;;  %8403 = vset.pattern.permute.xlu0 %v11914_v10  ;;  %8404 = vset.pattern.permute.xlu1 %v11914_v10 }
 0x1d8   : > { %1901 = vst.msk [vmem:[#allocation2 + $0x20] sm:$0xff] %vm1896_vm4, %v1875_v12  ;;  %v1876_v16 = vadd.f32 %v9040_v11, %v1563_v15  ;;  %2670 = vmatprep.subr.bf16.mxu1 %v11914_v10 }
 0x1d9   : > { %1904 = vst.msk [vmem:[#allocation2 + $0x38] sm:$0xff] %vm1896_vm4, %v1878_v14 }
 0x1da   : > { %1902 = vst.msk [vmem:[#allocation2 + $0x28] sm:$0xff] %vm1896_vm4, %v1876_v16 }
 0x1dc   : > { %v7960_v19 = vpop.f32.mrb[8].mxu1 }
 0x1dd   : > { %v1881_v21 = vadd.f32 %v7960_v19, %v9052_v17  ;;  %v1576_v22 = vpop.f32.mrb[9].mxu1 }
 0x1de   : > { %v1879_v24 = vadd.f32 %v9057_v18, %v1576_v22  ;;  %v7961_v25 = vpop.f32.mrb[10].mxu1 }
 0x1df   : > { %1907 = vst.msk [vmem:[#allocation2 + $0x50] sm:$0xff] %vm1896_vm4, %v1881_v21  ;;  %v1882_v26 = vadd.f32 %v7961_v25, %v9062_v20  ;;  %v1579_v27 = vpop.f32.mrb[11].mxu1 }
 0x1e0   : > { %1905 = vst.msk [vmem:[#allocation2 + $0x40] sm:$0xff] %vm1896_vm4, %v1879_v24  ;;  %v1880_v28 = vadd.f32 %v9068_v23, %v1579_v27 }
 0x1e1   : > { %1908 = vst.msk [vmem:[#allocation2 + $0x58] sm:$0xff] %vm1896_vm4, %v1882_v26 }
 0x1e2   : > { %1906 = vst.msk [vmem:[#allocation2 + $0x48] sm:$0xff] %vm1896_vm4, %v1880_v28 }
 0x1e4   : > { %v7964_v31 = vpop.f32.mrb[12].mxu1 }
 0x1e5   : > { %v1885_v33 = vadd.f32 %v7964_v31, %v9080_v29  ;;  %v1592_v34 = vpop.f32.mrb[13].mxu1 }
 0x1e6   : > { %v1883_v36 = vadd.f32 %v9085_v30, %v1592_v34  ;;  %v7965_v37 = vpop.f32.mrb[14].mxu1 }
 0x1e7   : > { %1911 = vst.msk [vmem:[#allocation2 + $0x70] sm:$0xff] %vm1896_vm4, %v1885_v33  ;;  %v1886_v38 = vadd.f32 %v7965_v37, %v9090_v32  ;;  %v1595_v39 = vpop.f32.mrb[15].mxu1 }
 0x1e8   : > { %1909 = vst.msk [vmem:[#allocation2 + $0x60] sm:$0xff] %vm1896_vm4, %v1883_v36  ;;  %v1884_v40 = vadd.f32 %v9096_v35, %v1595_v39 }
 0x1e9   : > { %1912 = vst.msk [vmem:[#allocation2 + $0x78] sm:$0xff] %vm1896_vm4, %v1886_v38 }
 0x1ea   : > { %1910 = vst.msk [vmem:[#allocation2 + $0x68] sm:$0xff] %vm1896_vm4, %v1884_v40 }
 0x1ec   : > { %v7968_v43 = vpop.f32.mrb[16].mxu1 }
 0x1ed   : > { %v1889_v46 = vadd.f32 %v7968_v43, %v9108_v41  ;;  %v1608_v47 = vpop.f32.mrb[17].mxu1 }
 0x1ee   : > { %v1887_v49 = vadd.f32 %v9113_v42, %v1608_v47  ;;  %v7969_v50 = vpop.f32.mrb[18].mxu1 }
 0x1ef   : > { %1915 = vst.msk [vmem:[#allocation2 + $0x90] sm:$0xff] %vm1896_vm4, %v1889_v46  ;;  %v1890_v51 = vadd.f32 %v7969_v50, %v9118_v44  ;;  %v1611_v52 = vpop.f32.mrb[19].mxu1 }
 0x1f0   : > { %1913 = vst.msk [vmem:[#allocation2 + $0x80] sm:$0xff] %vm1896_vm4, %v1887_v49  ;;  %v1888_v53 = vadd.f32 %v9124_v48, %v1611_v52 }
 0x1f1   : > { %1916 = vst.msk [vmem:[#allocation2 + $0x98] sm:$0xff] %vm1896_vm4, %v1890_v51 }
 0x1f2   : > { %1914 = vst.msk [vmem:[#allocation2 + $0x88] sm:$0xff] %vm1896_vm4, %v1888_v53 }
 0x1f4   : > { %v7972_v56 = vpop.f32.mrb[20].mxu1 }
 0x1f5   : > { %v1893_v60 = vadd.f32 %v7972_v56, %v9136_v54  ;;  %v1624_v61 = vpop.f32.mrb[21].mxu1 }
 0x1f6   : > { %v1891_v0 = vadd.f32 %v9141_v55, %v1624_v61  ;;  %v7973_v1 = vpop.f32.mrb[22].mxu1 }
 0x1f7   : > { %1919 = vst.msk [vmem:[#allocation2 + $0xb0] sm:$0xff] %vm1896_vm4, %v1893_v60  ;;  %v1894_v2 = vadd.f32 %v7973_v1, %v9146_v57  ;;  %v1627_v3 = vpop.f32.mrb[23].mxu1 }
 0x1f8   : > { %1917 = vst.msk [vmem:[#allocation2 + $0xa0] sm:$0xff] %vm1896_vm4, %v1891_v0  ;;  %v1892_v4 = vadd.f32 %v9152_v62, %v1627_v3 }
 0x1f9   : > { %1920 = vst.msk [vmem:[#allocation2 + $0xb8] sm:$0xff] %vm1896_vm4, %v1894_v2 }
 0x1fa   : > { %1918 = vst.msk [vmem:[#allocation2 + $0xa8] sm:$0xff] %vm1896_vm4, %v1892_v4 }
 0x1fc   : > { %v7976_v9 = vpop.f32.mrb[24].mxu1 }
 0x1fd   : > { %v1924_v12 = vadd.f32 %v7976_v9, %v9012_v63  ;;  %v1640_v13 = vpop.f32.mrb[25].mxu1 }
 0x1fe   : > { %v1895_v14 = vadd.f32 %v9164_v7, %v1640_v13  ;;  %v7977_v15 = vpop.f32.mrb[26].mxu1 }
 0x1ff   : > { %1975 = vrot.lane.b32.xlu0 %v1924_v12, %s8676_s25  ;;  %v1643_v16 = vpop.f32.mrb[27].mxu1  ;;  %v1925_v19 = vadd.f32 %v7977_v15, %v8996_v58 }
 0x200   : > { %1922 = vst.msk [vmem:[#allocation2 + $0xc0] sm:$0xf] %vm1921_vm5, %v1895_v14  ;;  %v1923_v22 = vadd.f32 %v9001_v59, %v1643_v16 }
 0x203   : > { %1977 = vrot.lane.b32.xlu0 %v1925_v19, %s8676_s25 }
 0x204   : > { %v7980_v21 = vpop.f32.mrb[28].mxu1 }
 0x205   : > { %v1656_v24 = vpop.f32.mrb[29].mxu1  ;;  %v1928_v27 = vadd.f32 %v7980_v21, %v9040_v11 }
 0x206   : > { %v7981_v25 = vpop.f32.mrb[30].mxu1  ;;  %v1926_v31 = vadd.f32 %v9006_v45, %v1656_v24 }
 0x207   : > { %1973 = vrot.lane.b32.xlu0 %v1923_v22, %s8676_s25  ;;  %v1659_v26 = vpop.f32.mrb[31].mxu1  ;;  %v1929_v37 = vadd.f32 %v7981_v25, %v9024_v5 }
 0x208   : > { %v1927_v39 = vadd.f32 %v9029_v6, %v1659_v26 }
 0x20b   : > { %1983 = vrot.lane.b32.xlu0 %v1928_v27, %s8676_s25 }
 0x20c   : > { %v7984_v28 = vpop.f32.mrb[32].mxu1 }
 0x20d   : > { %v1672_v33 = vpop.f32.mrb[33].mxu1  ;;  %v1932_v47 = vadd.f32 %v7984_v28, %v9068_v23 }
 0x20e   : > { %v7985_v34 = vpop.f32.mrb[34].mxu1  ;;  %v1930_v50 = vadd.f32 %v9034_v8, %v1672_v33 }
 0x20f   : > { %1979 = vrot.lane.b32.xlu0 %v1926_v31, %s8676_s25  ;;  %v1675_v36 = vpop.f32.mrb[35].mxu1  ;;  %v1933_v56 = vadd.f32 %v7985_v34, %v9052_v17 }
 0x210   : > { %v1931_v61 = vadd.f32 %v9057_v18, %v1675_v36 }
 0x213   : > { %1985 = vrot.lane.b32.xlu0 %v1929_v37, %s8676_s25 }
 0x214   : > { %v7988_v38 = vpop.f32.mrb[36].mxu1 }
 0x215   : > { %v1688_v40 = vpop.f32.mrb[37].mxu1  ;;  %v1936_v3 = vadd.f32 %v7988_v38, %v9096_v35 }
 0x216   : > { %v7989_v43 = vpop.f32.mrb[38].mxu1  ;;  %v1934_v9 = vadd.f32 %v9062_v20, %v1688_v40 }
 0x217   : > { %1981 = vrot.lane.b32.xlu0 %v1927_v39, %s8676_s25  ;;  %v1691_v46 = vpop.f32.mrb[39].mxu1  ;;  %v1937_v16 = vadd.f32 %v7989_v43, %v9080_v29 }
 0x21b   : > { %1991 = vrot.lane.b32.xlu0 %v1932_v47, %s8676_s25 }
 0x21c   : > { %v7992_v49 = vpop.f32.mrb[40].mxu1 }
 0x21d   : > { %v1704_v51 = vpop.f32.mrb[41].mxu1  ;;  %v1940_v27 = vadd.f32 %v7992_v49, %v9124_v48 }
 0x21e   : > { %v7993_v52 = vpop.f32.mrb[42].mxu1  ;;  %v1938_v31 = vadd.f32 %v9090_v32, %v1704_v51 }
 0x21f   : > { %1987 = vrot.lane.b32.xlu0 %v1930_v50, %s8676_s25  ;;  %v1707_v53 = vpop.f32.mrb[43].mxu1  ;;  %v1941_v37 = vadd.f32 %v7993_v52, %v9108_v41 }
 0x220   : > { %v1939_v39 = vadd.f32 %v9113_v42, %v1707_v53 }
 0x223   : > { %1993 = vrot.lane.b32.xlu0 %v1933_v56, %s8676_s25 }
 0x224   : > { %v7996_v60 = vpop.f32.mrb[44].mxu1 }
 0x225   : > { %v1720_v0 = vpop.f32.mrb[45].mxu1  ;;  %v1944_v47 = vadd.f32 %v7996_v60, %v9152_v62 }
 0x226   : > { %v7997_v1 = vpop.f32.mrb[46].mxu1  ;;  %v1942_v50 = vadd.f32 %v9118_v44, %v1720_v0 }
 0x227   : > { %1989 = vrot.lane.b32.xlu0 %v1931_v61, %s8676_s25  ;;  %v9192_v2 = vpop.f32.mrb[47].mxu1  ;;  %v1945_v56 = vadd.f32 %v7997_v1, %v9136_v54 }
 0x228   : > { %v1943_v61 = vadd.f32 %v9141_v55, %v9192_v2 }
 0x22b   : > { %1999 = vrot.lane.b32.xlu0 %v1936_v3, %s8676_s25 }
 0x22c   : > { %v8000_v4 = vpop.f32.mrb[48].mxu1 }
 0x22d   : > { %v2075_v12 = vadd.f32 %v8000_v4, %v9001_v59  ;;  %v9198_v13 = vpop.f32.mrb[49].mxu1  ;;  %v1935_v59 = vadd.f32 %v9085_v30, %v1691_v46 }
 0x22e   : > { %v8001_v14 = vpop.f32.mrb[50].mxu1 }
 0x22f   : > { %1995 = vrot.lane.b32.xlu0 %v1934_v9, %s8676_s25  ;;  %2125 = vrot.lane.b32.xlu1 %v2075_v12, %s8677_s26  ;;  %v9202_v15 = vpop.f32.mrb[51].mxu1  ;;  %v2076_v19 = vadd.f32 %v8001_v14, %v9012_v63 }
 0x233   : > { %2001 = vrot.lane.b32.xlu0 %v1937_v16, %s8676_s25  ;;  %2127 = vrot.lane.b32.xlu1 %v2076_v19, %s8677_s26  ;;  %v2479_v19 = vld [vmem:[%s11903_s6 + $0x28] sm:$0xff] }
 0x234   : > { %v8004_v21 = vpop.f32.mrb[52].mxu1 }
 0x235   : > { %v2079_v22 = vadd.f32 %v8004_v21, %v9029_v6  ;;  %v1752_v24 = vpop.f32.mrb[53].mxu1 }
 0x236   : > { %v8005_v25 = vpop.f32.mrb[54].mxu1  ;;  %v2077_v63 = vadd.f32 %v8996_v58, %v1752_v24 }
 0x237   : > { %1997 = vrot.lane.b32.xlu0 %v1935_v59, %s8676_s25  ;;  %2133 = vrot.lane.b32.xlu1 %v2079_v22, %s8677_s26  ;;  %v1755_v26 = vpop.f32.mrb[55].mxu1  ;;  %v2080_v6 = vadd.f32 %v8005_v25, %v9040_v11 }
 0x238   : > { %v2078_v58 = vadd.f32 %v9006_v45, %v1755_v26 }
 0x23b   : > { %2007 = vrot.lane.b32.xlu0 %v1940_v27, %s8676_s25  ;;  %2129 = vrot.lane.b32.xlu1 %v2077_v63, %s8677_s26 }
 0x23c   : > { %v8008_v28 = vpop.f32.mrb[56].mxu1 }
 0x23d   : > { %v1768_v33 = vpop.f32.mrb[57].mxu1  ;;  %v2083_v11 = vadd.f32 %v8008_v28, %v9057_v18 }
 0x23e   : > { %v8009_v34 = vpop.f32.mrb[58].mxu1  ;;  %v2081_v45 = vadd.f32 %v9024_v5, %v1768_v33 }
 0x23f   : > { %2003 = vrot.lane.b32.xlu0 %v1938_v31, %s8676_s25  ;;  %2135 = vrot.lane.b32.xlu1 %v2080_v6, %s8677_s26  ;;  %v1771_v36 = vpop.f32.mrb[59].mxu1  ;;  %v2084_v18 = vadd.f32 %v8009_v34, %v9068_v23 }
 0x240   : > { %v2082_v5 = vadd.f32 %v9034_v8, %v1771_v36  ;;  %v1946_v8 = vadd.f32 %v9146_v57, %v9198_v13 }
 0x243   : > { %2009 = vrot.lane.b32.xlu0 %v1941_v37, %s8676_s25  ;;  %2131 = vrot.lane.b32.xlu1 %v2078_v58, %s8677_s26 }
 0x244   : > { %v8012_v38 = vpop.f32.mrb[60].mxu1 }
 0x245   : > { %v1784_v40 = vpop.f32.mrb[61].mxu1  ;;  %v2087_v23 = vadd.f32 %v8012_v38, %v9085_v30  ;;  %v1947_v30 = vadd.f32 %v9164_v7, %v9202_v15 }
 0x246   : > { %v8013_v43 = vpop.f32.mrb[62].mxu1  ;;  %v2085_v1 = vadd.f32 %v9052_v17, %v1784_v40  ;;  %v2474_v17 = vld [vmem:[%s11903_s6] sm:$0xff]  ;;  %v3064_v40 = vld [vmem:[%s11905_s8 + $0x58] sm:$0xff] }
 0x247   : > { %2005 = vrot.lane.b32.xlu0 %v1939_v39, %s8676_s25  ;;  %2141 = vrot.lane.b32.xlu1 %v2083_v11, %s8677_s26  ;;  %v1787_v46 = vpop.f32.mrb[63].mxu1  ;;  %v2088_v2 = vadd.f32 %v8013_v43, %v9096_v35  ;;  %v2477_v35 = vld [vmem:[%s11903_s6 + $0x18] sm:$0xff]  ;;  %v3062_v39 = vld [vmem:[%s11905_s8 + $0x48] sm:$0xff] }
 0x248   : > { %v2086_v16 = vadd.f32 %v9062_v20, %v1787_v46  ;;  %v2481_v20 = vld [vmem:[%s11903_s6 + $0x38] sm:$0xff]  ;;  %v2478_v46 = vld [vmem:[%s11903_s6 + $0x20] sm:$0xff] }
 0x24b   : > { %2015 = vrot.lane.b32.xlu0 %v1944_v47, %s8676_s25  ;;  %2137 = vrot.lane.b32.xlu1 %v2081_v45, %s8677_s26  ;;  %v3066_v47 = vld [vmem:[%s11905_s8 + $0x68] sm:$0xff] }
 0x24c   : > { %v8016_v49 = vpop.f32.mrb[64].mxu1 }
 0x24d   : > { %v1800_v51 = vpop.f32.mrb[65].mxu1  ;;  %v2091_v15 = vadd.f32 %v8016_v49, %v9113_v42  ;;  %v2483_v42 = vld [vmem:[%s11903_s6 + $0x48] sm:$0xff]  ;;  %v2480_v49 = vld [vmem:[%s11903_s6 + $0x30] sm:$0xff] }
 0x24e   : > { %v8017_v52 = vpop.f32.mrb[66].mxu1  ;;  %v2089_v21 = vadd.f32 %v9080_v29, %v1800_v51  ;;  %v2482_v51 = vld [vmem:[%s11903_s6 + $0x40] sm:$0xff] }
 0x24f   : > { %2011 = vrot.lane.b32.xlu0 %v1942_v50, %s8676_s25  ;;  %2143 = vrot.lane.b32.xlu1 %v2084_v18, %s8677_s26  ;;  %v1803_v53 = vpop.f32.mrb[67].mxu1  ;;  %v2092_v59 = vadd.f32 %v8017_v52, %v9124_v48  ;;  %v2485_v48 = vld [vmem:[%s11903_s6 + $0x58] sm:$0xff]  ;;  %v3070_v52 = vld [vmem:[%s11905_s8 + $0x88] sm:$0xff] }
 0x250   : > { %v2090_v22 = vadd.f32 %v9090_v32, %v1803_v53  ;;  %v2487_v32 = vld [vmem:[%s11903_s6 + $0x68] sm:$0xff]  ;;  %v3068_v50 = vld [vmem:[%s11905_s8 + $0x78] sm:$0xff] }
 0x253   : > { %2017 = vrot.lane.b32.xlu0 %v1945_v56, %s8676_s25  ;;  %2139 = vrot.lane.b32.xlu1 %v2082_v5, %s8677_s26  ;;  %v2484_v5 = vld [vmem:[%s11903_s6 + $0x50] sm:$0xff] }
 0x254   : > { %v8020_v60 = vpop.f32.mrb[68].mxu1 }
 0x255   : > { %v1816_v0 = vpop.f32.mrb[69].mxu1  ;;  %v2095_v24 = vadd.f32 %v8020_v60, %v9141_v55  ;;  %v2489_v55 = vld [vmem:[%s11903_s6 + $0x78] sm:$0xff] }
 0x256   : > { %v8021_v3 = vpop.f32.mrb[70].mxu1  ;;  %v2093_v26 = vadd.f32 %v9108_v41, %v1816_v0  ;;  %v3054_v41 = vld [vmem:[%s11905_s8 + $0x8] sm:$0xff]  ;;  %v3072_v60 = vld [vmem:[%s11905_s8 + $0x98] sm:$0xff]  ;;  %v2486_v0 = vld [vmem:[%s11903_s6 + $0x60] sm:$0xff] }
 0x257   : > { %2013 = vrot.lane.b32.xlu0 %v1943_v61, %s8676_s25  ;;  %2149 = vrot.lane.b32.xlu1 %v2087_v23, %s8677_s26  ;;  %v1819_v4 = vpop.f32.mrb[71].mxu1  ;;  %v2096_v63 = vadd.f32 %v8021_v3, %v9152_v62  ;;  %v3056_v62 = vld [vmem:[%s11905_s8 + $0x18] sm:$0xff]  ;;  %v3074_v3 = vld [vmem:[%s11905_s8 + $0xa8] sm:$0xff] }
 0x258   : > { %v2094_v31 = vadd.f32 %v9118_v44, %v1819_v4  ;;  %v3058_v44 = vld [vmem:[%s11905_s8 + $0x28] sm:$0xff] }
 0x25b   : > { %2019 = vrot.lane.b32.xlu0 %v1946_v8, %s8676_s25  ;;  %2145 = vrot.lane.b32.xlu1 %v2085_v1, %s8677_s26  ;;  %v2488_v1 = vld [vmem:[%s11903_s6 + $0x70] sm:$0xff] }
 0x25c   : > { %v9250_v9 = vpop.f32.mrb[72].mxu1 }
 0x25d   : > { %v1832_v12 = vpop.f32.mrb[73].mxu1  ;;  %v2099_v58 = vadd.f32 %v9250_v9, %v9164_v7  ;;  %v2476_v7 = vld [vmem:[%s11903_s6 + $0x10] sm:$0xff]  ;;  %v3076_v9 = vld [vmem:[%s11905_s8 + $0xb8] sm:$0xff] }
 0x25e   : > { %v8025_v14 = vpop.f32.mrb[74].mxu1  ;;  %v2097_v33 = vadd.f32 %v9136_v54, %v1832_v12  ;;  %v3060_v54 = vld [vmem:[%s11905_s8 + $0x38] sm:$0xff]  ;;  %v3053_v12 = vld [vmem:[%s11905_s8] sm:$0xff] }
 0x25f   : > { %2021 = vrot.lane.b32.xlu0 %v1947_v30, %s8676_s25  ;;  %2151 = vrot.lane.b32.xlu1 %v2088_v2, %s8677_s26  ;;  %v1835_v13 = vpop.f32.mrb[75].mxu1  ;;  %v7235_v14 = vld [vmem:[%s11903_s6 + $0x80] sm:$0xff] }
 0x260   : > { %v2098_v36 = vadd.f32 %v9146_v57, %v1835_v13  ;;  %v2475_v57 = vld [vmem:[%s11903_s6 + $0x8] sm:$0xff] }
 0x263   : > { %2147 = vrot.lane.b32.xlu1 %v2086_v16, %s8677_s26  ;;  %2492 = vperm.xlu0 %8403, %v2474_v17   ;;  %v3055_v16 = vld [vmem:[%s11905_s8 + $0x10] sm:$0xff] }
 0x267   : > { %2157 = vrot.lane.b32.xlu1 %v2091_v15, %s8677_s26  ;;  %2507 = vperm.xlu0 %8403, %v2477_v35   ;;  %v7237_v35 = vld [vmem:[%s11903_s6 + $0x90] sm:$0xff] }
 0x26b   : > { %2153 = vrot.lane.b32.xlu1 %v2089_v21, %s8677_s26  ;;  %2517 = vperm.xlu0 %8403, %v2479_v19   ;;  %v3057_v21 = vld [vmem:[%s11905_s8 + $0x20] sm:$0xff] }
 0x26f   : > { %2159 = vrot.lane.b32.xlu1 %v2092_v59, %s8677_s26  ;;  %2527 = vperm.xlu0 %8403, %v2481_v20   ;;  %v7239_v20 = vld [vmem:[%s11903_s6 + $0xa0] sm:$0xff] }
 0x271   : > { %v1976_v29 = vpop.permute.xlu0 %1975 }
 0x272   : > { %2050 = vst.msk [vmem:[#allocation2 + $0x8] sm:$0xff] %vm2048_vm6, %v1976_v29  ;;  %v7241_v29 = vld [vmem:[%s11903_s6 + $0xb0] sm:$0xff] }
 0x273   : > { %2155 = vrot.lane.b32.xlu1 %v2090_v22, %s8677_s26  ;;  %2537 = vperm.xlu0 %8403, %v2483_v42   ;;  %v3059_v22 = vld [vmem:[%s11905_s8 + $0x30] sm:$0xff] }
 0x275   : > { %v1978_v25 = vpop.permute.xlu0 %1977 }
 0x276   : > { %2051 = vst.msk [vmem:[#allocation2 + $0x10] sm:$0xff] %vm2048_vm6, %v1978_v25  ;;  %v3061_v25 = vld [vmem:[%s11905_s8 + $0x40] sm:$0xff] }
 0x277   : > { %2165 = vrot.lane.b32.xlu1 %v2095_v24, %s8677_s26  ;;  %2547 = vperm.xlu0 %8403, %v2485_v48  }
 0x279   : > { %v1974_v27 = vpop.permute.xlu0 %1973 }
 0x27a   : > { %2049 = vst.msk [vmem:[#allocation2] sm:$0xff] %vm2048_vm6, %v1974_v27 }
 0x27b   : > { %2161 = vrot.lane.b32.xlu1 %v2093_v26, %s8677_s26  ;;  %2557 = vperm.xlu0 %8403, %v2487_v32   ;;  %v7243_v32 = vld [vmem:[%s11903_s6 + $0xc0] sm:$0xff] }
 0x27d   : > { %v1984_v28 = vpop.permute.xlu0 %1983 }
 0x27e   : > { %2054 = vst.msk [vmem:[#allocation2 + $0x28] sm:$0xff] %vm2048_vm6, %v1984_v28  ;;  %v7245_v28 = vld [vmem:[%s11903_s6 + $0xd0] sm:$0xff] }
 0x27f   : > { %2167 = vrot.lane.b32.xlu1 %v2096_v63, %s8677_s26  ;;  %2567 = vperm.xlu0 %8403, %v2489_v55   ;;  %v3063_v63 = vld [vmem:[%s11905_s8 + $0x50] sm:$0xff] }
 0x281   : > { %v1980_v6 = vpop.permute.xlu0 %1979 }
 0x282   : > { %2052 = vst.msk [vmem:[#allocation2 + $0x18] sm:$0xff] %vm2048_vm6, %v1980_v6 }
 0x283   : > { %2163 = vrot.lane.b32.xlu1 %v2094_v31, %s8677_s26  ;;  %3085 = vperm.xlu0 %8403, %v3054_v41  }
 0x285   : > { %v1986_v34 = vpop.permute.xlu0 %1985 }
 0x286   : > { %2055 = vst.msk [vmem:[#allocation2 + $0x30] sm:$0xff] %vm2048_vm6, %v1986_v34 }
 0x287   : > { %2169 = vrot.lane.b32.xlu1 %v2097_v33, %s8677_s26  ;;  %3095 = vperm.xlu0 %8403, %v3056_v62  }
 0x289   : > { %v1982_v37 = vpop.permute.xlu0 %1981 }
 0x28a   : > { %2053 = vst.msk [vmem:[#allocation2 + $0x20] sm:$0xff] %vm2048_vm6, %v1982_v37 }
 0x28b   : > { %2171 = vrot.lane.b32.xlu1 %v2098_v36, %s8677_s26  ;;  %3105 = vperm.xlu0 %8403, %v3058_v44   ;;  %v3065_v44 = vld [vmem:[%s11905_s8 + $0x60] sm:$0xff] }
 0x28c   : > { %v7247_v36 = vld [vmem:[%s11903_s6 + $0xe0] sm:$0xff] }
 0x28d   : > { %v1992_v38 = vpop.permute.xlu0 %1991 }
 0x28e   : > { %2058 = vst.msk [vmem:[#allocation2 + $0x48] sm:$0xff] %vm2048_vm6, %v1992_v38 }
 0x28f   : > { %2173 = vrot.lane.b32.xlu1 %v2099_v58, %s8677_s26  ;;  %3115 = vperm.xlu0 %8403, %v3060_v54  }
 0x291   : > { %v1988_v11 = vpop.permute.xlu0 %1987 }
 0x292   : > { %2056 = vst.msk [vmem:[#allocation2 + $0x38] sm:$0xff] %vm2048_vm6, %v1988_v11 }
 0x293   : > { %2497 = vperm.xlu1 %8404, %v2475_v57   ;;  %3125 = vperm.xlu0 %8403, %v3062_v39  }
 0x295   : > { %v1994_v43 = vpop.permute.xlu0 %1993 }
 0x296   : > { %2059 = vst.msk [vmem:[#allocation2 + $0x50] sm:$0xff] %vm2048_vm6, %v1994_v43 }
 0x297   : > { %2502 = vperm.xlu1 %8404, %v2476_v7   ;;  %3135 = vperm.xlu0 %8403, %v3064_v40  }
 0x299   : > { %v1990_v45 = vpop.permute.xlu0 %1989 }
 0x29a   : > { %2057 = vst.msk [vmem:[#allocation2 + $0x40] sm:$0xff] %vm2048_vm6, %v1990_v45 }
 0x29b   : > { %2512 = vperm.xlu1 %8404, %v2478_v46   ;;  %3145 = vperm.xlu0 %8403, %v3066_v47   ;;  %v3067_v46 = vld [vmem:[%s11905_s8 + $0x70] sm:$0xff] }
 0x29c   : > { %v7249_v47 = vld [vmem:[%s11903_s6 + $0xf0] sm:$0xff] }
 0x29d   : > { %v2000_v18 = vpop.permute.xlu0 %1999 }
 0x29e   : > { %2062 = vst.msk [vmem:[#allocation2 + $0x68] sm:$0xff] %vm2048_vm6, %v2000_v18 }
 0x29f   : > { %2522 = vperm.xlu1 %8404, %v2480_v49   ;;  %3155 = vperm.xlu0 %8403, %v3068_v50  }
 0x2a1   : > { %v1996_v53 = vpop.permute.xlu0 %1995  ;;  %v2126_v56 = vpop.permute.xlu1 %2125 }
 0x2a2   : > { %2060 = vst.msk [vmem:[#allocation2 + $0x58] sm:$0xff] %vm2048_vm6, %v1996_v53 }
 0x2a3   : > { %2201 = vst.msk [vmem:[#allocation2] sm:$0xff] %vm2200_vm7, %v2126_v56  ;;  %2532 = vperm.xlu1 %8404, %v2482_v51   ;;  %3165 = vperm.xlu0 %8403, %v3070_v52  }
 0x2a5   : > { %v2002_v61 = vpop.permute.xlu0 %2001  ;;  %v2128_v23 = vpop.permute.xlu1 %2127 }
 0x2a6   : > { %2063 = vst.msk [vmem:[#allocation2 + $0x70] sm:$0xff] %vm2048_vm6, %v2002_v61 }
 0x2a7   : > { %2202 = vst.msk [vmem:[#allocation2 + $0x8] sm:$0xff] %vm2200_vm7, %v2128_v23  ;;  %2542 = vperm.xlu1 %8404, %v2484_v5   ;;  %3175 = vperm.xlu0 %8403, %v3072_v60   ;;  %v3069_v23 = vld [vmem:[%s11905_s8 + $0x80] sm:$0xff] }
 0x2a9   : > { %v1998_v4 = vpop.permute.xlu0 %1997  ;;  %v2134_v8 = vpop.permute.xlu1 %2133 }
 0x2aa   : > { %2061 = vst.msk [vmem:[#allocation2 + $0x60] sm:$0xff] %vm2048_vm6, %v1998_v4  ;;  %v9434_v6 = vld [vmem:[#allocation2] sm:$0xff] }
 0x2ab   : > { %2205 = vst.msk [vmem:[#allocation2 + $0x20] sm:$0xff] %vm2200_vm7, %v2134_v8  ;;  %2552 = vperm.xlu1 %8404, %v2486_v0   ;;  %3185 = vperm.xlu0 %8403, %v3074_v3   ;;  %v2310_v54 = vmul.f32 %v9434_v6, %v9434_v6  ;;  %v2253_v39 = vsel %vm2252_vm8, %v9434_v6, 0.0  ;;  %v7313_v0 = vld [vmem:[%s11905_s8 + $0xc8] sm:$0xff] }
 0x2ad   : > { %v2008_v30 = vpop.permute.xlu0 %2007  ;;  %v2130_v2 = vpop.permute.xlu1 %2129  ;;  %v2335_v49 = vsel %vm2252_vm8, %v2310_v54, 0.0 }
 0x2ae   : > { %2066 = vst.msk [vmem:[#allocation2 + $0x88] sm:$0xff] %vm2048_vm6, %v2008_v30  ;;  %v9426_v55 = vld [vmem:[#allocation2 + $0x8] sm:$0xff] }
 0x2af   : > { %2203 = vst.msk [vmem:[#allocation2 + $0x10] sm:$0xff] %vm2200_vm7, %v2130_v2  ;;  %2562 = vperm.xlu1 %8404, %v2488_v1   ;;  %3195 = vperm.xlu0 %8403, %v3076_v9   ;;  %v2311_v33 = vmul.f32 %v9426_v55, %v9426_v55  ;;  %v2254_v37 = vsel %vm2252_vm8, %v9426_v55, 0.0 }
 0x2b0   : > { %v2255_v43 = vadd.f32 %v2254_v37, %v2253_v39  ;;  %v7319_v37 = vld [vmem:[%s11905_s8 + $0xf8] sm:$0xff] }
 0x2b1   : > { %v2004_v13 = vpop.permute.xlu0 %2003  ;;  %v2136_v17 = vpop.permute.xlu1 %2135  ;;  %v2336_v40 = vsel %vm2252_vm8, %v2311_v33, 0.0 }
 0x2b2   : > { %2064 = vst.msk [vmem:[#allocation2 + $0x78] sm:$0xff] %vm2048_vm6, %v2004_v13  ;;  %v9475_v52 = vld [vmem:[#allocation2 + $0x20] sm:$0xff]  ;;  %v2337_v56 = vadd.f32 %v2336_v40, %v2335_v49  ;;  %v3071_v13 = vld [vmem:[%s11905_s8 + $0x90] sm:$0xff] }
 0x2b3   : > { %2206 = vst.msk [vmem:[#allocation2 + $0x28] sm:$0xff] %vm2200_vm7, %v2136_v17  ;;  %3080 = vperm.xlu1 %8404, %v3053_v12   ;;  %3468 = vperm.xlu0 %8403, %v7235_v14   ;;  %v2314_v3 = vmul.f32 %v9475_v52, %v9475_v52  ;;  %v2260_v2 = vsel %vm2252_vm8, %v9475_v52, 0.0  ;;  %v7315_v17 = vld [vmem:[%s11905_s8 + $0xd8] sm:$0xff]  ;;  %v8450_v49 = vld [vmem:[%s11902_s5 + $0x4] ss:$8 sps:$4 sm:$0xff]  }
 0x2b4   : > { %7198 = vmatprep.mubr.msk.bf16.mxu1 %vm2642_vm10, %v8450_v49 }
 0x2b5   : > { %v2010_v15 = vpop.permute.xlu0 %2009  ;;  %v2132_v19 = vpop.permute.xlu1 %2131 }
 0x2b6   : > { %2067 = vst.msk [vmem:[#allocation2 + $0x90] sm:$0xff] %vm2048_vm6, %v2010_v15  ;;  %v9436_v62 = vld [vmem:[#allocation2 + $0x10] sm:$0xff]  ;;  %v2342_v15 = vsel %vm2252_vm8, %v2314_v3, 0.0 }
 0x2b7   : > { %2204 = vst.msk [vmem:[#allocation2 + $0x18] sm:$0xff] %vm2200_vm7, %v2132_v19  ;;  %3090 = vperm.xlu1 %8404, %v3055_v16   ;;  %3478 = vperm.xlu0 %8403, %v7237_v35   ;;  %v2312_v58 = vmul.f32 %v9436_v62, %v9436_v62  ;;  %v2256_v11 = vsel %vm2252_vm8, %v9436_v62, 0.0 }
 0x2b8   : > { %v2257_v53 = vadd.f32 %v2256_v11, %v2255_v43 }
 0x2b9   : > { %v2006_v59 = vpop.permute.xlu0 %2005  ;;  %v2142_v42 = vpop.permute.xlu1 %2141  ;;  %v2338_v50 = vsel %vm2252_vm8, %v2312_v58, 0.0 }
 0x2ba   : > { %2065 = vst.msk [vmem:[#allocation2 + $0x80] sm:$0xff] %vm2048_vm6, %v2006_v59  ;;  %v2339_v61 = vadd.f32 %v2338_v50, %v2337_v56  ;;  %v9490_v9 = vld [vmem:[#allocation2 + $0x28] sm:$0xff] }
 0x2bb   : > { %2209 = vst.msk [vmem:[#allocation2 + $0x40] sm:$0xff] %vm2200_vm7, %v2142_v42  ;;  %3100 = vperm.xlu1 %8404, %v3057_v21   ;;  %3488 = vperm.xlu0 %8403, %v7239_v20   ;;  %v2315_v16 = vmul.f32 %v9490_v9, %v9490_v9  ;;  %v2262_v20 = vsel %vm2252_vm8, %v9490_v9, 0.0 }
 0x2bd   : > { %v2016_v48 = vpop.permute.xlu0 %2015  ;;  %v2138_v24 = vpop.permute.xlu1 %2137 }
 0x2be   : > { %2070 = vst.msk [vmem:[#allocation2 + $0xa8] sm:$0xff] %vm2048_vm6, %v2016_v48  ;;  %v9442_v34 = vld [vmem:[#allocation2 + $0x18] sm:$0xff]  ;;  %v7317_v48 = vld [vmem:[%s11905_s8 + $0xe8] sm:$0xff] }
 0x2bf   : > { %2207 = vst.msk [vmem:[#allocation2 + $0x30] sm:$0xff] %vm2200_vm7, %v2138_v24  ;;  %3110 = vperm.xlu1 %8404, %v3059_v22   ;;  %3498 = vperm.xlu0 %8403, %v7241_v29   ;;  %v2313_v7 = vmul.f32 %v9442_v34, %v9442_v34  ;;  %v2258_v45 = vsel %vm2252_vm8, %v9442_v34, 0.0  ;;  %v3073_v29 = vld [vmem:[%s11905_s8 + $0xa0] sm:$0xff] }
 0x2c0   : > { %v2259_v60 = vadd.f32 %v2258_v45, %v2257_v53 }
 0x2c1   : > { %v2012_v26 = vpop.permute.xlu0 %2011  ;;  %v2144_v27 = vpop.permute.xlu1 %2143  ;;  %v2340_v5 = vsel %vm2252_vm8, %v2313_v7, 0.0 }
 0x2c2   : > { %2068 = vst.msk [vmem:[#allocation2 + $0x98] sm:$0xff] %vm2048_vm6, %v2012_v26  ;;  %v2341_v30 = vadd.f32 %v2340_v5, %v2339_v61  ;;  %v2261_v14 = vadd.f32 %v2260_v2, %v2259_v60  ;;  %v9525_v26 = vld [vmem:[#allocation2 + $0x40] sm:$0xff] }
 0x2c3   : > { %2210 = vst.msk [vmem:[#allocation2 + $0x48] sm:$0xff] %vm2200_vm7, %v2144_v27  ;;  %3120 = vperm.xlu1 %8404, %v3061_v25   ;;  %3508 = vperm.xlu0 %8403, %v7243_v32   ;;  %v2344_v25 = vsel %vm2252_vm8, %v2315_v16, 0.0  ;;  %v2268_v39 = vsel %vm2252_vm8, %v9525_v26, 0.0 }
 0x2c4   : > { %v2343_v21 = vadd.f32 %v2342_v15, %v2341_v30  ;;  %v2263_v22 = vadd.f32 %v2262_v20, %v2261_v14 }
 0x2c5   : > { %v2018_v41 = vpop.permute.xlu0 %2017  ;;  %v2140_v31 = vpop.permute.xlu1 %2139 }
 0x2c6   : > { %2071 = vst.msk [vmem:[#allocation2 + $0xb0] sm:$0xff] %vm2048_vm6, %v2018_v41  ;;  %v9488_v4 = vld [vmem:[#allocation2 + $0x30] sm:$0xff] }
 0x2c7   : > { %2208 = vst.msk [vmem:[#allocation2 + $0x38] sm:$0xff] %vm2200_vm7, %v2140_v31  ;;  %3130 = vperm.xlu1 %8404, %v3063_v63   ;;  %3518 = vperm.xlu0 %8403, %v7245_v28   ;;  %v2316_v35 = vmul.f32 %v9488_v4, %v9488_v4  ;;  %v2264_v59 = vsel %vm2252_vm8, %v9488_v4, 0.0  ;;  %v2345_v28 = vadd.f32 %v2344_v25, %v2343_v21 }
 0x2c8   : > { %v2265_v63 = vadd.f32 %v2264_v59, %v2263_v22 }
 0x2c9   : > { %v2014_v38 = vpop.permute.xlu0 %2013  ;;  %v2150_v57 = vpop.permute.xlu1 %2149  ;;  %v2346_v32 = vsel %vm2252_vm8, %v2316_v35, 0.0  ;;  %v7238_v35 = vld [vmem:[%s11903_s6 + $0x98] sm:$0xff] }
 0x2ca   : > { %2069 = vst.msk [vmem:[#allocation2 + $0xa0] sm:$0xff] %vm2048_vm6, %v2014_v38  ;;  %v2347_v33 = vadd.f32 %v2346_v32, %v2345_v28  ;;  %v9537_v54 = vld [vmem:[#allocation2 + $0x48] sm:$0xff] }
 0x2cb   : > { %2213 = vst.msk [vmem:[#allocation2 + $0x60] sm:$0xff] %vm2200_vm7, %v2150_v57  ;;  %3140 = vperm.xlu1 %8404, %v3065_v44   ;;  %3528 = vperm.xlu0 %8403, %v7247_v36   ;;  %v2318_v44 = vmul.f32 %v9525_v26, %v9525_v26  ;;  %v3075_v36 = vld [vmem:[%s11905_s8 + $0xb0] sm:$0xff]  ;;  %v2319_v40 = vmul.f32 %v9537_v54, %v9537_v54  ;;  %v2270_v56 = vsel %vm2252_vm8, %v9537_v54, 0.0  ;;  %v7240_v32 = vld [vmem:[%s11903_s6 + $0xa8] sm:$0xff] }
 0x2cd   : > { %v2020_v18 = vpop.permute.xlu0 %2019  ;;  %v2146_v51 = vpop.permute.xlu1 %2145  ;;  %v2350_v45 = vsel %vm2252_vm8, %v2318_v44, 0.0  ;;  %v2352_v3 = vsel %vm2252_vm8, %v2319_v40, 0.0  ;;  %v7329_v40 = vld [vmem:[%s11905_s8 + $0x148] sm:$0xff] }
 0x2ce   : > { %2072 = vst.msk [vmem:[#allocation2 + $0xb8] sm:$0xff] %vm2048_vm6, %v2020_v18  ;;  %v9495_v12 = vld [vmem:[#allocation2 + $0x38] sm:$0xff] }
 0x2cf   : > { %2211 = vst.msk [vmem:[#allocation2 + $0x50] sm:$0xff] %vm2200_vm7, %v2146_v51  ;;  %3150 = vperm.xlu1 %8404, %v3067_v46   ;;  %3538 = vperm.xlu0 %8403, %v7249_v47   ;;  %v2317_v42 = vmul.f32 %v9495_v12, %v9495_v12  ;;  %v2266_v24 = vsel %vm2252_vm8, %v9495_v12, 0.0  ;;  %v3077_v46 = vld [vmem:[%s11905_s8 + $0xc0] sm:$0xf]  ;;  %v7321_v47 = vld [vmem:[%s11905_s8 + $0x108] sm:$0xff] }
 0x2d0   : > { %v2267_v31 = vadd.f32 %v2266_v24, %v2265_v63 }
 0x2d1   : > { %v2022_v8 = vpop.permute.xlu0 %2021  ;;  %v2152_v1 = vpop.permute.xlu1 %2151  ;;  %v2348_v41 = vsel %vm2252_vm8, %v2317_v42, 0.0 }
 0x2d2   : > { %2074 = vst.msk [vmem:[#allocation2 + $0xc0] sm:$0xf] %vm2073_vm9, %v2022_v8  ;;  %v2349_v57 = vadd.f32 %v2348_v41, %v2347_v33  ;;  %v2269_v7 = vadd.f32 %v2268_v39, %v2267_v31  ;;  %v9578_v8 = vld [vmem:[#allocation2 + $0x60] sm:$0xff] }
 0x2d3   : > { %2214 = vst.msk [vmem:[#allocation2 + $0x68] sm:$0xff] %vm2200_vm7, %v2152_v1  ;;  %3160 = vperm.xlu1 %8404, %v3069_v23   ;;  %4057 = vperm.xlu0 %8403, %v7313_v0   ;;  %v7236_v23 = vld [vmem:[%s11903_s6 + $0x88] sm:$0xff]  ;;  %v7323_v0 = vld [vmem:[%s11905_s8 + $0x118] sm:$0xff]  ;;  %v2322_v16 = vmul.f32 %v9578_v8, %v9578_v8  ;;  %v2276_v22 = vsel %vm2252_vm8, %v9578_v8, 0.0 }
 0x2d4   : > { %v2351_v18 = vadd.f32 %v2350_v45, %v2349_v57  ;;  %v2271_v5 = vadd.f32 %v2270_v56, %v2269_v7  ;;  %v7242_v7 = vld [vmem:[%s11903_s6 + $0xb8] sm:$0xff] }
 0x2d5   : > { %v2148_v19 = vpop.permute.xlu1 %2147 }
 0x2d6   : > { %2212 = vst.msk [vmem:[#allocation2 + $0x58] sm:$0xff] %vm2200_vm7, %v2148_v19  ;;  %v9539_v58 = vld [vmem:[#allocation2 + $0x50] sm:$0xff]  ;;  %v2353_v2 = vadd.f32 %v2352_v3, %v2351_v18  ;;  %v7325_v19 = vld [vmem:[%s11905_s8 + $0x128] sm:$0xff] }
 0x2d7   : > { %3170 = vperm.xlu1 %8404, %v3071_v13   ;;  %4067 = vperm.xlu0 %8403, %v7315_v17   ;;  %v2320_v43 = vmul.f32 %v9539_v58, %v9539_v58  ;;  %v2272_v51 = vsel %vm2252_vm8, %v9539_v58, 0.0 }
 0x2d8   : > { %v2273_v30 = vadd.f32 %v2272_v51, %v2271_v5  ;;  %v7331_v5 = vld [vmem:[%s11905_s8 + $0x158] sm:$0xff] }
 0x2d9   : > { %v2158_v27 = vpop.permute.xlu1 %2157  ;;  %v2354_v60 = vsel %vm2252_vm8, %v2320_v43, 0.0 }
 0x2da   : > { %2217 = vst.msk [vmem:[#allocation2 + $0x80] sm:$0xff] %vm2200_vm7, %v2158_v27  ;;  %v2355_v17 = vadd.f32 %v2354_v60, %v2353_v2  ;;  %v9592_v21 = vld [vmem:[#allocation2 + $0x68] sm:$0xff]  ;;  %v7327_v27 = vld [vmem:[%s11905_s8 + $0x138] sm:$0xff] }
 0x2db   : > { %3180 = vperm.xlu1 %8404, %v3073_v29   ;;  %4077 = vperm.xlu0 %8403, %v7317_v48   ;;  %v2358_v48 = vsel %vm2252_vm8, %v2322_v16, 0.0  ;;  %v2323_v24 = vmul.f32 %v9592_v21, %v9592_v21  ;;  %v2278_v31 = vsel %vm2252_vm8, %v9592_v21, 0.0 }
 0x2dd   : > { %v2154_v38 = vpop.permute.xlu1 %2153  ;;  %v9544_v11 = vld [vmem:[#allocation2 + $0x58] sm:$0xff] }
 0x2de   : > { %2215 = vst.msk [vmem:[#allocation2 + $0x70] sm:$0xff] %vm2200_vm7, %v2154_v38  ;;  %v2321_v53 = vmul.f32 %v9544_v11, %v9544_v11  ;;  %v2274_v61 = vsel %vm2252_vm8, %v9544_v11, 0.0  ;;  %v2360_v38 = vsel %vm2252_vm8, %v2323_v24, 0.0 }
 0x2df   : > { %3190 = vperm.xlu1 %8404, %v3075_v36   ;;  %4087 = vperm.xlu0 %8403, %v7319_v37   ;;  %v2275_v13 = vadd.f32 %v2274_v61, %v2273_v30 }
 0x2e0   : > { %v2356_v14 = vsel %vm2252_vm8, %v2321_v53, 0.0  ;;  %v7244_v53 = vld [vmem:[%s11903_s6 + $0xc8] sm:$0xff] }
 0x2e1   : > { %v2160_v50 = vpop.permute.xlu1 %2159  ;;  %v2357_v42 = vadd.f32 %v2356_v14, %v2355_v17  ;;  %v2277_v29 = vadd.f32 %v2276_v22, %v2275_v13  ;;  %v9631_v43 = vld [vmem:[#allocation2 + $0x80] sm:$0xff]  ;;  %v7246_v13 = vld [vmem:[%s11903_s6 + $0xd8] sm:$0xff]  ;;  %v7333_v17 = vld [vmem:[%s11905_s8 + $0x168] sm:$0xff] }
 0x2e2   : > { %2218 = vst.msk [vmem:[#allocation2 + $0x88] sm:$0xff] %vm2200_vm7, %v2160_v50  ;;  %v9587_v15 = vpop.permute.xlu0 %2492  ;;  %v2326_v51 = vmul.f32 %v9631_v43, %v9631_v43  ;;  %v2284_v3 = vsel %vm2252_vm8, %v9631_v43, 0.0 }
 0x2e3   : > { %3200 = vperm.xlu1 %8404, %v3077_v46   ;;  %4097 = vperm.xlu0 %8403, %v7321_v47   ;;  %v2359_v41 = vadd.f32 %v2358_v48, %v2357_v42  ;;  %v2279_v37 = vadd.f32 %v2278_v31, %v2277_v29 }
 0x2e4   : > { %v2366_v30 = vsel %vm2252_vm8, %v2326_v51, 0.0 }
 0x2e5   : > { %v2156_v1 = vpop.permute.xlu1 %2155  ;;  %v9594_v20 = vld [vmem:[#allocation2 + $0x70] sm:$0xff]  ;;  %v2361_v45 = vadd.f32 %v2360_v38, %v2359_v41 }
 0x2e6   : > { %2216 = vst.msk [vmem:[#allocation2 + $0x78] sm:$0xff] %vm2200_vm7, %v2156_v1  ;;  %v2324_v25 = vmul.f32 %v9594_v20, %v9594_v20  ;;  %v2280_v33 = vsel %vm2252_vm8, %v9594_v20, 0.0  ;;  %v9619_v36 = vpop.permute.xlu0 %2507 }
 0x2e7   : > { %3473 = vperm.xlu1 %8404, %v7236_v23   ;;  %4107 = vperm.xlu0 %8403, %v7323_v0   ;;  %v2281_v47 = vadd.f32 %v2280_v33, %v2279_v37 }
 0x2e8   : > { %v2362_v57 = vsel %vm2252_vm8, %v2324_v25, 0.0  ;;  %v7248_v25 = vld [vmem:[%s11903_s6 + $0xe8] sm:$0xff] }
 0x2e9   : > { %v2166_v59 = vpop.permute.xlu1 %2165  ;;  %v2363_v18 = vadd.f32 %v2362_v57, %v2361_v45  ;;  %v9645_v60 = vld [vmem:[#allocation2 + $0x88] sm:$0xff] }
 0x2ea   : > { %2221 = vst.msk [vmem:[#allocation2 + $0xa0] sm:$0xff] %vm2200_vm7, %v2166_v59  ;;  %v9640_v56 = vpop.permute.xlu0 %2517  ;;  %v2327_v2 = vmul.f32 %v9645_v60, %v9645_v60 }
 0x2eb   : > { %3483 = vperm.xlu1 %8404, %v7238_v35   ;;  %4117 = vperm.xlu0 %8403, %v7325_v19   ;;  %v2286_v19 = vsel %vm2252_vm8, %v9645_v60, 0.0 }
 0x2ec   : > { %v2368_v48 = vsel %vm2252_vm8, %v2327_v2, 0.0 }
 0x2ed   : > { %v9610_v63 = vld [vmem:[#allocation2 + $0x78] sm:$0xff]  ;;  %v2162_v28 = vpop.permute.xlu1 %2161 }
 0x2ee   : > { %v2325_v44 = vmul.f32 %v9610_v63, %v9610_v63  ;;  %2219 = vst.msk [vmem:[#allocation2 + $0x90] sm:$0xff] %vm2200_vm7, %v2162_v28  ;;  %v2282_v39 = vsel %vm2252_vm8, %v9610_v63, 0.0  ;;  %v9668_v42 = vpop.permute.xlu0 %2527 }
 0x2ef   : > { %3493 = vperm.xlu1 %8404, %v7240_v32   ;;  %4127 = vperm.xlu0 %8403, %v7327_v27   ;;  %v2283_v50 = vadd.f32 %v2282_v39, %v2281_v47  ;;  %v7335_v32 = vld [vmem:[%s11905_s8 + $0x178] sm:$0xff] }
 0x2f0   : > { %v2364_v49 = vsel %vm2252_vm8, %v2325_v44, 0.0  ;;  %v7250_v47 = vld [vmem:[%s11903_s6 + $0xf8] sm:$0xff] }
 0x2f1   : > { %v2168_v46 = vpop.permute.xlu1 %2167  ;;  %v2365_v0 = vadd.f32 %v2364_v49, %v2363_v18  ;;  %v2285_v1 = vadd.f32 %v2284_v3, %v2283_v50  ;;  %v9670_v22 = vld [vmem:[#allocation2 + $0xa0] sm:$0xff]  ;;  %v7337_v49 = vld [vmem:[%s11905_s8 + $0x188] sm:$0xf] }
 0x2f2   : > { %2222 = vst.msk [vmem:[#allocation2 + $0xa8] sm:$0xff] %vm2200_vm7, %v2168_v46  ;;  %v2330_v44 = vmul.f32 %v9670_v22, %v9670_v22  ;;  %v9699_v45 = vpop.permute.xlu0 %2537 }
 0x2f3   : > { %3503 = vperm.xlu1 %8404, %v7242_v7   ;;  %4137 = vperm.xlu0 %8403, %v7329_v40   ;;  %v2367_v35 = vadd.f32 %v2366_v30, %v2365_v0  ;;  %v2287_v29 = vadd.f32 %v2286_v19, %v2285_v1  ;;  %v2292_v7 = vsel %vm2252_vm8, %v9670_v22, 0.0 }
 0x2f5   : > { %v9647_v61 = vld [vmem:[#allocation2 + $0x90] sm:$0xff]  ;;  %v2164_v23 = vpop.permute.xlu1 %2163  ;;  %v2369_v33 = vadd.f32 %v2368_v48, %v2367_v35 }
 0x2f6   : > { %2220 = vst.msk [vmem:[#allocation2 + $0x98] sm:$0xff] %vm2200_vm7, %v2164_v23  ;;  %v2328_v14 = vmul.f32 %v9647_v61, %v9647_v61  ;;  %v2288_v59 = vsel %vm2252_vm8, %v9647_v61, 0.0  ;;  %v9728_v48 = vpop.permute.xlu0 %2547 }
 0x2f7   : > { %3513 = vperm.xlu1 %8404, %v7244_v53   ;;  %4147 = vperm.xlu0 %8403, %v7331_v5   ;;  %v2289_v31 = vadd.f32 %v2288_v59, %v2287_v29  ;;  %v2374_v5 = vsel %vm2252_vm8, %v2330_v44, 0.0 }
 0x2f8   : > { %v2370_v24 = vsel %vm2252_vm8, %v2328_v14, 0.0  ;;  %v7314_v14 = vld [vmem:[%s11905_s8 + $0xd0] sm:$0xff] }
 0x2f9   : > { %v2170_v16 = vpop.permute.xlu1 %2169  ;;  %v9680_v27 = vld [vmem:[#allocation2 + $0xa8] sm:$0xff]  ;;  %v2371_v39 = vadd.f32 %v2370_v24, %v2369_v33 }
 0x2fa   : > { %2223 = vst.msk [vmem:[#allocation2 + $0xb0] sm:$0xff] %vm2200_vm7, %v2170_v16  ;;  %v2331_v40 = vmul.f32 %v9680_v27, %v9680_v27  ;;  %v2294_v23 = vsel %vm2252_vm8, %v9680_v27, 0.0 }
 0x2fb   : > { %3523 = vperm.xlu1 %8404, %v7246_v13   ;;  %4157 = vperm.xlu0 %8403, %v7333_v17   ;;  %v7355_v13 = vld [vmem:[%s11903_s6 + $0x108] sm:$0xff] }
 0x2fc   : > { %v2376_v30 = vsel %vm2252_vm8, %v2331_v40, 0.0  ;;  %v9747_v40 = vpop.permute.xlu0 %2557 }
 0x2fd   : > { %v9682_v28 = vld [vmem:[#allocation2 + $0x98] sm:$0xff]  ;;  %v2172_v41 = vpop.permute.xlu1 %2171 }
 0x2fe   : > { %v2290_v37 = vsel %vm2252_vm8, %v9682_v28, 0.0  ;;  %v2329_v38 = vmul.f32 %v9682_v28, %v9682_v28  ;;  %2224 = vst.msk [vmem:[#allocation2 + $0xb8] sm:$0xff] %vm2200_vm7, %v2172_v41  ;;  %v7357_v41 = vld [vmem:[%s11903_s6 + $0x118] sm:$0xff] }
 0x2ff   : > { %3533 = vperm.xlu1 %8404, %v7248_v25   ;;  %4167 = vperm.xlu0 %8403, %v7335_v32   ;;  %v2291_v57 = vadd.f32 %v2290_v37, %v2289_v31  ;;  %v7316_v32 = vld [vmem:[%s11905_s8 + $0xe0] sm:$0xff] }
 0x300   : > { %v2372_v46 = vsel %vm2252_vm8, %v2329_v38, 0.0 }
 0x301   : > { %v9704_v50 = vld [vmem:[#allocation2 + $0xb0] sm:$0xff]  ;;  %v2174_v18 = vpop.permute.xlu1 %2173  ;;  %v2293_v51 = vadd.f32 %v2292_v7, %v2291_v57  ;;  %v2373_v53 = vadd.f32 %v2372_v46, %v2371_v39  ;;  %v7359_v46 = vld [vmem:[%s11903_s6 + $0x128] sm:$0xff] }
 0x302   : > { %v2332_v0 = vmul.f32 %v9704_v50, %v9704_v50  ;;  %2226 = vst.msk [vmem:[#allocation2 + $0xc0] sm:$0xf] %vm2225_vm11, %v2174_v18  ;;  %v2296_v2 = vsel %vm2252_vm8, %v9704_v50, 0.0  ;;  %v7318_v7 = vld [vmem:[%s11905_s8 + $0xf0] sm:$0xff] }
 0x303   : > { %3543 = vperm.xlu1 %8404, %v7250_v47   ;;  %4177 = vperm.xlu0 %8403, %v7337_v49   ;;  %v2295_v3 = vadd.f32 %v2294_v23, %v2293_v51  ;;  %v2375_v1 = vadd.f32 %v2374_v5, %v2373_v53  ;;  %v7320_v53 = vld [vmem:[%s11905_s8 + $0x100] sm:$0xff]  ;;  %v7361_v5 = vld [vmem:[%s11903_s6 + $0x138] sm:$0xff] }
 0x304   : > { %v2378_v19 = vsel %vm2252_vm8, %v2332_v0, 0.0 }
 0x305   : > { %v9721_v17 = vld [vmem:[#allocation2 + $0xb8] sm:$0xff]  ;;  %v2297_v16 = vadd.f32 %v2296_v2, %v2295_v3  ;;  %v2377_v35 = vadd.f32 %v2376_v30, %v2375_v1  ;;  %v9758_v3 = vpop.permute.xlu0 %2567  ;;  %v7322_v2 = vld [vmem:[%s11905_s8 + $0x110] sm:$0xff] }
 0x306   : > { %v2298_v59 = vsel %vm2252_vm8, %v9721_v17, 0.0  ;;  %v2333_v29 = vmul.f32 %v9721_v17, %v9721_v17 }
 0x307   : > { %4062 = vperm.xlu1 %8404, %v7314_v14   ;;  %4450 = vperm.xlu0 %8403, %v7355_v13   ;;  %v2379_v24 = vadd.f32 %v2378_v19, %v2377_v35  ;;  %v2299_v33 = vadd.f32 %v2298_v59, %v2297_v16  ;;  %v7363_v14 = vld [vmem:[%s11903_s6 + $0x148] sm:$0xff] }
 0x308   : > { %v2380_v25 = vsel %vm2252_vm8, %v2333_v29, 0.0  ;;  %v7324_v29 = vld [vmem:[%s11905_s8 + $0x120] sm:$0xff] }
 0x309   : > { %v9737_v31 = vld [vmem:[#allocation2 + $0xc0] sm:$0xf]  ;;  %v2381_v57 = vadd.f32 %v2380_v25, %v2379_v24  ;;  %v9771_v24 = vpop.permute.xlu0 %3085  ;;  %v7365_v25 = vld [vmem:[%s11903_s6 + $0x158] sm:$0xff] }
 0x30a   : > { %v2301_v44 = vsel %vm2300_vm12, %v9737_v31, 0.0  ;;  %v2334_v37 = vmul.f32 %v9737_v31, %v9737_v31 }
 0x30b   : > { %4072 = vperm.xlu1 %8404, %v7316_v32   ;;  %4460 = vperm.xlu0 %8403, %v7357_v41   ;;  %v2302_v38 = vadd.f32 %v2301_v44, %v2299_v33 }
 0x30c   : > { %v2382_v39 = vsel %vm2300_vm12, %v2334_v37, 0.0  ;;  %v7326_v37 = vld [vmem:[%s11905_s8 + $0x130] sm:$0xff] }
 0x30d   : > { %v2303_v47 = vrot.slane %v2302_v38, 4  ;;  %v2383_v49 = vadd.f32 %v2382_v39, %v2381_v57 }
 0x30f   : > { %4082 = vperm.xlu1 %8404, %v7318_v7   ;;  %4470 = vperm.xlu0 %8403, %v7359_v46   ;;  %v2304_v18 = vadd.f32 %v2303_v47, %v2302_v38  ;;  %v2384_v51 = vrot.slane %v2383_v49, 4  ;;  %v7367_v38 = vld [vmem:[%s11903_s6 + $0x168] sm:$0xff]  ;;  %v9788_v7 = vpop.permute.xlu0 %3095  ;;  %v7328_v47 = vld [vmem:[%s11905_s8 + $0x140] sm:$0xff] }
 0x311   : > { %v2305_v23 = vrot.slane %v2304_v18, 2  ;;  %v2385_v0 = vadd.f32 %v2384_v51, %v2383_v49  ;;  %v7369_v49 = vld [vmem:[%s11903_s6 + $0x178] sm:$0xff] }
 0x312   : > { %v9766_v35 = vpop.permute.xlu1 %2497 }
 0x313   : > { %4092 = vperm.xlu1 %8404, %v7320_v53   ;;  %4480 = vperm.xlu0 %8403, %v7361_v5   ;;  %v2306_v1 = vadd.f32 %v2305_v23, %v2304_v18  ;;  %v2386_v30 = vrot.slane %v2385_v0, 2  ;;  %v9798_v51 = vpop.permute.xlu0 %3105  ;;  %v7330_v53 = vld [vmem:[%s11905_s8 + $0x150] sm:$0xff]  ;;  %v7433_v5 = vld [vmem:[%s11905_s8 + $0x198] sm:$0xff]  ;;  %v7332_v23 = vld [vmem:[%s11905_s8 + $0x160] sm:$0xff] }
 0x315   : > { %v2307_v13 = vrot.slane %v2306_v1, 1  ;;  %v2387_v16 = vadd.f32 %v2386_v30, %v2385_v0  ;;  %v7435_v0 = vld [vmem:[%s11905_s8 + $0x1a8] sm:$0xff] }
 0x316   : > { %v9786_v57 = vpop.permute.xlu1 %2502 }
 0x317   : > { %4102 = vperm.xlu1 %8404, %v7322_v2   ;;  %v2308_v19 = vadd.f32 %v2307_v13, %v2306_v1  ;;  %v2388_v59 = vrot.slane %v2387_v16, 1  ;;  %4490 = vperm.xlu0 %8403, %v7363_v14   ;;  %v9814_v30 = vpop.permute.xlu0 %3115 }
 0x319   : > { %v9776_v32 = vmul.f32 0.0051020407, %v2308_v19  ;;  %v2389_v41 = vadd.f32 %v2388_v59, %v2387_v16  ;;  %v7334_v16 = vld [vmem:[%s11905_s8 + $0x170] sm:$0xff] }
 0x31a   : > { %v9796_v18 = vpop.permute.xlu1 %2512 }
 0x31b   : > { %4112 = vperm.xlu1 %8404, %v7324_v29   ;;  %v2390_v33 = vmul.f32 0.0051020407, %v2389_v41  ;;  %v2391_v44 = vmul.f32 %v9776_v32, %v9776_v32  ;;  %4500 = vperm.xlu0 %8403, %v7365_v25   ;;  %v2393_v2 = vsub.f32 %v9434_v6, %v9776_v32  ;;  %v2394_v14 = vsub.f32 %v9426_v55, %v9776_v32  ;;  %v7437_v55 = vld [vmem:[%s11905_s8 + $0x1b8] sm:$0xff] }
 0x31c   : > { %v2395_v29 = vsub.f32 %v9436_v62, %v9776_v32  ;;  %v2396_v6 = vsub.f32 %v9442_v34, %v9776_v32  ;;  %v7336_v62 = vld [vmem:[%s11905_s8 + $0x180] sm:$0xff]  ;;  %v2397_v34 = vsub.f32 %v9475_v52, %v9776_v32 }
 0x31d   : > { %v2392_v39 = vsub.f32 %v2390_v33, %v2391_v44  ;;  %v7354_v52 = vld [vmem:[%s11903_s6 + $0x100] sm:$0xff] }
 0x31e   : > { %v9812_v1 = vpop.permute.xlu1 %2522 }
 0x31f   : > { %4122 = vperm.xlu1 %8404, %v7326_v37   ;;  %v2418_v46 = vadd.f32 1e-05, %v2392_v39  ;;  %4510 = vperm.xlu0 %8403, %v7367_v38   ;;  %v9838_v37 = vpop.permute.xlu0 %3125  ;;  %v2398_v38 = vsub.f32 %v9490_v9, %v9776_v32  ;;  %v7439_v39 = vld [vmem:[%s11905_s8 + $0x1c8] sm:$0xff]  ;;  %v2399_v9 = vsub.f32 %v9488_v4, %v9776_v32  ;;  %v7356_v4 = vld [vmem:[%s11903_s6 + $0x110] sm:$0xff] }
 0x321   : > { %8622 = vrsqrt.f32 %v2418_v46 }
 0x322   : > { %v9836_v44 = vpop.permute.xlu1 %2532 }
 0x323   : > { %4132 = vperm.xlu1 %8404, %v7328_v47   ;;  %4520 = vperm.xlu0 %8403, %v7369_v49  }
 0x327   : > { %4142 = vperm.xlu1 %8404, %v7330_v53   ;;  %5039 = vperm.xlu0 %8403, %v7433_v5   ;;  %v2400_v53 = vsub.f32 %v9495_v12, %v9776_v32  ;;  %v9860_v5 = vpop.permute.xlu1 %2542  ;;  %v2401_v12 = vsub.f32 %v9525_v26, %v9776_v32  ;;  %v7358_v26 = vld [vmem:[%s11903_s6 + $0x120] sm:$0xff] }
 0x32b   : > { %v9820_v13 = vpop.eup %8622  ;;  %4152 = vperm.xlu1 %8404, %v7332_v23   ;;  %5049 = vperm.xlu0 %8403, %v7435_v0   ;;  %v7441_v23 = vld [vmem:[%s11905_s8 + $0x1d8] sm:$0xff]  ;;  %v9866_v0 = vpop.permute.xlu0 %3135 }
 0x32c   : > { %v2420_v19 = vmul.f32 %v9820_v13, %v2393_v2  ;;  %v2421_v59 = vmul.f32 %v9820_v13, %v2394_v14  ;;  %v2422_v41 = vmul.f32 %v9820_v13, %v2395_v29  ;;  %v2423_v33 = vmul.f32 %v9820_v13, %v2396_v6 }
 0x32d   : > { %v2424_v47 = vmul.f32 %v9820_v13, %v2397_v34  ;;  %v2425_v49 = vmul.f32 %v9820_v13, %v2398_v38  ;;  %v2426_v14 = vmul.f32 %v9820_v13, %v2399_v9  ;;  %v2428_v6 = vmul.f32 %v9820_v13, %v2401_v12 }
 0x32e   : > { %v2445_v25 = vpack.c.bf16 %v2421_v59, %v2420_v19  ;;  %v2446_v46 = vpack.c.bf16 %v2423_v33, %v2422_v41  ;;  %v2402_v19 = vsub.f32 %v9537_v54, %v9776_v32  ;;  %v7443_v59 = vld [vmem:[%s11905_s8 + $0x1e8] sm:$0xff]  ;;  %v2403_v54 = vsub.f32 %v9539_v58, %v9776_v32  ;;  %v7360_v58 = vld [vmem:[%s11903_s6 + $0x130] sm:$0xff] }
 0x32f   : > { %4162 = vperm.xlu1 %8404, %v7334_v16   ;;  %5059 = vperm.xlu0 %8403, %v7437_v55   ;;  %v2447_v2 = vpack.c.bf16 %v2425_v49, %v2424_v47  ;;  %v2427_v16 = vmul.f32 %v9820_v13, %v2400_v53  ;;  %v9885_v41 = vpop.permute.xlu0 %3145  ;;  %v2404_v33 = vsub.f32 %v9544_v11, %v9776_v32  ;;  %v7447_v49 = vld [vmem:[%s11905_s8 + $0x208] sm:$0xff] }
 0x330   : > { %2671 = vmatpush1.bf16.msra.mxu1 %v2445_v25  ;;  %v2429_v55 = vmul.f32 %v9820_v13, %v2402_v19  ;;  %v9883_v25 = vpop.permute.xlu1 %2552  ;;  %v2430_v38 = vmul.f32 %v9820_v13, %v2403_v54  ;;  %v2405_v11 = vsub.f32 %v9578_v8, %v9776_v32  ;;  %v7362_v8 = vld [vmem:[%s11903_s6 + $0x140] sm:$0xff] }
 0x331   : > { %2672 = vmatprep.subr.bf16.mxu1 %v11914_v10  ;;  %v2448_v29 = vpack.c.bf16 %v2427_v16, %v2426_v14  ;;  %v7449_v14 = vld [vmem:[%s11905_s8 + $0x218] sm:$0xff] }
 0x332   : > { %v2449_v34 = vpack.c.bf16 %v2429_v55, %v2428_v6  ;;  %v2432_v53 = vmul.f32 %v9820_v13, %v2405_v11  ;;  %v7451_v6 = vld [vmem:[%s11905_s8 + $0x228] sm:$0xff] }
 0x333   : > { %4172 = vperm.xlu1 %8404, %v7336_v62   ;;  %5069 = vperm.xlu0 %8403, %v7439_v39   ;;  %v7445_v62 = vld [vmem:[%s11905_s8 + $0x1f8] sm:$0xff]  ;;  %v2431_v39 = vmul.f32 %v9820_v13, %v2404_v33  ;;  %v2412_v33 = vsub.f32 %v9682_v28, %v9776_v32  ;;  %v2413_v28 = vsub.f32 %v9670_v22, %v9776_v32  ;;  %v7432_v22 = vld [vmem:[%s11905_s8 + $0x190] sm:$0xff] }
 0x334   : > { %2673 = vmatpush1.bf16.msra.mxu1 %v2446_v46  ;;  %v2406_v46 = vsub.f32 %v9592_v21, %v9776_v32  ;;  %v9907_v47 = vpop.permute.xlu1 %2562  ;;  %v2407_v21 = vsub.f32 %v9594_v20, %v9776_v32  ;;  %v7364_v20 = vld [vmem:[%s11903_s6 + $0x150] sm:$0xff] }
 0x335   : > { %2674 = vmatprep.subr.bf16.mxu1 %v11914_v10  ;;  %v2450_v9 = vpack.c.bf16 %v2431_v39, %v2430_v38  ;;  %v2439_v11 = vmul.f32 %v9820_v13, %v2412_v33  ;;  %v7438_v33 = vld [vmem:[%s11905_s8 + $0x1c0] sm:$0xff] }
 0x337   : > { %4445 = vperm.xlu1 %8404, %v7354_v52   ;;  %5079 = vperm.xlu0 %8403, %v7441_v23   ;;  %v9913_v52 = vpop.permute.xlu0 %3155  ;;  %v2433_v23 = vmul.f32 %v9820_v13, %v2406_v46  ;;  %v2414_v46 = vsub.f32 %v9680_v27, %v9776_v32  ;;  %v2415_v27 = vsub.f32 %v9704_v50, %v9776_v32 }
 0x338   : > { %2675 = vmatpush1.bf16.msra.mxu1 %v2447_v2  ;;  %v2408_v2 = vsub.f32 %v9610_v63, %v9776_v32  ;;  %v9930_v19 = vpop.permute.xlu1 %3080  ;;  %v2409_v63 = vsub.f32 %v9631_v43, %v9776_v32  ;;  %v7366_v43 = vld [vmem:[%s11903_s6 + $0x160] sm:$0xff] }
 0x339   : > { %2676 = vmatprep.subr.bf16.mxu1 %v11914_v10  ;;  %v2451_v16 = vpack.c.bf16 %v2433_v23, %v2432_v53  ;;  %v2440_v53 = vmul.f32 %v9820_v13, %v2413_v28  ;;  %v2441_v23 = vmul.f32 %v9820_v13, %v2414_v46  ;;  %v8453_v46 = vld [vmem:[%s11902_s5 + $0x10] ss:$8 sps:$4 sm:$0xff]  }
 0x33a   : > { %v2435_v12 = vmul.f32 %v9820_v13, %v2408_v2  ;;  %v2416_v2 = vsub.f32 %v9721_v17, %v9776_v32  ;;  %v7434_v17 = vld [vmem:[%s11905_s8 + $0x1a0] sm:$0xff] }
 0x33b   : > { %4455 = vperm.xlu1 %8404, %v7356_v4   ;;  %5089 = vperm.xlu0 %8403, %v7443_v59   ;;  %v2434_v4 = vmul.f32 %v9820_v13, %v2407_v21  ;;  %v9932_v59 = vpop.permute.xlu0 %3165 }
 0x33c   : > { %2677 = vmatpush1.bf16.msra.mxu1 %v2448_v29  ;;  %v2410_v29 = vsub.f32 %v9645_v60, %v9776_v32  ;;  %v2411_v60 = vsub.f32 %v9647_v61, %v9776_v32  ;;  %v7368_v61 = vld [vmem:[%s11903_s6 + $0x170] sm:$0xff] }
 0x33d   : > { %2678 = vmatprep.subr.bf16.mxu1 %v11914_v10  ;;  %v2452_v55 = vpack.c.bf16 %v2435_v12, %v2434_v4  ;;  %v2455_v4 = vpack.c.bf16 %v2441_v23, %v2440_v53  ;;  %v2442_v12 = vmul.f32 %v9820_v13, %v2415_v27  ;;  %v7483_v53 = vld [vmem:[%s11903_s6 + $0x1d0] sm:$0xff] }
 0x33e   : > { %v2437_v54 = vmul.f32 %v9820_v13, %v2410_v29  ;;  %v7444_v27 = vld [vmem:[%s11905_s8 + $0x1f0] sm:$0xff] }
 0x33f   : > { %4465 = vperm.xlu1 %8404, %v7358_v26   ;;  %5099 = vperm.xlu0 %8403, %v7445_v62   ;;  %v2436_v26 = vmul.f32 %v9820_v13, %v2409_v63  ;;  %v9954_v62 = vpop.permute.xlu1 %3090  ;;  %v9960_v38 = vpop.permute.xlu0 %3175 }
 0x340   : > { %2679 = vmatpush1.bf16.msra.mxu1 %v2449_v34  ;;  %v7453_v34 = vld [vmem:[%s11905_s8 + $0x238] sm:$0xff] }
 0x341   : > { %2680 = vmatprep.subr.bf16.mxu1 %v11914_v10  ;;  %v2453_v39 = vpack.c.bf16 %v2437_v54, %v2436_v26 }
 0x343   : > { %4475 = vperm.xlu1 %8404, %v7360_v58   ;;  %5109 = vperm.xlu0 %8403, %v7447_v49   ;;  %v2438_v58 = vmul.f32 %v9820_v13, %v2411_v60  ;;  %v7455_v49 = vld [vmem:[%s11905_s8 + $0x248] sm:$0xff]  ;;  %v9979_v21 = vpop.permute.xlu0 %3185 }
 0x344   : > { %2681 = vmatpush1.bf16.msra.mxu1 %v2450_v9 }
 0x345   : > { %2682 = vmatprep.subr.bf16.mxu1 %v11914_v10  ;;  %v2454_v9 = vpack.c.bf16 %v2439_v11, %v2438_v58  ;;  %v7440_v58 = vld [vmem:[%s11905_s8 + $0x1d0] sm:$0xff] }
 0x347   : > { %4485 = vperm.xlu1 %8404, %v7362_v8   ;;  %5119 = vperm.xlu0 %8403, %v7449_v14   ;;  %v9977_v8 = vpop.permute.xlu1 %3100  ;;  %v2417_v14 = vsub.f32 %v9737_v31, %v9776_v32  ;;  %v7475_v31 = vld [vmem:[%s11903_s6 + $0x190] sm:$0xff]  ;;  %v10006_v32 = vpop.permute.xlu0 %3195 }
 0x348   : > { %2683 = vmatpush1.bf16.msra.mxu1 %v2451_v16  ;;  %v7473_v16 = vld [vmem:[%s11903_s6 + $0x180] sm:$0xff] }
 0x349   : > { %2684 = vmatprep.subr.bf16.mxu1 %v11914_v10  ;;  %v2444_v50 = vmul.f32 %v9820_v13, %v2417_v14  ;;  %v8456_v14 = vld [vmem:[%s11902_s5 + $0x20] ss:$8 sps:$4 sm:$0xff]  }
 0x34b   : > { %4495 = vperm.xlu1 %8404, %v7364_v20   ;;  %5129 = vperm.xlu0 %8403, %v7451_v6   ;;  %v2443_v20 = vmul.f32 %v9820_v13, %v2416_v2  ;;  %v10000_v63 = vpop.permute.xlu1 %3110  ;;  %v2457_v6 = vpack.c.bf16 %v2444_v50, %v2444_v50  ;;  %v7436_v13 = vld [vmem:[%s11905_s8 + $0x1b0] sm:$0xff]  ;;  %v10021_v60 = vpop.permute.xlu0 %3468  ;;  %v7485_v2 = vld [vmem:[%s11903_s6 + $0x1e0] sm:$0xff] }
 0x34c   : > { %2685 = vmatpush1.bf16.msra.mxu1 %v2452_v55  ;;  %v7477_v55 = vld [vmem:[%s11903_s6 + $0x1a0] sm:$0xff] }
 0x34d   : > { %2686 = vmatprep.subr.bf16.mxu1 %v11914_v10  ;;  %v2456_v29 = vpack.c.bf16 %v2443_v20, %v2442_v12  ;;  %v2668_v54 = vsel %vm926_vm0, %v2457_v6, 0  ;;  %v7487_v20 = vld [vmem:[%s11903_s6 + $0x1f0] sm:$0xff] }
 0x34e   : > { %v8459_v6 = vld [vmem:[%s11902_s5 + $0x30] ss:$8 sps:$4 sm:$0xff]  }
 0x34f   : > { %4505 = vperm.xlu1 %8404, %v7366_v43   ;;  %5139 = vperm.xlu0 %8403, %v7453_v34   ;;  %v10015_v26 = vpop.permute.xlu1 %3120  ;;  %v8448_v43 = vld [vmem:[%s11902_s5] ss:$8 sps:$4 sm:$0xff]   ;;  %v8451_v34 = vld [vmem:[%s11902_s5 + $0x14] ss:$8 sps:$4 sm:$0xff]   ;;  %v10042_v28 = vpop.permute.xlu0 %3478 }
 0x350   : > { %2687 = vmatpush1.bf16.msra.mxu1 %v2453_v39  ;;  %v7479_v39 = vld [vmem:[%s11903_s6 + $0x1b0] sm:$0xff] }
 0x351   : > { %2688 = vmatprep.subr.bf16.mxu1 %v11914_v10 }
 0x353   : > { %4515 = vperm.xlu1 %8404, %v7368_v61   ;;  %5149 = vperm.xlu0 %8403, %v7455_v49   ;;  %v10037_v11 = vpop.permute.xlu1 %3130  ;;  %v7481_v61 = vld [vmem:[%s11903_s6 + $0x1c0] sm:$0xff] }
 0x354   : > { %2689 = vmatpush1.bf16.msra.mxu1 %v2454_v9  ;;  %v7442_v49 = vld [vmem:[%s11905_s8 + $0x1e0] sm:$0xff] }
 0x355   : > { %2690 = vmatprep.subr.bf16.mxu1 %v11914_v10  ;;  %v8454_v9 = vld [vmem:[%s11902_s5 + $0x24] ss:$8 sps:$4 sm:$0xff]  }
 0x357   : > { %5034 = vperm.xlu1 %8404, %v7432_v22   ;;  %5422 = vperm.xlu0 %8403, %v7473_v16   ;;  %v10056_v23 = vpop.permute.xlu1 %3140  ;;  %v10058_v22 = vpop.permute.xlu0 %3488  ;;  %v7446_v16 = vld [vmem:[%s11905_s8 + $0x200] sm:$0xff] }
 0x358   : > { %2691 = vmatpush1.bf16.msra.mxu1 %v2455_v4  ;;  %v8457_v4 = vld [vmem:[%s11902_s5 + $0x34] ss:$8 sps:$4 sm:$0xff]  }
 0x359   : > { %2692 = vmatprep.subr.bf16.mxu1 %v11914_v10 }
 0x35b   : > { %5044 = vperm.xlu1 %8404, %v7434_v17   ;;  %5432 = vperm.xlu0 %8403, %v7475_v31   ;;  %v10076_v12 = vpop.permute.xlu1 %3150  ;;  %v10081_v50 = vpop.permute.xlu0 %3498  ;;  %v7448_v17 = vld [vmem:[%s11905_s8 + $0x210] sm:$0xff]  ;;  %v7551_v31 = vld [vmem:[%s11905_s8 + $0x258] sm:$0xff] }
 0x35c   : > { %2693 = vmatpush1.bf16.msra.mxu1 %v2456_v29  ;;  %11920 = vst [vmem:[#allocation4_spill] sm:$0xff] %v10081_v50 }
 0x35d   : > { %2694 = vmatprep.subr.bf16.mxu1 %v11914_v10 }
 0x35f   : > { %5054 = vperm.xlu1 %8404, %v7436_v13   ;;  %5442 = vperm.xlu0 %8403, %v7477_v55   ;;  %v10090_v29 = vpop.permute.xlu1 %3160  ;;  %v10095_v13 = vpop.permute.xlu0 %3508  ;;  %v7450_v55 = vld [vmem:[%s11905_s8 + $0x220] sm:$0xff] }
 0x360   : > { %2695 = vmatpush1.bf16.msra.mxu1 %v2668_v54  ;;  %11921 = vst [vmem:[#allocation5_spill] sm:$0xff] %v10095_v13  ;;  %v8460_v54 = vld [vmem:[%s11902_s5 + $0x44] ss:$8 sps:$4 sm:$0xff]  }
 0x361   : > { %3645 = vmatprep.subr.bf16.mxu1 %v11914_v10  ;;  %v7556_v10 = vld [vmem:[%s11905_s8 + $0x280] sm:$0xff] }
 0x363   : > { %2703 = vmatmul.mubr.bf16.vlgmr.msra.gmra.mrb[76].mxu1 %v8448_v43  ;;  %5064 = vperm.xlu1 %8404, %v7438_v33   ;;  %v7552_v43 = vld [vmem:[%s11905_s8 + $0x260] sm:$0xff]  ;;  %v7452_v33 = vld [vmem:[%s11905_s8 + $0x230] sm:$0xff] }
 0x364   : > { %7199 = vmatprep.mubr.msk.bf16.mxu1 %vm2642_vm10, %v8451_v34  ;;  %5452 = vperm.xlu0 %8403, %v7479_v39   ;;  %v10110_v34 = vpop.permute.xlu1 %3170  ;;  %v7554_v39 = vld [vmem:[%s11905_s8 + $0x270] sm:$0xff] }
 0x367   : > { %5074 = vperm.xlu1 %8404, %v7440_v58   ;;  %v10115_v58 = vpop.permute.xlu0 %3518 }
 0x368   : > { %5462 = vperm.xlu0 %8403, %v7481_v61   ;;  %11922 = vst [vmem:[#allocation6_spill] sm:$0xff] %v10115_v58  ;;  %v8462_v61 = vld [vmem:[%s11902_s5 + $0x40] ss:$8 sps:$4 sm:$0xff]  }
 0x36b   : > { %2711 = vmatmul.mubr.bf16.gmra.mrb[80].mxu1 %v8453_v46  ;;  %5084 = vperm.xlu1 %8404, %v7442_v49   ;;  %v7454_v46 = vld [vmem:[%s11905_s8 + $0x240] sm:$0xff]  ;;  %v8463_v49 = vld [vmem:[%s11902_s5 + $0x54] ss:$8 sps:$4 sm:$0xff]  }
 0x36c   : > { %7200 = vmatprep.mubr.msk.bf16.mxu1 %vm2642_vm10, %v8454_v9  ;;  %5472 = vperm.xlu0 %8403, %v7483_v53   ;;  %v7557_v9 = vld [vmem:[%s11905_s8 + $0x288] sm:$0xff]  ;;  %v10129_v53 = vpop.permute.xlu1 %3180 }
 0x36f   : > { %5094 = vperm.xlu1 %8404, %v7444_v27   ;;  %v10131_v27 = vpop.permute.xlu0 %3528 }
 0x370   : > { %5482 = vperm.xlu0 %8403, %v7485_v2   ;;  %11923 = vst [vmem:[#allocation7_spill] sm:$0xff] %v10131_v27  ;;  %v7456_v2 = vld [vmem:[%s11905_s8 + $0x250] sm:$0xf] }
 0x373   : > { %2719 = vmatmul.mubr.bf16.gmra.mrb[84].mxu1 %v8456_v14  ;;  %5104 = vperm.xlu1 %8404, %v7446_v16   ;;  %v7559_v14 = vld [vmem:[%s11905_s8 + $0x298] sm:$0xff] }
 0x374   : > { %7201 = vmatprep.mubr.msk.bf16.mxu1 %vm2642_vm10, %v8457_v4  ;;  %5492 = vperm.xlu0 %8403, %v7487_v20   ;;  %v8465_v16 = vld [vmem:[%s11902_s5 + $0x50] ss:$8 sps:$4 sm:$0xff]   ;;  %v7474_v4 = vld [vmem:[%s11903_s6 + $0x188] sm:$0xff] }
 0x375   : > { %v8466_v20 = vld [vmem:[%s11902_s5 + $0x64] ss:$8 sps:$4 sm:$0xff]  }
 0x377   : > { %5114 = vperm.xlu1 %8404, %v7448_v17   ;;  %v10149_v17 = vpop.permute.xlu1 %3190 }
 0x378   : > { %6011 = vperm.xlu0 %8403, %v7551_v31   ;;  %v7561_v31 = vld [vmem:[%s11905_s8 + $0x2a8] sm:$0xff] }
 0x37b   : > { %2727 = vmatmul.mubr.bf16.gmra.mrb[88].mxu1 %v8459_v6  ;;  %5124 = vperm.xlu1 %8404, %v7450_v55   ;;  %v10154_v6 = vpop.permute.xlu0 %3538  ;;  %v7476_v55 = vld [vmem:[%s11903_s6 + $0x198] sm:$0xff] }
 0x37c   : > { %7202 = vmatprep.mubr.msk.bf16.mxu1 %vm2642_vm10, %v8460_v54  ;;  %6016 = vperm.xlu0 %8403, %v7552_v43   ;;  %11924 = vst [vmem:[#allocation8_spill] sm:$0xff] %v10154_v6  ;;  %v7563_v54 = vld [vmem:[%s11905_s8 + $0x2b8] sm:$0xff]  ;;  %v10163_v43 = vpop.permute.xlu1 %3200 }
 0x37f   : > { %5134 = vperm.xlu1 %8404, %v7452_v33   ;;  %v8468_v33 = vld [vmem:[%s11902_s5 + $0x60] ss:$8 sps:$4 sm:$0xff]  }
 0x380   : > { %6026 = vperm.xlu0 %8403, %v7554_v39   ;;  %v10168_v39 = vpop.permute.xlu0 %4057 }
 0x381   : > { %11925 = vst [vmem:[#allocation9_spill] sm:$0xff] %v10168_v39  ;;  %v7572_v39 = vld [vmem:[%s11905_s8 + $0x300] sm:$0xff] }
 0x383   : > { %2735 = vmatmul.mubr.bf16.gmra.mrb[92].mxu1 %v8462_v61  ;;  %5144 = vperm.xlu1 %8404, %v7454_v46   ;;  %v7478_v61 = vld [vmem:[%s11903_s6 + $0x1a8] sm:$0xff]  ;;  %v8469_v46 = vld [vmem:[%s11902_s5 + $0x74] ss:$8 sps:$4 sm:$0xff]  }
 0x384   : > { %7203 = vmatprep.mubr.msk.bf16.mxu1 %vm2642_vm10, %v8463_v49  ;;  %6041 = vperm.xlu0 %8403, %v7557_v9   ;;  %v7565_v49 = vld [vmem:[%s11905_s8 + $0x2c8] sm:$0xff]  ;;  %v7480_v9 = vld [vmem:[%s11903_s6 + $0x1b8] sm:$0xff] }
 0x387   : > { %5154 = vperm.xlu1 %8404, %v7456_v2   ;;  %v10183_v2 = vpop.permute.xlu1 %3473 }
 0x388   : > { %6051 = vperm.xlu0 %8403, %v7559_v14   ;;  %v7567_v14 = vld [vmem:[%s11905_s8 + $0x2d8] sm:$0xff] }
 0x38b   : > { %2743 = vmatmul.mubr.bf16.gmra.mrb[96].mxu1 %v8465_v16  ;;  %5427 = vperm.xlu1 %8404, %v7474_v4   ;;  %v10188_v16 = vpop.permute.xlu0 %4067  ;;  %v8471_v4 = vld [vmem:[%s11902_s5 + $0x70] ss:$8 sps:$4 sm:$0xff]  }
 0x38c   : > { %7204 = vmatprep.mubr.msk.bf16.mxu1 %vm2642_vm10, %v8466_v20  ;;  %6061 = vperm.xlu0 %8403, %v7561_v31   ;;  %11926 = vst [vmem:[#allocation10_spill] sm:$0xff] %v10188_v16  ;;  %v7482_v20 = vld [vmem:[%s11903_s6 + $0x1c8] sm:$0xff]  ;;  %v11916_v16 = vmov 0.0  }
 0x38d   : > { %v7569_v31 = vld [vmem:[%s11905_s8 + $0x2e8] sm:$0xff]  ;;  %8026 = vmatprep.subr.bf16.mxu0 %v11916_v16 }
 0x38f   : > { %5437 = vperm.xlu1 %8404, %v7476_v55   ;;  %v10199_v55 = vpop.permute.xlu1 %3483 }
 0x390   : > { %6071 = vperm.xlu0 %8403, %v7563_v54   ;;  %v10201_v54 = vpop.permute.xlu0 %4077 }
 0x391   : > { %11927 = vst [vmem:[#allocation11_spill] sm:$0xff] %v10201_v54 }
 0x393   : > { %2751 = vmatmul.mubr.bf16.gmra.mrb[100].mxu1 %v8468_v33  ;;  %5447 = vperm.xlu1 %8404, %v7478_v61   ;;  %v7484_v33 = vld [vmem:[%s11903_s6 + $0x1d8] sm:$0xff] }
 0x394   : > { %7205 = vmatprep.mubr.msk.bf16.mxu1 %vm2642_vm10, %v8469_v46  ;;  %6081 = vperm.xlu0 %8403, %v7565_v49   ;;  %v7571_v61 = vld [vmem:[%s11905_s8 + $0x2f8] sm:$0xff]  ;;  %v7486_v46 = vld [vmem:[%s11903_s6 + $0x1e8] sm:$0xff]  ;;  %v10212_v49 = vpop.permute.xlu1 %3493 }
 0x397   : > { %5457 = vperm.xlu1 %8404, %v7480_v9   ;;  %v7573_v9 = vld [vmem:[%s11905_s8 + $0x308] sm:$0xff] }
 0x398   : > { %6091 = vperm.xlu0 %8403, %v7567_v14   ;;  %v10217_v14 = vpop.permute.xlu0 %4087 }
 0x399   : > { %11928 = vst [vmem:[#allocation12_spill] sm:$0xff] %v10217_v14 }
 0x39b   : > { %2759 = vmatmul.mubr.bf16.gmra.mrb[104].mxu1 %v8471_v4  ;;  %5467 = vperm.xlu1 %8404, %v7482_v20   ;;  %v7488_v4 = vld [vmem:[%s11903_s6 + $0x1f8] sm:$0xff] }
 0x39c   : > { %6101 = vperm.xlu0 %8403, %v7569_v31   ;;  %v7575_v20 = vld [vmem:[%s11905_s8 + $0x318] sm:$0xf]  ;;  %v10225_v31 = vpop.permute.xlu1 %3503 }
 0x39d   : > { %11929 = vst [vmem:[#allocation13_spill] sm:$0xff] %v10225_v31 }
 0x39f   : > { %5477 = vperm.xlu1 %8404, %v7484_v33   ;;  %v10227_v33 = vpop.permute.xlu0 %4097 }
 0x3a0   : > { %6111 = vperm.xlu0 %8403, %v7571_v61   ;;  %11930 = vst [vmem:[#allocation14_spill] sm:$0xff] %v10227_v33  ;;  %v7555_v61 = vld [vmem:[%s11905_s8 + $0x278] sm:$0xff]  ;;  %v7558_v33 = vld [vmem:[%s11905_s8 + $0x290] sm:$0xff] }
 0x3a3   : > { %5487 = vperm.xlu1 %8404, %v7486_v46   ;;  %v7553_v46 = vld [vmem:[%s11905_s8 + $0x268] sm:$0xff] }
 0x3a4   : > { %6121 = vperm.xlu0 %8403, %v7573_v9   ;;  %v10235_v9 = vpop.permute.xlu1 %3513 }
 0x3a5   : > { %11931 = vst [vmem:[#allocation15_spill] sm:$0xff] %v10235_v9 }
 0x3a7   : > { %5497 = vperm.xlu1 %8404, %v7488_v4  }
 0x3a8   : > { %6131 = vperm.xlu0 %8403, %v7575_v20   ;;  %v10240_v4 = vpop.permute.xlu1 %3523  ;;  %v7560_v20 = vld [vmem:[%s11905_s8 + $0x2a0] sm:$0xff] }
 0x3a9   : > { %11932 = vst [vmem:[#allocation16_spill] sm:$0xff] %v10240_v4 }
 0x3ab   : > { %6031 = vperm.xlu1 %8404, %v7555_v61  }
 0x3ac   : > { %v10248_v61 = vpop.permute.xlu1 %3533 }
 0x3ad   : > { %11933 = vst [vmem:[#allocation17_spill] sm:$0xff] %v10248_v61 }
 0x3af   : > { %6021 = vperm.xlu1 %8404, %v7553_v46   ;;  %v7562_v46 = vld [vmem:[%s11905_s8 + $0x2b0] sm:$0xff] }
 0x3b0   : > { %v10253_v14 = vpop.permute.xlu1 %3543 }
 0x3b1   : > { %11934 = vst [vmem:[#allocation18_spill] sm:$0xff] %v10253_v14 }
 0x3b3   : > { %6036 = vperm.xlu1 %8404, %v7556_v10   ;;  %v7564_v10 = vld [vmem:[%s11905_s8 + $0x2c0] sm:$0xff] }
 0x3b4   : > { %v10261_v54 = vpop.permute.xlu1 %4062 }
 0x3b5   : > { %11935 = vst [vmem:[#allocation19_spill] sm:$0xff] %v10261_v54 }
 0x3b7   : > { %6046 = vperm.xlu1 %8404, %v7558_v33   ;;  %v7566_v33 = vld [vmem:[%s11905_s8 + $0x2d0] sm:$0xff] }
 0x3bb   : > { %6056 = vperm.xlu1 %8404, %v7560_v20   ;;  %v7568_v20 = vld [vmem:[%s11905_s8 + $0x2e0] sm:$0xff] }
 0x3bf   : > { %6066 = vperm.xlu1 %8404, %v7562_v46   ;;  %v10267_v46 = vpop.permute.xlu1 %4072 }
 0x3c0   : > { %11936 = vst [vmem:[#allocation20_spill] sm:$0xff] %v10267_v46 }
 0x3c3   : > { %6076 = vperm.xlu1 %8404, %v7564_v10   ;;  %v7570_v10 = vld [vmem:[%s11905_s8 + $0x2f0] sm:$0xff]  ;;  %v10275_v54 = vpop.permute.xlu1 %4082 }
 0x3c4   : > { %11937 = vst [vmem:[#allocation21_spill] sm:$0xff] %v10275_v54 }
 0x3c7   : > { %6086 = vperm.xlu1 %8404, %v7566_v33   ;;  %v7574_v33 = vld [vmem:[%s11905_s8 + $0x310] sm:$0xff]  ;;  %v10280_v16 = vpop.permute.xlu1 %4092 }
 0x3c8   : > { %11938 = vst [vmem:[#allocation22_spill] sm:$0xff] %v10280_v16 }
 0x3cb   : > { %6096 = vperm.xlu1 %8404, %v7568_v20   ;;  %v11939_v20 = vmov 0.0  }
 0x3cc   : > { %8042 = vmatprep.mubr.msk.bf16.mxu0 %vm8679_vm13, %v11939_v20 }
 0x3cf   : > { %6106 = vperm.xlu1 %8404, %v7570_v10  }
 0x3d3   : > { %6116 = vperm.xlu1 %8404, %v7572_v39  }
 0x3d7   : > { %6126 = vperm.xlu1 %8404, %v7574_v33  }
 0x436   : > { %v2704_v46 = vpop.f32.mrb[76].mxu1 }
 0x437   : > { %v2705_v10 = vadd.f32 %v2704_v46, %v9587_v15  ;;  %v2706_v14 = vpop.f32.mrb[77].mxu1 }
 0x438   : > { %v2707_v6 = vpop.f32.mrb[78].mxu1 }
 0x439   : > { %v2708_v61 = vadd.f32 %v2707_v6, %v9766_v35  ;;  %v2709_v54 = vpop.f32.mrb[79].mxu1  ;;  %v2767_v39 = vmax.f32 %v2705_v10, 0.0 }
 0x43b   : > { %v2768_v27 = vmax.f32 %v2708_v61, 0.0 }
 0x43d   : > { %v2783_v4 = vpack.c.bf16 %v2768_v27, %v2767_v39 }
 0x43e   : > { %v2712_v58 = vpop.f32.mrb[80].mxu1 }
 0x43f   : > { %v2713_v9 = vadd.f32 %v2712_v58, %v9786_v57  ;;  %v2714_v16 = vpop.f32.mrb[81].mxu1  ;;  %8027 = vmatpush3.bf16.msra.mxu0 %v2783_v4 }
 0x440   : > { %v2715_v33 = vpop.f32.mrb[82].mxu1  ;;  %8028 = vmatprep.subr.bf16.mxu0 %v11939_v20 }
 0x441   : > { %v2716_v13 = vadd.f32 %v2715_v33, %v9619_v36  ;;  %v2717_v31 = vpop.f32.mrb[83].mxu1  ;;  %v2769_v15 = vmax.f32 %v2713_v9, 0.0 }
 0x443   : > { %v2770_v14 = vmax.f32 %v2716_v13, 0.0 }
 0x445   : > { %v2784_v46 = vpack.c.bf16 %v2770_v14, %v2769_v15 }
 0x446   : > { %v2720_v50 = vpop.f32.mrb[84].mxu1 }
 0x447   : > { %v2721_v35 = vadd.f32 %v2720_v50, %v9796_v18  ;;  %v2722_v6 = vpop.f32.mrb[85].mxu1  ;;  %8029 = vmatpush3.bf16.msra.mxu0 %v2784_v46 }
 0x448   : > { %v2723_v27 = vpop.f32.mrb[86].mxu1  ;;  %8030 = vmatprep.subr.bf16.mxu0 %v11939_v20 }
 0x449   : > { %v2724_v57 = vadd.f32 %v2723_v27, %v9640_v56  ;;  %v2725_v58 = vpop.f32.mrb[87].mxu1  ;;  %v2771_v16 = vmax.f32 %v2721_v35, 0.0 }
 0x44b   : > { %v2772_v54 = vmax.f32 %v2724_v57, 0.0 }
 0x44d   : > { %v2785_v4 = vpack.c.bf16 %v2772_v54, %v2771_v16 }
 0x44e   : > { %v2728_v61 = vpop.f32.mrb[88].mxu1 }
 0x44f   : > { %v2729_v36 = vadd.f32 %v2728_v61, %v9812_v1  ;;  %v2730_v31 = vpop.f32.mrb[89].mxu1  ;;  %8031 = vmatpush3.bf16.msra.mxu0 %v2785_v4 }
 0x450   : > { %v2731_v13 = vpop.f32.mrb[90].mxu1  ;;  %8032 = vmatprep.subr.bf16.mxu0 %v11939_v20 }
 0x451   : > { %v2732_v18 = vadd.f32 %v2731_v13, %v9668_v42  ;;  %v2733_v50 = vpop.f32.mrb[91].mxu1  ;;  %v2773_v9 = vmax.f32 %v2729_v36, 0.0 }
 0x453   : > { %v2774_v10 = vmax.f32 %v2732_v18, 0.0 }
 0x455   : > { %v2786_v39 = vpack.c.bf16 %v2774_v10, %v2773_v9 }
 0x456   : > { %v2736_v33 = vpop.f32.mrb[92].mxu1 }
 0x457   : > { %v2737_v56 = vadd.f32 %v2736_v33, %v9836_v44  ;;  %v2738_v15 = vpop.f32.mrb[93].mxu1  ;;  %8033 = vmatpush3.bf16.msra.mxu0 %v2786_v39 }
 0x458   : > { %v2739_v14 = vpop.f32.mrb[94].mxu1  ;;  %8034 = vmatprep.subr.bf16.mxu0 %v11939_v20 }
 0x459   : > { %v2740_v1 = vadd.f32 %v2739_v14, %v9699_v45  ;;  %v2741_v46 = vpop.f32.mrb[95].mxu1  ;;  %v2775_v35 = vmax.f32 %v2737_v56, 0.0 }
 0x45b   : > { %v2776_v6 = vmax.f32 %v2740_v1, 0.0 }
 0x45d   : > { %v2787_v27 = vpack.c.bf16 %v2776_v6, %v2775_v35  ;;  %v8475_v6 = vld [vmem:[%s11904_s7 + $0x18] sm:$0xff]  }
 0x45e   : > { %v2744_v57 = vpop.f32.mrb[96].mxu1 }
 0x45f   : > { %v2745_v42 = vadd.f32 %v2744_v57, %v9860_v5  ;;  %v2746_v58 = vpop.f32.mrb[97].mxu1  ;;  %8035 = vmatpush3.bf16.msra.mxu0 %v2787_v27  ;;  %v8476_v27 = vld [vmem:[%s11904_s7 + $0x20] sm:$0xff]   ;;  %v8477_v57 = vld [vmem:[%s11904_s7 + $0x28] sm:$0xff]  }
 0x460   : > { %v2747_v16 = vpop.f32.mrb[98].mxu1  ;;  %8036 = vmatprep.subr.bf16.mxu0 %v11939_v20  ;;  %v8479_v58 = vld [vmem:[%s11904_s7 + $0x38] sm:$0xff]  }
 0x461   : > { %v2748_v44 = vadd.f32 %v2747_v16, %v9728_v48  ;;  %v2749_v54 = vpop.f32.mrb[99].mxu1  ;;  %v2777_v4 = vmax.f32 %v2745_v42, 0.0  ;;  %v8478_v42 = vld [vmem:[%s11904_s7 + $0x30] sm:$0xff]   ;;  %v8480_v16 = vld [vmem:[%s11904_s7 + $0x40] sm:$0xff]  }
 0x462   : > { %v8482_v54 = vld [vmem:[%s11904_s7 + $0x50] sm:$0xff]  }
 0x463   : > { %v2778_v61 = vmax.f32 %v2748_v44, 0.0  ;;  %v8481_v44 = vld [vmem:[%s11904_s7 + $0x48] sm:$0xff]  }
 0x465   : > { %v2788_v36 = vpack.c.bf16 %v2778_v61, %v2777_v4  ;;  %v8483_v4 = vld [vmem:[%s11904_s7 + $0x58] sm:$0xff]   ;;  %v8484_v61 = vld [vmem:[%s11904_s7 + $0x60] ss:$0 sps:$4 sm:$0x33]  }
 0x466   : > { %v2752_v31 = vpop.f32.mrb[100].mxu1 }
 0x467   : > { %v2753_v45 = vadd.f32 %v2752_v31, %v9883_v25  ;;  %v2754_v13 = vpop.f32.mrb[101].mxu1  ;;  %8037 = vmatpush3.bf16.msra.mxu0 %v2788_v36 }
 0x468   : > { %v2755_v18 = vpop.f32.mrb[102].mxu1  ;;  %8038 = vmatprep.subr.bf16.mxu0 %v11939_v20 }
 0x469   : > { %v2756_v5 = vadd.f32 %v2755_v18, %v9747_v40  ;;  %v2757_v50 = vpop.f32.mrb[103].mxu1  ;;  %v2779_v9 = vmax.f32 %v2753_v45, 0.0  ;;  %v8472_v40 = vld [vmem:[%s11904_s7] sm:$0xff]  }
 0x46b   : > { %v2780_v10 = vmax.f32 %v2756_v5, 0.0 }
 0x46d   : > { %v2789_v39 = vpack.c.bf16 %v2780_v10, %v2779_v9 }
 0x46e   : > { %v2760_v33 = vpop.f32.mrb[104].mxu1 }
 0x46f   : > { %v2761_v48 = vadd.f32 %v2760_v33, %v9907_v47  ;;  %v2762_v56 = vpop.f32.mrb[105].mxu1  ;;  %8039 = vmatpush3.bf16.msra.mxu0 %v2789_v39  ;;  %v8473_v47 = vld [vmem:[%s11904_s7 + $0x8] sm:$0xff]  }
 0x470   : > { %v2763_v15 = vpop.f32.mrb[106].mxu1  ;;  %8040 = vmatprep.subr.bf16.mxu0 %v11939_v20  ;;  %v8642_v56 = vld [vmem:[#allocation2 + $0x8] sm:$0xff] }
 0x471   : > { %v2764_v25 = vadd.f32 %v2763_v15, %v9758_v3  ;;  %v2765_v14 = vpop.f32.mrb[107].mxu1  ;;  %v2781_v1 = vmax.f32 %v2761_v48, 0.0  ;;  %v8474_v3 = vld [vmem:[%s11904_s7 + $0x10] sm:$0xff]  }
 0x473   : > { %v2782_v46 = vmax.f32 %v2764_v25, 0.0  ;;  %v8643_v25 = vld [vmem:[#allocation2] sm:$0xff] }
 0x475   : > { %v2790_v35 = vpack.c.bf16 %v2782_v46, %v2781_v1  ;;  %v8644_v1 = vld [vmem:[#allocation2 + $0x10] sm:$0xff] }
 0x477   : > { %8041 = vmatpush3.bf16.msra.mxu0 %v2790_v35 }
 0x478   : > { %8094 = vmatprep.subr.bf16.mxu0 %v11939_v20 }
 0x47a   : > { %8043 = vmatmul.mubr.bf16.vlgmr.msra.gmra.mrb[76].mxu0 %v8472_v40 }
 0x47b   : > { %8046 = vmatprep.mubr.msk.bf16.mxu0 %vm8679_vm13, %v11939_v20 }
 0x482   : > { %8047 = vmatmul.mubr.bf16.gmra.mrb[80].mxu0 %v8473_v47 }
 0x483   : > { %8050 = vmatprep.mubr.msk.bf16.mxu0 %vm8679_vm13, %v11939_v20 }
 0x48a   : > { %8051 = vmatmul.mubr.bf16.gmra.mrb[84].mxu0 %v8474_v3 }
 0x48b   : > { %8054 = vmatprep.mubr.msk.bf16.mxu0 %vm8679_vm13, %v11939_v20 }
 0x492   : > { %8055 = vmatmul.mubr.bf16.gmra.mrb[88].mxu0 %v8475_v6 }
 0x493   : > { %8058 = vmatprep.mubr.msk.bf16.mxu0 %vm8679_vm13, %v11939_v20 }
 0x49a   : > { %8059 = vmatmul.mubr.bf16.gmra.mrb[92].mxu0 %v8476_v27 }
 0x49b   : > { %8062 = vmatprep.mubr.msk.bf16.mxu0 %vm8679_vm13, %v11939_v20 }
 0x4a2   : > { %8063 = vmatmul.mubr.bf16.gmra.mrb[96].mxu0 %v8477_v57  ;;  %v8645_v57 = vld [vmem:[#allocation2 + $0x18] sm:$0xff] }
 0x4a3   : > { %8066 = vmatprep.mubr.msk.bf16.mxu0 %vm8679_vm13, %v11939_v20 }
 0x4aa   : > { %8067 = vmatmul.mubr.bf16.gmra.mrb[100].mxu0 %v8478_v42 }
 0x4ab   : > { %8070 = vmatprep.mubr.msk.bf16.mxu0 %vm8679_vm13, %v11939_v20 }
 0x4b2   : > { %8071 = vmatmul.mubr.bf16.gmra.mrb[104].mxu0 %v8479_v58 }
 0x4b3   : > { %8074 = vmatprep.mubr.msk.bf16.mxu0 %vm8679_vm13, %v11939_v20 }
 0x4ba   : > { %8075 = vmatmul.mubr.bf16.gmra.mrb[108].mxu0 %v8480_v16 }
 0x4bb   : > { %8078 = vmatprep.mubr.msk.bf16.mxu0 %vm8679_vm13, %v11939_v20 }
 0x4c2   : > { %8079 = vmatmul.mubr.bf16.gmra.mrb[112].mxu0 %v8481_v44  ;;  %v8646_v44 = vld [vmem:[#allocation2 + $0x20] sm:$0xff] }
 0x4c3   : > { %8082 = vmatprep.mubr.msk.bf16.mxu0 %vm8679_vm13, %v11939_v20 }
 0x4ca   : > { %8083 = vmatmul.mubr.bf16.gmra.mrb[116].mxu0 %v8482_v54 }
 0x4cb   : > { %8086 = vmatprep.mubr.msk.bf16.mxu0 %vm8679_vm13, %v11939_v20 }
 0x4d2   : > { %8087 = vmatmul.mubr.bf16.gmra.mrb[120].mxu0 %v8483_v4 }
 0x4d3   : > { %8090 = vmatprep.mubr.msk.bf16.mxu0 %vm8679_vm13, %v11939_v20 }
 0x4da   : > { %8091 = vmatmul.mubr.bf16.gmra.mrb[124].mxu0 %v8484_v61 }
 0x4db   : > { %8110 = vmatprep.mubr.msk.bf16.mxu0 %vm8679_vm13, %v11939_v20 }
 0x54d   : > { %v2926_v36 = vpop.f32.mrb[76].mxu0 }
 0x54e   : > { %v8044_v31 = vpop.f32.mrb[77].mxu0  ;;  %v3028_v14 = vadd.f32 %v8643_v25, %v2926_v36 }
 0x54f   : > { %v2929_v45 = vpop.f32.mrb[78].mxu0 }
 0x550   : > { %v8045_v13 = vpop.f32.mrb[79].mxu0  ;;  %v3029_v15 = vadd.f32 %v8642_v56, %v2929_v45  ;;  %v10377_v6 = vadd.f32 %v9930_v19, %v3028_v14  ;;  %v8648_v56 = vld [vmem:[#allocation2 + $0x30] sm:$0xff] }
 0x552   : > { %v10374_v40 = vadd.f32 %v9771_v24, %v3029_v15  ;;  %v3284_v24 = vmul.f32 %v10377_v6, %v10377_v6  ;;  %v3228_v61 = vsel %vm2252_vm8, %v10377_v6, 0.0 }
 0x554   : > { %v3285_v16 = vmul.f32 %v10374_v40, %v10374_v40  ;;  %v3229_v4 = vsel %vm2252_vm8, %v10374_v40, 0.0 }
 0x555   : > { %v2934_v18 = vpop.f32.mrb[80].mxu0 }
 0x556   : > { %v8048_v5 = vpop.f32.mrb[81].mxu0  ;;  %v3030_v46 = vadd.f32 %v8644_v1, %v2934_v18  ;;  %v3310_v31 = vsel %vm2252_vm8, %v3285_v16, 0.0  ;;  %v8647_v18 = vld [vmem:[#allocation2 + $0x28] sm:$0xff] }
 0x557   : > { %v2937_v50 = vpop.f32.mrb[82].mxu0 }
 0x558   : > { %v8049_v9 = vpop.f32.mrb[83].mxu0  ;;  %v10380_v27 = vadd.f32 %v9954_v62, %v3030_v46  ;;  %v3031_v42 = vadd.f32 %v8645_v57, %v2937_v50 }
 0x559   : > { %v3230_v9 = vadd.f32 %v3229_v4, %v3228_v61 }
 0x55a   : > { %v3286_v19 = vmul.f32 %v10380_v27, %v10380_v27  ;;  %v10391_v62 = vadd.f32 %v9788_v7, %v3031_v42  ;;  %v3231_v45 = vsel %vm2252_vm8, %v10380_v27, 0.0  ;;  %v3309_v7 = vsel %vm2252_vm8, %v3284_v24, 0.0 }
 0x55b   : > { %v3311_v14 = vadd.f32 %v3310_v31, %v3309_v7  ;;  %v3232_v1 = vadd.f32 %v3231_v45, %v3230_v9 }
 0x55d   : > { %v2942_v10 = vpop.f32.mrb[84].mxu0 }
 0x55e   : > { %v8052_v39 = vpop.f32.mrb[85].mxu0  ;;  %v3032_v54 = vadd.f32 %v8646_v44, %v2942_v10 }
 0x55f   : > { %v2945_v33 = vpop.f32.mrb[86].mxu0  ;;  %v3312_v39 = vsel %vm2252_vm8, %v3286_v19, 0.0 }
 0x560   : > { %v8053_v48 = vpop.f32.mrb[87].mxu0  ;;  %v10399_v13 = vadd.f32 %v9977_v8, %v3032_v54  ;;  %v3033_v5 = vadd.f32 %v8647_v18, %v2945_v33  ;;  %v3233_v8 = vsel %vm2252_vm8, %v10391_v62, 0.0 }
 0x561   : > { %v3287_v48 = vmul.f32 %v10391_v62, %v10391_v62  ;;  %v3234_v44 = vadd.f32 %v3233_v8, %v3232_v1 }
 0x562   : > { %v3288_v33 = vmul.f32 %v10399_v13, %v10399_v13  ;;  %v10410_v46 = vadd.f32 %v9798_v51, %v3033_v5  ;;  %v3235_v42 = vsel %vm2252_vm8, %v10399_v13, 0.0  ;;  %v8650_v51 = vld [vmem:[#allocation2 + $0x40] sm:$0xff] }
 0x563   : > { %v3314_v57 = vsel %vm2252_vm8, %v3287_v48, 0.0  ;;  %v3236_v45 = vadd.f32 %v3235_v42, %v3234_v44  ;;  %v8651_v48 = vld [vmem:[#allocation2 + $0x48] sm:$0xff] }
 0x564   : > { %v3316_v24 = vsel %vm2252_vm8, %v3288_v33, 0.0  ;;  %v3289_v4 = vmul.f32 %v10410_v46, %v10410_v46  ;;  %v3237_v5 = vsel %vm2252_vm8, %v10410_v46, 0.0 }
 0x565   : > { %v2950_v35 = vpop.f32.mrb[88].mxu0 }
 0x566   : > { %v8056_v47 = vpop.f32.mrb[89].mxu0  ;;  %v3034_v15 = vadd.f32 %v8648_v56, %v2950_v35  ;;  %v3318_v7 = vsel %vm2252_vm8, %v3289_v4, 0.0  ;;  %v8653_v4 = vld [vmem:[#allocation2 + $0x58] sm:$0xff] }
 0x567   : > { %v2953_v3 = vpop.f32.mrb[90].mxu0  ;;  %v3313_v47 = vadd.f32 %v3312_v39, %v3311_v14 }
 0x568   : > { %v8057_v58 = vpop.f32.mrb[91].mxu0  ;;  %v10416_v35 = vadd.f32 %v10000_v63, %v3034_v15  ;;  %v3238_v15 = vadd.f32 %v3237_v5, %v3236_v45  ;;  %v8654_v45 = vld [vmem:[#allocation2 + $0x60] sm:$0xff] }
 0x569   : > { %v8649_v58 = vld [vmem:[#allocation2 + $0x38] sm:$0xff]  ;;  %v3315_v31 = vadd.f32 %v3314_v57, %v3313_v47 }
 0x56a   : > { %v3035_v16 = vadd.f32 %v8649_v58, %v2953_v3  ;;  %v3290_v63 = vmul.f32 %v10416_v35, %v10416_v35 }
 0x56b   : > { %v3317_v9 = vadd.f32 %v3316_v24, %v3315_v31 }
 0x56c   : > { %v10426_v3 = vadd.f32 %v9814_v30, %v3035_v16  ;;  %v8652_v30 = vld [vmem:[#allocation2 + $0x50] sm:$0xff] }
 0x56d   : > { %v2958_v36 = vpop.f32.mrb[92].mxu0  ;;  %v3319_v8 = vadd.f32 %v3318_v7, %v3317_v9 }
 0x56e   : > { %v8060_v50 = vpop.f32.mrb[93].mxu0  ;;  %v3036_v19 = vadd.f32 %v8650_v51, %v2958_v36  ;;  %v3239_v36 = vsel %vm2252_vm8, %v10416_v35, 0.0  ;;  %v3291_v14 = vmul.f32 %v10426_v3, %v10426_v3  ;;  %v3241_v57 = vsel %vm2252_vm8, %v10426_v3, 0.0 }
 0x56f   : > { %v2961_v10 = vpop.f32.mrb[94].mxu0  ;;  %v3240_v33 = vadd.f32 %v3239_v36, %v3238_v15 }
 0x570   : > { %v8061_v25 = vpop.f32.mrb[95].mxu0  ;;  %v10432_v39 = vadd.f32 %v10015_v26, %v3036_v19  ;;  %v3037_v56 = vadd.f32 %v8651_v48, %v2961_v10  ;;  %v3322_v44 = vsel %vm2252_vm8, %v3291_v14, 0.0 }
 0x571   : > { %v3320_v25 = vsel %vm2252_vm8, %v3290_v63, 0.0 }
 0x572   : > { %v3292_v26 = vmul.f32 %v10432_v39, %v10432_v39  ;;  %v10442_v42 = vadd.f32 %v9838_v37, %v3037_v56  ;;  %v3321_v58 = vadd.f32 %v3320_v25, %v3319_v8  ;;  %v8655_v25 = vld [vmem:[#allocation2 + $0x68] sm:$0xff] }
 0x574   : > { %v3324_v31 = vsel %vm2252_vm8, %v3292_v26, 0.0  ;;  %v3293_v37 = vmul.f32 %v10442_v42, %v10442_v42  ;;  %v3323_v63 = vadd.f32 %v3322_v44, %v3321_v58  ;;  %v3245_v9 = vsel %vm2252_vm8, %v10442_v42, 0.0 }
 0x575   : > { %v2966_v54 = vpop.f32.mrb[96].mxu0 }
 0x576   : > { %v8064_v61 = vpop.f32.mrb[97].mxu0  ;;  %v3038_v1 = vadd.f32 %v8652_v30, %v2966_v54  ;;  %v3243_v54 = vsel %vm2252_vm8, %v10432_v39, 0.0  ;;  %v3326_v48 = vsel %vm2252_vm8, %v3293_v37, 0.0 }
 0x577   : > { %v2969_v18 = vpop.f32.mrb[98].mxu0  ;;  %v3242_v61 = vadd.f32 %v3241_v57, %v3240_v33 }
 0x578   : > { %v8065_v50 = vpop.f32.mrb[99].mxu0  ;;  %v10448_v24 = vadd.f32 %v10037_v11, %v3038_v1  ;;  %v3039_v51 = vadd.f32 %v8653_v4, %v2969_v18  ;;  %v3325_v18 = vadd.f32 %v3324_v31, %v3323_v63  ;;  %v8657_v31 = vld [vmem:[#allocation2 + $0x78] sm:$0xff] }
 0x579   : > { %v3244_v50 = vadd.f32 %v3243_v54, %v3242_v61 }
 0x57a   : > { %v3294_v11 = vmul.f32 %v10448_v24, %v10448_v24  ;;  %v10458_v7 = vadd.f32 %v9866_v0, %v3039_v51  ;;  %v3247_v56 = vsel %vm2252_vm8, %v10448_v24, 0.0  ;;  %v3327_v58 = vadd.f32 %v3326_v48, %v3325_v18 }
 0x57b   : > { %v3246_v1 = vadd.f32 %v3245_v9, %v3244_v50  ;;  %v8658_v50 = vld [vmem:[#allocation2 + $0x80] sm:$0xff] }
 0x57c   : > { %v3328_v33 = vsel %vm2252_vm8, %v3294_v11, 0.0  ;;  %v3295_v0 = vmul.f32 %v10458_v7, %v10458_v7 }
 0x57d   : > { %v2974_v47 = vpop.f32.mrb[100].mxu0  ;;  %v3329_v4 = vadd.f32 %v3328_v33, %v3327_v58 }
 0x57e   : > { %v8068_v10 = vpop.f32.mrb[101].mxu0  ;;  %v3040_v5 = vadd.f32 %v8654_v45, %v2974_v47  ;;  %v8656_v47 = vld [vmem:[#allocation2 + $0x70] sm:$0xff]  ;;  %v3330_v51 = vsel %vm2252_vm8, %v3295_v0, 0.0  ;;  %v8659_v0 = vld [vmem:[#allocation2 + $0x88] sm:$0xff] }
 0x57f   : > { %v2977_v16 = vpop.f32.mrb[102].mxu0  ;;  %v8487_v10 = vld [vmem:[%s11902_s5 + $0x84] ss:$8 sps:$4 sm:$0xff]   ;;  %v3331_v18 = vadd.f32 %v3330_v51, %v3329_v4  ;;  %v8660_v4 = vld [vmem:[#allocation2 + $0x90] sm:$0xff] }
 0x580   : > { %v8069_v19 = vpop.f32.mrb[103].mxu0  ;;  %v10464_v15 = vadd.f32 %v10056_v23, %v3040_v5  ;;  %v3041_v14 = vadd.f32 %v8655_v25, %v2977_v16  ;;  %v3248_v23 = vadd.f32 %v3247_v56, %v3246_v1  ;;  %v3249_v16 = vsel %vm2252_vm8, %v10458_v7, 0.0  ;;  %7267 = vmatprep.mubr.msk.bf16.mxu1 %vm2642_vm10, %v8487_v10 }
 0x582   : > { %v3296_v44 = vmul.f32 %v10464_v15, %v10464_v15  ;;  %v10477_v54 = vadd.f32 %v9885_v41, %v3041_v14  ;;  %v3251_v19 = vsel %vm2252_vm8, %v10464_v15, 0.0  ;;  %v3250_v45 = vadd.f32 %v3249_v16, %v3248_v23 }
 0x584   : > { %v3332_v63 = vsel %vm2252_vm8, %v3296_v44, 0.0  ;;  %v3297_v41 = vmul.f32 %v10477_v54, %v10477_v54  ;;  %v3253_v56 = vsel %vm2252_vm8, %v10477_v54, 0.0 }
 0x585   : > { %v2982_v36 = vpop.f32.mrb[104].mxu0 }
 0x586   : > { %v8072_v30 = vpop.f32.mrb[105].mxu0  ;;  %v3042_v57 = vadd.f32 %v8656_v47, %v2982_v36  ;;  %v3252_v36 = vadd.f32 %v3251_v19, %v3250_v45  ;;  %v3334_v1 = vsel %vm2252_vm8, %v3297_v41, 0.0  ;;  %v8661_v41 = vld [vmem:[#allocation2 + $0x98] sm:$0xff] }
 0x587   : > { %v2985_v8 = vpop.f32.mrb[106].mxu0  ;;  %v3333_v30 = vadd.f32 %v3332_v63, %v3331_v18 }
 0x588   : > { %v8073_v26 = vpop.f32.mrb[107].mxu0  ;;  %v10484_v61 = vadd.f32 %v10076_v12, %v3042_v57  ;;  %v3043_v37 = vadd.f32 %v8657_v31, %v2985_v8  ;;  %v3254_v57 = vadd.f32 %v3253_v56, %v3252_v36 }
 0x58a   : > { %v3298_v12 = vmul.f32 %v10484_v61, %v10484_v61  ;;  %v10494_v25 = vadd.f32 %v9913_v52, %v3043_v37  ;;  %v3255_v8 = vsel %vm2252_vm8, %v10484_v61, 0.0  ;;  %v3335_v52 = vadd.f32 %v3334_v1, %v3333_v30 }
 0x58b   : > { %v3256_v58 = vadd.f32 %v3255_v8, %v3254_v57 }
 0x58c   : > { %v3336_v26 = vsel %vm2252_vm8, %v3298_v12, 0.0  ;;  %v3299_v10 = vmul.f32 %v10494_v25, %v10494_v25  ;;  %v3257_v16 = vsel %vm2252_vm8, %v10494_v25, 0.0 }
 0x58d   : > { %v2990_v5 = vpop.f32.mrb[108].mxu0  ;;  %v3337_v31 = vadd.f32 %v3336_v26, %v3335_v52 }
 0x58e   : > { %v3044_v9 = vadd.f32 %v8658_v50, %v2990_v5  ;;  %v8076_v11 = vpop.f32.mrb[109].mxu0  ;;  %v3338_v45 = vsel %vm2252_vm8, %v3299_v10, 0.0 }
 0x58f   : > { %v2993_v48 = vpop.f32.mrb[110].mxu0  ;;  %v3258_v11 = vadd.f32 %v3257_v16, %v3256_v58  ;;  %v3339_v36 = vadd.f32 %v3338_v45, %v3337_v31 }
 0x590   : > { %v8077_v14 = vpop.f32.mrb[111].mxu0  ;;  %v10500_v33 = vadd.f32 %v10090_v29, %v3044_v9  ;;  %v3045_v47 = vadd.f32 %v8659_v0, %v2993_v48  ;;  %v8662_v0 = vld [vmem:[#allocation2 + $0xa0] sm:$0xff] }
 0x592   : > { %v3300_v44 = vmul.f32 %v10500_v33, %v10500_v33  ;;  %v10510_v29 = vadd.f32 %v9932_v59, %v3045_v47  ;;  %v3259_v5 = vsel %vm2252_vm8, %v10500_v33, 0.0 }
 0x593   : > { %v3260_v48 = vadd.f32 %v3259_v5, %v3258_v11 }
 0x594   : > { %v3340_v59 = vsel %vm2252_vm8, %v3300_v44, 0.0  ;;  %v3301_v18 = vmul.f32 %v10510_v29, %v10510_v29  ;;  %v3261_v56 = vsel %vm2252_vm8, %v10510_v29, 0.0 }
 0x595   : > { %v2998_v23 = vpop.f32.mrb[112].mxu0  ;;  %v3341_v14 = vadd.f32 %v3340_v59, %v3339_v36  ;;  %v3262_v26 = vadd.f32 %v3261_v56, %v3260_v48  ;;  %v8664_v59 = vld [vmem:[#allocation2 + $0xb0] sm:$0xff] }
 0x596   : > { %v3046_v51 = vadd.f32 %v8660_v4, %v2998_v23  ;;  %v8080_v19 = vpop.f32.mrb[113].mxu0  ;;  %v3342_v1 = vsel %vm2252_vm8, %v3301_v18, 0.0  ;;  %v8663_v23 = vld [vmem:[#allocation2 + $0xa8] sm:$0xff] }
 0x597   : > { %v3001_v37 = vpop.f32.mrb[114].mxu0  ;;  %v3343_v4 = vadd.f32 %v3342_v1, %v3341_v14 }
 0x598   : > { %v10516_v63 = vadd.f32 %v10110_v34, %v3046_v51  ;;  %v3047_v50 = vadd.f32 %v8661_v41, %v3001_v37  ;;  %v8081_v9 = vpop.f32.mrb[115].mxu0 }
 0x59a   : > { %v3302_v12 = vmul.f32 %v10516_v63, %v10516_v63  ;;  %v10526_v34 = vadd.f32 %v9960_v38, %v3047_v50  ;;  %v3263_v8 = vsel %vm2252_vm8, %v10516_v63, 0.0 }
 0x59b   : > { %v3264_v51 = vadd.f32 %v3263_v8, %v3262_v26 }
 0x59c   : > { %v3344_v52 = vsel %vm2252_vm8, %v3302_v12, 0.0  ;;  %v3303_v58 = vmul.f32 %v10526_v34, %v10526_v34  ;;  %v3265_v19 = vsel %vm2252_vm8, %v10526_v34, 0.0 }
 0x59d   : > { %v3006_v30 = vpop.f32.mrb[116].mxu0  ;;  %v3345_v45 = vadd.f32 %v3344_v52, %v3343_v4  ;;  %v3266_v41 = vadd.f32 %v3265_v19, %v3264_v51  ;;  %v8666_v51 = vld [vmem:[#allocation2 + $0xc0] sm:$0xf] }
 0x59e   : > { %v3048_v47 = vadd.f32 %v8662_v0, %v3006_v30  ;;  %v8084_v57 = vpop.f32.mrb[117].mxu0  ;;  %v3346_v5 = vsel %vm2252_vm8, %v3303_v58, 0.0  ;;  %v8665_v30 = vld [vmem:[#allocation2 + $0xb8] sm:$0xff] }
 0x59f   : > { %v3009_v10 = vpop.f32.mrb[118].mxu0  ;;  %v3347_v48 = vadd.f32 %v3346_v5, %v3345_v45 }
 0x5a0   : > { %v10535_v38 = vadd.f32 %v10129_v53, %v3048_v47  ;;  %v3049_v16 = vadd.f32 %v8663_v23, %v3009_v10  ;;  %v8085_v44 = vpop.f32.mrb[119].mxu0 }
 0x5a2   : > { %v3304_v31 = vmul.f32 %v10535_v38, %v10535_v38  ;;  %v10542_v37 = vadd.f32 %v9979_v21, %v3049_v16  ;;  %v3267_v53 = vsel %vm2252_vm8, %v10535_v38, 0.0 }
 0x5a3   : > { %v3268_v56 = vadd.f32 %v3267_v53, %v3266_v41 }
 0x5a4   : > { %v3348_v9 = vsel %vm2252_vm8, %v3304_v31, 0.0  ;;  %v3305_v11 = vmul.f32 %v10542_v37, %v10542_v37  ;;  %v3269_v12 = vsel %vm2252_vm8, %v10542_v37, 0.0 }
 0x5a5   : > { %v3014_v50 = vpop.f32.mrb[120].mxu0  ;;  %v3349_v0 = vadd.f32 %v3348_v9, %v3347_v48  ;;  %v3270_v52 = vadd.f32 %v3269_v12, %v3268_v56 }
 0x5a6   : > { %v3050_v18 = vadd.f32 %v8664_v59, %v3014_v50  ;;  %v8088_v36 = vpop.f32.mrb[121].mxu0  ;;  %v3350_v47 = vsel %vm2252_vm8, %v3305_v11, 0.0 }
 0x5a7   : > { %v3017_v21 = vpop.f32.mrb[122].mxu0  ;;  %v3351_v23 = vadd.f32 %v3350_v47, %v3349_v0 }
 0x5a8   : > { %v10553_v14 = vadd.f32 %v10149_v17, %v3050_v18  ;;  %v3051_v1 = vadd.f32 %v8665_v30, %v3017_v21  ;;  %v8089_v8 = vpop.f32.mrb[123].mxu0 }
 0x5aa   : > { %v3271_v57 = vsel %vm2252_vm8, %v10553_v14, 0.0  ;;  %v3306_v26 = vmul.f32 %v10553_v14, %v10553_v14  ;;  %v10561_v10 = vadd.f32 %v10006_v32, %v3051_v1 }
 0x5ab   : > { %v3272_v16 = vadd.f32 %v3271_v57, %v3270_v52 }
 0x5ac   : > { %v3352_v58 = vsel %vm2252_vm8, %v3306_v26, 0.0  ;;  %v3307_v17 = vmul.f32 %v10561_v10, %v10561_v10  ;;  %v3273_v4 = vsel %vm2252_vm8, %v10561_v10, 0.0 }
 0x5ad   : > { %v3022_v44 = vpop.f32.mrb[124].mxu0  ;;  %v3353_v45 = vadd.f32 %v3352_v58, %v3351_v23  ;;  %v3274_v50 = vadd.f32 %v3273_v4, %v3272_v16 }
 0x5ae   : > { %v3052_v19 = vadd.f32 %v8666_v51, %v3022_v44  ;;  %v8092_v31 = vpop.f32.mrb[125].mxu0  ;;  %v3354_v32 = vsel %vm2252_vm8, %v3307_v17, 0.0 }
 0x5af   : > { %v3025_v5 = vpop.f32.mrb[126].mxu0  ;;  %v3355_v59 = vadd.f32 %v3354_v32, %v3353_v45 }
 0x5b0   : > { %v10570_v53 = vadd.f32 %v10163_v43, %v3052_v19  ;;  %v8093_v41 = vpop.f32.mrb[127].mxu0 }
 0x5b2   : > { %v3275_v9 = vsel %vm2300_vm12, %v10570_v53, 0.0  ;;  %v3308_v11 = vmul.f32 %v10570_v53, %v10570_v53 }
 0x5b3   : > { %v3276_v18 = vadd.f32 %v3275_v9, %v3274_v50 }
 0x5b4   : > { %v3356_v36 = vsel %vm2300_vm12, %v3308_v11, 0.0 }
 0x5b5   : > { %v3277_v48 = vrot.slane %v3276_v18, 4  ;;  %v3357_v56 = vadd.f32 %v3356_v36, %v3355_v59 }
 0x5b7   : > { %v3278_v21 = vadd.f32 %v3277_v48, %v3276_v18  ;;  %v3358_v12 = vrot.slane %v3357_v56, 4  ;;  %v11940_v18 = vmov 0  }
 0x5b9   : > { %v3279_v30 = vrot.slane %v3278_v21, 2  ;;  %v3359_v1 = vadd.f32 %v3358_v12, %v3357_v56 }
 0x5bb   : > { %v3280_v43 = vadd.f32 %v3279_v30, %v3278_v21  ;;  %v3360_v8 = vrot.slane %v3359_v1, 2 }
 0x5bd   : > { %v3281_v0 = vrot.slane %v3280_v43, 1  ;;  %v3361_v47 = vadd.f32 %v3360_v8, %v3359_v1 }
 0x5bf   : > { %v3282_v57 = vadd.f32 %v3281_v0, %v3280_v43  ;;  %v3362_v26 = vrot.slane %v3361_v47, 1 }
 0x5c1   : > { %v10577_v52 = vmul.f32 0.0051020407, %v3282_v57  ;;  %v3363_v58 = vadd.f32 %v3362_v26, %v3361_v47 }
 0x5c3   : > { %v3364_v17 = vmul.f32 0.0051020407, %v3363_v58  ;;  %v3365_v23 = vmul.f32 %v10577_v52, %v10577_v52  ;;  %v3367_v4 = vsub.f32 %v10377_v6, %v10577_v52  ;;  %v3368_v51 = vsub.f32 %v10374_v40, %v10577_v52 }
 0x5c4   : > { %v3369_v5 = vsub.f32 %v10380_v27, %v10577_v52  ;;  %v3370_v32 = vsub.f32 %v10391_v62, %v10577_v52  ;;  %v3371_v11 = vsub.f32 %v10399_v13, %v10577_v52  ;;  %v3372_v59 = vsub.f32 %v10410_v46, %v10577_v52 }
 0x5c5   : > { %v3366_v16 = vsub.f32 %v3364_v17, %v3365_v23  ;;  %v3373_v21 = vsub.f32 %v10416_v35, %v10577_v52  ;;  %v3374_v12 = vsub.f32 %v10426_v3, %v10577_v52  ;;  %v3375_v8 = vsub.f32 %v10432_v39, %v10577_v52 }
 0x5c6   : > { %v3376_v0 = vsub.f32 %v10442_v42, %v10577_v52  ;;  %v3377_v58 = vsub.f32 %v10448_v24, %v10577_v52  ;;  %v3378_v17 = vsub.f32 %v10458_v7, %v10577_v52 }
 0x5c7   : > { %v3392_v44 = vadd.f32 1e-05, %v3366_v16 }
 0x5c9   : > { %8624 = vrsqrt.f32 %v3392_v44 }
 0x5d3   : > { %v10585_v19 = vpop.eup %8624 }
 0x5d4   : > { %v3394_v31 = vmul.f32 %v10585_v19, %v3367_v4  ;;  %v3395_v45 = vmul.f32 %v10585_v19, %v3368_v51  ;;  %v3396_v50 = vmul.f32 %v10585_v19, %v3369_v5  ;;  %v3397_v9 = vmul.f32 %v10585_v19, %v3370_v32 }
 0x5d5   : > { %v3398_v48 = vmul.f32 %v10585_v19, %v3371_v11  ;;  %v3399_v56 = vmul.f32 %v10585_v19, %v3372_v59  ;;  %v3400_v1 = vmul.f32 %v10585_v19, %v3373_v21  ;;  %v3401_v43 = vmul.f32 %v10585_v19, %v3374_v12 }
 0x5d6   : > { %v3419_v41 = vpack.c.bf16 %v3395_v45, %v3394_v31  ;;  %v3420_v36 = vpack.c.bf16 %v3397_v9, %v3396_v50  ;;  %v3402_v57 = vmul.f32 %v10585_v19, %v3375_v8  ;;  %v3403_v26 = vmul.f32 %v10585_v19, %v3376_v0 }
 0x5d7   : > { %v3421_v30 = vpack.c.bf16 %v3399_v56, %v3398_v48  ;;  %v3422_v47 = vpack.c.bf16 %v3401_v43, %v3400_v1  ;;  %v3404_v16 = vmul.f32 %v10585_v19, %v3377_v58  ;;  %v3405_v44 = vmul.f32 %v10585_v19, %v3378_v17 }
 0x5d8   : > { %3646 = vmatpush1.bf16.msra.mxu1 %v3419_v41  ;;  %v3423_v23 = vpack.c.bf16 %v3403_v26, %v3402_v57  ;;  %v3379_v4 = vsub.f32 %v10464_v15, %v10577_v52  ;;  %v3380_v51 = vsub.f32 %v10477_v54, %v10577_v52  ;;  %v3381_v32 = vsub.f32 %v10484_v61, %v10577_v52 }
 0x5d9   : > { %3647 = vmatprep.subr.bf16.mxu1 %v11940_v18  ;;  %v3424_v31 = vpack.c.bf16 %v3405_v44, %v3404_v16  ;;  %v3382_v41 = vsub.f32 %v10494_v25, %v10577_v52  ;;  %v3383_v59 = vsub.f32 %v10500_v33, %v10577_v52  ;;  %v3385_v12 = vsub.f32 %v10516_v63, %v10577_v52 }
 0x5da   : > { %v3406_v45 = vmul.f32 %v10585_v19, %v3379_v4  ;;  %v3407_v5 = vmul.f32 %v10585_v19, %v3380_v51  ;;  %v3408_v9 = vmul.f32 %v10585_v19, %v3381_v32  ;;  %v3387_v0 = vsub.f32 %v10535_v38, %v10577_v52 }
 0x5db   : > { %v3409_v11 = vmul.f32 %v10585_v19, %v3382_v41  ;;  %v3410_v56 = vmul.f32 %v10585_v19, %v3383_v59  ;;  %v3412_v43 = vmul.f32 %v10585_v19, %v3385_v12  ;;  %v3389_v17 = vsub.f32 %v10553_v14, %v10577_v52  ;;  %v8488_v41 = vld [vmem:[%s11902_s5 + $0x94] ss:$8 sps:$4 sm:$0xff]   ;;  %v8496_v59 = vld [vmem:[%s11902_s5 + $0xb0] ss:$8 sps:$4 sm:$0xff]   ;;  %v8503_v12 = vld [vmem:[%s11902_s5 + $0xe4] ss:$8 sps:$4 sm:$0xff]  }
 0x5dc   : > { %3648 = vmatpush1.bf16.msra.mxu1 %v3420_v36  ;;  %v3425_v50 = vpack.c.bf16 %v3407_v5, %v3406_v45  ;;  %v3384_v36 = vsub.f32 %v10510_v29, %v10577_v52  ;;  %v3414_v26 = vmul.f32 %v10585_v19, %v3387_v0  ;;  %v3391_v16 = vsub.f32 %v10570_v53, %v10577_v52 }
 0x5dd   : > { %3649 = vmatprep.subr.bf16.mxu1 %v11940_v18  ;;  %v3426_v48 = vpack.c.bf16 %v3409_v11, %v3408_v9  ;;  %v3416_v4 = vmul.f32 %v10585_v19, %v3389_v17  ;;  %v8493_v9 = vld [vmem:[%s11902_s5 + $0xa0] ss:$8 sps:$4 sm:$0xff]   ;;  %v8494_v11 = vld [vmem:[%s11902_s5 + $0xb4] ss:$8 sps:$4 sm:$0xff]  }
 0x5de   : > { %v3411_v21 = vmul.f32 %v10585_v19, %v3384_v36  ;;  %v8497_v36 = vld [vmem:[%s11902_s5 + $0xc4] ss:$8 sps:$4 sm:$0xff]  }
 0x5e0   : > { %3650 = vmatpush1.bf16.msra.mxu1 %v3421_v30  ;;  %v3386_v30 = vsub.f32 %v10526_v34, %v10577_v52  ;;  %v3427_v1 = vpack.c.bf16 %v3411_v21, %v3410_v56  ;;  %v8500_v56 = vld [vmem:[%s11902_s5 + $0xd4] ss:$8 sps:$4 sm:$0xff]   ;;  %v8502_v21 = vld [vmem:[%s11902_s5 + $0xd0] ss:$8 sps:$4 sm:$0xff]  }
 0x5e1   : > { %3651 = vmatprep.subr.bf16.mxu1 %v11940_v18 }
 0x5e2   : > { %v3413_v8 = vmul.f32 %v10585_v19, %v3386_v30  ;;  %v8505_v30 = vld [vmem:[%s11902_s5 + $0xe0] ss:$8 sps:$4 sm:$0xff]  }
 0x5e4   : > { %3652 = vmatpush1.bf16.msra.mxu1 %v3422_v47  ;;  %v3388_v47 = vsub.f32 %v10542_v37, %v10577_v52  ;;  %v3428_v57 = vpack.c.bf16 %v3413_v8, %v3412_v43  ;;  %v8508_v43 = vld [vmem:[%s11902_s5 + $0xf0] ss:$8 sps:$4 sm:$0xff]  }
 0x5e5   : > { %3653 = vmatprep.subr.bf16.mxu1 %v11940_v18 }
 0x5e6   : > { %v3415_v58 = vmul.f32 %v10585_v19, %v3388_v47 }
 0x5e8   : > { %3654 = vmatpush1.bf16.msra.mxu1 %v3423_v23  ;;  %v3390_v23 = vsub.f32 %v10561_v10, %v10577_v52  ;;  %v3429_v44 = vpack.c.bf16 %v3415_v58, %v3414_v26  ;;  %v8485_v52 = vld [vmem:[%s11902_s5 + $0x80] ss:$8 sps:$4 sm:$0xff]  }
 0x5e9   : > { %3655 = vmatprep.subr.bf16.mxu1 %v11940_v18 }
 0x5ea   : > { %v3417_v51 = vmul.f32 %v10585_v19, %v3390_v23 }
 0x5ec   : > { %3656 = vmatpush1.bf16.msra.mxu1 %v3424_v31  ;;  %v3418_v31 = vmul.f32 %v10585_v19, %v3391_v16  ;;  %v3430_v45 = vpack.c.bf16 %v3417_v51, %v3416_v4  ;;  %v8490_v19 = vld [vmem:[%s11902_s5 + $0x90] ss:$8 sps:$4 sm:$0xff]  }
 0x5ed   : > { %3657 = vmatprep.subr.bf16.mxu1 %v11940_v18 }
 0x5ee   : > { %v3431_v5 = vpack.c.bf16 %v3418_v31, %v3418_v31 }
 0x5f0   : > { %3658 = vmatpush1.bf16.msra.mxu1 %v3425_v50  ;;  %v3643_v32 = vsel %vm926_vm0, %v3431_v5, 0  ;;  %v8491_v50 = vld [vmem:[%s11902_s5 + $0xa4] ss:$8 sps:$4 sm:$0xff]  }
 0x5f1   : > { %3659 = vmatprep.subr.bf16.mxu1 %v11940_v18 }
 0x5f4   : > { %3660 = vmatpush1.bf16.msra.mxu1 %v3426_v48  ;;  %v8499_v48 = vld [vmem:[%s11902_s5 + $0xc0] ss:$8 sps:$4 sm:$0xff]  }
 0x5f5   : > { %3661 = vmatprep.subr.bf16.mxu1 %v11940_v18 }
 0x5f8   : > { %3662 = vmatpush1.bf16.msra.mxu1 %v3427_v1  ;;  %v8506_v1 = vld [vmem:[%s11902_s5 + $0xf4] ss:$8 sps:$4 sm:$0xff]  }
 0x5f9   : > { %3663 = vmatprep.subr.bf16.mxu1 %v11940_v18 }
 0x5fc   : > { %3664 = vmatpush1.bf16.msra.mxu1 %v3428_v57 }
 0x5fd   : > { %3665 = vmatprep.subr.bf16.mxu1 %v11940_v18 }
 0x600   : > { %3666 = vmatpush1.bf16.msra.mxu1 %v3429_v44 }
 0x601   : > { %3667 = vmatprep.subr.bf16.mxu1 %v11940_v18 }
 0x604   : > { %3668 = vmatpush1.bf16.msra.mxu1 %v3430_v45 }
 0x605   : > { %3669 = vmatprep.subr.bf16.mxu1 %v11940_v18 }
 0x608   : > { %3670 = vmatpush1.bf16.msra.mxu1 %v3643_v32 }
 0x609   : > { %4622 = vmatprep.subr.bf16.mxu1 %v11940_v18 }
 0x60b   : > { %3678 = vmatmul.mubr.bf16.vlgmr.msra.gmra.mrb[108].mxu1 %v8485_v52 }
 0x60c   : > { %7268 = vmatprep.mubr.msk.bf16.mxu1 %vm2642_vm10, %v8488_v41 }
 0x613   : > { %3686 = vmatmul.mubr.bf16.gmra.mrb[112].mxu1 %v8490_v19 }
 0x614   : > { %7269 = vmatprep.mubr.msk.bf16.mxu1 %vm2642_vm10, %v8491_v50 }
 0x61b   : > { %3694 = vmatmul.mubr.bf16.gmra.mrb[116].mxu1 %v8493_v9 }
 0x61c   : > { %7270 = vmatprep.mubr.msk.bf16.mxu1 %vm2642_vm10, %v8494_v11 }
 0x623   : > { %3702 = vmatmul.mubr.bf16.gmra.mrb[120].mxu1 %v8496_v59 }
 0x624   : > { %7271 = vmatprep.mubr.msk.bf16.mxu1 %vm2642_vm10, %v8497_v36 }
 0x62b   : > { %3710 = vmatmul.mubr.bf16.gmra.mrb[124].mxu1 %v8499_v48 }
 0x62c   : > { %7272 = vmatprep.mubr.msk.bf16.mxu1 %vm2642_vm10, %v8500_v56 }
 0x633   : > { %3718 = vmatmul.mubr.bf16.gmra.mrb[128].mxu1 %v8502_v21 }
 0x634   : > { %7273 = vmatprep.mubr.msk.bf16.mxu1 %vm2642_vm10, %v8503_v12 }
 0x63b   : > { %3726 = vmatmul.mubr.bf16.gmra.mrb[132].mxu1 %v8505_v30 }
 0x63c   : > { %7274 = vmatprep.mubr.msk.bf16.mxu1 %vm2642_vm10, %v8506_v1 }
 0x643   : > { %3734 = vmatmul.mubr.bf16.gmra.mrb[136].mxu1 %v8508_v43 }
 0x6de   : > { %v3679_v8 = vpop.f32.mrb[108].mxu1 }
 0x6df   : > { %v3680_v0 = vadd.f32 %v3679_v8, %v10021_v60  ;;  %v3681_v47 = vpop.f32.mrb[109].mxu1 }
 0x6e0   : > { %v3682_v57 = vpop.f32.mrb[110].mxu1 }
 0x6e1   : > { %v3683_v26 = vadd.f32 %v3682_v57, %v10183_v2  ;;  %v3684_v58 = vpop.f32.mrb[111].mxu1  ;;  %v3742_v17 = vmax.f32 %v3680_v0, 0.0 }
 0x6e3   : > { %v3743_v23 = vmax.f32 %v3683_v26, 0.0 }
 0x6e5   : > { %v3758_v16 = vpack.c.bf16 %v3743_v23, %v3742_v17  ;;  %v11944_v17 = vld [vmem:[#allocation15_spill] sm:$0xff] }
 0x6e6   : > { %v3687_v44 = vpop.f32.mrb[112].mxu1 }
 0x6e7   : > { %v3688_v4 = vadd.f32 %v3687_v44, %v10042_v28  ;;  %v3689_v51 = vpop.f32.mrb[113].mxu1  ;;  %8095 = vmatpush3.bf16.msra.mxu0 %v3758_v16 }
 0x6e8   : > { %v3690_v31 = vpop.f32.mrb[114].mxu1  ;;  %8096 = vmatprep.subr.bf16.mxu0 %v11939_v20 }
 0x6e9   : > { %v3691_v45 = vadd.f32 %v3690_v31, %v10199_v55  ;;  %v3692_v5 = vpop.f32.mrb[115].mxu1  ;;  %v3744_v60 = vmax.f32 %v3688_v4, 0.0  ;;  %v11941_v55 = vld [vmem:[#allocation4_spill] sm:$0xff] }
 0x6eb   : > { %v3745_v32 = vmax.f32 %v3691_v45, 0.0  ;;  %v11945_v45 = vld [vmem:[#allocation6_spill] sm:$0xff] }
 0x6ed   : > { %v3759_v52 = vpack.c.bf16 %v3745_v32, %v3744_v60 }
 0x6ee   : > { %v3695_v41 = vpop.f32.mrb[116].mxu1 }
 0x6ef   : > { %v3696_v2 = vadd.f32 %v3695_v41, %v10058_v22  ;;  %v3697_v19 = vpop.f32.mrb[117].mxu1  ;;  %8097 = vmatpush3.bf16.msra.mxu0 %v3759_v52  ;;  %v11942_v22 = vld [vmem:[#allocation13_spill] sm:$0xff]  ;;  %v11946_v52 = vld [vmem:[#allocation16_spill] sm:$0xff] }
 0x6f0   : > { %v3698_v50 = vpop.f32.mrb[118].mxu1  ;;  %8098 = vmatprep.subr.bf16.mxu0 %v11939_v20 }
 0x6f1   : > { %v3699_v28 = vadd.f32 %v3698_v50, %v10212_v49  ;;  %v3700_v9 = vpop.f32.mrb[119].mxu1  ;;  %v3746_v11 = vmax.f32 %v3696_v2, 0.0  ;;  %v11943_v49 = vld [vmem:[#allocation5_spill] sm:$0xff] }
 0x6f3   : > { %v3747_v59 = vmax.f32 %v3699_v28, 0.0 }
 0x6f5   : > { %v3760_v36 = vpack.c.bf16 %v3747_v59, %v3746_v11  ;;  %v11947_v11 = vld [vmem:[#allocation7_spill] sm:$0xff] }
 0x6f6   : > { %v3703_v48 = vpop.f32.mrb[120].mxu1 }
 0x6f7   : > { %v3704_v56 = vadd.f32 %v3703_v48, %v11941_v55  ;;  %v3705_v21 = vpop.f32.mrb[121].mxu1  ;;  %8099 = vmatpush3.bf16.msra.mxu0 %v3760_v36  ;;  %v11948_v55 = vld [vmem:[#allocation17_spill] sm:$0xff] }
 0x6f8   : > { %v3706_v12 = vpop.f32.mrb[122].mxu1  ;;  %8100 = vmatprep.subr.bf16.mxu0 %v11939_v20 }
 0x6f9   : > { %v3707_v30 = vadd.f32 %v3706_v12, %v11942_v22  ;;  %v3708_v1 = vpop.f32.mrb[123].mxu1  ;;  %v3748_v43 = vmax.f32 %v3704_v56, 0.0 }
 0x6fb   : > { %v3749_v8 = vmax.f32 %v3707_v30, 0.0 }
 0x6fd   : > { %v3761_v0 = vpack.c.bf16 %v3749_v8, %v3748_v43  ;;  %v11949_v43 = vld [vmem:[#allocation8_spill] sm:$0xff] }
 0x6fe   : > { %v3711_v47 = vpop.f32.mrb[124].mxu1 }
 0x6ff   : > { %v3712_v57 = vadd.f32 %v3711_v47, %v11943_v49  ;;  %v3713_v26 = vpop.f32.mrb[125].mxu1  ;;  %8101 = vmatpush3.bf16.msra.mxu0 %v3761_v0  ;;  %v11950_v49 = vld [vmem:[#allocation18_spill] sm:$0xff] }
 0x700   : > { %v3714_v58 = vpop.f32.mrb[126].mxu1  ;;  %8102 = vmatprep.subr.bf16.mxu0 %v11939_v20 }
 0x701   : > { %v3715_v23 = vadd.f32 %v3714_v58, %v11944_v17  ;;  %v3716_v16 = vpop.f32.mrb[127].mxu1  ;;  %v3750_v44 = vmax.f32 %v3712_v57, 0.0 }
 0x702   : > { %v8509_v16 = vld [vmem:[%s11904_s7 + $0x64] sm:$0xff]  }
 0x703   : > { %v3751_v4 = vmax.f32 %v3715_v23, 0.0 }
 0x705   : > { %v3762_v51 = vpack.c.bf16 %v3751_v4, %v3750_v44  ;;  %v8510_v44 = vld [vmem:[%s11904_s7 + $0x6c] sm:$0xff]   ;;  %v8511_v4 = vld [vmem:[%s11904_s7 + $0x74] sm:$0xff]  }
 0x706   : > { %v3719_v31 = vpop.f32.mrb[128].mxu1 }
 0x707   : > { %v3720_v5 = vadd.f32 %v3719_v31, %v11945_v45  ;;  %v3721_v60 = vpop.f32.mrb[129].mxu1  ;;  %8103 = vmatpush3.bf16.msra.mxu0 %v3762_v51  ;;  %v8512_v51 = vld [vmem:[%s11904_s7 + $0x7c] sm:$0xff]   ;;  %v8513_v31 = vld [vmem:[%s11904_s7 + $0x84] sm:$0xff]   ;;  %v8514_v45 = vld [vmem:[%s11904_s7 + $0x8c] sm:$0xff]  }
 0x708   : > { %v3722_v32 = vpop.f32.mrb[130].mxu1  ;;  %8104 = vmatprep.subr.bf16.mxu0 %v11939_v20  ;;  %v8516_v60 = vld [vmem:[%s11904_s7 + $0x9c] sm:$0xff]  }
 0x709   : > { %v3723_v41 = vadd.f32 %v3722_v32, %v11946_v52  ;;  %v3724_v2 = vpop.f32.mrb[131].mxu1  ;;  %v3752_v19 = vmax.f32 %v3720_v5, 0.0  ;;  %v8515_v5 = vld [vmem:[%s11904_s7 + $0x94] sm:$0xff]   ;;  %v8517_v32 = vld [vmem:[%s11904_s7 + $0xa4] sm:$0xff]   ;;  %v8518_v52 = vld [vmem:[%s11904_s7 + $0xac] sm:$0xff]  }
 0x70a   : > { %v8520_v2 = vld [vmem:[%s11904_s7 + $0xbc] sm:$0xff]  }
 0x70b   : > { %v3753_v50 = vmax.f32 %v3723_v41, 0.0  ;;  %v8519_v41 = vld [vmem:[%s11904_s7 + $0xb4] sm:$0xff]  }
 0x70d   : > { %v3763_v28 = vpack.c.bf16 %v3753_v50, %v3752_v19  ;;  %v8521_v19 = vld [vmem:[%s11904_s7 + $0xc4] ss:$0 sps:$4 sm:$0x33]  }
 0x70e   : > { %v3727_v9 = vpop.f32.mrb[132].mxu1 }
 0x70f   : > { %v3728_v59 = vadd.f32 %v3727_v9, %v11947_v11  ;;  %v3729_v36 = vpop.f32.mrb[133].mxu1  ;;  %8105 = vmatpush3.bf16.msra.mxu0 %v3763_v28 }
 0x710   : > { %v3730_v48 = vpop.f32.mrb[134].mxu1  ;;  %8106 = vmatprep.subr.bf16.mxu0 %v11939_v20 }
 0x711   : > { %v3731_v56 = vadd.f32 %v3730_v48, %v11948_v55  ;;  %v3732_v21 = vpop.f32.mrb[135].mxu1  ;;  %v3754_v12 = vmax.f32 %v3728_v59, 0.0 }
 0x713   : > { %v3755_v22 = vmax.f32 %v3731_v56, 0.0 }
 0x715   : > { %v3764_v30 = vpack.c.bf16 %v3755_v22, %v3754_v12 }
 0x716   : > { %v3735_v1 = vpop.f32.mrb[136].mxu1 }
 0x717   : > { %v3736_v8 = vadd.f32 %v3735_v1, %v11949_v43  ;;  %v3737_v0 = vpop.f32.mrb[137].mxu1  ;;  %8107 = vmatpush3.bf16.msra.mxu0 %v3764_v30 }
 0x718   : > { %v3738_v47 = vpop.f32.mrb[138].mxu1  ;;  %8108 = vmatprep.subr.bf16.mxu0 %v11939_v20  ;;  %v11951_v0 = vld [vmem:[#allocation19_spill] sm:$0xff] }
 0x719   : > { %v3739_v57 = vadd.f32 %v3738_v47, %v11950_v49  ;;  %v3740_v26 = vpop.f32.mrb[139].mxu1  ;;  %v3756_v58 = vmax.f32 %v3736_v8, 0.0 }
 0x71a   : > { %v11952_v26 = vld [vmem:[#allocation9_spill] sm:$0xff] }
 0x71b   : > { %v3757_v17 = vmax.f32 %v3739_v57, 0.0 }
 0x71d   : > { %v3765_v23 = vpack.c.bf16 %v3757_v17, %v3756_v58  ;;  %v11953_v17 = vld [vmem:[#allocation10_spill] sm:$0xff] }
 0x71f   : > { %8109 = vmatpush3.bf16.msra.mxu0 %v3765_v23 }
 0x720   : > { %5599 = vmatprep.subr.bf16.mxu0 %v11940_v18 }
 0x722   : > { %8111 = vmatmul.mubr.bf16.vlgmr.msra.gmra.mrb[128].mxu0 %v8509_v16 }
 0x723   : > { %8114 = vmatprep.mubr.msk.bf16.mxu0 %vm8679_vm13, %v11939_v20 }
 0x72a   : > { %8115 = vmatmul.mubr.bf16.gmra.mrb[132].mxu0 %v8510_v44 }
 0x72b   : > { %8118 = vmatprep.mubr.msk.bf16.mxu0 %vm8679_vm13, %v11939_v20 }
 0x732   : > { %8119 = vmatmul.mubr.bf16.gmra.mrb[136].mxu0 %v8511_v4 }
 0x733   : > { %8122 = vmatprep.mubr.msk.bf16.mxu0 %vm8679_vm13, %v11939_v20 }
 0x73a   : > { %8123 = vmatmul.mubr.bf16.gmra.mrb[140].mxu0 %v8512_v51 }
 0x73b   : > { %8126 = vmatprep.mubr.msk.bf16.mxu0 %vm8679_vm13, %v11939_v20 }
 0x742   : > { %8127 = vmatmul.mubr.bf16.gmra.mrb[144].mxu0 %v8513_v31  ;;  %v11954_v31 = vld [vmem:[#allocation20_spill] sm:$0xff] }
 0x743   : > { %8130 = vmatprep.mubr.msk.bf16.mxu0 %vm8679_vm13, %v11939_v20 }
 0x74a   : > { %8131 = vmatmul.mubr.bf16.gmra.mrb[148].mxu0 %v8514_v45 }
 0x74b   : > { %8134 = vmatprep.mubr.msk.bf16.mxu0 %vm8679_vm13, %v11939_v20 }
 0x752   : > { %8135 = vmatmul.mubr.bf16.gmra.mrb[152].mxu0 %v8515_v5 }
 0x753   : > { %8138 = vmatprep.mubr.msk.bf16.mxu0 %vm8679_vm13, %v11939_v20 }
 0x75a   : > { %8139 = vmatmul.mubr.bf16.gmra.mrb[156].mxu0 %v8516_v60 }
 0x75b   : > { %8142 = vmatprep.mubr.msk.bf16.mxu0 %vm8679_vm13, %v11939_v20 }
 0x762   : > { %8143 = vmatmul.mubr.bf16.gmra.mrb[160].mxu0 %v8517_v32  ;;  %v11955_v32 = vld [vmem:[#allocation11_spill] sm:$0xff] }
 0x763   : > { %8146 = vmatprep.mubr.msk.bf16.mxu0 %vm8679_vm13, %v11939_v20 }
 0x76a   : > { %8147 = vmatmul.mubr.bf16.gmra.mrb[164].mxu0 %v8518_v52 }
 0x76b   : > { %8150 = vmatprep.mubr.msk.bf16.mxu0 %vm8679_vm13, %v11939_v20 }
 0x772   : > { %8151 = vmatmul.mubr.bf16.gmra.mrb[168].mxu0 %v8519_v41 }
 0x773   : > { %8154 = vmatprep.mubr.msk.bf16.mxu0 %vm8679_vm13, %v11939_v20 }
 0x77a   : > { %8155 = vmatmul.mubr.bf16.gmra.mrb[172].mxu0 %v8520_v2 }
 0x77b   : > { %8158 = vmatprep.mubr.msk.bf16.mxu0 %vm8679_vm13, %v11939_v20 }
 0x782   : > { %8159 = vmatmul.mubr.bf16.gmra.mrb[176].mxu0 %v8521_v19 }
 0x7f5   : > { %v3902_v50 = vpop.f32.mrb[128].mxu0 }
 0x7f6   : > { %v8112_v28 = vpop.f32.mrb[129].mxu0  ;;  %v4004_v1 = vadd.f32 %v3902_v50, %v10377_v6 }
 0x7f7   : > { %v3905_v9 = vpop.f32.mrb[130].mxu0 }
 0x7f8   : > { %v8113_v11 = vpop.f32.mrb[131].mxu0  ;;  %v4005_v30 = vadd.f32 %v3905_v9, %v10374_v40  ;;  %v10818_v58 = vadd.f32 %v11952_v26, %v4004_v1 }
 0x7fa   : > { %v10815_v47 = vadd.f32 %v11951_v0, %v4005_v30 }
 0x7fc   : > { %v4262_v40 = vmul.f32 %v10815_v47, %v10815_v47  ;;  %v4206_v4 = vsel %vm2252_vm8, %v10815_v47, 0.0 }
 0x7fd   : > { %v3910_v59 = vpop.f32.mrb[132].mxu0 }
 0x7fe   : > { %v8116_v36 = vpop.f32.mrb[133].mxu0  ;;  %v4006_v43 = vadd.f32 %v3910_v59, %v10380_v27  ;;  %v4261_v27 = vmul.f32 %v10818_v58, %v10818_v58  ;;  %v4287_v60 = vsel %vm2252_vm8, %v4262_v40, 0.0 }
 0x7ff   : > { %v3913_v48 = vpop.f32.mrb[134].mxu0 }
 0x800   : > { %v8117_v55 = vpop.f32.mrb[135].mxu0  ;;  %v10821_v23 = vadd.f32 %v11953_v17, %v4006_v43  ;;  %v4007_v16 = vadd.f32 %v3913_v48, %v10391_v62  ;;  %v4205_v62 = vsel %vm2252_vm8, %v10818_v58, 0.0  ;;  %v4286_v28 = vsel %vm2252_vm8, %v4261_v27, 0.0  ;;  %v11957_v43 = vld [vmem:[#allocation12_spill] sm:$0xff] }
 0x801   : > { %v4207_v19 = vadd.f32 %v4206_v4, %v4205_v62  ;;  %v4288_v48 = vadd.f32 %v4287_v60, %v4286_v28 }
 0x802   : > { %v4263_v51 = vmul.f32 %v10821_v23, %v10821_v23  ;;  %v10834_v45 = vadd.f32 %v11954_v31, %v4007_v16 }
 0x804   : > { %v4289_v9 = vsel %vm2252_vm8, %v4263_v51, 0.0  ;;  %v4264_v11 = vmul.f32 %v10834_v45, %v10834_v45 }
 0x805   : > { %v3918_v56 = vpop.f32.mrb[136].mxu0 }
 0x806   : > { %v8120_v21 = vpop.f32.mrb[137].mxu0  ;;  %v4008_v6 = vadd.f32 %v3918_v56, %v10399_v13  ;;  %v4208_v13 = vsel %vm2252_vm8, %v10821_v23, 0.0  ;;  %v4210_v56 = vsel %vm2252_vm8, %v10834_v45, 0.0  ;;  %v4291_v30 = vsel %vm2252_vm8, %v4264_v11, 0.0 }
 0x807   : > { %v3921_v12 = vpop.f32.mrb[138].mxu0  ;;  %v4209_v55 = vadd.f32 %v4208_v13, %v4207_v19  ;;  %v11956_v21 = vld [vmem:[#allocation21_spill] sm:$0xff] }
 0x808   : > { %v8121_v22 = vpop.f32.mrb[139].mxu0  ;;  %v10842_v52 = vadd.f32 %v11955_v32, %v4008_v6  ;;  %v4009_v41 = vadd.f32 %v3921_v12, %v10410_v46 }
 0x809   : > { %v4290_v22 = vadd.f32 %v4289_v9, %v4288_v48  ;;  %v4211_v0 = vadd.f32 %v4210_v56, %v4209_v55  ;;  %v4103_v9 = vpop.permute.xlu1 %4102 }
 0x80a   : > { %v4265_v46 = vmul.f32 %v10842_v52, %v10842_v52  ;;  %v10855_v12 = vadd.f32 %v11956_v21, %v4009_v41  ;;  %v4212_v1 = vsel %vm2252_vm8, %v10842_v52, 0.0 }
 0x80b   : > { %v4292_v40 = vadd.f32 %v4291_v30, %v4290_v22  ;;  %v4213_v6 = vadd.f32 %v4212_v1, %v4211_v0 }
 0x80c   : > { %v4293_v26 = vsel %vm2252_vm8, %v4265_v46, 0.0  ;;  %v4266_v17 = vmul.f32 %v10855_v12, %v10855_v12  ;;  %v4214_v4 = vsel %vm2252_vm8, %v10855_v12, 0.0 }
 0x80d   : > { %v3926_v8 = vpop.f32.mrb[140].mxu0  ;;  %v4294_v62 = vadd.f32 %v4293_v26, %v4292_v40  ;;  %v4215_v41 = vadd.f32 %v4214_v4, %v4213_v6 }
 0x80e   : > { %v8124_v49 = vpop.f32.mrb[141].mxu0  ;;  %v4010_v59 = vadd.f32 %v3926_v8, %v10416_v35  ;;  %v4295_v60 = vsel %vm2252_vm8, %v4266_v17, 0.0  ;;  %v4113_v17 = vpop.permute.xlu1 %4112 }
 0x80f   : > { %v3929_v57 = vpop.f32.mrb[142].mxu0  ;;  %v4296_v11 = vadd.f32 %v4295_v60, %v4294_v62 }
 0x810   : > { %v8125_v44 = vpop.f32.mrb[143].mxu0  ;;  %v10861_v35 = vadd.f32 %v11957_v43, %v4010_v59  ;;  %v4011_v8 = vadd.f32 %v3929_v57, %v10426_v3  ;;  %v11958_v3 = vld [vmem:[#allocation22_spill] sm:$0xff] }
 0x812   : > { %v4267_v51 = vmul.f32 %v10861_v35, %v10861_v35  ;;  %v10873_v57 = vadd.f32 %v11958_v3, %v4011_v8 }
 0x814   : > { %v4268_v19 = vmul.f32 %v10873_v57, %v10873_v57  ;;  %v4218_v48 = vsel %vm2252_vm8, %v10873_v57, 0.0 }
 0x815   : > { %v3934_v5 = vpop.f32.mrb[144].mxu0 }
 0x816   : > { %v8128_v2 = vpop.f32.mrb[145].mxu0  ;;  %v4012_v16 = vadd.f32 %v3934_v5, %v10432_v39  ;;  %v4216_v39 = vsel %vm2252_vm8, %v10861_v35, 0.0  ;;  %v11959_v5 = vld [vmem:[#allocation14_spill] sm:$0xff]  ;;  %v4299_v22 = vsel %vm2252_vm8, %v4268_v19, 0.0 }
 0x817   : > { %v3937_v50 = vpop.f32.mrb[146].mxu0  ;;  %v4297_v2 = vsel %vm2252_vm8, %v4267_v51, 0.0  ;;  %v4217_v59 = vadd.f32 %v4216_v39, %v4215_v41 }
 0x818   : > { %v8129_v36 = vpop.f32.mrb[147].mxu0  ;;  %v10879_v13 = vadd.f32 %v11959_v5, %v4012_v16  ;;  %v4013_v32 = vadd.f32 %v3937_v50, %v10442_v42  ;;  %v4108_v50 = vpop.permute.xlu0 %4107  ;;  %v4298_v46 = vadd.f32 %v4297_v2, %v4296_v11 }
 0x819   : > { %v4219_v8 = vadd.f32 %v4218_v48, %v4217_v59 }
 0x81a   : > { %v4269_v55 = vmul.f32 %v10879_v13, %v10879_v13  ;;  %v10890_v56 = vadd.f32 %v4103_v9, %v4013_v32  ;;  %v4300_v16 = vadd.f32 %v4299_v22, %v4298_v46  ;;  %v4123_v9 = vpop.permute.xlu1 %4122 }
 0x81c   : > { %v4301_v0 = vsel %vm2252_vm8, %v4269_v55, 0.0  ;;  %v4222_v40 = vsel %vm2252_vm8, %v10890_v56, 0.0 }
 0x81d   : > { %v3942_v49 = vpop.f32.mrb[148].mxu0 }
 0x81e   : > { %v8132_v44 = vpop.f32.mrb[149].mxu0  ;;  %v4014_v28 = vadd.f32 %v3942_v49, %v10448_v24  ;;  %v4220_v24 = vsel %vm2252_vm8, %v10879_v13, 0.0  ;;  %v4270_v49 = vmul.f32 %v10890_v56, %v10890_v56 }
 0x81f   : > { %v3945_v27 = vpop.f32.mrb[150].mxu0  ;;  %v4221_v44 = vadd.f32 %v4220_v24, %v4219_v8 }
 0x820   : > { %v8133_v31 = vpop.f32.mrb[151].mxu0  ;;  %v10895_v30 = vadd.f32 %v4108_v50, %v4014_v28  ;;  %v4015_v1 = vadd.f32 %v3945_v27, %v10458_v7  ;;  %v4118_v7 = vpop.permute.xlu0 %4117  ;;  %v4302_v27 = vadd.f32 %v4301_v0, %v4300_v16  ;;  %v4303_v3 = vsel %vm2252_vm8, %v4270_v49, 0.0  ;;  %v8524_v28 = vld [vmem:[%s11902_s5 + $0x104] ss:$8 sps:$4 sm:$0xff]  }
 0x821   : > { %v4223_v39 = vadd.f32 %v4222_v40, %v4221_v44  ;;  %7386 = vmatprep.mubr.msk.bf16.mxu1 %vm2642_vm10, %v8524_v28  ;;  %v4133_v49 = vpop.permute.xlu1 %4132 }
 0x822   : > { %v4271_v6 = vmul.f32 %v10895_v30, %v10895_v30  ;;  %v10906_v4 = vadd.f32 %v4113_v17, %v4015_v1  ;;  %v4224_v31 = vsel %vm2252_vm8, %v10895_v30, 0.0  ;;  %v4304_v11 = vadd.f32 %v4303_v3, %v4302_v27 }
 0x823   : > { %v4225_v59 = vadd.f32 %v4224_v31, %v4223_v39 }
 0x824   : > { %v4305_v32 = vsel %vm2252_vm8, %v4271_v6, 0.0  ;;  %v4272_v41 = vmul.f32 %v10906_v4, %v10906_v4  ;;  %v4128_v55 = vpop.permute.xlu0 %4127 }
 0x825   : > { %v3950_v36 = vpop.f32.mrb[152].mxu0 }
 0x826   : > { %v8136_v42 = vpop.f32.mrb[153].mxu0  ;;  %v4016_v26 = vadd.f32 %v3950_v36, %v10464_v15 }
 0x827   : > { %v3953_v21 = vpop.f32.mrb[154].mxu0  ;;  %v4307_v42 = vsel %vm2252_vm8, %v4272_v41, 0.0 }
 0x828   : > { %v8137_v43 = vpop.f32.mrb[155].mxu0  ;;  %v10911_v15 = vadd.f32 %v4118_v7, %v4016_v26  ;;  %v4017_v62 = vadd.f32 %v3953_v21, %v10477_v54  ;;  %v4226_v54 = vsel %vm2252_vm8, %v10906_v4, 0.0  ;;  %v4138_v7 = vpop.permute.xlu0 %4137 }
 0x829   : > { %v4227_v22 = vadd.f32 %v4226_v54, %v4225_v59 }
 0x82a   : > { %v4273_v36 = vmul.f32 %v10911_v15, %v10911_v15  ;;  %v10925_v48 = vadd.f32 %v4123_v9, %v4017_v62  ;;  %v4228_v50 = vsel %vm2252_vm8, %v10911_v15, 0.0 }
 0x82b   : > { %v4229_v17 = vadd.f32 %v4228_v50, %v4227_v22 }
 0x82c   : > { %v4309_v1 = vsel %vm2252_vm8, %v4273_v36, 0.0  ;;  %v4274_v43 = vmul.f32 %v10925_v48, %v10925_v48  ;;  %v4230_v44 = vsel %vm2252_vm8, %v10925_v48, 0.0  ;;  %v4148_v59 = vpop.permute.xlu0 %4147 }
 0x82d   : > { %v3958_v51 = vpop.f32.mrb[156].mxu0  ;;  %v4231_v62 = vadd.f32 %v4230_v44, %v4229_v17 }
 0x82e   : > { %v8140_v60 = vpop.f32.mrb[157].mxu0  ;;  %v4018_v2 = vadd.f32 %v3958_v51, %v10484_v61  ;;  %v4306_v61 = vadd.f32 %v4305_v32, %v4304_v11  ;;  %v4311_v51 = vsel %vm2252_vm8, %v4274_v43, 0.0 }
 0x82f   : > { %v3961_v5 = vpop.f32.mrb[158].mxu0 }
 0x830   : > { %v8141_v19 = vpop.f32.mrb[159].mxu0  ;;  %v10931_v46 = vadd.f32 %v4128_v55, %v4018_v2  ;;  %v4019_v21 = vadd.f32 %v3961_v5, %v10494_v25  ;;  %v4308_v26 = vadd.f32 %v4307_v42, %v4306_v61  ;;  %v4143_v5 = vpop.permute.xlu1 %4142 }
 0x832   : > { %v4275_v25 = vmul.f32 %v10931_v46, %v10931_v46  ;;  %v10942_v40 = vadd.f32 %v4133_v49, %v4019_v21  ;;  %v4310_v27 = vadd.f32 %v4309_v1, %v4308_v26 }
 0x834   : > { %v4313_v60 = vsel %vm2252_vm8, %v4275_v25, 0.0  ;;  %v4276_v39 = vmul.f32 %v10942_v40, %v10942_v40  ;;  %v4312_v32 = vadd.f32 %v4311_v51, %v4310_v27  ;;  %v4234_v19 = vsel %vm2252_vm8, %v10942_v40, 0.0  ;;  %v4153_v1 = vpop.permute.xlu1 %4152 }
 0x835   : > { %v3966_v24 = vpop.f32.mrb[160].mxu0 }
 0x836   : > { %v4020_v8 = vadd.f32 %v3966_v24, %v10500_v33  ;;  %v8144_v0 = vpop.f32.mrb[161].mxu0  ;;  %v4232_v33 = vsel %vm2252_vm8, %v10931_v46, 0.0  ;;  %v4314_v54 = vadd.f32 %v4313_v60, %v4312_v32  ;;  %v4315_v55 = vsel %vm2252_vm8, %v4276_v39, 0.0 }
 0x837   : > { %v3969_v16 = vpop.f32.mrb[162].mxu0  ;;  %v4233_v41 = vadd.f32 %v4232_v33, %v4231_v62 }
 0x838   : > { %v8145_v6 = vpop.f32.mrb[163].mxu0  ;;  %v10947_v3 = vadd.f32 %v4138_v7, %v4020_v8  ;;  %v4021_v31 = vadd.f32 %v3969_v16, %v10510_v29  ;;  %v4316_v43 = vadd.f32 %v4315_v55, %v4314_v54  ;;  %v4158_v7 = vpop.permute.xlu0 %4157 }
 0x839   : > { %v4235_v22 = vadd.f32 %v4234_v19, %v4233_v41 }
 0x83a   : > { %v4277_v28 = vmul.f32 %v10947_v3, %v10947_v3  ;;  %v10957_v9 = vadd.f32 %v4143_v5, %v4021_v31  ;;  %v4236_v61 = vsel %vm2252_vm8, %v10947_v3, 0.0  ;;  %v4163_v5 = vpop.permute.xlu1 %4162 }
 0x83b   : > { %v4237_v8 = vadd.f32 %v4236_v61, %v4235_v22 }
 0x83c   : > { %v4317_v24 = vsel %vm2252_vm8, %v4277_v28, 0.0  ;;  %v4238_v0 = vsel %vm2252_vm8, %v10957_v9, 0.0 }
 0x83d   : > { %v3974_v2 = vpop.f32.mrb[164].mxu0  ;;  %v4318_v17 = vadd.f32 %v4317_v24, %v4316_v43  ;;  %v4239_v27 = vadd.f32 %v4238_v0, %v4237_v8 }
 0x83e   : > { %v4022_v29 = vadd.f32 %v3974_v2, %v10516_v63  ;;  %v8148_v11 = vpop.f32.mrb[165].mxu0  ;;  %v4278_v63 = vmul.f32 %v10957_v9, %v10957_v9  ;;  %v4173_v0 = vpop.permute.xlu1 %4172 }
 0x83f   : > { %v3977_v36 = vpop.f32.mrb[166].mxu0 }
 0x840   : > { %v10963_v42 = vadd.f32 %v4148_v59, %v4022_v29  ;;  %v4023_v50 = vadd.f32 %v3977_v36, %v10526_v34  ;;  %v8149_v21 = vpop.f32.mrb[167].mxu0  ;;  %v4319_v16 = vsel %vm2252_vm8, %v4278_v63, 0.0 }
 0x841   : > { %v4320_v32 = vadd.f32 %v4319_v16, %v4318_v17 }
 0x842   : > { %v4279_v49 = vmul.f32 %v10963_v42, %v10963_v42  ;;  %v10973_v26 = vadd.f32 %v4153_v1, %v4023_v50  ;;  %v4240_v44 = vsel %vm2252_vm8, %v10963_v42, 0.0  ;;  %v4168_v50 = vpop.permute.xlu0 %4167 }
 0x843   : > { %v4241_v41 = vadd.f32 %v4240_v44, %v4239_v27 }
 0x844   : > { %v4321_v33 = vsel %vm2252_vm8, %v4279_v49, 0.0  ;;  %v4280_v31 = vmul.f32 %v10973_v26, %v10973_v26 }
 0x845   : > { %v3982_v34 = vpop.f32.mrb[168].mxu0  ;;  %v4322_v28 = vadd.f32 %v4321_v33, %v4320_v32 }
 0x846   : > { %v4024_v25 = vadd.f32 %v3982_v34, %v10535_v38  ;;  %v8152_v6 = vpop.f32.mrb[169].mxu0  ;;  %v4242_v38 = vsel %vm2252_vm8, %v10973_v26, 0.0  ;;  %v4323_v29 = vsel %vm2252_vm8, %v4280_v31, 0.0 }
 0x847   : > { %v3985_v51 = vpop.f32.mrb[170].mxu0  ;;  %v4243_v59 = vadd.f32 %v4242_v38, %v4241_v41  ;;  %v4324_v21 = vadd.f32 %v4323_v29, %v4322_v28 }
 0x848   : > { %v10982_v62 = vadd.f32 %v4158_v7, %v4024_v25  ;;  %v4025_v60 = vadd.f32 %v3985_v51, %v10542_v37  ;;  %v8153_v39 = vpop.f32.mrb[171].mxu0 }
 0x84a   : > { %v4281_v2 = vmul.f32 %v10982_v62, %v10982_v62  ;;  %v10989_v19 = vadd.f32 %v4163_v5, %v4025_v60  ;;  %v4244_v11 = vsel %vm2252_vm8, %v10982_v62, 0.0  ;;  %v4178_v60 = vpop.permute.xlu0 %4177 }
 0x84b   : > { %v4245_v22 = vadd.f32 %v4244_v11, %v4243_v59 }
 0x84c   : > { %v4325_v54 = vsel %vm2252_vm8, %v4281_v2, 0.0  ;;  %v4282_v36 = vmul.f32 %v10989_v19, %v10989_v19  ;;  %v4246_v63 = vsel %vm2252_vm8, %v10989_v19, 0.0 }
 0x84d   : > { %v3990_v37 = vpop.f32.mrb[172].mxu0  ;;  %v4326_v49 = vadd.f32 %v4325_v54, %v4324_v21  ;;  %v4247_v44 = vadd.f32 %v4246_v63, %v4245_v22 }
 0x84e   : > { %v4026_v55 = vadd.f32 %v3990_v37, %v10553_v14  ;;  %v8156_v61 = vpop.f32.mrb[173].mxu0  ;;  %v4327_v17 = vsel %vm2252_vm8, %v4282_v36, 0.0 }
 0x84f   : > { %v3993_v24 = vpop.f32.mrb[174].mxu0 }
 0x850   : > { %v11000_v1 = vadd.f32 %v4168_v50, %v4026_v55  ;;  %v4027_v43 = vadd.f32 %v3993_v24, %v10561_v10  ;;  %v8157_v8 = vpop.f32.mrb[175].mxu0  ;;  %v4328_v10 = vadd.f32 %v4327_v17, %v4326_v49 }
 0x852   : > { %v4248_v14 = vsel %vm2252_vm8, %v11000_v1, 0.0  ;;  %v4283_v34 = vmul.f32 %v11000_v1, %v11000_v1  ;;  %v11008_v16 = vadd.f32 %v4173_v0, %v4027_v43 }
 0x853   : > { %v4249_v7 = vadd.f32 %v4248_v14, %v4247_v44 }
 0x854   : > { %v4329_v25 = vsel %vm2252_vm8, %v4283_v34, 0.0  ;;  %v4284_v6 = vmul.f32 %v11008_v16, %v11008_v16  ;;  %v4250_v51 = vsel %vm2252_vm8, %v11008_v16, 0.0 }
 0x855   : > { %v3998_v27 = vpop.f32.mrb[176].mxu0  ;;  %v4330_v39 = vadd.f32 %v4329_v25, %v4328_v10  ;;  %v4251_v2 = vadd.f32 %v4250_v51, %v4249_v7 }
 0x856   : > { %v4028_v33 = vadd.f32 %v3998_v27, %v10570_v53  ;;  %v8160_v31 = vpop.f32.mrb[177].mxu0  ;;  %v4331_v32 = vsel %vm2252_vm8, %v4284_v6, 0.0 }
 0x857   : > { %v4001_v5 = vpop.f32.mrb[178].mxu0  ;;  %v4332_v11 = vadd.f32 %v4331_v32, %v4330_v39 }
 0x858   : > { %v11017_v41 = vadd.f32 %v4178_v60, %v4028_v33  ;;  %v8161_v38 = vpop.f32.mrb[179].mxu0 }
 0x85a   : > { %v4252_v28 = vsel %vm2300_vm12, %v11017_v41, 0.0  ;;  %v4285_v29 = vmul.f32 %v11017_v41, %v11017_v41 }
 0x85b   : > { %v4253_v59 = vadd.f32 %v4252_v28, %v4251_v2 }
 0x85c   : > { %v4333_v53 = vsel %vm2300_vm12, %v4285_v29, 0.0 }
 0x85d   : > { %v4254_v37 = vrot.slane %v4253_v59, 4  ;;  %v4334_v54 = vadd.f32 %v4333_v53, %v4332_v11 }
 0x85f   : > { %v4255_v36 = vadd.f32 %v4254_v37, %v4253_v59  ;;  %v4335_v55 = vrot.slane %v4334_v54, 4 }
 0x861   : > { %v4256_v61 = vrot.slane %v4255_v36, 2  ;;  %v4336_v50 = vadd.f32 %v4335_v55, %v4334_v54 }
 0x863   : > { %v4257_v21 = vadd.f32 %v4256_v61, %v4255_v36  ;;  %v4337_v22 = vrot.slane %v4336_v50, 2 }
 0x865   : > { %v4258_v24 = vrot.slane %v4257_v21, 1  ;;  %v4338_v63 = vadd.f32 %v4337_v22, %v4336_v50 }
 0x867   : > { %v4259_v43 = vadd.f32 %v4258_v24, %v4257_v21  ;;  %v4339_v8 = vrot.slane %v4338_v63, 1 }
 0x869   : > { %v11024_v0 = vmul.f32 0.0051020407, %v4259_v43  ;;  %v4340_v49 = vadd.f32 %v4339_v8, %v4338_v63 }
 0x86b   : > { %v4341_v17 = vmul.f32 0.0051020407, %v4340_v49  ;;  %v4342_v14 = vmul.f32 %v11024_v0, %v11024_v0  ;;  %v4344_v25 = vsub.f32 %v10818_v58, %v11024_v0  ;;  %v4345_v6 = vsub.f32 %v10815_v47, %v11024_v0 }
 0x86c   : > { %v4346_v51 = vsub.f32 %v10821_v23, %v11024_v0  ;;  %v4347_v33 = vsub.f32 %v10834_v45, %v11024_v0  ;;  %v4348_v5 = vsub.f32 %v10842_v52, %v11024_v0  ;;  %v4349_v32 = vsub.f32 %v10855_v12, %v11024_v0 }
 0x86d   : > { %v4343_v34 = vsub.f32 %v4341_v17, %v4342_v14  ;;  %v4350_v29 = vsub.f32 %v10861_v35, %v11024_v0  ;;  %v4351_v11 = vsub.f32 %v10873_v57, %v11024_v0  ;;  %v4352_v54 = vsub.f32 %v10879_v13, %v11024_v0 }
 0x86e   : > { %v4353_v36 = vsub.f32 %v10890_v56, %v11024_v0  ;;  %v4354_v21 = vsub.f32 %v10895_v30, %v11024_v0  ;;  %v4355_v22 = vsub.f32 %v10906_v4, %v11024_v0  ;;  %v4356_v8 = vsub.f32 %v10911_v15, %v11024_v0 }
 0x86f   : > { %v4369_v44 = vadd.f32 1e-05, %v4343_v34  ;;  %v4357_v49 = vsub.f32 %v10925_v48, %v11024_v0 }
 0x871   : > { %8626 = vrsqrt.f32 %v4369_v44  ;;  %v4358_v44 = vsub.f32 %v10931_v46, %v11024_v0 }
 0x87b   : > { %v11032_v10 = vpop.eup %8626 }
 0x87c   : > { %v4371_v7 = vmul.f32 %v11032_v10, %v4344_v25  ;;  %v4372_v27 = vmul.f32 %v11032_v10, %v4345_v6  ;;  %v4373_v60 = vmul.f32 %v11032_v10, %v4346_v51  ;;  %v4374_v39 = vmul.f32 %v11032_v10, %v4347_v33 }
 0x87d   : > { %v4375_v2 = vmul.f32 %v11032_v10, %v4348_v5  ;;  %v4376_v28 = vmul.f32 %v11032_v10, %v4349_v32  ;;  %v4377_v53 = vmul.f32 %v11032_v10, %v4350_v29  ;;  %v4378_v37 = vmul.f32 %v11032_v10, %v4351_v11 }
 0x87e   : > { %v4396_v31 = vpack.c.bf16 %v4372_v27, %v4371_v7  ;;  %v4397_v38 = vpack.c.bf16 %v4374_v39, %v4373_v60  ;;  %v4379_v61 = vmul.f32 %v11032_v10, %v4352_v54  ;;  %v4380_v50 = vmul.f32 %v11032_v10, %v4353_v36 }
 0x87f   : > { %v4398_v59 = vpack.c.bf16 %v4376_v28, %v4375_v2  ;;  %v4399_v55 = vpack.c.bf16 %v4378_v37, %v4377_v53  ;;  %v4381_v63 = vmul.f32 %v11032_v10, %v4354_v21  ;;  %v4382_v43 = vmul.f32 %v11032_v10, %v4355_v22 }
 0x880   : > { %4623 = vmatpush1.bf16.msra.mxu1 %v4396_v31  ;;  %v4400_v24 = vpack.c.bf16 %v4380_v50, %v4379_v61  ;;  %v4383_v14 = vmul.f32 %v11032_v10, %v4356_v8  ;;  %v4384_v34 = vmul.f32 %v11032_v10, %v4357_v49  ;;  %v4359_v25 = vsub.f32 %v10942_v40, %v11024_v0  ;;  %v8525_v8 = vld [vmem:[%s11902_s5 + $0x114] ss:$8 sps:$4 sm:$0xff]   ;;  %v8528_v49 = vld [vmem:[%s11902_s5 + $0x124] ss:$8 sps:$4 sm:$0xff]  }
 0x881   : > { %4624 = vmatprep.subr.bf16.mxu1 %v11940_v18  ;;  %v4401_v17 = vpack.c.bf16 %v4382_v43, %v4381_v63  ;;  %v4385_v7 = vmul.f32 %v11032_v10, %v4358_v44  ;;  %v4360_v51 = vsub.f32 %v10947_v3, %v11024_v0  ;;  %v4361_v33 = vsub.f32 %v10957_v9, %v11024_v0  ;;  %v8534_v44 = vld [vmem:[%s11902_s5 + $0x144] ss:$8 sps:$4 sm:$0xff]  }
 0x882   : > { %v4402_v6 = vpack.c.bf16 %v4384_v34, %v4383_v14  ;;  %v4386_v27 = vmul.f32 %v11032_v10, %v4359_v25  ;;  %v4362_v5 = vsub.f32 %v10963_v42, %v11024_v0  ;;  %v4363_v32 = vsub.f32 %v10973_v26, %v11024_v0  ;;  %v8531_v14 = vld [vmem:[%s11902_s5 + $0x134] ss:$8 sps:$4 sm:$0xff]   ;;  %v8533_v34 = vld [vmem:[%s11902_s5 + $0x130] ss:$8 sps:$4 sm:$0xff]   ;;  %v8536_v25 = vld [vmem:[%s11902_s5 + $0x140] ss:$8 sps:$4 sm:$0xff]  }
 0x883   : > { %v4387_v60 = vmul.f32 %v11032_v10, %v4360_v51  ;;  %v4388_v39 = vmul.f32 %v11032_v10, %v4361_v33  ;;  %v4364_v29 = vsub.f32 %v10982_v62, %v11024_v0  ;;  %v4365_v11 = vsub.f32 %v10989_v19, %v11024_v0  ;;  %v8542_v51 = vld [vmem:[%s11902_s5 + $0x160] ss:$8 sps:$4 sm:$0xff]   ;;  %v8543_v33 = vld [vmem:[%s11902_s5 + $0x174] ss:$8 sps:$4 sm:$0xff]  }
 0x884   : > { %4625 = vmatpush1.bf16.msra.mxu1 %v4397_v38  ;;  %v4403_v31 = vpack.c.bf16 %v4386_v27, %v4385_v7  ;;  %v4389_v2 = vmul.f32 %v11032_v10, %v4362_v5  ;;  %v4390_v28 = vmul.f32 %v11032_v10, %v4363_v32  ;;  %v4366_v54 = vsub.f32 %v11000_v1, %v11024_v0  ;;  %v8539_v7 = vld [vmem:[%s11902_s5 + $0x150] ss:$8 sps:$4 sm:$0xff]   ;;  %v8540_v27 = vld [vmem:[%s11902_s5 + $0x164] ss:$8 sps:$4 sm:$0xff]  }
 0x885   : > { %4626 = vmatprep.subr.bf16.mxu1 %v11940_v18  ;;  %v4404_v38 = vpack.c.bf16 %v4388_v39, %v4387_v60  ;;  %v4391_v53 = vmul.f32 %v11032_v10, %v4364_v29  ;;  %v4392_v37 = vmul.f32 %v11032_v10, %v4365_v11  ;;  %v4367_v36 = vsub.f32 %v11008_v16, %v11024_v0  ;;  %v4446_v60 = vpop.permute.xlu1 %4445 }
 0x886   : > { %v4393_v50 = vmul.f32 %v11032_v10, %v4366_v54 }
 0x887   : > { %v4406_v61 = vpack.c.bf16 %v4392_v37, %v4391_v53  ;;  %v4394_v21 = vmul.f32 %v11032_v10, %v4367_v36 }
 0x888   : > { %4627 = vmatpush1.bf16.msra.mxu1 %v4398_v59  ;;  %v4405_v59 = vpack.c.bf16 %v4390_v28, %v4389_v2 }
 0x889   : > { %4628 = vmatprep.subr.bf16.mxu1 %v11940_v18  ;;  %v4456_v37 = vpop.permute.xlu1 %4455 }
 0x88c   : > { %4629 = vmatpush1.bf16.msra.mxu1 %v4399_v55  ;;  %v4368_v55 = vsub.f32 %v11017_v41, %v11024_v0  ;;  %v8522_v0 = vld [vmem:[%s11902_s5 + $0x100] ss:$8 sps:$4 sm:$0xff]  }
 0x88d   : > { %4630 = vmatprep.subr.bf16.mxu1 %v11940_v18 }
 0x88e   : > { %v4395_v22 = vmul.f32 %v11032_v10, %v4368_v55  ;;  %v8527_v10 = vld [vmem:[%s11902_s5 + $0x110] ss:$8 sps:$4 sm:$0xff]  }
 0x890   : > { %4631 = vmatpush1.bf16.msra.mxu1 %v4400_v24  ;;  %v4407_v24 = vpack.c.bf16 %v4394_v21, %v4393_v50  ;;  %v4408_v63 = vpack.c.bf16 %v4395_v22, %v4395_v22 }
 0x891   : > { %4632 = vmatprep.subr.bf16.mxu1 %v11940_v18 }
 0x892   : > { %v4620_v43 = vsel %vm926_vm0, %v4408_v63, 0 }
 0x894   : > { %4633 = vmatpush1.bf16.msra.mxu1 %v4401_v17  ;;  %v8530_v17 = vld [vmem:[%s11902_s5 + $0x120] ss:$8 sps:$4 sm:$0xff]  }
 0x895   : > { %4634 = vmatprep.subr.bf16.mxu1 %v11940_v18 }
 0x898   : > { %4635 = vmatpush1.bf16.msra.mxu1 %v4402_v6  ;;  %v8537_v6 = vld [vmem:[%s11902_s5 + $0x154] ss:$8 sps:$4 sm:$0xff]  }
 0x899   : > { %4636 = vmatprep.subr.bf16.mxu1 %v11940_v18 }
 0x89c   : > { %4637 = vmatpush1.bf16.msra.mxu1 %v4403_v31  ;;  %v8545_v31 = vld [vmem:[%s11902_s5 + $0x170] ss:$8 sps:$4 sm:$0xff]  }
 0x89d   : > { %4638 = vmatprep.subr.bf16.mxu1 %v11940_v18 }
 0x8a0   : > { %4639 = vmatpush1.bf16.msra.mxu1 %v4404_v38  ;;  %v4451_v38 = vpop.permute.xlu0 %4450 }
 0x8a1   : > { %4640 = vmatprep.subr.bf16.mxu1 %v11940_v18 }
 0x8a4   : > { %4641 = vmatpush1.bf16.msra.mxu1 %v4405_v59 }
 0x8a5   : > { %4642 = vmatprep.subr.bf16.mxu1 %v11940_v18 }
 0x8a8   : > { %4643 = vmatpush1.bf16.msra.mxu1 %v4406_v61  ;;  %v4461_v61 = vpop.permute.xlu0 %4460 }
 0x8a9   : > { %4644 = vmatprep.subr.bf16.mxu1 %v11940_v18 }
 0x8ac   : > { %4645 = vmatpush1.bf16.msra.mxu1 %v4407_v24 }
 0x8ad   : > { %4646 = vmatprep.subr.bf16.mxu1 %v11940_v18 }
 0x8b0   : > { %4647 = vmatpush1.bf16.msra.mxu1 %v4620_v43 }
 0x8b1   : > { %8162 = vmatprep.subr.bf16.mxu1 %v11939_v20 }
 0x8b3   : > { %4655 = vmatmul.mubr.bf16.vlgmr.msra.gmra.mrb[140].mxu1 %v8522_v0  ;;  %v4466_v0 = vpop.permute.xlu1 %4465 }
 0x8b4   : > { %7387 = vmatprep.mubr.msk.bf16.mxu1 %vm2642_vm10, %v8525_v8 }
 0x8bb   : > { %4663 = vmatmul.mubr.bf16.gmra.mrb[144].mxu1 %v8527_v10 }
 0x8bc   : > { %7388 = vmatprep.mubr.msk.bf16.mxu1 %vm2642_vm10, %v8528_v49 }
 0x8c3   : > { %4671 = vmatmul.mubr.bf16.gmra.mrb[148].mxu1 %v8530_v17  ;;  %v4471_v17 = vpop.permute.xlu0 %4470 }
 0x8c4   : > { %7389 = vmatprep.mubr.msk.bf16.mxu1 %vm2642_vm10, %v8531_v14 }
 0x8cb   : > { %4679 = vmatmul.mubr.bf16.gmra.mrb[152].mxu1 %v8533_v34 }
 0x8cc   : > { %7390 = vmatprep.mubr.msk.bf16.mxu1 %vm2642_vm10, %v8534_v44 }
 0x8d3   : > { %4687 = vmatmul.mubr.bf16.gmra.mrb[156].mxu1 %v8536_v25 }
 0x8d4   : > { %7391 = vmatprep.mubr.msk.bf16.mxu1 %vm2642_vm10, %v8537_v6 }
 0x8db   : > { %4695 = vmatmul.mubr.bf16.gmra.mrb[160].mxu1 %v8539_v7 }
 0x8dc   : > { %7392 = vmatprep.mubr.msk.bf16.mxu1 %vm2642_vm10, %v8540_v27  ;;  %v4476_v27 = vpop.permute.xlu1 %4475 }
 0x8e3   : > { %4703 = vmatmul.mubr.bf16.gmra.mrb[164].mxu1 %v8542_v51 }
 0x8e4   : > { %7393 = vmatprep.mubr.msk.bf16.mxu1 %vm2642_vm10, %v8543_v33 }
 0x8eb   : > { %4711 = vmatmul.mubr.bf16.gmra.mrb[168].mxu1 %v8545_v31 }
 0x8ec   : > { %8178 = vmatprep.mubr.msk.bf16.mxu1 %vm8679_vm13, %v11939_v20 }
 0x986   : > { %v4656_v39 = vpop.f32.mrb[140].mxu1 }
 0x987   : > { %v4657_v5 = vadd.f32 %v4656_v39, %v4446_v60  ;;  %v4658_v32 = vpop.f32.mrb[141].mxu1  ;;  %v4481_v60 = vpop.permute.xlu0 %4480 }
 0x988   : > { %v4659_v2 = vpop.f32.mrb[142].mxu1 }
 0x989   : > { %v4660_v28 = vadd.f32 %v4659_v2, %v4451_v38  ;;  %v4661_v29 = vpop.f32.mrb[143].mxu1  ;;  %v4719_v11 = vmax.f32 %v4657_v5, 0.0 }
 0x98a   : > { %v4486_v29 = vpop.permute.xlu1 %4485 }
 0x98b   : > { %v4720_v59 = vmax.f32 %v4660_v28, 0.0 }
 0x98d   : > { %v4735_v53 = vpack.c.bf16 %v4720_v59, %v4719_v11 }
 0x98e   : > { %v4664_v54 = vpop.f32.mrb[144].mxu1 }
 0x98f   : > { %v4665_v36 = vadd.f32 %v4664_v54, %v4456_v37  ;;  %v4666_v55 = vpop.f32.mrb[145].mxu1  ;;  %8163 = vmatpush3.bf16.msra.mxu1 %v4735_v53  ;;  %v4491_v37 = vpop.permute.xlu0 %4490 }
 0x990   : > { %v4667_v50 = vpop.f32.mrb[146].mxu1  ;;  %8164 = vmatprep.subr.bf16.mxu1 %v11939_v20 }
 0x991   : > { %v4668_v21 = vadd.f32 %v4667_v50, %v4461_v61  ;;  %v4669_v22 = vpop.f32.mrb[147].mxu1  ;;  %v4721_v24 = vmax.f32 %v4665_v36, 0.0 }
 0x992   : > { %v4496_v22 = vpop.permute.xlu1 %4495 }
 0x993   : > { %v4722_v63 = vmax.f32 %v4668_v21, 0.0 }
 0x995   : > { %v4736_v43 = vpack.c.bf16 %v4722_v63, %v4721_v24 }
 0x996   : > { %v4672_v8 = vpop.f32.mrb[148].mxu1 }
 0x997   : > { %v4673_v10 = vadd.f32 %v4672_v8, %v4466_v0  ;;  %v4674_v49 = vpop.f32.mrb[149].mxu1  ;;  %8165 = vmatpush3.bf16.msra.mxu1 %v4736_v43  ;;  %v4501_v0 = vpop.permute.xlu0 %4500 }
 0x998   : > { %v4675_v14 = vpop.f32.mrb[150].mxu1  ;;  %8166 = vmatprep.subr.bf16.mxu1 %v11939_v20 }
 0x999   : > { %v4676_v34 = vadd.f32 %v4675_v14, %v4471_v17  ;;  %v4677_v44 = vpop.f32.mrb[151].mxu1  ;;  %v4723_v25 = vmax.f32 %v4673_v10, 0.0 }
 0x99a   : > { %v4506_v44 = vpop.permute.xlu1 %4505 }
 0x99b   : > { %v4724_v6 = vmax.f32 %v4676_v34, 0.0 }
 0x99d   : > { %v4737_v7 = vpack.c.bf16 %v4724_v6, %v4723_v25 }
 0x99e   : > { %v4680_v51 = vpop.f32.mrb[152].mxu1 }
 0x99f   : > { %v4681_v33 = vadd.f32 %v4680_v51, %v4476_v27  ;;  %v4682_v31 = vpop.f32.mrb[153].mxu1  ;;  %8167 = vmatpush3.bf16.msra.mxu1 %v4737_v7  ;;  %v4511_v27 = vpop.permute.xlu0 %4510 }
 0x9a0   : > { %v4683_v39 = vpop.f32.mrb[154].mxu1  ;;  %8168 = vmatprep.subr.bf16.mxu1 %v11939_v20 }
 0x9a1   : > { %v4684_v5 = vadd.f32 %v4683_v39, %v4481_v60  ;;  %v4685_v32 = vpop.f32.mrb[155].mxu1  ;;  %v4725_v38 = vmax.f32 %v4681_v33, 0.0 }
 0x9a2   : > { %v4516_v32 = vpop.permute.xlu1 %4515 }
 0x9a3   : > { %v4726_v2 = vmax.f32 %v4684_v5, 0.0 }
 0x9a5   : > { %v4738_v28 = vpack.c.bf16 %v4726_v2, %v4725_v38 }
 0x9a6   : > { %v4688_v11 = vpop.f32.mrb[156].mxu1 }
 0x9a7   : > { %v4689_v59 = vadd.f32 %v4688_v11, %v4486_v29  ;;  %v4690_v53 = vpop.f32.mrb[157].mxu1  ;;  %8169 = vmatpush3.bf16.msra.mxu1 %v4738_v28  ;;  %v4521_v29 = vpop.permute.xlu0 %4520 }
 0x9a8   : > { %v4691_v54 = vpop.f32.mrb[158].mxu1  ;;  %8170 = vmatprep.subr.bf16.mxu1 %v11939_v20 }
 0x9a9   : > { %v4692_v36 = vadd.f32 %v4691_v54, %v4491_v37  ;;  %v4693_v55 = vpop.f32.mrb[159].mxu1  ;;  %v4727_v61 = vmax.f32 %v4689_v59, 0.0 }
 0x9aa   : > { %v8546_v55 = vld [vmem:[%s11904_s7 + $0xc8] sm:$0xff]  }
 0x9ab   : > { %v4728_v50 = vmax.f32 %v4692_v36, 0.0 }
 0x9ad   : > { %v4739_v21 = vpack.c.bf16 %v4728_v50, %v4727_v61  ;;  %v8547_v61 = vld [vmem:[%s11904_s7 + $0xd0] sm:$0xff]   ;;  %v8548_v50 = vld [vmem:[%s11904_s7 + $0xd8] sm:$0xff]  }
 0x9ae   : > { %v4696_v24 = vpop.f32.mrb[160].mxu1 }
 0x9af   : > { %v4697_v63 = vadd.f32 %v4696_v24, %v4496_v22  ;;  %v4698_v43 = vpop.f32.mrb[161].mxu1  ;;  %8171 = vmatpush3.bf16.msra.mxu1 %v4739_v21  ;;  %v8549_v21 = vld [vmem:[%s11904_s7 + $0xe0] sm:$0xff]   ;;  %v8550_v22 = vld [vmem:[%s11904_s7 + $0xe8] sm:$0xff]   ;;  %v8551_v24 = vld [vmem:[%s11904_s7 + $0xf0] sm:$0xff]  }
 0x9b0   : > { %v4699_v8 = vpop.f32.mrb[162].mxu1  ;;  %8172 = vmatprep.subr.bf16.mxu1 %v11939_v20  ;;  %v8553_v43 = vld [vmem:[%s11904_s7 + $0x100] sm:$0xff]  }
 0x9b1   : > { %v4700_v10 = vadd.f32 %v4699_v8, %v4501_v0  ;;  %v4701_v49 = vpop.f32.mrb[163].mxu1  ;;  %v4729_v17 = vmax.f32 %v4697_v63, 0.0  ;;  %v8552_v63 = vld [vmem:[%s11904_s7 + $0xf8] sm:$0xff]   ;;  %v8554_v0 = vld [vmem:[%s11904_s7 + $0x108] sm:$0xff]   ;;  %v8555_v8 = vld [vmem:[%s11904_s7 + $0x110] sm:$0xff]  }
 0x9b2   : > { %v8557_v49 = vld [vmem:[%s11904_s7 + $0x120] sm:$0xff]  }
 0x9b3   : > { %v4730_v14 = vmax.f32 %v4700_v10, 0.0  ;;  %v8556_v10 = vld [vmem:[%s11904_s7 + $0x118] sm:$0xff]  }
 0x9b5   : > { %v4740_v34 = vpack.c.bf16 %v4730_v14, %v4729_v17  ;;  %v8558_v17 = vld [vmem:[%s11904_s7 + $0x128] ss:$0 sps:$4 sm:$0x33]  }
 0x9b6   : > { %v4704_v25 = vpop.f32.mrb[164].mxu1 }
 0x9b7   : > { %v4705_v6 = vadd.f32 %v4704_v25, %v4506_v44  ;;  %v4706_v7 = vpop.f32.mrb[165].mxu1  ;;  %8173 = vmatpush3.bf16.msra.mxu1 %v4740_v34 }
 0x9b8   : > { %v4707_v51 = vpop.f32.mrb[166].mxu1  ;;  %8174 = vmatprep.subr.bf16.mxu1 %v11939_v20 }
 0x9b9   : > { %v4708_v33 = vadd.f32 %v4707_v51, %v4511_v27  ;;  %v4709_v31 = vpop.f32.mrb[167].mxu1  ;;  %v4731_v60 = vmax.f32 %v4705_v6, 0.0 }
 0x9bb   : > { %v4732_v39 = vmax.f32 %v4708_v33, 0.0 }
 0x9bd   : > { %v4741_v5 = vpack.c.bf16 %v4732_v39, %v4731_v60 }
 0x9be   : > { %v4712_v38 = vpop.f32.mrb[168].mxu1 }
 0x9bf   : > { %v4713_v2 = vadd.f32 %v4712_v38, %v4516_v32  ;;  %v4714_v28 = vpop.f32.mrb[169].mxu1  ;;  %8175 = vmatpush3.bf16.msra.mxu1 %v4741_v5  ;;  %v5035_v5 = vpop.permute.xlu1 %5034 }
 0x9c0   : > { %v4715_v11 = vpop.f32.mrb[170].mxu1  ;;  %8176 = vmatprep.subr.bf16.mxu1 %v11939_v20  ;;  %v5040_v28 = vpop.permute.xlu0 %5039 }
 0x9c1   : > { %v4716_v59 = vadd.f32 %v4715_v11, %v4521_v29  ;;  %v4717_v53 = vpop.f32.mrb[171].mxu1  ;;  %v4733_v37 = vmax.f32 %v4713_v2, 0.0 }
 0x9c3   : > { %v4734_v54 = vmax.f32 %v4716_v59, 0.0  ;;  %v5045_v53 = vpop.permute.xlu1 %5044 }
 0x9c5   : > { %v4742_v36 = vpack.c.bf16 %v4734_v54, %v4733_v37 }
 0x9c7   : > { %8177 = vmatpush3.bf16.msra.mxu1 %v4742_v36 }
 0x9c8   : > { %8298 = vmatprep.subr.bf16.mxu1 %v11939_v20 }
 0x9ca   : > { %8179 = vmatmul.mubr.bf16.vlgmr.msra.gmra.mrb[172].mxu1 %v8546_v55 }
 0x9cb   : > { %8182 = vmatprep.mubr.msk.bf16.mxu1 %vm8679_vm13, %v11939_v20 }
 0x9d2   : > { %8183 = vmatmul.mubr.bf16.gmra.mrb[176].mxu1 %v8547_v61 }
 0x9d3   : > { %8186 = vmatprep.mubr.msk.bf16.mxu1 %vm8679_vm13, %v11939_v20 }
 0x9da   : > { %8187 = vmatmul.mubr.bf16.gmra.mrb[180].mxu1 %v8548_v50 }
 0x9db   : > { %8190 = vmatprep.mubr.msk.bf16.mxu1 %vm8679_vm13, %v11939_v20 }
 0x9e2   : > { %8191 = vmatmul.mubr.bf16.gmra.mrb[184].mxu1 %v8549_v21 }
 0x9e3   : > { %8194 = vmatprep.mubr.msk.bf16.mxu1 %vm8679_vm13, %v11939_v20 }
 0x9ea   : > { %8195 = vmatmul.mubr.bf16.gmra.mrb[188].mxu1 %v8550_v22 }
 0x9eb   : > { %8198 = vmatprep.mubr.msk.bf16.mxu1 %vm8679_vm13, %v11939_v20 }
 0x9f2   : > { %8199 = vmatmul.mubr.bf16.gmra.mrb[192].mxu1 %v8551_v24 }
 0x9f3   : > { %8202 = vmatprep.mubr.msk.bf16.mxu1 %vm8679_vm13, %v11939_v20 }
 0x9fa   : > { %8203 = vmatmul.mubr.bf16.gmra.mrb[196].mxu1 %v8552_v63  ;;  %v5055_v63 = vpop.permute.xlu1 %5054 }
 0x9fb   : > { %8206 = vmatprep.mubr.msk.bf16.mxu1 %vm8679_vm13, %v11939_v20 }
 0xa02   : > { %8207 = vmatmul.mubr.bf16.gmra.mrb[200].mxu1 %v8553_v43 }
 0xa03   : > { %8210 = vmatprep.mubr.msk.bf16.mxu1 %vm8679_vm13, %v11939_v20 }
 0xa0a   : > { %8211 = vmatmul.mubr.bf16.gmra.mrb[204].mxu1 %v8554_v0 }
 0xa0b   : > { %8214 = vmatprep.mubr.msk.bf16.mxu1 %vm8679_vm13, %v11939_v20 }
 0xa12   : > { %8215 = vmatmul.mubr.bf16.gmra.mrb[208].mxu1 %v8555_v8 }
 0xa13   : > { %8218 = vmatprep.mubr.msk.bf16.mxu1 %vm8679_vm13, %v11939_v20 }
 0xa1a   : > { %8219 = vmatmul.mubr.bf16.gmra.mrb[212].mxu1 %v8556_v10 }
 0xa1b   : > { %8222 = vmatprep.mubr.msk.bf16.mxu1 %vm8679_vm13, %v11939_v20 }
 0xa22   : > { %8223 = vmatmul.mubr.bf16.gmra.mrb[216].mxu1 %v8557_v49 }
 0xa23   : > { %8226 = vmatprep.mubr.msk.bf16.mxu1 %vm8679_vm13, %v11939_v20 }
 0xa2a   : > { %8227 = vmatmul.mubr.bf16.gmra.mrb[220].mxu1 %v8558_v17 }
 0xa2b   : > { %8302 = vmatprep.mubr.msk.bf16.mxu1 %vm8679_vm13, %v11939_v20 }
 0xa9d   : > { %v4879_v14 = vpop.f32.mrb[172].mxu1 }
 0xa9e   : > { %v8180_v34 = vpop.f32.mrb[173].mxu1  ;;  %v4981_v38 = vadd.f32 %v4879_v14, %v10818_v58 }
 0xa9f   : > { %v4882_v44 = vpop.f32.mrb[174].mxu1 }
 0xaa0   : > { %v8181_v25 = vpop.f32.mrb[175].mxu1  ;;  %v4982_v32 = vadd.f32 %v4882_v44, %v10815_v47  ;;  %v11251_v54 = vadd.f32 %v5035_v5, %v4981_v38 }
 0xaa2   : > { %v11249_v11 = vadd.f32 %v5040_v28, %v4982_v32  ;;  %v5238_v50 = vmul.f32 %v11251_v54, %v11251_v54 }
 0xaa4   : > { %v5239_v47 = vmul.f32 %v11249_v11, %v11249_v11  ;;  %v5183_v21 = vsel %vm2252_vm8, %v11249_v11, 0.0  ;;  %v5263_v34 = vsel %vm2252_vm8, %v5238_v50, 0.0 }
 0xaa5   : > { %v4887_v6 = vpop.f32.mrb[176].mxu1 }
 0xaa6   : > { %v8184_v7 = vpop.f32.mrb[177].mxu1  ;;  %v4983_v2 = vadd.f32 %v4887_v6, %v10821_v23  ;;  %v5050_v23 = vpop.permute.xlu0 %5049  ;;  %v5264_v0 = vsel %vm2252_vm8, %v5239_v47, 0.0 }
 0xaa7   : > { %v4890_v27 = vpop.f32.mrb[178].mxu1 }
 0xaa8   : > { %v8185_v51 = vpop.f32.mrb[179].mxu1  ;;  %v11253_v36 = vadd.f32 %v5045_v53, %v4983_v2  ;;  %v4984_v55 = vadd.f32 %v4890_v27, %v10834_v45  ;;  %v5182_v45 = vsel %vm2252_vm8, %v11251_v54, 0.0 }
 0xaa9   : > { %v5184_v17 = vadd.f32 %v5183_v21, %v5182_v45  ;;  %v5265_v51 = vadd.f32 %v5264_v0, %v5263_v34 }
 0xaaa   : > { %v5240_v22 = vmul.f32 %v11253_v36, %v11253_v36  ;;  %v11265_v24 = vadd.f32 %v5050_v23, %v4984_v55  ;;  %v5060_v27 = vpop.permute.xlu0 %5059 }
 0xaac   : > { %v5266_v44 = vsel %vm2252_vm8, %v5240_v22, 0.0  ;;  %v5241_v25 = vmul.f32 %v11265_v24, %v11265_v24 }
 0xaad   : > { %v4895_v33 = vpop.f32.mrb[180].mxu1  ;;  %v5267_v5 = vadd.f32 %v5266_v44, %v5265_v51 }
 0xaae   : > { %v8188_v31 = vpop.f32.mrb[181].mxu1  ;;  %v4985_v58 = vadd.f32 %v4895_v33, %v10842_v52  ;;  %v5185_v52 = vsel %vm2252_vm8, %v11253_v36, 0.0  ;;  %v5268_v32 = vsel %vm2252_vm8, %v5241_v25, 0.0  ;;  %v5070_v47 = vpop.permute.xlu0 %5069 }
 0xaaf   : > { %v4898_v60 = vpop.f32.mrb[182].mxu1  ;;  %v5186_v33 = vadd.f32 %v5185_v52, %v5184_v17  ;;  %v5187_v31 = vsel %vm2252_vm8, %v11265_v24, 0.0 }
 0xab0   : > { %v8189_v39 = vpop.f32.mrb[183].mxu1  ;;  %v11272_v8 = vadd.f32 %v5055_v63, %v4985_v58  ;;  %v4986_v10 = vadd.f32 %v4898_v60, %v10855_v12  ;;  %v5269_v58 = vadd.f32 %v5268_v32, %v5267_v5 }
 0xab1   : > { %v5065_v39 = vpop.permute.xlu1 %5064  ;;  %v5188_v28 = vadd.f32 %v5187_v31, %v5186_v33 }
 0xab2   : > { %v5242_v12 = vmul.f32 %v11272_v8, %v11272_v8  ;;  %v11284_v60 = vadd.f32 %v5060_v27, %v4986_v10  ;;  %v5189_v38 = vsel %vm2252_vm8, %v11272_v8, 0.0  ;;  %v5080_v44 = vpop.permute.xlu0 %5079 }
 0xab3   : > { %v5190_v23 = vadd.f32 %v5189_v38, %v5188_v28 }
 0xab4   : > { %v5243_v53 = vmul.f32 %v11284_v60, %v11284_v60  ;;  %v5191_v21 = vsel %vm2252_vm8, %v11284_v60, 0.0 }
 0xab5   : > { %v4903_v29 = vpop.f32.mrb[184].mxu1  ;;  %v5075_v63 = vpop.permute.xlu1 %5074  ;;  %v5192_v10 = vadd.f32 %v5191_v21, %v5190_v23 }
 0xab6   : > { %v8192_v59 = vpop.f32.mrb[185].mxu1  ;;  %v4987_v6 = vadd.f32 %v4903_v29, %v10861_v35  ;;  %v5272_v0 = vsel %vm2252_vm8, %v5243_v53, 0.0  ;;  %v5090_v53 = vpop.permute.xlu0 %5089 }
 0xab7   : > { %v4906_v37 = vpop.f32.mrb[186].mxu1  ;;  %v5270_v59 = vsel %vm2252_vm8, %v5242_v12, 0.0 }
 0xab8   : > { %v8193_v61 = vpop.f32.mrb[187].mxu1  ;;  %v11289_v35 = vadd.f32 %v5065_v39, %v4987_v6  ;;  %v4988_v2 = vadd.f32 %v4906_v37, %v10873_v57  ;;  %v5271_v45 = vadd.f32 %v5270_v59, %v5269_v58 }
 0xaba   : > { %v5244_v57 = vmul.f32 %v11289_v35, %v11289_v35  ;;  %v11300_v37 = vadd.f32 %v5070_v47, %v4988_v2  ;;  %v5273_v25 = vadd.f32 %v5272_v0, %v5271_v45 }
 0xabc   : > { %v5245_v17 = vmul.f32 %v11300_v37, %v11300_v37  ;;  %v5195_v27 = vsel %vm2252_vm8, %v11300_v37, 0.0 }
 0xabd   : > { %v4911_v43 = vpop.f32.mrb[188].mxu1 }
 0xabe   : > { %v8196_v49 = vpop.f32.mrb[189].mxu1  ;;  %v4989_v55 = vadd.f32 %v4911_v43, %v10879_v13  ;;  %v5193_v13 = vsel %vm2252_vm8, %v11289_v35, 0.0  ;;  %v5276_v39 = vsel %vm2252_vm8, %v5245_v17, 0.0 }
 0xabf   : > { %v4914_v14 = vpop.f32.mrb[190].mxu1  ;;  %v5274_v49 = vsel %vm2252_vm8, %v5244_v57, 0.0  ;;  %v5194_v6 = vadd.f32 %v5193_v13, %v5192_v10 }
 0xac0   : > { %v8197_v7 = vpop.f32.mrb[191].mxu1  ;;  %v11305_v43 = vadd.f32 %v5075_v63, %v4989_v55  ;;  %v4990_v52 = vadd.f32 %v4914_v14, %v10890_v56  ;;  %v5085_v14 = vpop.permute.xlu1 %5084  ;;  %v5275_v31 = vadd.f32 %v5274_v49, %v5273_v25 }
 0xac1   : > { %v5196_v2 = vadd.f32 %v5195_v27, %v5194_v6 }
 0xac2   : > { %v5246_v51 = vmul.f32 %v11305_v43, %v11305_v43  ;;  %v11316_v33 = vadd.f32 %v5080_v44, %v4990_v52  ;;  %v5277_v55 = vadd.f32 %v5276_v39, %v5275_v31  ;;  %v5100_v44 = vpop.permute.xlu0 %5099 }
 0xac4   : > { %v5278_v28 = vsel %vm2252_vm8, %v5246_v51, 0.0  ;;  %v5199_v47 = vsel %vm2252_vm8, %v11316_v33, 0.0 }
 0xac5   : > { %v4919_v29 = vpop.f32.mrb[192].mxu1 }
 0xac6   : > { %v8200_v61 = vpop.f32.mrb[193].mxu1  ;;  %v4991_v34 = vadd.f32 %v4919_v29, %v10895_v30  ;;  %v5197_v30 = vsel %vm2252_vm8, %v11305_v43, 0.0  ;;  %v5247_v29 = vmul.f32 %v11316_v33, %v11316_v33 }
 0xac7   : > { %v4922_v50 = vpop.f32.mrb[194].mxu1  ;;  %v5198_v61 = vadd.f32 %v5197_v30, %v5196_v2 }
 0xac8   : > { %v8201_v22 = vpop.f32.mrb[195].mxu1  ;;  %v11321_v5 = vadd.f32 %v5085_v14, %v4991_v34  ;;  %v4992_v32 = vadd.f32 %v4922_v50, %v10906_v4  ;;  %v5095_v4 = vpop.permute.xlu1 %5094  ;;  %v5279_v50 = vadd.f32 %v5278_v28, %v5277_v55  ;;  %v5280_v57 = vsel %vm2252_vm8, %v5247_v29, 0.0  ;;  %v8561_v34 = vld [vmem:[%s11902_s5 + $0x184] ss:$8 sps:$4 sm:$0xff]  }
 0xac9   : > { %v5200_v0 = vadd.f32 %v5199_v47, %v5198_v61  ;;  %7505 = vmatprep.mubr.msk.bf16.mxu0 %vm2642_vm10, %v8561_v34  ;;  %v5110_v29 = vpop.permute.xlu0 %5109 }
 0xaca   : > { %v5248_v58 = vmul.f32 %v11321_v5, %v11321_v5  ;;  %v11332_v23 = vadd.f32 %v5090_v53, %v4992_v32  ;;  %v5201_v22 = vsel %vm2252_vm8, %v11321_v5, 0.0  ;;  %v5281_v25 = vadd.f32 %v5280_v57, %v5279_v50 }
 0xacb   : > { %v5202_v6 = vadd.f32 %v5201_v22, %v5200_v0 }
 0xacc   : > { %v5282_v52 = vsel %vm2252_vm8, %v5248_v58, 0.0  ;;  %v5249_v10 = vmul.f32 %v11332_v23, %v11332_v23  ;;  %v5105_v51 = vpop.permute.xlu1 %5104 }
 0xacd   : > { %v4927_v7 = vpop.f32.mrb[196].mxu1 }
 0xace   : > { %v8204_v56 = vpop.f32.mrb[197].mxu1  ;;  %v4993_v59 = vadd.f32 %v4927_v7, %v10911_v15 }
 0xacf   : > { %v4930_v12 = vpop.f32.mrb[198].mxu1  ;;  %v5284_v56 = vsel %vm2252_vm8, %v5249_v10, 0.0 }
 0xad0   : > { %v8205_v38 = vpop.f32.mrb[199].mxu1  ;;  %v11337_v15 = vadd.f32 %v5095_v4, %v4993_v59  ;;  %v4994_v63 = vadd.f32 %v4930_v12, %v10925_v48  ;;  %v5203_v48 = vsel %vm2252_vm8, %v11332_v23, 0.0  ;;  %v5115_v4 = vpop.permute.xlu1 %5114 }
 0xad1   : > { %v5204_v39 = vadd.f32 %v5203_v48, %v5202_v6 }
 0xad2   : > { %v5250_v7 = vmul.f32 %v11337_v15, %v11337_v15  ;;  %v11351_v27 = vadd.f32 %v5100_v44, %v4994_v63  ;;  %v5205_v14 = vsel %vm2252_vm8, %v11337_v15, 0.0 }
 0xad3   : > { %v5206_v53 = vadd.f32 %v5205_v14, %v5204_v39 }
 0xad4   : > { %v5286_v32 = vsel %vm2252_vm8, %v5250_v7, 0.0  ;;  %v5251_v38 = vmul.f32 %v11351_v27, %v11351_v27  ;;  %v5207_v61 = vsel %vm2252_vm8, %v11351_v27, 0.0  ;;  %v5125_v6 = vpop.permute.xlu1 %5124 }
 0xad5   : > { %v4935_v21 = vpop.f32.mrb[200].mxu1  ;;  %v5208_v63 = vadd.f32 %v5207_v61, %v5206_v53 }
 0xad6   : > { %v8208_v45 = vpop.f32.mrb[201].mxu1  ;;  %v4995_v49 = vadd.f32 %v4935_v21, %v10931_v46  ;;  %v5283_v46 = vadd.f32 %v5282_v52, %v5281_v25  ;;  %v5288_v21 = vsel %vm2252_vm8, %v5251_v38, 0.0 }
 0xad7   : > { %v4938_v13 = vpop.f32.mrb[202].mxu1 }
 0xad8   : > { %v8209_v17 = vpop.f32.mrb[203].mxu1  ;;  %v11357_v31 = vadd.f32 %v5105_v51, %v4995_v49  ;;  %v4996_v12 = vadd.f32 %v4938_v13, %v10942_v40  ;;  %v5285_v59 = vadd.f32 %v5284_v56, %v5283_v46  ;;  %v5120_v13 = vpop.permute.xlu0 %5119 }
 0xada   : > { %v5252_v40 = vmul.f32 %v11357_v31, %v11357_v31  ;;  %v11368_v47 = vadd.f32 %v5110_v29, %v4996_v12  ;;  %v5287_v50 = vadd.f32 %v5286_v32, %v5285_v59 }
 0xadc   : > { %v5290_v45 = vsel %vm2252_vm8, %v5252_v40, 0.0  ;;  %v5253_v0 = vmul.f32 %v11368_v47, %v11368_v47  ;;  %v5289_v52 = vadd.f32 %v5288_v21, %v5287_v50  ;;  %v5211_v17 = vsel %vm2252_vm8, %v11368_v47, 0.0  ;;  %v5130_v32 = vpop.permute.xlu0 %5129 }
 0xadd   : > { %v4943_v30 = vpop.f32.mrb[204].mxu1 }
 0xade   : > { %v4997_v2 = vadd.f32 %v4943_v30, %v10947_v3  ;;  %v8212_v28 = vpop.f32.mrb[205].mxu1  ;;  %v5209_v3 = vsel %vm2252_vm8, %v11357_v31, 0.0  ;;  %v5291_v48 = vadd.f32 %v5290_v45, %v5289_v52  ;;  %v5292_v51 = vsel %vm2252_vm8, %v5253_v0, 0.0 }
 0xadf   : > { %v4946_v55 = vpop.f32.mrb[206].mxu1  ;;  %v5210_v10 = vadd.f32 %v5209_v3, %v5208_v63 }
 0xae0   : > { %v8213_v58 = vpop.f32.mrb[207].mxu1  ;;  %v11373_v57 = vadd.f32 %v5115_v4, %v4997_v2  ;;  %v4998_v22 = vadd.f32 %v4946_v55, %v10957_v9  ;;  %v5293_v38 = vadd.f32 %v5292_v51, %v5291_v48  ;;  %v5135_v4 = vpop.permute.xlu1 %5134 }
 0xae1   : > { %v5212_v39 = vadd.f32 %v5211_v17, %v5210_v10 }
 0xae2   : > { %v5254_v34 = vmul.f32 %v11373_v57, %v11373_v57  ;;  %v11383_v44 = vadd.f32 %v5120_v13, %v4998_v22  ;;  %v5213_v46 = vsel %vm2252_vm8, %v11373_v57, 0.0  ;;  %v5140_v13 = vpop.permute.xlu0 %5139 }
 0xae3   : > { %v5214_v2 = vadd.f32 %v5213_v46, %v5212_v39 }
 0xae4   : > { %v5294_v30 = vsel %vm2252_vm8, %v5254_v34, 0.0  ;;  %v5215_v28 = vsel %vm2252_vm8, %v11383_v44, 0.0 }
 0xae5   : > { %v4951_v49 = vpop.f32.mrb[208].mxu1  ;;  %v5295_v53 = vadd.f32 %v5294_v30, %v5293_v38  ;;  %v5216_v50 = vadd.f32 %v5215_v28, %v5214_v2 }
 0xae6   : > { %v4999_v9 = vadd.f32 %v4951_v49, %v10963_v42  ;;  %v8216_v25 = vpop.f32.mrb[209].mxu1  ;;  %v5255_v42 = vmul.f32 %v11383_v44, %v11383_v44  ;;  %v5150_v28 = vpop.permute.xlu0 %5149 }
 0xae7   : > { %v4954_v7 = vpop.f32.mrb[210].mxu1 }
 0xae8   : > { %v11389_v56 = vadd.f32 %v5125_v6, %v4999_v9  ;;  %v5000_v14 = vadd.f32 %v4954_v7, %v10973_v26  ;;  %v8217_v12 = vpop.f32.mrb[211].mxu1  ;;  %v5296_v55 = vsel %vm2252_vm8, %v5255_v42, 0.0 }
 0xae9   : > { %v5297_v52 = vadd.f32 %v5296_v55, %v5295_v53 }
 0xaea   : > { %v5256_v29 = vmul.f32 %v11389_v56, %v11389_v56  ;;  %v11399_v59 = vadd.f32 %v5130_v32, %v5000_v14  ;;  %v5217_v61 = vsel %vm2252_vm8, %v11389_v56, 0.0  ;;  %v5145_v14 = vpop.permute.xlu1 %5144 }
 0xaeb   : > { %v5218_v10 = vadd.f32 %v5217_v61, %v5216_v50 }
 0xaec   : > { %v5298_v3 = vsel %vm2252_vm8, %v5256_v29, 0.0  ;;  %v5257_v22 = vmul.f32 %v11399_v59, %v11399_v59 }
 0xaed   : > { %v4959_v26 = vpop.f32.mrb[212].mxu1  ;;  %v5299_v34 = vadd.f32 %v5298_v3, %v5297_v52 }
 0xaee   : > { %v5001_v40 = vadd.f32 %v4959_v26, %v10982_v62  ;;  %v8220_v58 = vpop.f32.mrb[213].mxu1  ;;  %v5219_v62 = vsel %vm2252_vm8, %v11399_v59, 0.0  ;;  %v5300_v9 = vsel %vm2252_vm8, %v5257_v22, 0.0 }
 0xaef   : > { %v4962_v21 = vpop.f32.mrb[214].mxu1  ;;  %v5220_v6 = vadd.f32 %v5219_v62, %v5218_v10  ;;  %v5301_v12 = vadd.f32 %v5300_v9, %v5299_v34 }
 0xaf0   : > { %v11408_v63 = vadd.f32 %v5135_v4, %v5001_v40  ;;  %v5002_v45 = vadd.f32 %v4962_v21, %v10989_v19  ;;  %v8221_v0 = vpop.f32.mrb[215].mxu1 }
 0xaf2   : > { %v5258_v49 = vmul.f32 %v11408_v63, %v11408_v63  ;;  %v11415_v17 = vadd.f32 %v5140_v13, %v5002_v45  ;;  %v5221_v25 = vsel %vm2252_vm8, %v11408_v63, 0.0  ;;  %v5155_v45 = vpop.permute.xlu1 %5154 }
 0xaf3   : > { %v5222_v39 = vadd.f32 %v5221_v25, %v5220_v6 }
 0xaf4   : > { %v5302_v48 = vsel %vm2252_vm8, %v5258_v49, 0.0  ;;  %v5259_v7 = vmul.f32 %v11415_v17, %v11415_v17  ;;  %v5223_v42 = vsel %vm2252_vm8, %v11415_v17, 0.0 }
 0xaf5   : > { %v4967_v19 = vpop.f32.mrb[216].mxu1  ;;  %v5303_v29 = vadd.f32 %v5302_v48, %v5301_v12  ;;  %v5224_v61 = vadd.f32 %v5223_v42, %v5222_v39 }
 0xaf6   : > { %v5003_v51 = vadd.f32 %v4967_v19, %v11000_v1  ;;  %v8224_v46 = vpop.f32.mrb[217].mxu1  ;;  %v5304_v53 = vsel %vm2252_vm8, %v5259_v7, 0.0 }
 0xaf7   : > { %v4970_v30 = vpop.f32.mrb[218].mxu1 }
 0xaf8   : > { %v11426_v32 = vadd.f32 %v5145_v14, %v5003_v51  ;;  %v5004_v38 = vadd.f32 %v4970_v30, %v11008_v16  ;;  %v8225_v2 = vpop.f32.mrb[219].mxu1  ;;  %v5305_v16 = vadd.f32 %v5304_v53, %v5303_v29 }
 0xafa   : > { %v5225_v1 = vsel %vm2252_vm8, %v11426_v32, 0.0  ;;  %v5260_v26 = vmul.f32 %v11426_v32, %v11426_v32  ;;  %v11434_v55 = vadd.f32 %v5150_v28, %v5004_v38 }
 0xafb   : > { %v5226_v4 = vadd.f32 %v5225_v1, %v5224_v61 }
 0xafc   : > { %v5306_v40 = vsel %vm2252_vm8, %v5260_v26, 0.0  ;;  %v5261_v58 = vmul.f32 %v11434_v55, %v11434_v55  ;;  %v5227_v21 = vsel %vm2252_vm8, %v11434_v55, 0.0 }
 0xafd   : > { %v4975_v50 = vpop.f32.mrb[220].mxu1  ;;  %v5307_v0 = vadd.f32 %v5306_v40, %v5305_v16  ;;  %v5228_v49 = vadd.f32 %v5227_v21, %v5226_v4 }
 0xafe   : > { %v5005_v3 = vadd.f32 %v4975_v50, %v11017_v41  ;;  %v8228_v22 = vpop.f32.mrb[221].mxu1  ;;  %v5308_v52 = vsel %vm2252_vm8, %v5261_v58, 0.0 }
 0xaff   : > { %v4978_v13 = vpop.f32.mrb[222].mxu1  ;;  %v5309_v25 = vadd.f32 %v5308_v52, %v5307_v0 }
 0xb00   : > { %v11443_v10 = vadd.f32 %v5155_v45, %v5005_v3  ;;  %v8229_v62 = vpop.f32.mrb[223].mxu1 }
 0xb02   : > { %v5229_v34 = vsel %vm2300_vm12, %v11443_v10, 0.0  ;;  %v5262_v9 = vmul.f32 %v11443_v10, %v11443_v10 }
 0xb03   : > { %v5230_v6 = vadd.f32 %v5229_v34, %v5228_v49 }
 0xb04   : > { %v5310_v41 = vsel %vm2300_vm12, %v5262_v9, 0.0 }
 0xb05   : > { %v5231_v19 = vrot.slane %v5230_v6, 4  ;;  %v5311_v48 = vadd.f32 %v5310_v41, %v5309_v25 }
 0xb07   : > { %v5232_v7 = vadd.f32 %v5231_v19, %v5230_v6  ;;  %v5312_v51 = vrot.slane %v5311_v48, 4 }
 0xb09   : > { %v5233_v46 = vrot.slane %v5232_v7, 2  ;;  %v5313_v14 = vadd.f32 %v5312_v51, %v5311_v48 }
 0xb0b   : > { %v5234_v12 = vadd.f32 %v5233_v46, %v5232_v7  ;;  %v5314_v39 = vrot.slane %v5313_v14, 2 }
 0xb0d   : > { %v5235_v30 = vrot.slane %v5234_v12, 1  ;;  %v5315_v42 = vadd.f32 %v5314_v39, %v5313_v14 }
 0xb0f   : > { %v5236_v38 = vadd.f32 %v5235_v30, %v5234_v12  ;;  %v5316_v2 = vrot.slane %v5315_v42, 1 }
 0xb11   : > { %v11450_v28 = vmul.f32 0.0051020407, %v5236_v38  ;;  %v5317_v29 = vadd.f32 %v5316_v2, %v5315_v42 }
 0xb13   : > { %v5318_v53 = vmul.f32 0.0051020407, %v5317_v29  ;;  %v5319_v1 = vmul.f32 %v11450_v28, %v11450_v28  ;;  %v5321_v40 = vsub.f32 %v11251_v54, %v11450_v28  ;;  %v5322_v58 = vsub.f32 %v11249_v11, %v11450_v28 }
 0xb14   : > { %v5323_v21 = vsub.f32 %v11253_v36, %v11450_v28  ;;  %v5324_v3 = vsub.f32 %v11265_v24, %v11450_v28  ;;  %v5325_v13 = vsub.f32 %v11272_v8, %v11450_v28  ;;  %v5326_v52 = vsub.f32 %v11284_v60, %v11450_v28 }
 0xb15   : > { %v5320_v26 = vsub.f32 %v5318_v53, %v5319_v1  ;;  %v5327_v9 = vsub.f32 %v11289_v35, %v11450_v28  ;;  %v5328_v25 = vsub.f32 %v11300_v37, %v11450_v28  ;;  %v5329_v48 = vsub.f32 %v11305_v43, %v11450_v28 }
 0xb16   : > { %v5330_v7 = vsub.f32 %v11316_v33, %v11450_v28  ;;  %v5331_v12 = vsub.f32 %v11321_v5, %v11450_v28  ;;  %v5332_v39 = vsub.f32 %v11332_v23, %v11450_v28  ;;  %v5333_v2 = vsub.f32 %v11337_v15, %v11450_v28 }
 0xb17   : > { %v5346_v61 = vadd.f32 1e-05, %v5320_v26  ;;  %v5334_v29 = vsub.f32 %v11351_v27, %v11450_v28 }
 0xb19   : > { %8628 = vrsqrt.f32 %v5346_v61  ;;  %v5335_v61 = vsub.f32 %v11357_v31, %v11450_v28 }
 0xb23   : > { %v11458_v16 = vpop.eup %8628 }
 0xb24   : > { %v5348_v4 = vmul.f32 %v11458_v16, %v5321_v40  ;;  %v5349_v50 = vmul.f32 %v11458_v16, %v5322_v58  ;;  %v5350_v45 = vmul.f32 %v11458_v16, %v5323_v21  ;;  %v5351_v0 = vmul.f32 %v11458_v16, %v5324_v3 }
 0xb25   : > { %v5352_v49 = vmul.f32 %v11458_v16, %v5325_v13  ;;  %v5353_v34 = vmul.f32 %v11458_v16, %v5326_v52  ;;  %v5354_v41 = vmul.f32 %v11458_v16, %v5327_v9  ;;  %v5355_v19 = vmul.f32 %v11458_v16, %v5328_v25 }
 0xb26   : > { %v5373_v22 = vpack.c.bf16 %v5349_v50, %v5348_v4  ;;  %v5374_v62 = vpack.c.bf16 %v5351_v0, %v5350_v45  ;;  %v5356_v46 = vmul.f32 %v11458_v16, %v5329_v48  ;;  %v5357_v14 = vmul.f32 %v11458_v16, %v5330_v7 }
 0xb27   : > { %v5375_v6 = vpack.c.bf16 %v5353_v34, %v5352_v49  ;;  %v5376_v51 = vpack.c.bf16 %v5355_v19, %v5354_v41  ;;  %v5358_v42 = vmul.f32 %v11458_v16, %v5331_v12  ;;  %v5359_v38 = vmul.f32 %v11458_v16, %v5332_v39 }
 0xb28   : > { %5600 = vmatpush1.bf16.msra.mxu0 %v5373_v22  ;;  %v5377_v30 = vpack.c.bf16 %v5357_v14, %v5356_v46  ;;  %v5360_v1 = vmul.f32 %v11458_v16, %v5333_v2  ;;  %v5361_v26 = vmul.f32 %v11458_v16, %v5334_v29  ;;  %v5336_v40 = vsub.f32 %v11368_v47, %v11450_v28  ;;  %v8562_v2 = vld [vmem:[%s11902_s5 + $0x194] ss:$8 sps:$4 sm:$0xff]   ;;  %v8565_v29 = vld [vmem:[%s11902_s5 + $0x1a4] ss:$8 sps:$4 sm:$0xff]  }
 0xb29   : > { %5601 = vmatprep.subr.bf16.mxu0 %v11940_v18  ;;  %v5378_v53 = vpack.c.bf16 %v5359_v38, %v5358_v42  ;;  %v5362_v4 = vmul.f32 %v11458_v16, %v5335_v61  ;;  %v5337_v21 = vsub.f32 %v11373_v57, %v11450_v28  ;;  %v5338_v3 = vsub.f32 %v11383_v44, %v11450_v28  ;;  %v8571_v61 = vld [vmem:[%s11902_s5 + $0x1c4] ss:$8 sps:$4 sm:$0xff]  }
 0xb2a   : > { %v5379_v58 = vpack.c.bf16 %v5361_v26, %v5360_v1  ;;  %v5363_v50 = vmul.f32 %v11458_v16, %v5336_v40  ;;  %v5339_v13 = vsub.f32 %v11389_v56, %v11450_v28  ;;  %v5340_v52 = vsub.f32 %v11399_v59, %v11450_v28  ;;  %v8568_v1 = vld [vmem:[%s11902_s5 + $0x1b4] ss:$8 sps:$4 sm:$0xff]   ;;  %v8570_v26 = vld [vmem:[%s11902_s5 + $0x1b0] ss:$8 sps:$4 sm:$0xff]   ;;  %v8573_v40 = vld [vmem:[%s11902_s5 + $0x1c0] ss:$8 sps:$4 sm:$0xff]  }
 0xb2b   : > { %v5364_v45 = vmul.f32 %v11458_v16, %v5337_v21  ;;  %v5365_v0 = vmul.f32 %v11458_v16, %v5338_v3  ;;  %v5341_v9 = vsub.f32 %v11408_v63, %v11450_v28  ;;  %v5342_v25 = vsub.f32 %v11415_v17, %v11450_v28  ;;  %v8579_v21 = vld [vmem:[%s11902_s5 + $0x1e0] ss:$8 sps:$4 sm:$0xff]   ;;  %v8580_v3 = vld [vmem:[%s11902_s5 + $0x1f4] ss:$8 sps:$4 sm:$0xff]  }
 0xb2c   : > { %5602 = vmatpush1.bf16.msra.mxu0 %v5374_v62  ;;  %v5380_v22 = vpack.c.bf16 %v5363_v50, %v5362_v4  ;;  %v5366_v49 = vmul.f32 %v11458_v16, %v5339_v13  ;;  %v5367_v34 = vmul.f32 %v11458_v16, %v5340_v52  ;;  %v5343_v48 = vsub.f32 %v11426_v32, %v11450_v28  ;;  %v8576_v4 = vld [vmem:[%s11902_s5 + $0x1d0] ss:$8 sps:$4 sm:$0xff]   ;;  %v8577_v50 = vld [vmem:[%s11902_s5 + $0x1e4] ss:$8 sps:$4 sm:$0xff]  }
 0xb2d   : > { %5603 = vmatprep.subr.bf16.mxu0 %v11940_v18  ;;  %v5381_v62 = vpack.c.bf16 %v5365_v0, %v5364_v45  ;;  %v5368_v41 = vmul.f32 %v11458_v16, %v5341_v9  ;;  %v5369_v19 = vmul.f32 %v11458_v16, %v5342_v25  ;;  %v5344_v7 = vsub.f32 %v11434_v55, %v11450_v28  ;;  %v5423_v45 = vpop.permute.xlu0 %5422 }
 0xb2e   : > { %v5370_v14 = vmul.f32 %v11458_v16, %v5343_v48 }
 0xb2f   : > { %v5383_v46 = vpack.c.bf16 %v5369_v19, %v5368_v41  ;;  %v5371_v12 = vmul.f32 %v11458_v16, %v5344_v7 }
 0xb30   : > { %5604 = vmatpush1.bf16.msra.mxu0 %v5375_v6  ;;  %v5382_v6 = vpack.c.bf16 %v5367_v34, %v5366_v49 }
 0xb31   : > { %5605 = vmatprep.subr.bf16.mxu0 %v11940_v18  ;;  %v5433_v19 = vpop.permute.xlu0 %5432 }
 0xb34   : > { %5606 = vmatpush1.bf16.msra.mxu0 %v5376_v51  ;;  %v5345_v51 = vsub.f32 %v11443_v10, %v11450_v28  ;;  %v8559_v28 = vld [vmem:[%s11902_s5 + $0x180] ss:$8 sps:$4 sm:$0xff]  }
 0xb35   : > { %5607 = vmatprep.subr.bf16.mxu0 %v11940_v18 }
 0xb36   : > { %v5372_v39 = vmul.f32 %v11458_v16, %v5345_v51  ;;  %v8564_v16 = vld [vmem:[%s11902_s5 + $0x190] ss:$8 sps:$4 sm:$0xff]  }
 0xb38   : > { %5608 = vmatpush1.bf16.msra.mxu0 %v5377_v30  ;;  %v5384_v30 = vpack.c.bf16 %v5371_v12, %v5370_v14  ;;  %v5385_v42 = vpack.c.bf16 %v5372_v39, %v5372_v39 }
 0xb39   : > { %5609 = vmatprep.subr.bf16.mxu0 %v11940_v18 }
 0xb3a   : > { %v5597_v38 = vsel %vm926_vm0, %v5385_v42, 0  ;;  %vm6343_vm0 = vcmask 523264  }
 0xb3c   : > { %5610 = vmatpush1.bf16.msra.mxu0 %v5378_v53  ;;  %v8567_v53 = vld [vmem:[%s11902_s5 + $0x1a0] ss:$8 sps:$4 sm:$0xff]  }
 0xb3d   : > { %5611 = vmatprep.subr.bf16.mxu0 %v11940_v18 }
 0xb40   : > { %5612 = vmatpush1.bf16.msra.mxu0 %v5379_v58  ;;  %v8574_v58 = vld [vmem:[%s11902_s5 + $0x1d4] ss:$8 sps:$4 sm:$0xff]  }
 0xb41   : > { %5613 = vmatprep.subr.bf16.mxu0 %v11940_v18 }
 0xb44   : > { %5614 = vmatpush1.bf16.msra.mxu0 %v5380_v22  ;;  %v8582_v22 = vld [vmem:[%s11902_s5 + $0x1f0] ss:$8 sps:$4 sm:$0xff]  }
 0xb45   : > { %5615 = vmatprep.subr.bf16.mxu0 %v11940_v18 }
 0xb48   : > { %5616 = vmatpush1.bf16.msra.mxu0 %v5381_v62  ;;  %v5428_v62 = vpop.permute.xlu1 %5427 }
 0xb49   : > { %5617 = vmatprep.subr.bf16.mxu0 %v11940_v18 }
 0xb4c   : > { %5618 = vmatpush1.bf16.msra.mxu0 %v5382_v6 }
 0xb4d   : > { %5619 = vmatprep.subr.bf16.mxu0 %v11940_v18 }
 0xb50   : > { %5620 = vmatpush1.bf16.msra.mxu0 %v5383_v46  ;;  %v5438_v46 = vpop.permute.xlu1 %5437 }
 0xb51   : > { %5621 = vmatprep.subr.bf16.mxu0 %v11940_v18 }
 0xb54   : > { %5622 = vmatpush1.bf16.msra.mxu0 %v5384_v30 }
 0xb55   : > { %5623 = vmatprep.subr.bf16.mxu0 %v11940_v18 }
 0xb58   : > { %5624 = vmatpush1.bf16.msra.mxu0 %v5597_v38 }
 0xb59   : > { %8230 = vmatprep.subr.bf16.mxu0 %v11939_v20 }
 0xb5b   : > { %5632 = vmatmul.mubr.bf16.vlgmr.msra.gmra.mrb[180].mxu0 %v8559_v28  ;;  %v5443_v28 = vpop.permute.xlu0 %5442 }
 0xb5c   : > { %7506 = vmatprep.mubr.msk.bf16.mxu0 %vm2642_vm10, %v8562_v2 }
 0xb63   : > { %5640 = vmatmul.mubr.bf16.gmra.mrb[184].mxu0 %v8564_v16 }
 0xb64   : > { %7507 = vmatprep.mubr.msk.bf16.mxu0 %vm2642_vm10, %v8565_v29 }
 0xb6b   : > { %5648 = vmatmul.mubr.bf16.gmra.mrb[188].mxu0 %v8567_v53  ;;  %v5448_v53 = vpop.permute.xlu1 %5447 }
 0xb6c   : > { %7508 = vmatprep.mubr.msk.bf16.mxu0 %vm2642_vm10, %v8568_v1 }
 0xb73   : > { %5656 = vmatmul.mubr.bf16.gmra.mrb[192].mxu0 %v8570_v26 }
 0xb74   : > { %7509 = vmatprep.mubr.msk.bf16.mxu0 %vm2642_vm10, %v8571_v61 }
 0xb7b   : > { %5664 = vmatmul.mubr.bf16.gmra.mrb[196].mxu0 %v8573_v40 }
 0xb7c   : > { %7510 = vmatprep.mubr.msk.bf16.mxu0 %vm2642_vm10, %v8574_v58 }
 0xb83   : > { %5672 = vmatmul.mubr.bf16.gmra.mrb[200].mxu0 %v8576_v4 }
 0xb84   : > { %7511 = vmatprep.mubr.msk.bf16.mxu0 %vm2642_vm10, %v8577_v50  ;;  %v5453_v50 = vpop.permute.xlu0 %5452 }
 0xb8b   : > { %5680 = vmatmul.mubr.bf16.gmra.mrb[204].mxu0 %v8579_v21 }
 0xb8c   : > { %7512 = vmatprep.mubr.msk.bf16.mxu0 %vm2642_vm10, %v8580_v3 }
 0xb93   : > { %5688 = vmatmul.mubr.bf16.gmra.mrb[208].mxu0 %v8582_v22 }
 0xb94   : > { %8246 = vmatprep.mubr.msk.bf16.mxu0 %vm8679_vm13, %v11939_v20 }
 0xc2e   : > { %v5633_v0 = vpop.f32.mrb[180].mxu0 }
 0xc2f   : > { %v5634_v13 = vadd.f32 %v5633_v0, %v5423_v45  ;;  %v5635_v52 = vpop.f32.mrb[181].mxu0  ;;  %v5458_v45 = vpop.permute.xlu1 %5457 }
 0xc30   : > { %v5636_v49 = vpop.f32.mrb[182].mxu0 }
 0xc31   : > { %v5637_v34 = vadd.f32 %v5636_v49, %v5428_v62  ;;  %v5638_v9 = vpop.f32.mrb[183].mxu0  ;;  %v5696_v25 = vmax.f32 %v5634_v13, 0.0 }
 0xc32   : > { %v5463_v9 = vpop.permute.xlu0 %5462 }
 0xc33   : > { %v5697_v6 = vmax.f32 %v5637_v34, 0.0 }
 0xc35   : > { %v5712_v41 = vpack.c.bf16 %v5697_v6, %v5696_v25 }
 0xc36   : > { %v5641_v48 = vpop.f32.mrb[184].mxu0 }
 0xc37   : > { %v5642_v7 = vadd.f32 %v5641_v48, %v5433_v19  ;;  %v5643_v51 = vpop.f32.mrb[185].mxu0  ;;  %8231 = vmatpush3.bf16.msra.mxu0 %v5712_v41  ;;  %v5468_v19 = vpop.permute.xlu1 %5467 }
 0xc38   : > { %v5644_v14 = vpop.f32.mrb[186].mxu0  ;;  %8232 = vmatprep.subr.bf16.mxu0 %v11939_v20 }
 0xc39   : > { %v5645_v12 = vadd.f32 %v5644_v14, %v5438_v46  ;;  %v5646_v39 = vpop.f32.mrb[187].mxu0  ;;  %v5698_v30 = vmax.f32 %v5642_v7, 0.0 }
 0xc3a   : > { %v5473_v39 = vpop.permute.xlu0 %5472 }
 0xc3b   : > { %v5699_v42 = vmax.f32 %v5645_v12, 0.0 }
 0xc3d   : > { %v5713_v38 = vpack.c.bf16 %v5699_v42, %v5698_v30 }
 0xc3e   : > { %v5649_v2 = vpop.f32.mrb[188].mxu0 }
 0xc3f   : > { %v5650_v16 = vadd.f32 %v5649_v2, %v5443_v28  ;;  %v5651_v29 = vpop.f32.mrb[189].mxu0  ;;  %8233 = vmatpush3.bf16.msra.mxu0 %v5713_v38  ;;  %v5478_v28 = vpop.permute.xlu1 %5477 }
 0xc40   : > { %v5652_v1 = vpop.f32.mrb[190].mxu0  ;;  %8234 = vmatprep.subr.bf16.mxu0 %v11939_v20 }
 0xc41   : > { %v5653_v26 = vadd.f32 %v5652_v1, %v5448_v53  ;;  %v5654_v61 = vpop.f32.mrb[191].mxu0  ;;  %v5700_v40 = vmax.f32 %v5650_v16, 0.0 }
 0xc42   : > { %v5483_v61 = vpop.permute.xlu0 %5482 }
 0xc43   : > { %v5701_v58 = vmax.f32 %v5653_v26, 0.0 }
 0xc45   : > { %v5714_v4 = vpack.c.bf16 %v5701_v58, %v5700_v40 }
 0xc46   : > { %v5657_v21 = vpop.f32.mrb[192].mxu0 }
 0xc47   : > { %v5658_v3 = vadd.f32 %v5657_v21, %v5453_v50  ;;  %v5659_v22 = vpop.f32.mrb[193].mxu0  ;;  %8235 = vmatpush3.bf16.msra.mxu0 %v5714_v4  ;;  %v5488_v50 = vpop.permute.xlu1 %5487 }
 0xc48   : > { %v5660_v0 = vpop.f32.mrb[194].mxu0  ;;  %8236 = vmatprep.subr.bf16.mxu0 %v11939_v20 }
 0xc49   : > { %v5661_v13 = vadd.f32 %v5660_v0, %v5458_v45  ;;  %v5662_v52 = vpop.f32.mrb[195].mxu0  ;;  %v5702_v62 = vmax.f32 %v5658_v3, 0.0 }
 0xc4a   : > { %v5493_v52 = vpop.permute.xlu0 %5492 }
 0xc4b   : > { %v5703_v49 = vmax.f32 %v5661_v13, 0.0 }
 0xc4d   : > { %v5715_v34 = vpack.c.bf16 %v5703_v49, %v5702_v62 }
 0xc4e   : > { %v5665_v25 = vpop.f32.mrb[196].mxu0 }
 0xc4f   : > { %v5666_v6 = vadd.f32 %v5665_v25, %v5463_v9  ;;  %v5667_v41 = vpop.f32.mrb[197].mxu0  ;;  %8237 = vmatpush3.bf16.msra.mxu0 %v5715_v34  ;;  %v5498_v9 = vpop.permute.xlu1 %5497 }
 0xc50   : > { %v5668_v48 = vpop.f32.mrb[198].mxu0  ;;  %8238 = vmatprep.subr.bf16.mxu0 %v11939_v20 }
 0xc51   : > { %v5669_v7 = vadd.f32 %v5668_v48, %v5468_v19  ;;  %v5670_v51 = vpop.f32.mrb[199].mxu0  ;;  %v5704_v46 = vmax.f32 %v5666_v6, 0.0 }
 0xc52   : > { %v8583_v51 = vld [vmem:[%s11904_s7 + $0x12c] sm:$0xff]  }
 0xc53   : > { %v5705_v14 = vmax.f32 %v5669_v7, 0.0 }
 0xc55   : > { %v5716_v12 = vpack.c.bf16 %v5705_v14, %v5704_v46  ;;  %v8584_v46 = vld [vmem:[%s11904_s7 + $0x134] sm:$0xff]   ;;  %v8585_v14 = vld [vmem:[%s11904_s7 + $0x13c] sm:$0xff]  }
 0xc56   : > { %v5673_v30 = vpop.f32.mrb[200].mxu0 }
 0xc57   : > { %v5674_v42 = vadd.f32 %v5673_v30, %v5473_v39  ;;  %v5675_v38 = vpop.f32.mrb[201].mxu0  ;;  %8239 = vmatpush3.bf16.msra.mxu0 %v5716_v12  ;;  %v8586_v12 = vld [vmem:[%s11904_s7 + $0x144] sm:$0xff]   ;;  %v8587_v39 = vld [vmem:[%s11904_s7 + $0x14c] sm:$0xff]   ;;  %v8588_v30 = vld [vmem:[%s11904_s7 + $0x154] sm:$0xff]  }
 0xc58   : > { %v5676_v2 = vpop.f32.mrb[202].mxu0  ;;  %8240 = vmatprep.subr.bf16.mxu0 %v11939_v20  ;;  %v8590_v38 = vld [vmem:[%s11904_s7 + $0x164] sm:$0xff]  }
 0xc59   : > { %v5677_v16 = vadd.f32 %v5676_v2, %v5478_v28  ;;  %v5678_v29 = vpop.f32.mrb[203].mxu0  ;;  %v5706_v53 = vmax.f32 %v5674_v42, 0.0  ;;  %v8589_v42 = vld [vmem:[%s11904_s7 + $0x15c] sm:$0xff]   ;;  %v8591_v28 = vld [vmem:[%s11904_s7 + $0x16c] sm:$0xff]   ;;  %v8592_v2 = vld [vmem:[%s11904_s7 + $0x174] sm:$0xff]  }
 0xc5a   : > { %v8594_v29 = vld [vmem:[%s11904_s7 + $0x184] sm:$0xff]  }
 0xc5b   : > { %v5707_v1 = vmax.f32 %v5677_v16, 0.0  ;;  %v8593_v16 = vld [vmem:[%s11904_s7 + $0x17c] sm:$0xff]  }
 0xc5d   : > { %v5717_v26 = vpack.c.bf16 %v5707_v1, %v5706_v53  ;;  %v8595_v53 = vld [vmem:[%s11904_s7 + $0x18c] ss:$0 sps:$4 sm:$0x33]  }
 0xc5e   : > { %v5681_v40 = vpop.f32.mrb[204].mxu0 }
 0xc5f   : > { %v5682_v58 = vadd.f32 %v5681_v40, %v5483_v61  ;;  %v5683_v4 = vpop.f32.mrb[205].mxu0  ;;  %8241 = vmatpush3.bf16.msra.mxu0 %v5717_v26 }
 0xc60   : > { %v5684_v21 = vpop.f32.mrb[206].mxu0  ;;  %8242 = vmatprep.subr.bf16.mxu0 %v11939_v20  ;;  %v6032_v4 = vpop.permute.xlu1 %6031 }
 0xc61   : > { %v5685_v3 = vadd.f32 %v5684_v21, %v5488_v50  ;;  %v5686_v22 = vpop.f32.mrb[207].mxu0  ;;  %v5708_v45 = vmax.f32 %v5682_v58, 0.0  ;;  %v6012_v58 = vpop.permute.xlu0 %6011 }
 0xc63   : > { %v5709_v0 = vmax.f32 %v5685_v3, 0.0 }
 0xc65   : > { %v5718_v13 = vpack.c.bf16 %v5709_v0, %v5708_v45  ;;  %v6017_v0 = vpop.permute.xlu0 %6016 }
 0xc66   : > { %v5689_v62 = vpop.f32.mrb[208].mxu0 }
 0xc67   : > { %v5690_v49 = vadd.f32 %v5689_v62, %v5493_v52  ;;  %v5691_v34 = vpop.f32.mrb[209].mxu0  ;;  %8243 = vmatpush3.bf16.msra.mxu0 %v5718_v13  ;;  %v6022_v13 = vpop.permute.xlu1 %6021 }
 0xc68   : > { %v5692_v25 = vpop.f32.mrb[210].mxu0  ;;  %8244 = vmatprep.subr.bf16.mxu0 %v11939_v20 }
 0xc69   : > { %v5693_v6 = vadd.f32 %v5692_v25, %v5498_v9  ;;  %v5694_v41 = vpop.f32.mrb[211].mxu0  ;;  %v5710_v19 = vmax.f32 %v5690_v49, 0.0 }
 0xc6b   : > { %v5711_v48 = vmax.f32 %v5693_v6, 0.0 }
 0xc6d   : > { %v5719_v7 = vpack.c.bf16 %v5711_v48, %v5710_v19 }
 0xc6f   : > { %8245 = vmatpush3.bf16.msra.mxu0 %v5719_v7  ;;  %v6027_v7 = vpop.permute.xlu0 %6026 }
 0xc70   : > { %8366 = vmatprep.subr.bf16.mxu0 %v11939_v20 }
 0xc72   : > { %8247 = vmatmul.mubr.bf16.vlgmr.msra.gmra.mrb[212].mxu0 %v8583_v51  ;;  %v6037_v51 = vpop.permute.xlu1 %6036 }
 0xc73   : > { %8250 = vmatprep.mubr.msk.bf16.mxu0 %vm8679_vm13, %v11939_v20 }
 0xc7a   : > { %8251 = vmatmul.mubr.bf16.gmra.mrb[216].mxu0 %v8584_v46 }
 0xc7b   : > { %8254 = vmatprep.mubr.msk.bf16.mxu0 %vm8679_vm13, %v11939_v20 }
 0xc82   : > { %8255 = vmatmul.mubr.bf16.gmra.mrb[220].mxu0 %v8585_v14 }
 0xc83   : > { %8258 = vmatprep.mubr.msk.bf16.mxu0 %vm8679_vm13, %v11939_v20 }
 0xc8a   : > { %8259 = vmatmul.mubr.bf16.gmra.mrb[224].mxu0 %v8586_v12 }
 0xc8b   : > { %8262 = vmatprep.mubr.msk.bf16.mxu0 %vm8679_vm13, %v11939_v20 }
 0xc92   : > { %8263 = vmatmul.mubr.bf16.gmra.mrb[228].mxu0 %v8587_v39 }
 0xc93   : > { %8266 = vmatprep.mubr.msk.bf16.mxu0 %vm8679_vm13, %v11939_v20 }
 0xc9a   : > { %8267 = vmatmul.mubr.bf16.gmra.mrb[232].mxu0 %v8588_v30 }
 0xc9b   : > { %8270 = vmatprep.mubr.msk.bf16.mxu0 %vm8679_vm13, %v11939_v20 }
 0xca2   : > { %8271 = vmatmul.mubr.bf16.gmra.mrb[236].mxu0 %v8589_v42 }
 0xca3   : > { %8274 = vmatprep.mubr.msk.bf16.mxu0 %vm8679_vm13, %v11939_v20 }
 0xcaa   : > { %8275 = vmatmul.mubr.bf16.gmra.mrb[240].mxu0 %v8590_v38 }
 0xcab   : > { %8278 = vmatprep.mubr.msk.bf16.mxu0 %vm8679_vm13, %v11939_v20 }
 0xcb2   : > { %8279 = vmatmul.mubr.bf16.gmra.mrb[244].mxu0 %v8591_v28 }
 0xcb3   : > { %8282 = vmatprep.mubr.msk.bf16.mxu0 %vm8679_vm13, %v11939_v20 }
 0xcba   : > { %8283 = vmatmul.mubr.bf16.gmra.mrb[248].mxu0 %v8592_v2 }
 0xcbb   : > { %8286 = vmatprep.mubr.msk.bf16.mxu0 %vm8679_vm13, %v11939_v20 }
 0xcc2   : > { %8287 = vmatmul.mubr.bf16.gmra.mrb[252].mxu0 %v8593_v16  ;;  %v6042_v16 = vpop.permute.xlu0 %6041 }
 0xcc3   : > { %8290 = vmatprep.mubr.msk.bf16.mxu0 %vm8679_vm13, %v11939_v20 }
 0xcca   : > { %8291 = vmatmul.mubr.bf16.gmra.mrb[0].mxu0 %v8594_v29 }
 0xccb   : > { %8294 = vmatprep.mubr.msk.bf16.mxu0 %vm8679_vm13, %v11939_v20 }
 0xcd2   : > { %8295 = vmatmul.mubr.bf16.gmra.mrb[4].mxu0 %v8595_v53 }
 0xcd3   : > { %8374 = vmatprep.mubr.msk.bf16.mxu0 %vm8679_vm13, %v11939_v20 }
 0xd45   : > { %v5856_v1 = vpop.f32.mrb[212].mxu0 }
 0xd46   : > { %v8248_v26 = vpop.f32.mrb[213].mxu0  ;;  %v5958_v45 = vadd.f32 %v5856_v1, %v11251_v54 }
 0xd47   : > { %v5859_v61 = vpop.f32.mrb[214].mxu0 }
 0xd48   : > { %v8249_v40 = vpop.f32.mrb[215].mxu0  ;;  %v5959_v52 = vadd.f32 %v5859_v61, %v11249_v11  ;;  %v6134_v49 = vadd.f32 %v6012_v58, %v5958_v45  ;;  %v6047_v61 = vpop.permute.xlu1 %6046 }
 0xd4a   : > { %v6135_v6 = vadd.f32 %v6017_v0, %v5959_v52  ;;  %v6159_v46 = vsel %vm2252_vm8, %v6134_v49, -inf  ;;  %v6052_v0 = vpop.permute.xlu0 %6051 }
 0xd4c   : > { %v6160_v39 = vsel %vm2252_vm8, %v6135_v6, -inf  ;;  %v6057_v49 = vpop.permute.xlu1 %6056 }
 0xd4d   : > { %v5864_v50 = vpop.f32.mrb[216].mxu0 }
 0xd4e   : > { %v8252_v21 = vpop.f32.mrb[217].mxu0  ;;  %v5960_v54 = vadd.f32 %v5864_v50, %v11253_v36 }
 0xd4f   : > { %v5867_v3 = vpop.f32.mrb[218].mxu0 }
 0xd50   : > { %v8253_v22 = vpop.f32.mrb[219].mxu0 }
 0xd55   : > { %v5872_v62 = vpop.f32.mrb[220].mxu0 }
 0xd56   : > { %v5962_v34 = vadd.f32 %v5872_v62, %v11272_v8  ;;  %v8256_v9 = vpop.f32.mrb[221].mxu0  ;;  %v5961_v8 = vadd.f32 %v5867_v3, %v11265_v24 }
 0xd57   : > { %v5875_v25 = vpop.f32.mrb[222].mxu0 }
 0xd58   : > { %v6138_v41 = vadd.f32 %v6032_v4, %v5962_v34  ;;  %v5963_v19 = vadd.f32 %v5875_v25, %v11284_v60  ;;  %v8257_v48 = vpop.f32.mrb[223].mxu0  ;;  %v6136_v60 = vadd.f32 %v6022_v13, %v5960_v54  ;;  %v6137_v53 = vadd.f32 %v6027_v7, %v5961_v8 }
 0xd5a   : > { %v6163_v14 = vsel %vm2252_vm8, %v6138_v41, -inf  ;;  %v6139_v11 = vadd.f32 %v6037_v51, %v5963_v19  ;;  %v6161_v40 = vsel %vm2252_vm8, %v6136_v60, -inf  ;;  %v6162_v50 = vsel %vm2252_vm8, %v6137_v53, -inf }
 0xd5b   : > { %v6164_v12 = vmax.f32 %v6159_v46, %v6163_v14 }
 0xd5c   : > { %v6165_v30 = vsel %vm2252_vm8, %v6139_v11, -inf }
 0xd5d   : > { %v6166_v42 = vmax.f32 %v6160_v39, %v6165_v30  ;;  %v5880_v38 = vpop.f32.mrb[224].mxu0 }
 0xd5e   : > { %v5964_v28 = vadd.f32 %v5880_v38, %v11289_v35  ;;  %v8260_v2 = vpop.f32.mrb[225].mxu0 }
 0xd5f   : > { %v5883_v29 = vpop.f32.mrb[226].mxu0 }
 0xd60   : > { %v6140_v36 = vadd.f32 %v6042_v16, %v5964_v28  ;;  %v5965_v1 = vadd.f32 %v5883_v29, %v11300_v37  ;;  %v8261_v26 = vpop.f32.mrb[227].mxu0 }
 0xd62   : > { %v6167_v24 = vsel %vm2252_vm8, %v6140_v36, -inf  ;;  %v6141_v58 = vadd.f32 %v6047_v61, %v5965_v1 }
 0xd63   : > { %v6168_v4 = vmax.f32 %v6161_v40, %v6167_v24 }
 0xd64   : > { %v6169_v21 = vsel %vm2252_vm8, %v6141_v58, -inf }
 0xd65   : > { %v6170_v35 = vmax.f32 %v6162_v50, %v6169_v21  ;;  %v5888_v3 = vpop.f32.mrb[228].mxu0 }
 0xd66   : > { %v5966_v22 = vadd.f32 %v5888_v3, %v11305_v43  ;;  %v8264_v45 = vpop.f32.mrb[229].mxu0  ;;  %v6062_v43 = vpop.permute.xlu0 %6061 }
 0xd67   : > { %v5891_v13 = vpop.f32.mrb[230].mxu0 }
 0xd68   : > { %v6142_v37 = vadd.f32 %v6052_v0, %v5966_v22  ;;  %v5967_v52 = vadd.f32 %v5891_v13, %v11316_v33  ;;  %v8265_v62 = vpop.f32.mrb[231].mxu0  ;;  %v6067_v33 = vpop.permute.xlu1 %6066 }
 0xd6a   : > { %v6171_v34 = vsel %vm2252_vm8, %v6142_v37, -inf  ;;  %v6143_v9 = vadd.f32 %v6057_v49, %v5967_v52 }
 0xd6b   : > { %v6172_v25 = vmax.f32 %v6164_v12, %v6171_v34 }
 0xd6c   : > { %v6173_v6 = vsel %vm2252_vm8, %v6143_v9, -inf }
 0xd6d   : > { %v6174_v41 = vmax.f32 %v6166_v42, %v6173_v6  ;;  %v5896_v19 = vpop.f32.mrb[232].mxu0 }
 0xd6e   : > { %v5968_v48 = vadd.f32 %v5896_v19, %v11321_v5  ;;  %v8268_v7 = vpop.f32.mrb[233].mxu0  ;;  %v6072_v5 = vpop.permute.xlu0 %6071 }
 0xd6f   : > { %v5899_v51 = vpop.f32.mrb[234].mxu0 }
 0xd70   : > { %v6144_v46 = vadd.f32 %v6062_v43, %v5968_v48  ;;  %v5969_v54 = vadd.f32 %v5899_v51, %v11332_v23  ;;  %v8269_v14 = vpop.f32.mrb[235].mxu0  ;;  %v6077_v23 = vpop.permute.xlu1 %6076 }
 0xd72   : > { %v6175_v11 = vsel %vm2252_vm8, %v6144_v46, -inf  ;;  %v6145_v39 = vadd.f32 %v6067_v33, %v5969_v54 }
 0xd73   : > { %v6176_v8 = vmax.f32 %v6168_v4, %v6175_v11 }
 0xd74   : > { %v6177_v12 = vsel %vm2252_vm8, %v6145_v39, -inf }
 0xd75   : > { %v6178_v30 = vmax.f32 %v6170_v35, %v6177_v12  ;;  %v5904_v38 = vpop.f32.mrb[236].mxu0 }
 0xd76   : > { %v5970_v42 = vadd.f32 %v5904_v38, %v11337_v15  ;;  %v8272_v60 = vpop.f32.mrb[237].mxu0  ;;  %v6082_v15 = vpop.permute.xlu0 %6081 }
 0xd77   : > { %v5907_v28 = vpop.f32.mrb[238].mxu0 }
 0xd78   : > { %v6146_v2 = vadd.f32 %v6072_v5, %v5970_v42  ;;  %v5971_v16 = vadd.f32 %v5907_v28, %v11351_v27  ;;  %v8273_v29 = vpop.f32.mrb[239].mxu0  ;;  %v6087_v27 = vpop.permute.xlu1 %6086 }
 0xd7a   : > { %v6179_v53 = vsel %vm2252_vm8, %v6146_v2, -inf  ;;  %v6147_v36 = vadd.f32 %v6077_v23, %v5971_v16 }
 0xd7b   : > { %v6180_v1 = vmax.f32 %v6172_v25, %v6179_v53 }
 0xd7c   : > { %v6181_v26 = vsel %vm2252_vm8, %v6147_v36, -inf }
 0xd7d   : > { %v6182_v61 = vmax.f32 %v6174_v41, %v6181_v26  ;;  %v5912_v40 = vpop.f32.mrb[240].mxu0 }
 0xd7e   : > { %v5972_v24 = vadd.f32 %v5912_v40, %v11357_v31  ;;  %v8276_v58 = vpop.f32.mrb[241].mxu0  ;;  %v6092_v31 = vpop.permute.xlu0 %6091 }
 0xd7f   : > { %v5915_v4 = vpop.f32.mrb[242].mxu0 }
 0xd80   : > { %v6148_v50 = vadd.f32 %v6082_v15, %v5972_v24  ;;  %v5973_v21 = vadd.f32 %v5915_v4, %v11368_v47  ;;  %v8277_v35 = vpop.f32.mrb[243].mxu0  ;;  %v6097_v47 = vpop.permute.xlu1 %6096 }
 0xd82   : > { %v6183_v3 = vsel %vm2252_vm8, %v6148_v50, -inf  ;;  %v6149_v22 = vadd.f32 %v6087_v27, %v5973_v21 }
 0xd83   : > { %v6184_v45 = vmax.f32 %v6176_v8, %v6183_v3 }
 0xd84   : > { %v6185_v0 = vsel %vm2252_vm8, %v6149_v22, -inf }
 0xd85   : > { %v6186_v13 = vmax.f32 %v6178_v30, %v6185_v0  ;;  %v5920_v37 = vpop.f32.mrb[244].mxu0 }
 0xd86   : > { %v5974_v52 = vadd.f32 %v5920_v37, %v11373_v57  ;;  %v8280_v62 = vpop.f32.mrb[245].mxu0  ;;  %v6102_v57 = vpop.permute.xlu0 %6101 }
 0xd87   : > { %v5923_v49 = vpop.f32.mrb[246].mxu0 }
 0xd88   : > { %v6150_v34 = vadd.f32 %v6092_v31, %v5974_v52  ;;  %v5975_v9 = vadd.f32 %v5923_v49, %v11383_v44  ;;  %v8281_v25 = vpop.f32.mrb[247].mxu0  ;;  %v6107_v44 = vpop.permute.xlu1 %6106 }
 0xd8a   : > { %v6187_v6 = vsel %vm2252_vm8, %v6150_v34, -inf  ;;  %v6151_v41 = vadd.f32 %v6097_v47, %v5975_v9 }
 0xd8b   : > { %v6188_v19 = vmax.f32 %v6180_v1, %v6187_v6 }
 0xd8c   : > { %v6189_v48 = vsel %vm2252_vm8, %v6151_v41, -inf }
 0xd8d   : > { %v6190_v7 = vmax.f32 %v6182_v61, %v6189_v48  ;;  %v5928_v43 = vpop.f32.mrb[248].mxu0 }
 0xd8e   : > { %v5976_v51 = vadd.f32 %v5928_v43, %v11389_v56  ;;  %v8284_v46 = vpop.f32.mrb[249].mxu0  ;;  %v6112_v56 = vpop.permute.xlu0 %6111 }
 0xd8f   : > { %v5931_v54 = vpop.f32.mrb[250].mxu0 }
 0xd90   : > { %v6152_v14 = vadd.f32 %v6102_v57, %v5976_v51  ;;  %v5977_v33 = vadd.f32 %v5931_v54, %v11399_v59  ;;  %v8285_v11 = vpop.f32.mrb[251].mxu0  ;;  %v6117_v59 = vpop.permute.xlu1 %6116  ;;  %v8596_v54 = vld [vmem:[%s11906_s9] sm:$0xff]  }
 0xd91   : > { %8299 = vmatpush3.bf16.msra.mxu1 %v8596_v54 }
 0xd92   : > { %v6191_v39 = vsel %vm2252_vm8, %v6152_v14, -inf  ;;  %v6153_v8 = vadd.f32 %v6107_v44, %v5977_v33  ;;  %v8597_v14 = vld [vmem:[%s11906_s9 + $0x8] sm:$0xff]   ;;  %8300 = vmatprep.subr.bf16.mxu1 %v11939_v20 }
 0xd93   : > { %v6192_v12 = vmax.f32 %v6184_v45, %v6191_v39 }
 0xd94   : > { %v6193_v30 = vsel %vm2252_vm8, %v6153_v8, -inf }
 0xd95   : > { %v6194_v38 = vmax.f32 %v6186_v13, %v6193_v30  ;;  %v5936_v42 = vpop.f32.mrb[252].mxu0  ;;  %8301 = vmatpush3.bf16.msra.mxu1 %v8597_v14 }
 0xd96   : > { %v5978_v60 = vadd.f32 %v5936_v42, %v11408_v63  ;;  %v8288_v5 = vpop.f32.mrb[253].mxu0  ;;  %v6122_v63 = vpop.permute.xlu0 %6121  ;;  %8306 = vmatprep.subr.bf16.mxu1 %v11939_v20 }
 0xd97   : > { %v5939_v28 = vpop.f32.mrb[254].mxu0  ;;  %v8598_v5 = vld [vmem:[%s11908_s11] sm:$0xff]  }
 0xd98   : > { %v6154_v2 = vadd.f32 %v6112_v56, %v5978_v60  ;;  %v5979_v16 = vadd.f32 %v5939_v28, %v11415_v17  ;;  %v8289_v29 = vpop.f32.mrb[255].mxu0  ;;  %v6127_v17 = vpop.permute.xlu1 %6126  ;;  %v8599_v28 = vld [vmem:[%s11908_s11 + $0x8] sm:$0xff]  }
 0xd99   : > { %v7576_v29 = vld [vmem:[%s11907_s10] ss:$0 sm:$0xff] }
 0xd9a   : > { %v6195_v23 = vsel %vm2252_vm8, %v6154_v2, -inf  ;;  %v6155_v53 = vadd.f32 %v6117_v59, %v5979_v16  ;;  %v8600_v2 = vld [vmem:[%s11908_s11 + $0x10] sm:$0xff]   ;;  %v8601_v16 = vld [vmem:[%s11908_s11 + $0x18] sm:$0xff]  }
 0xd9b   : > { %v6196_v36 = vmax.f32 %v6188_v19, %v6195_v23 }
 0xd9c   : > { %v6197_v1 = vsel %vm2252_vm8, %v6155_v53, -inf }
 0xd9d   : > { %v6198_v26 = vmax.f32 %v6190_v7, %v6197_v1  ;;  %v5944_v61 = vpop.f32.mrb[0].mxu0 }
 0xd9e   : > { %v5980_v40 = vadd.f32 %v5944_v61, %v11426_v32  ;;  %v8292_v24 = vpop.f32.mrb[1].mxu0  ;;  %v6132_v32 = vpop.permute.xlu0 %6131 }
 0xd9f   : > { %v5947_v58 = vpop.f32.mrb[2].mxu0  ;;  %v7585_v24 = vld [vmem:[%s11909_s12] ss:$0 sm:$0xff] }
 0xda0   : > { %v6156_v15 = vadd.f32 %v6122_v63, %v5980_v40  ;;  %v5981_v4 = vadd.f32 %v5947_v58, %v11434_v55  ;;  %v8293_v50 = vpop.f32.mrb[3].mxu0 }
 0xda2   : > { %v6199_v21 = vsel %vm2252_vm8, %v6156_v15, -inf  ;;  %v6157_v35 = vadd.f32 %v6127_v17, %v5981_v4 }
 0xda3   : > { %v6200_v27 = vmax.f32 %v6192_v12, %v6199_v21 }
 0xda4   : > { %v6201_v3 = vsel %vm2252_vm8, %v6157_v35, -inf }
 0xda5   : > { %v6202_v22 = vmax.f32 %v6194_v38, %v6201_v3  ;;  %v5952_v45 = vpop.f32.mrb[4].mxu0  ;;  %v8603_v3 = vld [vmem:[%s11906_s9 + $0x18] sm:$0xff]  }
 0xda6   : > { %v5982_v0 = vadd.f32 %v5952_v45, %v11443_v10  ;;  %v8296_v13 = vpop.f32.mrb[5].mxu0 }
 0xda7   : > { %v6206_v37 = vmax.f32 %v6200_v27, %v6202_v22  ;;  %v5955_v52 = vpop.f32.mrb[6].mxu0  ;;  %v8602_v27 = vld [vmem:[%s11906_s9 + $0x10] sm:$0xff]  }
 0xda8   : > { %v6158_v62 = vadd.f32 %v6132_v32, %v5982_v0  ;;  %v8297_v31 = vpop.f32.mrb[7].mxu0 }
 0xdaa   : > { %v6203_v55 = vsel %vm2300_vm12, %v6158_v62, -inf }
 0xdab   : > { %v6204_v49 = vmax.f32 %v6196_v36, %v6203_v55 }
 0xdad   : > { %v6205_v34 = vmax.f32 %v6204_v49, %v6198_v26  ;;  %v8604_v49 = vld [vmem:[%s11908_s11 + $0x20] sm:$0xff]  }
 0xdaf   : > { %v6207_v9 = vmax.f32 %v6205_v34, %v6206_v37 }
 0xdb1   : > { %v6208_v25 = vrot.slane %v6207_v9, 4 }
 0xdb3   : > { %v6209_v47 = vmax.f32 %v6207_v9, %v6208_v25  ;;  %v8605_v9 = vld [vmem:[%s11908_s11 + $0x28] sm:$0xff]   ;;  %v8606_v25 = vld [vmem:[%s11908_s11 + $0x30] sm:$0xff]  }
 0xdb5   : > { %v6210_v6 = vrot.slane %v6209_v47, 2 }
 0xdb7   : > { %v6211_v41 = vmax.f32 %v6209_v47, %v6210_v6  ;;  %v8607_v47 = vld [vmem:[%s11908_s11 + $0x38] sm:$0xff]   ;;  %v7591_v6 = vld [vmem:[%s11907_s10 + $0x1] ss:$0 sm:$0xff] }
 0xdb9   : > { %v6212_v19 = vrot.slane %v6211_v41, 1 }
 0xdbb   : > { %v6213_v48 = vmax.f32 %v6211_v41, %v6212_v19 }
 0xdbd   : > { %6221 = vrot.lane.b32.xlu0 %v6213_v48, %s8677_s26  ;;  %6217 = vrot.lane.b32.xlu1 %v6213_v48, %s8680_s20  ;;  %6215 = vst.msk [vmem:[#allocation3] sm:$0x1] %vm6214_vm14, %v6213_v48 }
 0xe2f   : > { %v6222_v10 = vpop.permute.xlu0 %6221  ;;  %v6218_v7 = vpop.permute.xlu1 %6217 }
 0xe30   : > { %6224 = vst.msk [vmem:[#allocation3 + $0x2] sm:$0x1] %vm6214_vm14, %v6222_v10  ;;  %6220 = vst.msk [vmem:[#allocation3 + $0x1] sm:$0x1] %vm6214_vm14, %v6218_v7 }
 0xe37   : > { %v6225_v43 = vld [vmem:[#allocation3] sm:$0x7] }
 0xe38   : > { %v6227_v51 = vsel %vm6226_vm15, %v6225_v43, 0.0  ;;  %v6231_v46 = vmul.f32 %v6225_v43, %v6225_v43 }
 0xe39   : > { %6228 = vadd.xlane.f32.xlu1 %v6227_v51 }
 0xe3a   : > { %v6232_v57 = vsel %vm6226_vm15, %v6231_v46, 0.0 }
 0xe3b   : > { %6233 = vadd.xlane.f32.xlu0 %v6232_v57  ;;  %v7609_v57 = vld [vmem:[%s11909_s12 + $0x1] ss:$0 sm:$0xff] }
 0xec6   : > { %v6229_v33 = vpop.xlane.xlu1 %6228 }
 0xec7   : > { %v6230_v11 = vmul.f32 0.03125, %v6229_v33 }
 0xec8   : > { %v6234_v44 = vpop.xlane.xlu0 %6233 }
 0xec9   : > { %v6236_v39 = vmul.f32 %v6230_v11, %v6230_v11  ;;  %v6235_v8 = vmul.f32 0.03125, %v6234_v44  ;;  %v6238_v38 = vsub.f32 %v6225_v43, %v6230_v11 }
 0xecb   : > { %v6237_v12 = vsub.f32 %v6235_v8, %v6236_v39 }
 0xecd   : > { %v6239_v30 = vadd.f32 1e-05, %v6237_v12 }
 0xecf   : > { %8630 = vrsqrt.f32 %v6239_v30  ;;  %v8608_v30 = vld [vmem:[%s11906_s9 + $0x20] sm:$0xff]  }
 0xed9   : > { %v8631_v42 = vpop.eup %8630 }
 0xeda   : > { %v6241_v60 = vmul.f32 %v8631_v42, %v6238_v38  ;;  %v8609_v38 = vld [vmem:[%s11906_s9 + $0x28] sm:$0xff]  }
 0xedc   : > { %v6242_v56 = vpack.c.bf16 %v6241_v60, %v6241_v60 }
 0xede   : > { %8303 = vmatmul.mubr.msk.bf16.vlgmr.msra.gmra.mrb[224].mxu1 %vm1896_vm4, %v6242_v56 }
 0xedf   : > { %8307 = vmatpush3.bf16.msra.mxu1 %v8598_v5  ;;  %8314 = vmatprep.mubr.msk.bf16.mxu1 %vm8679_vm13, %v11939_v20 }
 0xee0   : > { %8308 = vmatprep.subr.bf16.mxu1 %v11939_v20 }
 0xee3   : > { %8309 = vmatpush3.bf16.msra.mxu1 %v8599_v28 }
 0xee4   : > { %8310 = vmatprep.subr.bf16.mxu1 %v11939_v20 }
 0xee7   : > { %8311 = vmatpush3.bf16.msra.mxu1 %v8600_v2 }
 0xee8   : > { %8312 = vmatprep.subr.bf16.mxu1 %v11939_v20 }
 0xeeb   : > { %8313 = vmatpush3.bf16.msra.mxu1 %v8601_v16 }
 0xeec   : > { %8318 = vmatprep.subr.bf16.mxu1 %v11939_v20 }
 0xfb1   : > { %v6303_v59 = vpop.f32.mrb[224].mxu1 }
 0xfb2   : > { %v6304_v23 = vadd.f32 %v7576_v29, %v6303_v59  ;;  %v8304_v53 = vpop.f32.mrb[225].mxu1 }
 0xfb3   : > { %v6306_v36 = vpop.f32.mrb[226].mxu1  ;;  %v8610_v53 = vld [vmem:[%s11908_s11 + $0x40] sm:$0xff]  }
 0xfb4   : > { %v6309_v1 = vmax.f32 %v6304_v23, 0.0  ;;  %v8305_v26 = vpop.f32.mrb[227].mxu1 }
 0xfb5   : > { %v8612_v26 = vld [vmem:[%s11908_s11 + $0x50] sm:$0xff]  }
 0xfb6   : > { %v6310_v61 = vpack.c.bf16 %v6309_v1, %v6309_v1  ;;  %v8611_v1 = vld [vmem:[%s11908_s11 + $0x48] sm:$0xff]  }
 0xfb8   : > { %8315 = vmatmul.mubr.msk.bf16.vlgmr.msra.gmra.mrb[228].mxu1 %vm6343_vm0, %v6310_v61  ;;  %v8613_v61 = vld [vmem:[%s11908_s11 + $0x58] sm:$0xff]  }
 0xfb9   : > { %8322 = vmatprep.mubr.msk.bf16.mxu1 %vm8679_vm13, %v11939_v20  ;;  %8319 = vmatpush3.bf16.msra.mxu1 %v8602_v27 }
 0xfba   : > { %8320 = vmatprep.subr.bf16.mxu1 %v11939_v20 }
 0xfbd   : > { %8321 = vmatpush3.bf16.msra.mxu1 %v8603_v3 }
 0xfbe   : > { %8326 = vmatprep.subr.bf16.mxu1 %v11939_v20 }
0x108b   : > { %v6381_v40 = vpop.f32.mrb[228].mxu1 }
0x108c   : > { %v6387_v63 = vadd.f32 %v6381_v40, %v6225_v43  ;;  %v8316_v58 = vpop.f32.mrb[229].mxu1  ;;  %v7615_v40 = vld [vmem:[%s11907_s10 + $0x2] ss:$0 sm:$0xff] }
0x108d   : > { %v6384_v15 = vpop.f32.mrb[230].mxu1 }
0x108e   : > { %v6395_v4 = vadd.f32 %v7585_v24, %v6387_v63  ;;  %v8317_v50 = vpop.f32.mrb[231].mxu1 }
0x1090   : > { %v6396_v17 = vsel %vm6226_vm15, %v6395_v4, 0.0  ;;  %v6400_v21 = vmul.f32 %v6395_v4, %v6395_v4 }
0x1091   : > { %6397 = vadd.xlane.f32.xlu0 %v6396_v17 }
0x1092   : > { %v6401_v35 = vsel %vm6226_vm15, %v6400_v21, 0.0 }
0x1093   : > { %6402 = vadd.xlane.f32.xlu1 %v6401_v35  ;;  %v7633_v35 = vld [vmem:[%s11909_s12 + $0x2] ss:$0 sm:$0xff] }
0x111e   : > { %v6398_v22 = vpop.xlane.xlu0 %6397 }
0x111f   : > { %v6399_v45 = vmul.f32 0.03125, %v6398_v22 }
0x1120   : > { %v6403_v0 = vpop.xlane.xlu1 %6402 }
0x1121   : > { %v6405_v13 = vmul.f32 %v6399_v45, %v6399_v45  ;;  %v6404_v32 = vmul.f32 0.03125, %v6403_v0  ;;  %v6407_v62 = vsub.f32 %v6395_v4, %v6399_v45 }
0x1123   : > { %v6406_v37 = vsub.f32 %v6404_v32, %v6405_v13 }
0x1125   : > { %v6408_v52 = vadd.f32 1e-05, %v6406_v37 }
0x1127   : > { %8632 = vrsqrt.f32 %v6408_v52  ;;  %v8614_v52 = vld [vmem:[%s11906_s9 + $0x30] sm:$0xff]  }
0x1131   : > { %v8633_v31 = vpop.eup %8632 }
0x1132   : > { %v6410_v55 = vmul.f32 %v8633_v31, %v6407_v62  ;;  %v8615_v62 = vld [vmem:[%s11906_s9 + $0x38] sm:$0xff]   ;;  %v8616_v31 = vld [vmem:[%s11908_s11 + $0x60] sm:$0xff]  }
0x1133   : > { %8367 = vmatpush3.bf16.msra.mxu0 %v8616_v31 }
0x1134   : > { %v6411_v34 = vpack.c.bf16 %v6410_v55, %v6410_v55  ;;  %v8617_v55 = vld [vmem:[%s11908_s11 + $0x68] sm:$0xff]   ;;  %8368 = vmatprep.subr.bf16.mxu0 %v11939_v20 }
0x1136   : > { %8323 = vmatmul.mubr.msk.bf16.vlgmr.msra.gmra.mrb[232].mxu1 %vm1896_vm4, %v6411_v34 }
0x1137   : > { %8327 = vmatpush3.bf16.msra.mxu1 %v8604_v49  ;;  %8334 = vmatprep.mubr.msk.bf16.mxu1 %vm8679_vm13, %v11939_v20 }
0x1138   : > { %8328 = vmatprep.subr.bf16.mxu1 %v11939_v20  ;;  %8369 = vmatpush3.bf16.msra.mxu0 %v8617_v55 }
0x1139   : > { %8370 = vmatprep.subr.bf16.mxu0 %v11939_v20 }
0x113b   : > { %8329 = vmatpush3.bf16.msra.mxu1 %v8605_v9 }
0x113c   : > { %8330 = vmatprep.subr.bf16.mxu1 %v11939_v20 }
0x113f   : > { %8331 = vmatpush3.bf16.msra.mxu1 %v8606_v25 }
0x1140   : > { %8332 = vmatprep.subr.bf16.mxu1 %v11939_v20 }
0x1143   : > { %8333 = vmatpush3.bf16.msra.mxu1 %v8607_v47 }
0x1144   : > { %8338 = vmatprep.subr.bf16.mxu1 %v11939_v20 }
0x1209   : > { %v6474_v41 = vpop.f32.mrb[232].mxu1 }
0x120a   : > { %v6475_v19 = vadd.f32 %v7591_v6, %v6474_v41  ;;  %v8324_v48 = vpop.f32.mrb[233].mxu1 }
0x120b   : > { %v6477_v10 = vpop.f32.mrb[234].mxu1 }
0x120c   : > { %v6480_v7 = vmax.f32 %v6475_v19, 0.0  ;;  %v8325_v43 = vpop.f32.mrb[235].mxu1 }
0x120d   : > { %v8618_v43 = vld [vmem:[%s11908_s11 + $0x70] sm:$0xff]  }
0x120e   : > { %v6481_v51 = vpack.c.bf16 %v6480_v7, %v6480_v7  ;;  %8371 = vmatpush3.bf16.msra.mxu0 %v8618_v43 }
0x120f   : > { %8372 = vmatprep.subr.bf16.mxu0 %v11939_v20 }
0x1210   : > { %8335 = vmatmul.mubr.msk.bf16.vlgmr.msra.gmra.mrb[236].mxu1 %vm6343_vm0, %v6481_v51  ;;  %v8619_v51 = vld [vmem:[%s11908_s11 + $0x78] sm:$0xff]  }
0x1211   : > { %8342 = vmatprep.mubr.msk.bf16.mxu1 %vm8679_vm13, %v11939_v20  ;;  %8339 = vmatpush3.bf16.msra.mxu1 %v8608_v30 }
0x1212   : > { %8340 = vmatprep.subr.bf16.mxu1 %v11939_v20  ;;  %8373 = vmatpush3.bf16.msra.mxu0 %v8619_v51 }
0x1215   : > { %8341 = vmatpush3.bf16.msra.mxu1 %v8609_v38  ;;  %v7657_v38 = vld [vmem:[%s11909_s12 + $0x3] ss:$0 sm:$0xff] }
0x1216   : > { %8346 = vmatprep.subr.bf16.mxu1 %v11939_v20 }
0x12e3   : > { %v6552_v46 = vpop.f32.mrb[236].mxu1 }
0x12e4   : > { %v6558_v54 = vadd.f32 %v6552_v46, %v6395_v4  ;;  %v8336_v14 = vpop.f32.mrb[237].mxu1  ;;  %v7639_v46 = vld [vmem:[%s11907_s10 + $0x3] ss:$0 sm:$0xff] }
0x12e5   : > { %v6555_v33 = vpop.f32.mrb[238].mxu1 }
0x12e6   : > { %v6567_v11 = vadd.f32 %v7609_v57, %v6558_v54  ;;  %v8337_v44 = vpop.f32.mrb[239].mxu1 }
0x12e8   : > { %v6568_v39 = vsel %vm6226_vm15, %v6567_v11, 0.0  ;;  %v6572_v8 = vmul.f32 %v6567_v11, %v6567_v11 }
0x12e9   : > { %6569 = vadd.xlane.f32.xlu0 %v6568_v39 }
0x12ea   : > { %v6573_v12 = vsel %vm6226_vm15, %v6572_v8, 0.0  ;;  %v8620_v8 = vld [vmem:[%s11910_s13] sm:$0xff]  }
0x12eb   : > { %6574 = vadd.xlane.f32.xlu1 %v6573_v12  ;;  %v8621_v12 = vld [vmem:[%s11910_s13 + $0x8] sm:$0xff]  }
0x1376   : > { %v6570_v42 = vpop.xlane.xlu0 %6569 }
0x1377   : > { %v6571_v60 = vmul.f32 0.03125, %v6570_v42 }
0x1378   : > { %v6575_v5 = vpop.xlane.xlu1 %6574 }
0x1379   : > { %v6577_v56 = vmul.f32 %v6571_v60, %v6571_v60  ;;  %v6576_v28 = vmul.f32 0.03125, %v6575_v5  ;;  %v6579_v29 = vsub.f32 %v6567_v11, %v6571_v60 }
0x137b   : > { %v6578_v2 = vsub.f32 %v6576_v28, %v6577_v56 }
0x137d   : > { %v6580_v16 = vadd.f32 1e-05, %v6578_v2 }
0x137f   : > { %8634 = vrsqrt.f32 %v6580_v16  ;;  %v6982_v16 = vlaneseq }
0x1389   : > { %v8635_v59 = vpop.eup %8634 }
0x138a   : > { %v6582_v23 = vmul.f32 %v8635_v59, %v6579_v29  ;;  %v6979_v29 = vld [vmem:[%s11912_s15] sm:$0x1] }
0x138b   : > { %vm6980_vm1 = vcmp.gt.f32.partialorder %v6979_v29, 0.5 }
0x138c   : > { %v6583_v36 = vpack.c.bf16 %v6582_v23, %v6582_v23  ;;  %v6981_v23 = vsel %vm6980_vm1, 1, %v11940_v18 }
0x138e   : > { %8343 = vmatmul.mubr.msk.bf16.vlgmr.msra.gmra.mrb[240].mxu1 %vm1896_vm4, %v6583_v36  ;;  %v7658_v36 = vld [vmem:[%s11911_s14] ss:$0 sm:$0xff] }
0x138f   : > { %8347 = vmatpush3.bf16.msra.mxu1 %v8610_v53  ;;  %8354 = vmatprep.mubr.msk.bf16.mxu1 %vm8679_vm13, %v11939_v20 }
0x1390   : > { %8348 = vmatprep.subr.bf16.mxu1 %v11939_v20 }
0x1393   : > { %8349 = vmatpush3.bf16.msra.mxu1 %v8611_v1 }
0x1394   : > { %8350 = vmatprep.subr.bf16.mxu1 %v11939_v20 }
0x1397   : > { %8351 = vmatpush3.bf16.msra.mxu1 %v8612_v26 }
0x1398   : > { %8352 = vmatprep.subr.bf16.mxu1 %v11939_v20 }
0x139b   : > { %8353 = vmatpush3.bf16.msra.mxu1 %v8613_v61 }
0x139c   : > { %8358 = vmatprep.subr.bf16.mxu1 %v11939_v20 }
0x1461   : > { %v6646_v24 = vpop.f32.mrb[240].mxu1 }
0x1462   : > { %v6647_v63 = vadd.f32 %v7615_v40, %v6646_v24  ;;  %v8344_v58 = vpop.f32.mrb[241].mxu1 }
0x1463   : > { %v6649_v15 = vpop.f32.mrb[242].mxu1 }
0x1464   : > { %v6652_v4 = vmax.f32 %v6647_v63, 0.0  ;;  %v8345_v50 = vpop.f32.mrb[243].mxu1 }
0x1466   : > { %v6653_v17 = vpack.c.bf16 %v6652_v4, %v6652_v4 }
0x1468   : > { %8355 = vmatmul.mubr.msk.bf16.vlgmr.msra.gmra.mrb[244].mxu1 %vm6343_vm0, %v6653_v17 }
0x1469   : > { %8362 = vmatprep.mubr.msk.bf16.mxu1 %vm8679_vm13, %v11939_v20  ;;  %8359 = vmatpush3.bf16.msra.mxu1 %v8614_v52 }
0x146a   : > { %8360 = vmatprep.subr.bf16.mxu1 %v11939_v20 }
0x146d   : > { %8361 = vmatpush3.bf16.msra.mxu1 %v8615_v62 }
0x146e   : > { %8378 = vmatprep.subr.bf16.mxu1 %v11939_v20 }
0x153b   : > { %v6724_v21 = vpop.f32.mrb[244].mxu1 }
0x153c   : > { %v6730_v27 = vadd.f32 %v6724_v21, %v6567_v11  ;;  %v8356_v3 = vpop.f32.mrb[245].mxu1 }
0x153d   : > { %v6727_v22 = vpop.f32.mrb[246].mxu1 }
0x153e   : > { %v6739_v45 = vadd.f32 %v7633_v35, %v6730_v27  ;;  %v8357_v0 = vpop.f32.mrb[247].mxu1 }
0x1540   : > { %v6740_v13 = vsel %vm6226_vm15, %v6739_v45, 0.0  ;;  %v6744_v32 = vmul.f32 %v6739_v45, %v6739_v45 }
0x1541   : > { %6741 = vadd.xlane.f32.xlu0 %v6740_v13 }
0x1542   : > { %v6745_v37 = vsel %vm6226_vm15, %v6744_v32, 0.0 }
0x1543   : > { %6746 = vadd.xlane.f32.xlu1 %v6745_v37 }
0x15ce   : > { %v6742_v49 = vpop.xlane.xlu0 %6741 }
0x15cf   : > { %v6743_v34 = vmul.f32 0.03125, %v6742_v49 }
0x15d0   : > { %v6747_v9 = vpop.xlane.xlu1 %6746 }
0x15d1   : > { %v6749_v25 = vmul.f32 %v6743_v34, %v6743_v34  ;;  %v6748_v47 = vmul.f32 0.03125, %v6747_v9  ;;  %v6751_v19 = vsub.f32 %v6739_v45, %v6743_v34 }
0x15d3   : > { %v6750_v6 = vsub.f32 %v6748_v47, %v6749_v25 }
0x15d5   : > { %v6752_v41 = vadd.f32 1e-05, %v6750_v6 }
0x15d7   : > { %8636 = vrsqrt.f32 %v6752_v41 }
0x15e1   : > { %v8637_v48 = vpop.eup %8636 }
0x15e2   : > { %v6754_v10 = vmul.f32 %v8637_v48, %v6751_v19 }
0x15e4   : > { %v6755_v7 = vpack.c.bf16 %v6754_v10, %v6754_v10 }
0x15e6   : > { %8363 = vmatmul.mubr.msk.bf16.vlgmr.msra.gmra.mrb[248].mxu1 %vm1896_vm4, %v6755_v7 }
0x15e7   : > { %8382 = vmatprep.mubr.msk.bf16.mxu1 %vm8679_vm13, %v11939_v20  ;;  %8379 = vmatpush3.bf16.msra.mxu1 %v8620_v8 }
0x15e8   : > { %8380 = vmatprep.subr.bf16.mxu1 %v11939_v20  ;;  %v6983_v20 = vshrl.u32 %v6982_v16, 7 }
0x15ea   : > { %v6984_v59 = vsub.s32 0, %v6983_v20 }
0x15eb   : > { %8381 = vmatpush3.bf16.msra.mxu1 %v8621_v12 }
0x15ec   : > { %v6985_v53 = vrot.slane %v6981_v23, %v6984_v59 }
0x15ee   : > { %vm6986_vm2 = vcmp.eq.s32.totalorder %v6985_v53, 1 }
0x16b9   : > { %v6818_v57 = vpop.f32.mrb[248].mxu1 }
0x16ba   : > { %v6819_v54 = vadd.f32 %v7639_v46, %v6818_v57  ;;  %v8364_v14 = vpop.f32.mrb[249].mxu1 }
0x16bb   : > { %v6821_v33 = vpop.f32.mrb[250].mxu1 }
0x16bc   : > { %v6824_v11 = vmax.f32 %v6819_v54, 0.0  ;;  %v8365_v44 = vpop.f32.mrb[251].mxu1 }
0x16be   : > { %v6825_v39 = vpack.c.bf16 %v6824_v11, %v6824_v11 }
0x16c0   : > { %8375 = vmatmul.mubr.msk.bf16.vlgmr.msra.gmra.mrb[8].mxu0 %vm6343_vm0, %v6825_v39 }
0x1793   : > { %v6896_v30 = vpop.f32.mrb[8].mxu0 }
0x1794   : > { %v6902_v42 = vadd.f32 %v6896_v30, %v6739_v45  ;;  %v8376_v60 = vpop.f32.mrb[9].mxu0 }
0x1795   : > { %v6899_v5 = vpop.f32.mrb[10].mxu0 }
0x1796   : > { %v6911_v56 = vadd.f32 %v7657_v38, %v6902_v42  ;;  %v8377_v28 = vpop.f32.mrb[11].mxu0 }
0x1798   : > { %v6912_v2 = vpack.c.bf16 %v6911_v56, %v6911_v56 }
0x179a   : > { %8383 = vmatmul.mubr.msk.bf16.vlgmr.msra.gmra.mrb[252].mxu1 %vm1896_vm4, %v6912_v2 }
0x186d   : > { %v6973_v1 = vpop.f32.mrb[252].mxu1 }
0x186e   : > { %v6974_v26 = vadd.f32 %v7658_v36, %v6973_v1  ;;  %v8384_v61 = vpop.f32.mrb[253].mxu1 }
0x186f   : > { %v6976_v40 = vpop.f32.mrb[254].mxu1 }
0x1870   : > { %v6987_v24 = vsel %vm6986_vm2, -inf, %v6974_v26  ;;  %v8385_v63 = vpop.f32.mrb[255].mxu1 }
0x1871   : > { %v6989_v58 = vsel %vm6988_vm3, %v6987_v24, -inf }
0x1872   : > { %6990 = vmax.xlane.f32.xlu0 %v6989_v58 }
0x18ff   : > { %v6991_v15 = vpop.xlane.xlu0 %6990 }
0x1900   : > { %v6992_v4 = vsub.f32 %v6987_v24, %v6991_v15 }
0x1902   : > { %v6993_v18 = vmul.f32 1.442695, %v6992_v4 }
0x1904   : > { %8638 = vpow2.f32 %v6993_v18 }
0x190e   : > { %v8639_v50 = vpop.eup %8638 }
0x190f   : > { %v6995_v17 = vsel %vm6988_vm3, %v8639_v50, 0.0 }
0x1910   : > { %6996 = vadd.xlane.f32.xlu1 %v6995_v17 }
0x199d   : > { %v6997_v21 = vpop.xlane.xlu1 %6996 }
0x199e   : > { %8640 = vlog2.f32 %v6997_v21 }
0x19a8   : > { %v8641_v35 = vpop.eup %8640 }
0x19a9   : > { %v6999_v27 = vmul.f32 0.6931472, %v8641_v35 }
0x19ab   : > { %v7000_v3 = vsub.f32 %v6992_v4, %v6999_v27 }
0x19ad   : > { %7001 = vst.msk [vmem:[%s519_s18] sm:$0x7] %vm6988_vm3, %v7000_v3 }
0x19ae PF: > { %s26_s21 = sadd.s32 1, %s8673_s21  }
0x19af   : > { %p23_p4 = scmp.ge.s32.totalorder %s26_s21, 4  }
0x19b1   :  { %25 = sbr.rel (!%p23_p4) target bundleno = 2 (0x2), region = 138 }

</bundles_post_ra>
